<compile_context>
chip_gen: v6e
topology: v6e:2x2x1
jax: 0.10.0
libtpu: 0.0.40
codegen_flags: <defaults>
</compile_context>

<pallas_src>
import functools
import math

import jax
import jax.numpy as jnp
from jax.experimental import pallas as pl
from jax.experimental.pallas import tpu as pltpu


def _round_up(x, m):
    return (x + m - 1) // m * m


def _k_tile(Kp):
    # largest multiple-of-128 divisor of Kp that is <= 512 (always exists: 128 | Kp)
    c = min(512, Kp)
    while Kp % c != 0:
        c -= 128
    return c


def _n_tiles(N):
    Np = _round_up(N, 128)
    tn = Np if Np <= 256 else 256
    Np = _round_up(Np, tn)
    return Np, tn


def _m_tiles(M):
    Mp = _round_up(M, 8)
    tm = Mp if Mp <= 256 else 256
    Mp = _round_up(Mp, tm)
    return Mp, tm


# ----------------------------------------------------------------------------
# Pallas kernel: tiled matmul + per-column affine (BN / bias) (+ residual) (+ ReLU)
#   out = act((A @ W) * scale + shift [+ residual])
# A/W are bf16 (MXU), accumulation and epilogue are f32, one store per output tile.
# ----------------------------------------------------------------------------
def _mm_kernel(relu, has_res, a_ref, w_ref, s_ref, sh_ref, *rest):
    if has_res:
        res_ref, o_ref, acc_ref = rest
    else:
        o_ref, acc_ref = rest

    k = pl.program_id(2)

    @pl.when(k == 0)
    def _init():
        acc_ref[...] = jnp.zeros_like(acc_ref)

    acc_ref[...] += jnp.dot(a_ref[...], w_ref[...], preferred_element_type=jnp.float32)

    @pl.when(k == pl.num_programs(2) - 1)
    def _epilogue():
        out = acc_ref[...] * s_ref[...] + sh_ref[...]
        if has_res:
            out = out + res_ref[...].astype(jnp.float32)
        if relu:
            out = jnp.maximum(out, 0.0)
        o_ref[...] = out.astype(o_ref.dtype)


def matmul_affine(a, lin, residual=None, relu=False, out_dtype=jnp.bfloat16):
    """out = act((a @ W) * scale + shift [+ residual]) with pre-padded bf16 W in `lin`."""
    M = a.shape[0]
    K, N = lin["K"], lin["N"]
    w_p, sc_p, sh_p = lin["w"], lin["scale"], lin["shift"]
    Kp, Np = w_p.shape
    tk, tn = lin["tk"], lin["tn"]
    Mp, tm = _m_tiles(M)

    a = a.astype(jnp.bfloat16)
    if (Mp, Kp) != (M, K):
        a = jnp.pad(a, ((0, Mp - M), (0, Kp - K)))

    in_specs = [
        pl.BlockSpec((tm, tk), lambda i, j, k: (i, k)),
        pl.BlockSpec((tk, tn), lambda i, j, k: (k, j)),
        pl.BlockSpec((1, tn), lambda i, j, k: (0, j)),
        pl.BlockSpec((1, tn), lambda i, j, k: (0, j)),
    ]
    args = [a, w_p, sc_p, sh_p]
    has_res = residual is not None
    res_bytes = 0
    if has_res:
        r = residual.astype(jnp.bfloat16)
        if r.shape != (Mp, Np):
            r = jnp.pad(r, ((0, Mp - r.shape[0]), (0, Np - r.shape[1])))
        in_specs.append(pl.BlockSpec((tm, tn), lambda i, j, k: (i, j)))
        args.append(r)
        res_bytes = 2 * Mp * Np

    grid = (Mp // tm, Np // tn, Kp // tk)
    bytes_accessed = 2 * Mp * Kp + 2 * Kp * Np + res_bytes + 2 * Mp * Np + 8 * Np

    out = pl.pallas_call(
        functools.partial(_mm_kernel, relu, has_res),
        out_shape=jax.ShapeDtypeStruct((Mp, Np), out_dtype),
        grid=grid,
        in_specs=in_specs,
        out_specs=pl.BlockSpec((tm, tn), lambda i, j, k: (i, j)),
        scratch_shapes=[pltpu.VMEM((tm, tn), jnp.float32)],
        compiler_params=pltpu.CompilerParams(
            dimension_semantics=("parallel", "parallel", "arbitrary")),
        cost_estimate=pl.CostEstimate(
            flops=2 * Mp * Np * Kp, transcendentals=0,
            bytes_accessed=int(bytes_accessed)),
    )(*args)
    return out[:M, :N]


# ----------------------------------------------------------------------------
# Pallas kernel: fused global-average-pool + projection head
#   feats = pool @ x ; h = relu((feats @ W1)*s1 + sh1) ; z = h @ W2 + b2
# Everything is tiny (<= a few MB) so a single VMEM-resident block is used.
# ----------------------------------------------------------------------------
def _head_kernel(pool_ref, x_ref, w1_ref, s1_ref, sh1_ref, w2_ref, b2_ref, o_ref):
    feats = jnp.dot(pool_ref[...], x_ref[...].astype(jnp.float32),
                    preferred_element_type=jnp.float32)                    # (Bp, 512) GAP
    h = jnp.dot(feats.astype(jnp.bfloat16), w1_ref[...],
                preferred_element_type=jnp.float32)
    h = jnp.maximum(h * s1_ref[...] + sh1_ref[...], 0.0)                   # BN1d + ReLU
    z = jnp.dot(h.astype(jnp.bfloat16), w2_ref[...],
                preferred_element_type=jnp.float32) + b2_ref[...]
    o_ref[...] = z


def projection_head(x_nhwc, head):
    B, Hf, Wf, C = x_nhwc.shape  # C == 512
    HW = Hf * Wf
    M = B * HW
    Mp = _round_up(M, 8)
    Bp = _round_up(B, 8)

    x_flat = x_nhwc.reshape(M, C).astype(jnp.bfloat16)
    if Mp != M:
        x_flat = jnp.pad(x_flat, ((0, Mp - M), (0, 0)))

    # averaging matrix implementing the global average pool as a tiny matmul
    pool = jnp.zeros((Bp, Mp), jnp.float32)
    rows = jnp.repeat(jnp.arange(B), HW)
    cols = jnp.arange(M)
    pool = pool.at[rows, cols].set(1.0 / HW)

    w1, s1, sh1, w2, b2 = head["w1"], head["s1"], head["sh1"], head["w2"], head["b2"]
    flops = 2 * (Bp * Mp * C + Bp * C * C + Bp * C * 128)
    bytes_accessed = 4 * Bp * Mp + 2 * Mp * C + 2 * C * C + 8 * C + 2 * C * 128 + 4 * 128 + 4 * Bp * 128

    out = pl.pallas_call(
        _head_kernel,
        out_shape=jax.ShapeDtypeStruct((Bp, 128), jnp.float32),
        grid=(1,),
        in_specs=[
            pl.BlockSpec((Bp, Mp), lambda i: (0, 0)),
            pl.BlockSpec((Mp, C), lambda i: (0, 0)),
            pl.BlockSpec((C, C), lambda i: (0, 0)),
            pl.BlockSpec((1, C), lambda i: (0, 0)),
            pl.BlockSpec((1, C), lambda i: (0, 0)),
            pl.BlockSpec((C, 128), lambda i: (0, 0)),
            pl.BlockSpec((1, 128), lambda i: (0, 0)),
        ],
        out_specs=pl.BlockSpec((Bp, 128), lambda i: (0, 0)),
        compiler_params=pltpu.CompilerParams(dimension_semantics=("arbitrary",)),
        cost_estimate=pl.CostEstimate(flops=int(flops), transcendentals=0,
                                      bytes_accessed=int(bytes_accessed)),
    )(pool, x_flat, w1, s1, sh1, w2, b2)
    return out[:B]


# ----------------------------------------------------------------------------
# Conv (as im2col + fused kernel) and ResNet-18 building blocks
# ----------------------------------------------------------------------------
def im2col(x, kh, kw, stride, pad):
    """x: NHWC (bf16) -> (B*Ho*Wo, kh*kw*C) patch matrix (flatten order matches HWIO weights)."""
    # TODO(synk): patch matrix is still materialized (kh*kw x HBM amplification); folding the
    # kh*kw window loop into the kernel's K grid axis would remove it for large images.
    B, H, W, C = x.shape
    if pad:
        x = jnp.pad(x, ((0, 0), (pad, pad), (pad, pad), (0, 0)))
    Ho = (H + 2 * pad - kh) // stride + 1
    Wo = (W + 2 * pad - kw) // stride + 1
    patches = []
    for i in range(kh):
        for j in range(kw):
            patches.append(x[:, i:i + stride * Ho:stride, j:j + stride * Wo:stride, :])
    cols = jnp.stack(patches, axis=3)  # (B, Ho, Wo, kh*kw, C)
    return cols.reshape(B * Ho * Wo, kh * kw * C), Ho, Wo


def conv_bn(x, lin, stride, pad, relu, residual=None):
    """conv2d (no bias) + eval-mode BatchNorm (+ residual) (+ ReLU), inside the Pallas kernel."""
    B = x.shape[0]
    kh, kw = lin["kh"], lin["kw"]
    cols, Ho, Wo = im2col(x, kh, kw, stride, pad)
    cout = lin["N"]
    res = None if residual is None else residual.reshape(B * Ho * Wo, cout)
    out = matmul_affine(cols, lin, residual=res, relu=relu)
    return out.reshape(B, Ho, Wo, cout)


def basic_block(x, p):
    identity = x
    out = conv_bn(x, p["conv1"], p["stride"], 1, relu=True)
    if "down" in p:
        identity = conv_bn(x, p["down"], p["stride"], 0, relu=False)
    # relu(bn2(conv2(out)) + identity) fused in one kernel call
    out = conv_bn(out, p["conv2"], 1, 1, relu=True, residual=identity)
    return out


# ----------------------------------------------------------------------------
# Deterministic parameter construction (synthetic, no checkpoint load)
# ----------------------------------------------------------------------------
class KeyGen:
    def __init__(self, key):
        self.key = key

    def next(self):
        self.key, k = jax.random.split(self.key)
        return k


def make_conv(kg, k, cin, cout):
    std = math.sqrt(2.0 / (k * k * cin))
    return jax.random.normal(kg.next(), (k, k, cin, cout), jnp.float32) * std


def make_bn(kg, c):
    gamma = 1.0 + 0.1 * jax.random.normal(kg.next(), (c,), jnp.float32)
    beta = 0.1 * jax.random.normal(kg.next(), (c,), jnp.float32)
    mean = 0.1 * jax.random.normal(kg.next(), (c,), jnp.float32)
    var = 1.0 + 0.1 * jax.random.uniform(kg.next(), (c,), jnp.float32)
    return (gamma, beta, mean, var)


def make_block(kg, cin, cout, stride):
    p = {
        "conv1": make_conv(kg, 3, cin, cout), "bn1": make_bn(kg, cout),
        "conv2": make_conv(kg, 3, cout, cout), "bn2": make_bn(kg, cout),
        "stride": stride,
    }
    if stride != 1 or cin != cout:
        p["down"] = make_conv(kg, 1, cin, cout)
        p["down_bn"] = make_bn(kg, cout)
    return p


def make_params(seed=0):
    kg = KeyGen(jax.random.PRNGKey(seed))
    params = {
        "conv1": make_conv(kg, 7, 3, 64), "bn1": make_bn(kg, 64),
        "layer1": [make_block(kg, 64, 64, 1), make_block(kg, 64, 64, 1)],
        "layer2": [make_block(kg, 64, 128, 2), make_block(kg, 128, 128, 1)],
        "layer3": [make_block(kg, 128, 256, 2), make_block(kg, 256, 256, 1)],
        "layer4": [make_block(kg, 256, 512, 2), make_block(kg, 512, 512, 1)],
        # SimCLRProjectionHead(512, 512, 128):
        #   Linear(512, 512, bias=False) -> BatchNorm1d(512) -> ReLU -> Linear(512, 128)
        "proj_w1": jax.random.normal(kg.next(), (512, 512), jnp.float32) * math.sqrt(2.0 / 512),
        "proj_bn1": make_bn(kg, 512),
        "proj_w2": jax.random.normal(kg.next(), (512, 128), jnp.float32) * math.sqrt(1.0 / 512),
        "proj_b2": 0.01 * jax.random.normal(kg.next(), (128,), jnp.float32),
    }
    return params


# ----------------------------------------------------------------------------
# One-time parameter preparation: fold BN, reshape/pad/bf16-cast weights, pick K/N tiles
# ----------------------------------------------------------------------------
def prep_linear(w2d, scale, shift, kh=None, kw=None):
    K, N = w2d.shape
    Kp = _round_up(K, 128)
    tk = _k_tile(Kp)
    Np, tn = _n_tiles(N)
    w_p = jnp.zeros((Kp, Np), jnp.bfloat16).at[:K, :N].set(w2d.astype(jnp.bfloat16))
    sc = jnp.zeros((1, Np), jnp.float32).at[:, :N].set(scale.reshape(1, N).astype(jnp.float32))
    sh = jnp.zeros((1, Np), jnp.float32).at[:, :N].set(shift.reshape(1, N).astype(jnp.float32))
    d = {"w": w_p, "scale": sc, "shift": sh, "K": K, "N": N, "tk": tk, "tn": tn}
    if kh is not None:
        d["kh"], d["kw"] = kh, kw
    return d


def prep_conv(w_hwio, bn):
    kh, kw, cin, cout = w_hwio.shape
    gamma, beta, mean, var = bn
    scale = gamma / jnp.sqrt(var + 1e-5)
    shift = beta - mean * scale
    return prep_linear(w_hwio.reshape(kh * kw * cin, cout), scale, shift, kh, kw)


def prep_block(p):
    d = {"stride": p["stride"],
         "conv1": prep_conv(p["conv1"], p["bn1"]),
         "conv2": prep_conv(p["conv2"], p["bn2"])}
    if "down" in p:
        d["down"] = prep_conv(p["down"], p["down_bn"])
    return d


def prepare_params(params):
    prepped = {"conv1": prep_conv(params["conv1"], params["bn1"])}
    for layer in ("layer1", "layer2", "layer3", "layer4"):
        prepped[layer] = [prep_block(b) for b in params[layer]]
    g, b, m, v = params["proj_bn1"]
    s1 = g / jnp.sqrt(v + 1e-5)
    sh1 = b - m * s1
    prepped["head"] = {
        "w1": params["proj_w1"].astype(jnp.bfloat16),
        "s1": s1.reshape(1, 512).astype(jnp.float32),
        "sh1": sh1.reshape(1, 512).astype(jnp.float32),
        "w2": params["proj_w2"].astype(jnp.bfloat16),
        "b2": params["proj_b2"].reshape(1, 128).astype(jnp.float32),
    }
    return prepped


# ----------------------------------------------------------------------------
# SimCLR forward: features = backbone(x).flatten(1); z = projection_head(features)
# ----------------------------------------------------------------------------
def simclr_forward(params, x_nchw):
    x = jnp.transpose(x_nchw, (0, 2, 3, 1)).astype(jnp.bfloat16)  # NCHW -> NHWC, bf16 activations

    # stem: conv7x7/s2 + BN + ReLU (Pallas), then 3x3/s2 max-pool
    x = conv_bn(x, params["conv1"], 2, 3, relu=True)
    # TODO(synk): 3x3/s2 max-pool kept in plain JAX (window-reduction glue, minor vs convs)
    x = jax.lax.reduce_window(
        x, jnp.array(-jnp.inf, dtype=x.dtype), jax.lax.max,
        window_dimensions=(1, 3, 3, 1), window_strides=(1, 2, 2, 1),
        padding=((0, 0), (1, 1), (1, 1), (0, 0)))

    for layer in ("layer1", "layer2", "layer3", "layer4"):
        for blk in params[layer]:
            x = basic_block(x, blk)

    # backbone.fc (512->1000) bypassed; fused GAP + projection head in ONE Pallas kernel
    return projection_head(x, params["head"])


if __name__ == "__main__":
    params = make_params(0)
    prepped = prepare_params(params)   # one-time weight pad/cast + BN folding (hoisted)
    x = jax.random.normal(jax.random.PRNGKey(0), (2, 3, 32, 32), jnp.float32)

    fwd = jax.jit(lambda inp: simclr_forward(prepped, inp))
    z = jax.block_until_ready(fwd(x))

    assert z.shape == (2, 128), z.shape
    assert bool(jnp.all(jnp.isfinite(z)))
    print("KERNEL_OK")
</pallas_src>

<mosaic_0001>
module attributes {stable_mosaic.version = 11 : i64} {
  func.func @_mm_kernel(%arg0: i32, %arg1: i32, %arg2: i32, %arg3: memref<256x256xbf16, #tpu.memory_space<vmem>>, %arg4: memref<256x128xbf16, #tpu.memory_space<vmem>>, %arg5: memref<1x128xf32, #tpu.memory_space<vmem>>, %arg6: memref<1x128xf32, #tpu.memory_space<vmem>>, %arg7: memref<256x128xbf16, #tpu.memory_space<vmem>>, %arg8: memref<256x128xf32, #tpu.memory_space<vmem>>) attributes {dimension_semantics = [#tpu.dimension_semantics<parallel>, #tpu.dimension_semantics<parallel>, #tpu.dimension_semantics<arbitrary>], iteration_bounds = array<i64: 2, 1, 1>, scalar_prefetch = 0 : i64, scratch_operands = 1 : i64, tpu.core_type = #tpu.core_type<tc>, window_params = [{transform_indices = @transform_0, window_bounds = array<i64: 256, 256>}, {transform_indices = @transform_1, window_bounds = array<i64: 256, 128>}, {transform_indices = @transform_2, window_bounds = array<i64: 1, 128>}, {transform_indices = @transform_3, window_bounds = array<i64: 1, 128>}, {transform_indices = @transform_4, window_bounds = array<i64: 256, 128>}]} {
    %c0_i32 = arith.constant 0 : i32
    %0 = arith.cmpi eq, %arg2, %c0_i32 : i32
    %1 = arith.extui %0 : i1 to i32
    %c0_i32_0 = arith.constant 0 : i32
    %2 = arith.cmpi ne, %1, %c0_i32_0 : i32
    scf.if %2 {
      %cst_10 = arith.constant 0.000000e+00 : f32
      %12 = vector.broadcast %cst_10 : f32 to vector<256x128xf32>
      %c0_11 = arith.constant 0 : index
      %c0_12 = arith.constant 0 : index
      %13 = vector.load %arg8[%c0_11, %c0_12] : memref<256x128xf32, #tpu.memory_space<vmem>>, vector<256x128xf32>
      tpu.vector_store %arg8[%c0_11, %c0_12], %12 {strides = array<i32>} : memref<256x128xf32, #tpu.memory_space<vmem>>, vector<256x128xf32>,
    } else {
    }
    %c0 = arith.constant 0 : index
    %c0_1 = arith.constant 0 : index
    %3 = vector.load %arg8[%c0, %c0_1] : memref<256x128xf32, #tpu.memory_space<vmem>>, vector<256x128xf32>
    %c0_2 = arith.constant 0 : index
    %c0_3 = arith.constant 0 : index
    %4 = vector.load %arg3[%c0_2, %c0_3] : memref<256x256xbf16, #tpu.memory_space<vmem>>, vector<256x256xbf16>
    %c0_4 = arith.constant 0 : index
    %c0_5 = arith.constant 0 : index
    %5 = vector.load %arg4[%c0_4, %c0_5] : memref<256x128xbf16, #tpu.memory_space<vmem>>, vector<256x128xbf16>
    %cst = arith.constant dense<0.000000e+00> : vector<256x128xf32>
    %6 = tpu.matmul %4, %5, %cst {dimension_numbers = #tpu.dot_dimension_numbers<[1], [0], [0], [1], [0, 0, 1, 1], [], []>} : vector<256x256xbf16>, vector<256x128xbf16>, vector<256x128xf32> -> vector<256x128xf32>
    %7 = arith.addf %3, %6 : vector<256x128xf32>
    %c0_6 = arith.constant 0 : index
    %c0_7 = arith.constant 0 : index
    %8 = vector.load %arg8[%c0_6, %c0_7] : memref<256x128xf32, #tpu.memory_space<vmem>>, vector<256x128xf32>
    tpu.vector_store %arg8[%c0_6, %c0_7], %7 {strides = array<i32>} : memref<256x128xf32, #tpu.memory_space<vmem>>, vector<256x128xf32>,
    %c0_i32_8 = arith.constant 0 : i32
    %9 = arith.cmpi eq, %arg2, %c0_i32_8 : i32
    %10 = arith.extui %9 : i1 to i32
    %c0_i32_9 = arith.constant 0 : i32
    %11 = arith.cmpi ne, %10, %c0_i32_9 : i32
    scf.if %11 {
      %c0_10 = arith.constant 0 : index
      %c0_11 = arith.constant 0 : index
      %12 = vector.load %arg8[%c0_10, %c0_11] : memref<256x128xf32, #tpu.memory_space<vmem>>, vector<256x128xf32>
      %c0_12 = arith.constant 0 : index
      %c0_13 = arith.constant 0 : index
      %13 = vector.load %arg5[%c0_12, %c0_13] : memref<1x128xf32, #tpu.memory_space<vmem>>, vector<1x128xf32>
      %14 = vector.broadcast %13 : vector<1x128xf32> to vector<256x128xf32>
      %15 = arith.mulf %12, %14 : vector<256x128xf32>
      %c0_14 = arith.constant 0 : index
      %c0_15 = arith.constant 0 : index
      %16 = vector.load %arg6[%c0_14, %c0_15] : memref<1x128xf32, #tpu.memory_space<vmem>>, vector<1x128xf32>
      %17 = vector.broadcast %16 : vector<1x128xf32> to vector<256x128xf32>
      %18 = arith.addf %15, %17 : vector<256x128xf32>
      %cst_16 = arith.constant 0.000000e+00 : f32
      %19 = vector.broadcast %cst_16 : f32 to vector<256x128xf32>
      %20 = arith.maximumf %18, %19 : vector<256x128xf32>
      %21 = arith.truncf %20 : vector<256x128xf32> to vector<256x128xbf16>
      %c0_17 = arith.constant 0 : index
      %c0_18 = arith.constant 0 : index
      %22 = vector.load %arg7[%c0_17, %c0_18] : memref<256x128xbf16, #tpu.memory_space<vmem>>, vector<256x128xbf16>
      tpu.vector_store %arg7[%c0_17, %c0_18], %21 {strides = array<i32>} : memref<256x128xbf16, #tpu.memory_space<vmem>>, vector<256x128xbf16>,
    } else {
    }
    return
  }
  func.func @transform_0(%arg0: i32, %arg1: i32, %arg2: i32) -> (i32, i32) {
    %c0_i32 = arith.constant 0 : i32
    return %arg0, %arg2 : i32, i32
  }
  func.func @transform_1(%arg0: i32, %arg1: i32, %arg2: i32) -> (i32, i32) {
    %c0_i32 = arith.constant 0 : i32
    return %arg2, %arg1 : i32, i32
  }
  func.func @transform_2(%arg0: i32, %arg1: i32, %arg2: i32) -> (i32, i32) {
    %c0_i32 = arith.constant 0 : i32
    %c0_i32_0 = arith.constant 0 : i32
    return %c0_i32, %arg1 : i32, i32
  }
  func.func @transform_3(%arg0: i32, %arg1: i32, %arg2: i32) -> (i32, i32) {
    %c0_i32 = arith.constant 0 : i32
    %c0_i32_0 = arith.constant 0 : i32
    return %c0_i32, %arg1 : i32, i32
  }
  func.func @transform_4(%arg0: i32, %arg1: i32, %arg2: i32) -> (i32, i32) {
    %c0_i32 = arith.constant 0 : i32
    return %arg0, %arg1 : i32, i32
  }
}

module attributes {stable_mosaic.version = 11 : i64} {
  func.func @_mm_kernel(%arg0: i32, %arg1: i32, %arg2: i32, %arg3: memref<128x128xbf16, #tpu.memory_space<vmem>>, %arg4: memref<128x128xbf16, #tpu.memory_space<vmem>>, %arg5: memref<1x128xf32, #tpu.memory_space<vmem>>, %arg6: memref<1x128xf32, #tpu.memory_space<vmem>>, %arg7: memref<128x128xbf16, #tpu.memory_space<vmem>>, %arg8: memref<128x128xf32, #tpu.memory_space<vmem>>) attributes {dimension_semantics = [#tpu.dimension_semantics<parallel>, #tpu.dimension_semantics<parallel>, #tpu.dimension_semantics<arbitrary>], iteration_bounds = array<i64: 1, 1, 5>, scalar_prefetch = 0 : i64, scratch_operands = 1 : i64, tpu.core_type = #tpu.core_type<tc>, window_params = [{transform_indices = @transform_0, window_bounds = array<i64: 128, 128>}, {transform_indices = @transform_1, window_bounds = array<i64: 128, 128>}, {transform_indices = @transform_2, window_bounds = array<i64: 1, 128>}, {transform_indices = @transform_3, window_bounds = array<i64: 1, 128>}, {transform_indices = @transform_4, window_bounds = array<i64: 128, 128>}]} {
    %c0_i32 = arith.constant 0 : i32
    %0 = arith.cmpi eq, %arg2, %c0_i32 : i32
    %1 = arith.extui %0 : i1 to i32
    %c0_i32_0 = arith.constant 0 : i32
    %2 = arith.cmpi ne, %1, %c0_i32_0 : i32
    scf.if %2 {
      %cst_9 = arith.constant 0.000000e+00 : f32
      %12 = vector.broadcast %cst_9 : f32 to vector<128x128xf32>
      %c0_10 = arith.constant 0 : index
      %c0_11 = arith.constant 0 : index
      %13 = vector.load %arg8[%c0_10, %c0_11] : memref<128x128xf32, #tpu.memory_space<vmem>>, vector<128x128xf32>
      tpu.vector_store %arg8[%c0_10, %c0_11], %12 {strides = array<i32>} : memref<128x128xf32, #tpu.memory_space<vmem>>, vector<128x128xf32>,
    } else {
    }
    %c0 = arith.constant 0 : index
    %c0_1 = arith.constant 0 : index
    %3 = vector.load %arg8[%c0, %c0_1] : memref<128x128xf32, #tpu.memory_space<vmem>>, vector<128x128xf32>
    %c0_2 = arith.constant 0 : index
    %c0_3 = arith.constant 0 : index
    %4 = vector.load %arg3[%c0_2, %c0_3] : memref<128x128xbf16, #tpu.memory_space<vmem>>, vector<128x128xbf16>
    %c0_4 = arith.constant 0 : index
    %c0_5 = arith.constant 0 : index
    %5 = vector.load %arg4[%c0_4, %c0_5] : memref<128x128xbf16, #tpu.memory_space<vmem>>, vector<128x128xbf16>
    %cst = arith.constant dense<0.000000e+00> : vector<128x128xf32>
    %6 = tpu.matmul %4, %5, %cst {dimension_numbers = #tpu.dot_dimension_numbers<[1], [0], [0], [1], [0, 0, 1, 1], [], []>} : vector<128x128xbf16>, vector<128x128xbf16>, vector<128x128xf32> -> vector<128x128xf32>
    %7 = arith.addf %3, %6 : vector<128x128xf32>
    %c0_6 = arith.constant 0 : index
    %c0_7 = arith.constant 0 : index
    %8 = vector.load %arg8[%c0_6, %c0_7] : memref<128x128xf32, #tpu.memory_space<vmem>>, vector<128x128xf32>
    tpu.vector_store %arg8[%c0_6, %c0_7], %7 {strides = array<i32>} : memref<128x128xf32, #tpu.memory_space<vmem>>, vector<128x128xf32>,
    %c4_i32 = arith.constant 4 : i32
    %9 = arith.cmpi eq, %arg2, %c4_i32 : i32
    %10 = arith.extui %9 : i1 to i32
    %c0_i32_8 = arith.constant 0 : i32
    %11 = arith.cmpi ne, %10, %c0_i32_8 : i32
    scf.if %11 {
      %c0_9 = arith.constant 0 : index
      %c0_10 = arith.constant 0 : index
      %12 = vector.load %arg8[%c0_9, %c0_10] : memref<128x128xf32, #tpu.memory_space<vmem>>, vector<128x128xf32>
      %c0_11 = arith.constant 0 : index
      %c0_12 = arith.constant 0 : index
      %13 = vector.load %arg5[%c0_11, %c0_12] : memref<1x128xf32, #tpu.memory_space<vmem>>, vector<1x128xf32>
      %14 = vector.broadcast %13 : vector<1x128xf32> to vector<128x128xf32>
      %15 = arith.mulf %12, %14 : vector<128x128xf32>
      %c0_13 = arith.constant 0 : index
      %c0_14 = arith.constant 0 : index
      %16 = vector.load %arg6[%c0_13, %c0_14] : memref<1x128xf32, #tpu.memory_space<vmem>>, vector<1x128xf32>
      %17 = vector.broadcast %16 : vector<1x128xf32> to vector<128x128xf32>
      %18 = arith.addf %15, %17 : vector<128x128xf32>
      %cst_15 = arith.constant 0.000000e+00 : f32
      %19 = vector.broadcast %cst_15 : f32 to vector<128x128xf32>
      %20 = arith.maximumf %18, %19 : vector<128x128xf32>
      %21 = arith.truncf %20 : vector<128x128xf32> to vector<128x128xbf16>
      %c0_16 = arith.constant 0 : index
      %c0_17 = arith.constant 0 : index
      %22 = vector.load %arg7[%c0_16, %c0_17] : memref<128x128xbf16, #tpu.memory_space<vmem>>, vector<128x128xbf16>
      tpu.vector_store %arg7[%c0_16, %c0_17], %21 {strides = array<i32>} : memref<128x128xbf16, #tpu.memory_space<vmem>>, vector<128x128xbf16>,
    } else {
    }
    return
  }
  func.func @transform_0(%arg0: i32, %arg1: i32, %arg2: i32) -> (i32, i32) {
    %c0_i32 = arith.constant 0 : i32
    return %arg0, %arg2 : i32, i32
  }
  func.func @transform_1(%arg0: i32, %arg1: i32, %arg2: i32) -> (i32, i32) {
    %c0_i32 = arith.constant 0 : i32
    return %arg2, %arg1 : i32, i32
  }
  func.func @transform_2(%arg0: i32, %arg1: i32, %arg2: i32) -> (i32, i32) {
    %c0_i32 = arith.constant 0 : i32
    %c0_i32_0 = arith.constant 0 : i32
    return %c0_i32, %arg1 : i32, i32
  }
  func.func @transform_3(%arg0: i32, %arg1: i32, %arg2: i32) -> (i32, i32) {
    %c0_i32 = arith.constant 0 : i32
    %c0_i32_0 = arith.constant 0 : i32
    return %c0_i32, %arg1 : i32, i32
  }
  func.func @transform_4(%arg0: i32, %arg1: i32, %arg2: i32) -> (i32, i32) {
    %c0_i32 = arith.constant 0 : i32
    return %arg0, %arg1 : i32, i32
  }
}

module attributes {stable_mosaic.version = 11 : i64} {
  func.func @_mm_kernel(%arg0: i32, %arg1: i32, %arg2: i32, %arg3: memref<128x128xbf16, #tpu.memory_space<vmem>>, %arg4: memref<128x128xbf16, #tpu.memory_space<vmem>>, %arg5: memref<1x128xf32, #tpu.memory_space<vmem>>, %arg6: memref<1x128xf32, #tpu.memory_space<vmem>>, %arg7: memref<128x128xbf16, #tpu.memory_space<vmem>>, %arg8: memref<128x128xbf16, #tpu.memory_space<vmem>>, %arg9: memref<128x128xf32, #tpu.memory_space<vmem>>) attributes {dimension_semantics = [#tpu.dimension_semantics<parallel>, #tpu.dimension_semantics<parallel>, #tpu.dimension_semantics<arbitrary>], iteration_bounds = array<i64: 1, 1, 5>, scalar_prefetch = 0 : i64, scratch_operands = 1 : i64, tpu.core_type = #tpu.core_type<tc>, window_params = [{transform_indices = @transform_0, window_bounds = array<i64: 128, 128>}, {transform_indices = @transform_1, window_bounds = array<i64: 128, 128>}, {transform_indices = @transform_2, window_bounds = array<i64: 1, 128>}, {transform_indices = @transform_3, window_bounds = array<i64: 1, 128>}, {transform_indices = @transform_4, window_bounds = array<i64: 128, 128>}, {transform_indices = @transform_5, window_bounds = array<i64: 128, 128>}]} {
    %c0_i32 = arith.constant 0 : i32
    %0 = arith.cmpi eq, %arg2, %c0_i32 : i32
    %1 = arith.extui %0 : i1 to i32
    %c0_i32_0 = arith.constant 0 : i32
    %2 = arith.cmpi ne, %1, %c0_i32_0 : i32
    scf.if %2 {
      %cst_9 = arith.constant 0.000000e+00 : f32
      %12 = vector.broadcast %cst_9 : f32 to vector<128x128xf32>
      %c0_10 = arith.constant 0 : index
      %c0_11 = arith.constant 0 : index
      %13 = vector.load %arg9[%c0_10, %c0_11] : memref<128x128xf32, #tpu.memory_space<vmem>>, vector<128x128xf32>
      tpu.vector_store %arg9[%c0_10, %c0_11], %12 {strides = array<i32>} : memref<128x128xf32, #tpu.memory_space<vmem>>, vector<128x128xf32>,
    } else {
    }
    %c0 = arith.constant 0 : index
    %c0_1 = arith.constant 0 : index
    %3 = vector.load %arg9[%c0, %c0_1] : memref<128x128xf32, #tpu.memory_space<vmem>>, vector<128x128xf32>
    %c0_2 = arith.constant 0 : index
    %c0_3 = arith.constant 0 : index
    %4 = vector.load %arg3[%c0_2, %c0_3] : memref<128x128xbf16, #tpu.memory_space<vmem>>, vector<128x128xbf16>
    %c0_4 = arith.constant 0 : index
    %c0_5 = arith.constant 0 : index
    %5 = vector.load %arg4[%c0_4, %c0_5] : memref<128x128xbf16, #tpu.memory_space<vmem>>, vector<128x128xbf16>
    %cst = arith.constant dense<0.000000e+00> : vector<128x128xf32>
    %6 = tpu.matmul %4, %5, %cst {dimension_numbers = #tpu.dot_dimension_numbers<[1], [0], [0], [1], [0, 0, 1, 1], [], []>} : vector<128x128xbf16>, vector<128x128xbf16>, vector<128x128xf32> -> vector<128x128xf32>
    %7 = arith.addf %3, %6 : vector<128x128xf32>
    %c0_6 = arith.constant 0 : index
    %c0_7 = arith.constant 0 : index
    %8 = vector.load %arg9[%c0_6, %c0_7] : memref<128x128xf32, #tpu.memory_space<vmem>>, vector<128x128xf32>
    tpu.vector_store %arg9[%c0_6, %c0_7], %7 {strides = array<i32>} : memref<128x128xf32, #tpu.memory_space<vmem>>, vector<128x128xf32>,
    %c4_i32 = arith.constant 4 : i32
    %9 = arith.cmpi eq, %arg2, %c4_i32 : i32
    %10 = arith.extui %9 : i1 to i32
    %c0_i32_8 = arith.constant 0 : i32
    %11 = arith.cmpi ne, %10, %c0_i32_8 : i32
    scf.if %11 {
      %c0_9 = arith.constant 0 : index
      %c0_10 = arith.constant 0 : index
      %12 = vector.load %arg9[%c0_9, %c0_10] : memref<128x128xf32, #tpu.memory_space<vmem>>, vector<128x128xf32>
      %c0_11 = arith.constant 0 : index
      %c0_12 = arith.constant 0 : index
      %13 = vector.load %arg5[%c0_11, %c0_12] : memref<1x128xf32, #tpu.memory_space<vmem>>, vector<1x128xf32>
      %14 = vector.broadcast %13 : vector<1x128xf32> to vector<128x128xf32>
      %15 = arith.mulf %12, %14 : vector<128x128xf32>
      %c0_13 = arith.constant 0 : index
      %c0_14 = arith.constant 0 : index
      %16 = vector.load %arg6[%c0_13, %c0_14] : memref<1x128xf32, #tpu.memory_space<vmem>>, vector<1x128xf32>
      %17 = vector.broadcast %16 : vector<1x128xf32> to vector<128x128xf32>
      %18 = arith.addf %15, %17 : vector<128x128xf32>
      %c0_15 = arith.constant 0 : index
      %c0_16 = arith.constant 0 : index
      %19 = vector.load %arg7[%c0_15, %c0_16] : memref<128x128xbf16, #tpu.memory_space<vmem>>, vector<128x128xbf16>
      %20 = arith.extf %19 : vector<128x128xbf16> to vector<128x128xf32>
      %21 = arith.addf %18, %20 : vector<128x128xf32>
      %cst_17 = arith.constant 0.000000e+00 : f32
      %22 = vector.broadcast %cst_17 : f32 to vector<128x128xf32>
      %23 = arith.maximumf %21, %22 : vector<128x128xf32>
      %24 = arith.truncf %23 : vector<128x128xf32> to vector<128x128xbf16>
      %c0_18 = arith.constant 0 : index
      %c0_19 = arith.constant 0 : index
      %25 = vector.load %arg8[%c0_18, %c0_19] : memref<128x128xbf16, #tpu.memory_space<vmem>>, vector<128x128xbf16>
      tpu.vector_store %arg8[%c0_18, %c0_19], %24 {strides = array<i32>} : memref<128x128xbf16, #tpu.memory_space<vmem>>, vector<128x128xbf16>,
    } else {
    }
    return
  }
  func.func @transform_0(%arg0: i32, %arg1: i32, %arg2: i32) -> (i32, i32) {
    %c0_i32 = arith.constant 0 : i32
    return %arg0, %arg2 : i32, i32
  }
  func.func @transform_1(%arg0: i32, %arg1: i32, %arg2: i32) -> (i32, i32) {
    %c0_i32 = arith.constant 0 : i32
    return %arg2, %arg1 : i32, i32
  }
  func.func @transform_2(%arg0: i32, %arg1: i32, %arg2: i32) -> (i32, i32) {
    %c0_i32 = arith.constant 0 : i32
    %c0_i32_0 = arith.constant 0 : i32
    return %c0_i32, %arg1 : i32, i32
  }
  func.func @transform_3(%arg0: i32, %arg1: i32, %arg2: i32) -> (i32, i32) {
    %c0_i32 = arith.constant 0 : i32
    %c0_i32_0 = arith.constant 0 : i32
    return %c0_i32, %arg1 : i32, i32
  }
  func.func @transform_4(%arg0: i32, %arg1: i32, %arg2: i32) -> (i32, i32) {
    %c0_i32 = arith.constant 0 : i32
    return %arg0, %arg1 : i32, i32
  }
  func.func @transform_5(%arg0: i32, %arg1: i32, %arg2: i32) -> (i32, i32) {
    %c0_i32 = arith.constant 0 : i32
    return %arg0, %arg1 : i32, i32
  }
}

module attributes {stable_mosaic.version = 11 : i64} {
  func.func @_mm_kernel(%arg0: i32, %arg1: i32, %arg2: i32, %arg3: memref<32x128xbf16, #tpu.memory_space<vmem>>, %arg4: memref<128x128xbf16, #tpu.memory_space<vmem>>, %arg5: memref<1x128xf32, #tpu.memory_space<vmem>>, %arg6: memref<1x128xf32, #tpu.memory_space<vmem>>, %arg7: memref<32x128xbf16, #tpu.memory_space<vmem>>, %arg8: memref<32x128xf32, #tpu.memory_space<vmem>>) attributes {dimension_semantics = [#tpu.dimension_semantics<parallel>, #tpu.dimension_semantics<parallel>, #tpu.dimension_semantics<arbitrary>], iteration_bounds = array<i64: 1, 1, 5>, scalar_prefetch = 0 : i64, scratch_operands = 1 : i64, tpu.core_type = #tpu.core_type<tc>, window_params = [{transform_indices = @transform_0, window_bounds = array<i64: 32, 128>}, {transform_indices = @transform_1, window_bounds = array<i64: 128, 128>}, {transform_indices = @transform_2, window_bounds = array<i64: 1, 128>}, {transform_indices = @transform_3, window_bounds = array<i64: 1, 128>}, {transform_indices = @transform_4, window_bounds = array<i64: 32, 128>}]} {
    %c0_i32 = arith.constant 0 : i32
    %0 = arith.cmpi eq, %arg2, %c0_i32 : i32
    %1 = arith.extui %0 : i1 to i32
    %c0_i32_0 = arith.constant 0 : i32
    %2 = arith.cmpi ne, %1, %c0_i32_0 : i32
    scf.if %2 {
      %cst_9 = arith.constant 0.000000e+00 : f32
      %12 = vector.broadcast %cst_9 : f32 to vector<32x128xf32>
      %c0_10 = arith.constant 0 : index
      %c0_11 = arith.constant 0 : index
      %13 = vector.load %arg8[%c0_10, %c0_11] : memref<32x128xf32, #tpu.memory_space<vmem>>, vector<32x128xf32>
      tpu.vector_store %arg8[%c0_10, %c0_11], %12 {strides = array<i32>} : memref<32x128xf32, #tpu.memory_space<vmem>>, vector<32x128xf32>,
    } else {
    }
    %c0 = arith.constant 0 : index
    %c0_1 = arith.constant 0 : index
    %3 = vector.load %arg8[%c0, %c0_1] : memref<32x128xf32, #tpu.memory_space<vmem>>, vector<32x128xf32>
    %c0_2 = arith.constant 0 : index
    %c0_3 = arith.constant 0 : index
    %4 = vector.load %arg3[%c0_2, %c0_3] : memref<32x128xbf16, #tpu.memory_space<vmem>>, vector<32x128xbf16>
    %c0_4 = arith.constant 0 : index
    %c0_5 = arith.constant 0 : index
    %5 = vector.load %arg4[%c0_4, %c0_5] : memref<128x128xbf16, #tpu.memory_space<vmem>>, vector<128x128xbf16>
    %cst = arith.constant dense<0.000000e+00> : vector<32x128xf32>
    %6 = tpu.matmul %4, %5, %cst {dimension_numbers = #tpu.dot_dimension_numbers<[1], [0], [0], [1], [0, 0, 1, 1], [], []>} : vector<32x128xbf16>, vector<128x128xbf16>, vector<32x128xf32> -> vector<32x128xf32>
    %7 = arith.addf %3, %6 : vector<32x128xf32>
    %c0_6 = arith.constant 0 : index
    %c0_7 = arith.constant 0 : index
    %8 = vector.load %arg8[%c0_6, %c0_7] : memref<32x128xf32, #tpu.memory_space<vmem>>, vector<32x128xf32>
    tpu.vector_store %arg8[%c0_6, %c0_7], %7 {strides = array<i32>} : memref<32x128xf32, #tpu.memory_space<vmem>>, vector<32x128xf32>,
    %c4_i32 = arith.constant 4 : i32
    %9 = arith.cmpi eq, %arg2, %c4_i32 : i32
    %10 = arith.extui %9 : i1 to i32
    %c0_i32_8 = arith.constant 0 : i32
    %11 = arith.cmpi ne, %10, %c0_i32_8 : i32
    scf.if %11 {
      %c0_9 = arith.constant 0 : index
      %c0_10 = arith.constant 0 : index
      %12 = vector.load %arg8[%c0_9, %c0_10] : memref<32x128xf32, #tpu.memory_space<vmem>>, vector<32x128xf32>
      %c0_11 = arith.constant 0 : index
      %c0_12 = arith.constant 0 : index
      %13 = vector.load %arg5[%c0_11, %c0_12] : memref<1x128xf32, #tpu.memory_space<vmem>>, vector<1x128xf32>
      %14 = vector.broadcast %13 : vector<1x128xf32> to vector<32x128xf32>
      %15 = arith.mulf %12, %14 : vector<32x128xf32>
      %c0_13 = arith.constant 0 : index
      %c0_14 = arith.constant 0 : index
      %16 = vector.load %arg6[%c0_13, %c0_14] : memref<1x128xf32, #tpu.memory_space<vmem>>, vector<1x128xf32>
      %17 = vector.broadcast %16 : vector<1x128xf32> to vector<32x128xf32>
      %18 = arith.addf %15, %17 : vector<32x128xf32>
      %cst_15 = arith.constant 0.000000e+00 : f32
      %19 = vector.broadcast %cst_15 : f32 to vector<32x128xf32>
      %20 = arith.maximumf %18, %19 : vector<32x128xf32>
      %21 = arith.truncf %20 : vector<32x128xf32> to vector<32x128xbf16>
      %c0_16 = arith.constant 0 : index
      %c0_17 = arith.constant 0 : index
      %22 = vector.load %arg7[%c0_16, %c0_17] : memref<32x128xbf16, #tpu.memory_space<vmem>>, vector<32x128xbf16>
      tpu.vector_store %arg7[%c0_16, %c0_17], %21 {strides = array<i32>} : memref<32x128xbf16, #tpu.memory_space<vmem>>, vector<32x128xbf16>,
    } else {
    }
    return
  }
  func.func @transform_0(%arg0: i32, %arg1: i32, %arg2: i32) -> (i32, i32) {
    %c0_i32 = arith.constant 0 : i32
    return %arg0, %arg2 : i32, i32
  }
  func.func @transform_1(%arg0: i32, %arg1: i32, %arg2: i32) -> (i32, i32) {
    %c0_i32 = arith.constant 0 : i32
    return %arg2, %arg1 : i32, i32
  }
  func.func @transform_2(%arg0: i32, %arg1: i32, %arg2: i32) -> (i32, i32) {
    %c0_i32 = arith.constant 0 : i32
    %c0_i32_0 = arith.constant 0 : i32
    return %c0_i32, %arg1 : i32, i32
  }
  func.func @transform_3(%arg0: i32, %arg1: i32, %arg2: i32) -> (i32, i32) {
    %c0_i32 = arith.constant 0 : i32
    %c0_i32_0 = arith.constant 0 : i32
    return %c0_i32, %arg1 : i32, i32
  }
  func.func @transform_4(%arg0: i32, %arg1: i32, %arg2: i32) -> (i32, i32) {
    %c0_i32 = arith.constant 0 : i32
    return %arg0, %arg1 : i32, i32
  }
}

module attributes {stable_mosaic.version = 11 : i64} {
  func.func @_mm_kernel(%arg0: i32, %arg1: i32, %arg2: i32, %arg3: memref<32x384xbf16, #tpu.memory_space<vmem>>, %arg4: memref<384x128xbf16, #tpu.memory_space<vmem>>, %arg5: memref<1x128xf32, #tpu.memory_space<vmem>>, %arg6: memref<1x128xf32, #tpu.memory_space<vmem>>, %arg7: memref<32x128xbf16, #tpu.memory_space<vmem>>, %arg8: memref<32x128xbf16, #tpu.memory_space<vmem>>, %arg9: memref<32x128xf32, #tpu.memory_space<vmem>>) attributes {dimension_semantics = [#tpu.dimension_semantics<parallel>, #tpu.dimension_semantics<parallel>, #tpu.dimension_semantics<arbitrary>], iteration_bounds = array<i64: 1, 1, 3>, scalar_prefetch = 0 : i64, scratch_operands = 1 : i64, tpu.core_type = #tpu.core_type<tc>, window_params = [{transform_indices = @transform_0, window_bounds = array<i64: 32, 384>}, {transform_indices = @transform_1, window_bounds = array<i64: 384, 128>}, {transform_indices = @transform_2, window_bounds = array<i64: 1, 128>}, {transform_indices = @transform_3, window_bounds = array<i64: 1, 128>}, {transform_indices = @transform_4, window_bounds = array<i64: 32, 128>}, {transform_indices = @transform_5, window_bounds = array<i64: 32, 128>}]} {
    %c0_i32 = arith.constant 0 : i32
    %0 = arith.cmpi eq, %arg2, %c0_i32 : i32
    %1 = arith.extui %0 : i1 to i32
    %c0_i32_0 = arith.constant 0 : i32
    %2 = arith.cmpi ne, %1, %c0_i32_0 : i32
    scf.if %2 {
      %cst_9 = arith.constant 0.000000e+00 : f32
      %12 = vector.broadcast %cst_9 : f32 to vector<32x128xf32>
      %c0_10 = arith.constant 0 : index
      %c0_11 = arith.constant 0 : index
      %13 = vector.load %arg9[%c0_10, %c0_11] : memref<32x128xf32, #tpu.memory_space<vmem>>, vector<32x128xf32>
      tpu.vector_store %arg9[%c0_10, %c0_11], %12 {strides = array<i32>} : memref<32x128xf32, #tpu.memory_space<vmem>>, vector<32x128xf32>,
    } else {
    }
    %c0 = arith.constant 0 : index
    %c0_1 = arith.constant 0 : index
    %3 = vector.load %arg9[%c0, %c0_1] : memref<32x128xf32, #tpu.memory_space<vmem>>, vector<32x128xf32>
    %c0_2 = arith.constant 0 : index
    %c0_3 = arith.constant 0 : index
    %4 = vector.load %arg3[%c0_2, %c0_3] : memref<32x384xbf16, #tpu.memory_space<vmem>>, vector<32x384xbf16>
    %c0_4 = arith.constant 0 : index
    %c0_5 = arith.constant 0 : index
    %5 = vector.load %arg4[%c0_4, %c0_5] : memref<384x128xbf16, #tpu.memory_space<vmem>>, vector<384x128xbf16>
    %cst = arith.constant dense<0.000000e+00> : vector<32x128xf32>
    %6 = tpu.matmul %4, %5, %cst {dimension_numbers = #tpu.dot_dimension_numbers<[1], [0], [0], [1], [0, 0, 1, 1], [], []>} : vector<32x384xbf16>, vector<384x128xbf16>, vector<32x128xf32> -> vector<32x128xf32>
    %7 = arith.addf %3, %6 : vector<32x128xf32>
    %c0_6 = arith.constant 0 : index
    %c0_7 = arith.constant 0 : index
    %8 = vector.load %arg9[%c0_6, %c0_7] : memref<32x128xf32, #tpu.memory_space<vmem>>, vector<32x128xf32>
    tpu.vector_store %arg9[%c0_6, %c0_7], %7 {strides = array<i32>} : memref<32x128xf32, #tpu.memory_space<vmem>>, vector<32x128xf32>,
    %c2_i32 = arith.constant 2 : i32
    %9 = arith.cmpi eq, %arg2, %c2_i32 : i32
    %10 = arith.extui %9 : i1 to i32
    %c0_i32_8 = arith.constant 0 : i32
    %11 = arith.cmpi ne, %10, %c0_i32_8 : i32
    scf.if %11 {
      %c0_9 = arith.constant 0 : index
      %c0_10 = arith.constant 0 : index
      %12 = vector.load %arg9[%c0_9, %c0_10] : memref<32x128xf32, #tpu.memory_space<vmem>>, vector<32x128xf32>
      %c0_11 = arith.constant 0 : index
      %c0_12 = arith.constant 0 : index
      %13 = vector.load %arg5[%c0_11, %c0_12] : memref<1x128xf32, #tpu.memory_space<vmem>>, vector<1x128xf32>
      %14 = vector.broadcast %13 : vector<1x128xf32> to vector<32x128xf32>
      %15 = arith.mulf %12, %14 : vector<32x128xf32>
      %c0_13 = arith.constant 0 : index
      %c0_14 = arith.constant 0 : index
      %16 = vector.load %arg6[%c0_13, %c0_14] : memref<1x128xf32, #tpu.memory_space<vmem>>, vector<1x128xf32>
      %17 = vector.broadcast %16 : vector<1x128xf32> to vector<32x128xf32>
      %18 = arith.addf %15, %17 : vector<32x128xf32>
      %c0_15 = arith.constant 0 : index
      %c0_16 = arith.constant 0 : index
      %19 = vector.load %arg7[%c0_15, %c0_16] : memref<32x128xbf16, #tpu.memory_space<vmem>>, vector<32x128xbf16>
      %20 = arith.extf %19 : vector<32x128xbf16> to vector<32x128xf32>
      %21 = arith.addf %18, %20 : vector<32x128xf32>
      %cst_17 = arith.constant 0.000000e+00 : f32
      %22 = vector.broadcast %cst_17 : f32 to vector<32x128xf32>
      %23 = arith.maximumf %21, %22 : vector<32x128xf32>
      %24 = arith.truncf %23 : vector<32x128xf32> to vector<32x128xbf16>
      %c0_18 = arith.constant 0 : index
      %c0_19 = arith.constant 0 : index
      %25 = vector.load %arg8[%c0_18, %c0_19] : memref<32x128xbf16, #tpu.memory_space<vmem>>, vector<32x128xbf16>
      tpu.vector_store %arg8[%c0_18, %c0_19], %24 {strides = array<i32>} : memref<32x128xbf16, #tpu.memory_space<vmem>>, vector<32x128xbf16>,
    } else {
    }
    return
  }
  func.func @transform_0(%arg0: i32, %arg1: i32, %arg2: i32) -> (i32, i32) {
    %c0_i32 = arith.constant 0 : i32
    return %arg0, %arg2 : i32, i32
  }
  func.func @transform_1(%arg0: i32, %arg1: i32, %arg2: i32) -> (i32, i32) {
    %c0_i32 = arith.constant 0 : i32
    return %arg2, %arg1 : i32, i32
  }
  func.func @transform_2(%arg0: i32, %arg1: i32, %arg2: i32) -> (i32, i32) {
    %c0_i32 = arith.constant 0 : i32
    %c0_i32_0 = arith.constant 0 : i32
    return %c0_i32, %arg1 : i32, i32
  }
  func.func @transform_3(%arg0: i32, %arg1: i32, %arg2: i32) -> (i32, i32) {
    %c0_i32 = arith.constant 0 : i32
    %c0_i32_0 = arith.constant 0 : i32
    return %c0_i32, %arg1 : i32, i32
  }
  func.func @transform_4(%arg0: i32, %arg1: i32, %arg2: i32) -> (i32, i32) {
    %c0_i32 = arith.constant 0 : i32
    return %arg0, %arg1 : i32, i32
  }
  func.func @transform_5(%arg0: i32, %arg1: i32, %arg2: i32) -> (i32, i32) {
    %c0_i32 = arith.constant 0 : i32
    return %arg0, %arg1 : i32, i32
  }
}

module attributes {stable_mosaic.version = 11 : i64} {
  func.func @_mm_kernel(%arg0: i32, %arg1: i32, %arg2: i32, %arg3: memref<32x384xbf16, #tpu.memory_space<vmem>>, %arg4: memref<384x128xbf16, #tpu.memory_space<vmem>>, %arg5: memref<1x128xf32, #tpu.memory_space<vmem>>, %arg6: memref<1x128xf32, #tpu.memory_space<vmem>>, %arg7: memref<32x128xbf16, #tpu.memory_space<vmem>>, %arg8: memref<32x128xf32, #tpu.memory_space<vmem>>) attributes {dimension_semantics = [#tpu.dimension_semantics<parallel>, #tpu.dimension_semantics<parallel>, #tpu.dimension_semantics<arbitrary>], iteration_bounds = array<i64: 1, 1, 3>, scalar_prefetch = 0 : i64, scratch_operands = 1 : i64, tpu.core_type = #tpu.core_type<tc>, window_params = [{transform_indices = @transform_0, window_bounds = array<i64: 32, 384>}, {transform_indices = @transform_1, window_bounds = array<i64: 384, 128>}, {transform_indices = @transform_2, window_bounds = array<i64: 1, 128>}, {transform_indices = @transform_3, window_bounds = array<i64: 1, 128>}, {transform_indices = @transform_4, window_bounds = array<i64: 32, 128>}]} {
    %c0_i32 = arith.constant 0 : i32
    %0 = arith.cmpi eq, %arg2, %c0_i32 : i32
    %1 = arith.extui %0 : i1 to i32
    %c0_i32_0 = arith.constant 0 : i32
    %2 = arith.cmpi ne, %1, %c0_i32_0 : i32
    scf.if %2 {
      %cst_9 = arith.constant 0.000000e+00 : f32
      %12 = vector.broadcast %cst_9 : f32 to vector<32x128xf32>
      %c0_10 = arith.constant 0 : index
      %c0_11 = arith.constant 0 : index
      %13 = vector.load %arg8[%c0_10, %c0_11] : memref<32x128xf32, #tpu.memory_space<vmem>>, vector<32x128xf32>
      tpu.vector_store %arg8[%c0_10, %c0_11], %12 {strides = array<i32>} : memref<32x128xf32, #tpu.memory_space<vmem>>, vector<32x128xf32>,
    } else {
    }
    %c0 = arith.constant 0 : index
    %c0_1 = arith.constant 0 : index
    %3 = vector.load %arg8[%c0, %c0_1] : memref<32x128xf32, #tpu.memory_space<vmem>>, vector<32x128xf32>
    %c0_2 = arith.constant 0 : index
    %c0_3 = arith.constant 0 : index
    %4 = vector.load %arg3[%c0_2, %c0_3] : memref<32x384xbf16, #tpu.memory_space<vmem>>, vector<32x384xbf16>
    %c0_4 = arith.constant 0 : index
    %c0_5 = arith.constant 0 : index
    %5 = vector.load %arg4[%c0_4, %c0_5] : memref<384x128xbf16, #tpu.memory_space<vmem>>, vector<384x128xbf16>
    %cst = arith.constant dense<0.000000e+00> : vector<32x128xf32>
    %6 = tpu.matmul %4, %5, %cst {dimension_numbers = #tpu.dot_dimension_numbers<[1], [0], [0], [1], [0, 0, 1, 1], [], []>} : vector<32x384xbf16>, vector<384x128xbf16>, vector<32x128xf32> -> vector<32x128xf32>
    %7 = arith.addf %3, %6 : vector<32x128xf32>
    %c0_6 = arith.constant 0 : index
    %c0_7 = arith.constant 0 : index
    %8 = vector.load %arg8[%c0_6, %c0_7] : memref<32x128xf32, #tpu.memory_space<vmem>>, vector<32x128xf32>
    tpu.vector_store %arg8[%c0_6, %c0_7], %7 {strides = array<i32>} : memref<32x128xf32, #tpu.memory_space<vmem>>, vector<32x128xf32>,
    %c2_i32 = arith.constant 2 : i32
    %9 = arith.cmpi eq, %arg2, %c2_i32 : i32
    %10 = arith.extui %9 : i1 to i32
    %c0_i32_8 = arith.constant 0 : i32
    %11 = arith.cmpi ne, %10, %c0_i32_8 : i32
    scf.if %11 {
      %c0_9 = arith.constant 0 : index
      %c0_10 = arith.constant 0 : index
      %12 = vector.load %arg8[%c0_9, %c0_10] : memref<32x128xf32, #tpu.memory_space<vmem>>, vector<32x128xf32>
      %c0_11 = arith.constant 0 : index
      %c0_12 = arith.constant 0 : index
      %13 = vector.load %arg5[%c0_11, %c0_12] : memref<1x128xf32, #tpu.memory_space<vmem>>, vector<1x128xf32>
      %14 = vector.broadcast %13 : vector<1x128xf32> to vector<32x128xf32>
      %15 = arith.mulf %12, %14 : vector<32x128xf32>
      %c0_13 = arith.constant 0 : index
      %c0_14 = arith.constant 0 : index
      %16 = vector.load %arg6[%c0_13, %c0_14] : memref<1x128xf32, #tpu.memory_space<vmem>>, vector<1x128xf32>
      %17 = vector.broadcast %16 : vector<1x128xf32> to vector<32x128xf32>
      %18 = arith.addf %15, %17 : vector<32x128xf32>
      %cst_15 = arith.constant 0.000000e+00 : f32
      %19 = vector.broadcast %cst_15 : f32 to vector<32x128xf32>
      %20 = arith.maximumf %18, %19 : vector<32x128xf32>
      %21 = arith.truncf %20 : vector<32x128xf32> to vector<32x128xbf16>
      %c0_16 = arith.constant 0 : index
      %c0_17 = arith.constant 0 : index
      %22 = vector.load %arg7[%c0_16, %c0_17] : memref<32x128xbf16, #tpu.memory_space<vmem>>, vector<32x128xbf16>
      tpu.vector_store %arg7[%c0_16, %c0_17], %21 {strides = array<i32>} : memref<32x128xbf16, #tpu.memory_space<vmem>>, vector<32x128xbf16>,
    } else {
    }
    return
  }
  func.func @transform_0(%arg0: i32, %arg1: i32, %arg2: i32) -> (i32, i32) {
    %c0_i32 = arith.constant 0 : i32
    return %arg0, %arg2 : i32, i32
  }
  func.func @transform_1(%arg0: i32, %arg1: i32, %arg2: i32) -> (i32, i32) {
    %c0_i32 = arith.constant 0 : i32
    return %arg2, %arg1 : i32, i32
  }
  func.func @transform_2(%arg0: i32, %arg1: i32, %arg2: i32) -> (i32, i32) {
    %c0_i32 = arith.constant 0 : i32
    %c0_i32_0 = arith.constant 0 : i32
    return %c0_i32, %arg1 : i32, i32
  }
  func.func @transform_3(%arg0: i32, %arg1: i32, %arg2: i32) -> (i32, i32) {
    %c0_i32 = arith.constant 0 : i32
    %c0_i32_0 = arith.constant 0 : i32
    return %c0_i32, %arg1 : i32, i32
  }
  func.func @transform_4(%arg0: i32, %arg1: i32, %arg2: i32) -> (i32, i32) {
    %c0_i32 = arith.constant 0 : i32
    return %arg0, %arg1 : i32, i32
  }
}

module attributes {stable_mosaic.version = 11 : i64} {
  func.func @_mm_kernel(%arg0: i32, %arg1: i32, %arg2: i32, %arg3: memref<32x128xbf16, #tpu.memory_space<vmem>>, %arg4: memref<128x128xbf16, #tpu.memory_space<vmem>>, %arg5: memref<1x128xf32, #tpu.memory_space<vmem>>, %arg6: memref<1x128xf32, #tpu.memory_space<vmem>>, %arg7: memref<32x128xbf16, #tpu.memory_space<vmem>>, %arg8: memref<32x128xf32, #tpu.memory_space<vmem>>) attributes {dimension_semantics = [#tpu.dimension_semantics<parallel>, #tpu.dimension_semantics<parallel>, #tpu.dimension_semantics<arbitrary>], iteration_bounds = array<i64: 1, 1, 1>, scalar_prefetch = 0 : i64, scratch_operands = 1 : i64, tpu.core_type = #tpu.core_type<tc>, window_params = [{transform_indices = @transform_0, window_bounds = array<i64: 32, 128>}, {transform_indices = @transform_1, window_bounds = array<i64: 128, 128>}, {transform_indices = @transform_2, window_bounds = array<i64: 1, 128>}, {transform_indices = @transform_3, window_bounds = array<i64: 1, 128>}, {transform_indices = @transform_4, window_bounds = array<i64: 32, 128>}]} {
    %c0_i32 = arith.constant 0 : i32
    %0 = arith.cmpi eq, %arg2, %c0_i32 : i32
    %1 = arith.extui %0 : i1 to i32
    %c0_i32_0 = arith.constant 0 : i32
    %2 = arith.cmpi ne, %1, %c0_i32_0 : i32
    scf.if %2 {
      %cst_10 = arith.constant 0.000000e+00 : f32
      %12 = vector.broadcast %cst_10 : f32 to vector<32x128xf32>
      %c0_11 = arith.constant 0 : index
      %c0_12 = arith.constant 0 : index
      %13 = vector.load %arg8[%c0_11, %c0_12] : memref<32x128xf32, #tpu.memory_space<vmem>>, vector<32x128xf32>
      tpu.vector_store %arg8[%c0_11, %c0_12], %12 {strides = array<i32>} : memref<32x128xf32, #tpu.memory_space<vmem>>, vector<32x128xf32>,
    } else {
    }
    %c0 = arith.constant 0 : index
    %c0_1 = arith.constant 0 : index
    %3 = vector.load %arg8[%c0, %c0_1] : memref<32x128xf32, #tpu.memory_space<vmem>>, vector<32x128xf32>
    %c0_2 = arith.constant 0 : index
    %c0_3 = arith.constant 0 : index
    %4 = vector.load %arg3[%c0_2, %c0_3] : memref<32x128xbf16, #tpu.memory_space<vmem>>, vector<32x128xbf16>
    %c0_4 = arith.constant 0 : index
    %c0_5 = arith.constant 0 : index
    %5 = vector.load %arg4[%c0_4, %c0_5] : memref<128x128xbf16, #tpu.memory_space<vmem>>, vector<128x128xbf16>
    %cst = arith.constant dense<0.000000e+00> : vector<32x128xf32>
    %6 = tpu.matmul %4, %5, %cst {dimension_numbers = #tpu.dot_dimension_numbers<[1], [0], [0], [1], [0, 0, 1, 1], [], []>} : vector<32x128xbf16>, vector<128x128xbf16>, vector<32x128xf32> -> vector<32x128xf32>
    %7 = arith.addf %3, %6 : vector<32x128xf32>
    %c0_6 = arith.constant 0 : index
    %c0_7 = arith.constant 0 : index
    %8 = vector.load %arg8[%c0_6, %c0_7] : memref<32x128xf32, #tpu.memory_space<vmem>>, vector<32x128xf32>
    tpu.vector_store %arg8[%c0_6, %c0_7], %7 {strides = array<i32>} : memref<32x128xf32, #tpu.memory_space<vmem>>, vector<32x128xf32>,
    %c0_i32_8 = arith.constant 0 : i32
    %9 = arith.cmpi eq, %arg2, %c0_i32_8 : i32
    %10 = arith.extui %9 : i1 to i32
    %c0_i32_9 = arith.constant 0 : i32
    %11 = arith.cmpi ne, %10, %c0_i32_9 : i32
    scf.if %11 {
      %c0_10 = arith.constant 0 : index
      %c0_11 = arith.constant 0 : index
      %12 = vector.load %arg8[%c0_10, %c0_11] : memref<32x128xf32, #tpu.memory_space<vmem>>, vector<32x128xf32>
      %c0_12 = arith.constant 0 : index
      %c0_13 = arith.constant 0 : index
      %13 = vector.load %arg5[%c0_12, %c0_13] : memref<1x128xf32, #tpu.memory_space<vmem>>, vector<1x128xf32>
      %14 = vector.broadcast %13 : vector<1x128xf32> to vector<32x128xf32>
      %15 = arith.mulf %12, %14 : vector<32x128xf32>
      %c0_14 = arith.constant 0 : index
      %c0_15 = arith.constant 0 : index
      %16 = vector.load %arg6[%c0_14, %c0_15] : memref<1x128xf32, #tpu.memory_space<vmem>>, vector<1x128xf32>
      %17 = vector.broadcast %16 : vector<1x128xf32> to vector<32x128xf32>
      %18 = arith.addf %15, %17 : vector<32x128xf32>
      %19 = arith.truncf %18 : vector<32x128xf32> to vector<32x128xbf16>
      %c0_16 = arith.constant 0 : index
      %c0_17 = arith.constant 0 : index
      %20 = vector.load %arg7[%c0_16, %c0_17] : memref<32x128xbf16, #tpu.memory_space<vmem>>, vector<32x128xbf16>
      tpu.vector_store %arg7[%c0_16, %c0_17], %19 {strides = array<i32>} : memref<32x128xbf16, #tpu.memory_space<vmem>>, vector<32x128xbf16>,
    } else {
    }
    return
  }
  func.func @transform_0(%arg0: i32, %arg1: i32, %arg2: i32) -> (i32, i32) {
    %c0_i32 = arith.constant 0 : i32
    return %arg0, %arg2 : i32, i32
  }
  func.func @transform_1(%arg0: i32, %arg1: i32, %arg2: i32) -> (i32, i32) {
    %c0_i32 = arith.constant 0 : i32
    return %arg2, %arg1 : i32, i32
  }
  func.func @transform_2(%arg0: i32, %arg1: i32, %arg2: i32) -> (i32, i32) {
    %c0_i32 = arith.constant 0 : i32
    %c0_i32_0 = arith.constant 0 : i32
    return %c0_i32, %arg1 : i32, i32
  }
  func.func @transform_3(%arg0: i32, %arg1: i32, %arg2: i32) -> (i32, i32) {
    %c0_i32 = arith.constant 0 : i32
    %c0_i32_0 = arith.constant 0 : i32
    return %c0_i32, %arg1 : i32, i32
  }
  func.func @transform_4(%arg0: i32, %arg1: i32, %arg2: i32) -> (i32, i32) {
    %c0_i32 = arith.constant 0 : i32
    return %arg0, %arg1 : i32, i32
  }
}

module attributes {stable_mosaic.version = 11 : i64} {
  func.func @_mm_kernel(%arg0: i32, %arg1: i32, %arg2: i32, %arg3: memref<8x384xbf16, #tpu.memory_space<vmem>>, %arg4: memref<384x256xbf16, #tpu.memory_space<vmem>>, %arg5: memref<1x256xf32, #tpu.memory_space<vmem>>, %arg6: memref<1x256xf32, #tpu.memory_space<vmem>>, %arg7: memref<8x256xbf16, #tpu.memory_space<vmem>>, %arg8: memref<8x256xf32, #tpu.memory_space<vmem>>) attributes {dimension_semantics = [#tpu.dimension_semantics<parallel>, #tpu.dimension_semantics<parallel>, #tpu.dimension_semantics<arbitrary>], iteration_bounds = array<i64: 1, 1, 3>, scalar_prefetch = 0 : i64, scratch_operands = 1 : i64, tpu.core_type = #tpu.core_type<tc>, window_params = [{transform_indices = @transform_0, window_bounds = array<i64: 8, 384>}, {transform_indices = @transform_1, window_bounds = array<i64: 384, 256>}, {transform_indices = @transform_2, window_bounds = array<i64: 1, 256>}, {transform_indices = @transform_3, window_bounds = array<i64: 1, 256>}, {transform_indices = @transform_4, window_bounds = array<i64: 8, 256>}]} {
    %c0_i32 = arith.constant 0 : i32
    %0 = arith.cmpi eq, %arg2, %c0_i32 : i32
    %1 = arith.extui %0 : i1 to i32
    %c0_i32_0 = arith.constant 0 : i32
    %2 = arith.cmpi ne, %1, %c0_i32_0 : i32
    scf.if %2 {
      %cst_9 = arith.constant 0.000000e+00 : f32
      %12 = vector.broadcast %cst_9 : f32 to vector<8x256xf32>
      %c0_10 = arith.constant 0 : index
      %c0_11 = arith.constant 0 : index
      %13 = vector.load %arg8[%c0_10, %c0_11] : memref<8x256xf32, #tpu.memory_space<vmem>>, vector<8x256xf32>
      tpu.vector_store %arg8[%c0_10, %c0_11], %12 {strides = array<i32>} : memref<8x256xf32, #tpu.memory_space<vmem>>, vector<8x256xf32>,
    } else {
    }
    %c0 = arith.constant 0 : index
    %c0_1 = arith.constant 0 : index
    %3 = vector.load %arg8[%c0, %c0_1] : memref<8x256xf32, #tpu.memory_space<vmem>>, vector<8x256xf32>
    %c0_2 = arith.constant 0 : index
    %c0_3 = arith.constant 0 : index
    %4 = vector.load %arg3[%c0_2, %c0_3] : memref<8x384xbf16, #tpu.memory_space<vmem>>, vector<8x384xbf16>
    %c0_4 = arith.constant 0 : index
    %c0_5 = arith.constant 0 : index
    %5 = vector.load %arg4[%c0_4, %c0_5] : memref<384x256xbf16, #tpu.memory_space<vmem>>, vector<384x256xbf16>
    %cst = arith.constant dense<0.000000e+00> : vector<8x256xf32>
    %6 = tpu.matmul %4, %5, %cst {dimension_numbers = #tpu.dot_dimension_numbers<[1], [0], [0], [1], [0, 0, 1, 1], [], []>} : vector<8x384xbf16>, vector<384x256xbf16>, vector<8x256xf32> -> vector<8x256xf32>
    %7 = arith.addf %3, %6 : vector<8x256xf32>
    %c0_6 = arith.constant 0 : index
    %c0_7 = arith.constant 0 : index
    %8 = vector.load %arg8[%c0_6, %c0_7] : memref<8x256xf32, #tpu.memory_space<vmem>>, vector<8x256xf32>
    tpu.vector_store %arg8[%c0_6, %c0_7], %7 {strides = array<i32>} : memref<8x256xf32, #tpu.memory_space<vmem>>, vector<8x256xf32>,
    %c2_i32 = arith.constant 2 : i32
    %9 = arith.cmpi eq, %arg2, %c2_i32 : i32
    %10 = arith.extui %9 : i1 to i32
    %c0_i32_8 = arith.constant 0 : i32
    %11 = arith.cmpi ne, %10, %c0_i32_8 : i32
    scf.if %11 {
      %c0_9 = arith.constant 0 : index
      %c0_10 = arith.constant 0 : index
      %12 = vector.load %arg8[%c0_9, %c0_10] : memref<8x256xf32, #tpu.memory_space<vmem>>, vector<8x256xf32>
      %c0_11 = arith.constant 0 : index
      %c0_12 = arith.constant 0 : index
      %13 = vector.load %arg5[%c0_11, %c0_12] : memref<1x256xf32, #tpu.memory_space<vmem>>, vector<1x256xf32>
      %14 = vector.broadcast %13 : vector<1x256xf32> to vector<8x256xf32>
      %15 = arith.mulf %12, %14 : vector<8x256xf32>
      %c0_13 = arith.constant 0 : index
      %c0_14 = arith.constant 0 : index
      %16 = vector.load %arg6[%c0_13, %c0_14] : memref<1x256xf32, #tpu.memory_space<vmem>>, vector<1x256xf32>
      %17 = vector.broadcast %16 : vector<1x256xf32> to vector<8x256xf32>
      %18 = arith.addf %15, %17 : vector<8x256xf32>
      %cst_15 = arith.constant 0.000000e+00 : f32
      %19 = vector.broadcast %cst_15 : f32 to vector<8x256xf32>
      %20 = arith.maximumf %18, %19 : vector<8x256xf32>
      %21 = arith.truncf %20 : vector<8x256xf32> to vector<8x256xbf16>
      %c0_16 = arith.constant 0 : index
      %c0_17 = arith.constant 0 : index
      %22 = vector.load %arg7[%c0_16, %c0_17] : memref<8x256xbf16, #tpu.memory_space<vmem>>, vector<8x256xbf16>
      tpu.vector_store %arg7[%c0_16, %c0_17], %21 {strides = array<i32>} : memref<8x256xbf16, #tpu.memory_space<vmem>>, vector<8x256xbf16>,
    } else {
    }
    return
  }
  func.func @transform_0(%arg0: i32, %arg1: i32, %arg2: i32) -> (i32, i32) {
    %c0_i32 = arith.constant 0 : i32
    return %arg0, %arg2 : i32, i32
  }
  func.func @transform_1(%arg0: i32, %arg1: i32, %arg2: i32) -> (i32, i32) {
    %c0_i32 = arith.constant 0 : i32
    return %arg2, %arg1 : i32, i32
  }
  func.func @transform_2(%arg0: i32, %arg1: i32, %arg2: i32) -> (i32, i32) {
    %c0_i32 = arith.constant 0 : i32
    %c0_i32_0 = arith.constant 0 : i32
    return %c0_i32, %arg1 : i32, i32
  }
  func.func @transform_3(%arg0: i32, %arg1: i32, %arg2: i32) -> (i32, i32) {
    %c0_i32 = arith.constant 0 : i32
    %c0_i32_0 = arith.constant 0 : i32
    return %c0_i32, %arg1 : i32, i32
  }
  func.func @transform_4(%arg0: i32, %arg1: i32, %arg2: i32) -> (i32, i32) {
    %c0_i32 = arith.constant 0 : i32
    return %arg0, %arg1 : i32, i32
  }
}

module attributes {stable_mosaic.version = 11 : i64} {
  func.func @_mm_kernel(%arg0: i32, %arg1: i32, %arg2: i32, %arg3: memref<8x128xbf16, #tpu.memory_space<vmem>>, %arg4: memref<128x256xbf16, #tpu.memory_space<vmem>>, %arg5: memref<1x256xf32, #tpu.memory_space<vmem>>, %arg6: memref<1x256xf32, #tpu.memory_space<vmem>>, %arg7: memref<8x256xbf16, #tpu.memory_space<vmem>>, %arg8: memref<8x256xf32, #tpu.memory_space<vmem>>) attributes {dimension_semantics = [#tpu.dimension_semantics<parallel>, #tpu.dimension_semantics<parallel>, #tpu.dimension_semantics<arbitrary>], iteration_bounds = array<i64: 1, 1, 1>, scalar_prefetch = 0 : i64, scratch_operands = 1 : i64, tpu.core_type = #tpu.core_type<tc>, window_params = [{transform_indices = @transform_0, window_bounds = array<i64: 8, 128>}, {transform_indices = @transform_1, window_bounds = array<i64: 128, 256>}, {transform_indices = @transform_2, window_bounds = array<i64: 1, 256>}, {transform_indices = @transform_3, window_bounds = array<i64: 1, 256>}, {transform_indices = @transform_4, window_bounds = array<i64: 8, 256>}]} {
    %c0_i32 = arith.constant 0 : i32
    %0 = arith.cmpi eq, %arg2, %c0_i32 : i32
    %1 = arith.extui %0 : i1 to i32
    %c0_i32_0 = arith.constant 0 : i32
    %2 = arith.cmpi ne, %1, %c0_i32_0 : i32
    scf.if %2 {
      %cst_10 = arith.constant 0.000000e+00 : f32
      %12 = vector.broadcast %cst_10 : f32 to vector<8x256xf32>
      %c0_11 = arith.constant 0 : index
      %c0_12 = arith.constant 0 : index
      %13 = vector.load %arg8[%c0_11, %c0_12] : memref<8x256xf32, #tpu.memory_space<vmem>>, vector<8x256xf32>
      tpu.vector_store %arg8[%c0_11, %c0_12], %12 {strides = array<i32>} : memref<8x256xf32, #tpu.memory_space<vmem>>, vector<8x256xf32>,
    } else {
    }
    %c0 = arith.constant 0 : index
    %c0_1 = arith.constant 0 : index
    %3 = vector.load %arg8[%c0, %c0_1] : memref<8x256xf32, #tpu.memory_space<vmem>>, vector<8x256xf32>
    %c0_2 = arith.constant 0 : index
    %c0_3 = arith.constant 0 : index
    %4 = vector.load %arg3[%c0_2, %c0_3] : memref<8x128xbf16, #tpu.memory_space<vmem>>, vector<8x128xbf16>
    %c0_4 = arith.constant 0 : index
    %c0_5 = arith.constant 0 : index
    %5 = vector.load %arg4[%c0_4, %c0_5] : memref<128x256xbf16, #tpu.memory_space<vmem>>, vector<128x256xbf16>
    %cst = arith.constant dense<0.000000e+00> : vector<8x256xf32>
    %6 = tpu.matmul %4, %5, %cst {dimension_numbers = #tpu.dot_dimension_numbers<[1], [0], [0], [1], [0, 0, 1, 1], [], []>} : vector<8x128xbf16>, vector<128x256xbf16>, vector<8x256xf32> -> vector<8x256xf32>
    %7 = arith.addf %3, %6 : vector<8x256xf32>
    %c0_6 = arith.constant 0 : index
    %c0_7 = arith.constant 0 : index
    %8 = vector.load %arg8[%c0_6, %c0_7] : memref<8x256xf32, #tpu.memory_space<vmem>>, vector<8x256xf32>
    tpu.vector_store %arg8[%c0_6, %c0_7], %7 {strides = array<i32>} : memref<8x256xf32, #tpu.memory_space<vmem>>, vector<8x256xf32>,
    %c0_i32_8 = arith.constant 0 : i32
    %9 = arith.cmpi eq, %arg2, %c0_i32_8 : i32
    %10 = arith.extui %9 : i1 to i32
    %c0_i32_9 = arith.constant 0 : i32
    %11 = arith.cmpi ne, %10, %c0_i32_9 : i32
    scf.if %11 {
      %c0_10 = arith.constant 0 : index
      %c0_11 = arith.constant 0 : index
      %12 = vector.load %arg8[%c0_10, %c0_11] : memref<8x256xf32, #tpu.memory_space<vmem>>, vector<8x256xf32>
      %c0_12 = arith.constant 0 : index
      %c0_13 = arith.constant 0 : index
      %13 = vector.load %arg5[%c0_12, %c0_13] : memref<1x256xf32, #tpu.memory_space<vmem>>, vector<1x256xf32>
      %14 = vector.broadcast %13 : vector<1x256xf32> to vector<8x256xf32>
      %15 = arith.mulf %12, %14 : vector<8x256xf32>
      %c0_14 = arith.constant 0 : index
      %c0_15 = arith.constant 0 : index
      %16 = vector.load %arg6[%c0_14, %c0_15] : memref<1x256xf32, #tpu.memory_space<vmem>>, vector<1x256xf32>
      %17 = vector.broadcast %16 : vector<1x256xf32> to vector<8x256xf32>
      %18 = arith.addf %15, %17 : vector<8x256xf32>
      %19 = arith.truncf %18 : vector<8x256xf32> to vector<8x256xbf16>
      %c0_16 = arith.constant 0 : index
      %c0_17 = arith.constant 0 : index
      %20 = vector.load %arg7[%c0_16, %c0_17] : memref<8x256xbf16, #tpu.memory_space<vmem>>, vector<8x256xbf16>
      tpu.vector_store %arg7[%c0_16, %c0_17], %19 {strides = array<i32>} : memref<8x256xbf16, #tpu.memory_space<vmem>>, vector<8x256xbf16>,
    } else {
    }
    return
  }
  func.func @transform_0(%arg0: i32, %arg1: i32, %arg2: i32) -> (i32, i32) {
    %c0_i32 = arith.constant 0 : i32
    return %arg0, %arg2 : i32, i32
  }
  func.func @transform_1(%arg0: i32, %arg1: i32, %arg2: i32) -> (i32, i32) {
    %c0_i32 = arith.constant 0 : i32
    return %arg2, %arg1 : i32, i32
  }
  func.func @transform_2(%arg0: i32, %arg1: i32, %arg2: i32) -> (i32, i32) {
    %c0_i32 = arith.constant 0 : i32
    %c0_i32_0 = arith.constant 0 : i32
    return %c0_i32, %arg1 : i32, i32
  }
  func.func @transform_3(%arg0: i32, %arg1: i32, %arg2: i32) -> (i32, i32) {
    %c0_i32 = arith.constant 0 : i32
    %c0_i32_0 = arith.constant 0 : i32
    return %c0_i32, %arg1 : i32, i32
  }
  func.func @transform_4(%arg0: i32, %arg1: i32, %arg2: i32) -> (i32, i32) {
    %c0_i32 = arith.constant 0 : i32
    return %arg0, %arg1 : i32, i32
  }
}

module attributes {stable_mosaic.version = 11 : i64} {
  func.func @_mm_kernel(%arg0: i32, %arg1: i32, %arg2: i32, %arg3: memref<8x384xbf16, #tpu.memory_space<vmem>>, %arg4: memref<384x256xbf16, #tpu.memory_space<vmem>>, %arg5: memref<1x256xf32, #tpu.memory_space<vmem>>, %arg6: memref<1x256xf32, #tpu.memory_space<vmem>>, %arg7: memref<8x256xbf16, #tpu.memory_space<vmem>>, %arg8: memref<8x256xbf16, #tpu.memory_space<vmem>>, %arg9: memref<8x256xf32, #tpu.memory_space<vmem>>) attributes {dimension_semantics = [#tpu.dimension_semantics<parallel>, #tpu.dimension_semantics<parallel>, #tpu.dimension_semantics<arbitrary>], iteration_bounds = array<i64: 1, 1, 6>, scalar_prefetch = 0 : i64, scratch_operands = 1 : i64, tpu.core_type = #tpu.core_type<tc>, window_params = [{transform_indices = @transform_0, window_bounds = array<i64: 8, 384>}, {transform_indices = @transform_1, window_bounds = array<i64: 384, 256>}, {transform_indices = @transform_2, window_bounds = array<i64: 1, 256>}, {transform_indices = @transform_3, window_bounds = array<i64: 1, 256>}, {transform_indices = @transform_4, window_bounds = array<i64: 8, 256>}, {transform_indices = @transform_5, window_bounds = array<i64: 8, 256>}]} {
    %c0_i32 = arith.constant 0 : i32
    %0 = arith.cmpi eq, %arg2, %c0_i32 : i32
    %1 = arith.extui %0 : i1 to i32
    %c0_i32_0 = arith.constant 0 : i32
    %2 = arith.cmpi ne, %1, %c0_i32_0 : i32
    scf.if %2 {
      %cst_9 = arith.constant 0.000000e+00 : f32
      %12 = vector.broadcast %cst_9 : f32 to vector<8x256xf32>
      %c0_10 = arith.constant 0 : index
      %c0_11 = arith.constant 0 : index
      %13 = vector.load %arg9[%c0_10, %c0_11] : memref<8x256xf32, #tpu.memory_space<vmem>>, vector<8x256xf32>
      tpu.vector_store %arg9[%c0_10, %c0_11], %12 {strides = array<i32>} : memref<8x256xf32, #tpu.memory_space<vmem>>, vector<8x256xf32>,
    } else {
    }
    %c0 = arith.constant 0 : index
    %c0_1 = arith.constant 0 : index
    %3 = vector.load %arg9[%c0, %c0_1] : memref<8x256xf32, #tpu.memory_space<vmem>>, vector<8x256xf32>
    %c0_2 = arith.constant 0 : index
    %c0_3 = arith.constant 0 : index
    %4 = vector.load %arg3[%c0_2, %c0_3] : memref<8x384xbf16, #tpu.memory_space<vmem>>, vector<8x384xbf16>
    %c0_4 = arith.constant 0 : index
    %c0_5 = arith.constant 0 : index
    %5 = vector.load %arg4[%c0_4, %c0_5] : memref<384x256xbf16, #tpu.memory_space<vmem>>, vector<384x256xbf16>
    %cst = arith.constant dense<0.000000e+00> : vector<8x256xf32>
    %6 = tpu.matmul %4, %5, %cst {dimension_numbers = #tpu.dot_dimension_numbers<[1], [0], [0], [1], [0, 0, 1, 1], [], []>} : vector<8x384xbf16>, vector<384x256xbf16>, vector<8x256xf32> -> vector<8x256xf32>
    %7 = arith.addf %3, %6 : vector<8x256xf32>
    %c0_6 = arith.constant 0 : index
    %c0_7 = arith.constant 0 : index
    %8 = vector.load %arg9[%c0_6, %c0_7] : memref<8x256xf32, #tpu.memory_space<vmem>>, vector<8x256xf32>
    tpu.vector_store %arg9[%c0_6, %c0_7], %7 {strides = array<i32>} : memref<8x256xf32, #tpu.memory_space<vmem>>, vector<8x256xf32>,
    %c5_i32 = arith.constant 5 : i32
    %9 = arith.cmpi eq, %arg2, %c5_i32 : i32
    %10 = arith.extui %9 : i1 to i32
    %c0_i32_8 = arith.constant 0 : i32
    %11 = arith.cmpi ne, %10, %c0_i32_8 : i32
    scf.if %11 {
      %c0_9 = arith.constant 0 : index
      %c0_10 = arith.constant 0 : index
      %12 = vector.load %arg9[%c0_9, %c0_10] : memref<8x256xf32, #tpu.memory_space<vmem>>, vector<8x256xf32>
      %c0_11 = arith.constant 0 : index
      %c0_12 = arith.constant 0 : index
      %13 = vector.load %arg5[%c0_11, %c0_12] : memref<1x256xf32, #tpu.memory_space<vmem>>, vector<1x256xf32>
      %14 = vector.broadcast %13 : vector<1x256xf32> to vector<8x256xf32>
      %15 = arith.mulf %12, %14 : vector<8x256xf32>
      %c0_13 = arith.constant 0 : index
      %c0_14 = arith.constant 0 : index
      %16 = vector.load %arg6[%c0_13, %c0_14] : memref<1x256xf32, #tpu.memory_space<vmem>>, vector<1x256xf32>
      %17 = vector.broadcast %16 : vector<1x256xf32> to vector<8x256xf32>
      %18 = arith.addf %15, %17 : vector<8x256xf32>
      %c0_15 = arith.constant 0 : index
      %c0_16 = arith.constant 0 : index
      %19 = vector.load %arg7[%c0_15, %c0_16] : memref<8x256xbf16, #tpu.memory_space<vmem>>, vector<8x256xbf16>
      %20 = arith.extf %19 : vector<8x256xbf16> to vector<8x256xf32>
      %21 = arith.addf %18, %20 : vector<8x256xf32>
      %cst_17 = arith.constant 0.000000e+00 : f32
      %22 = vector.broadcast %cst_17 : f32 to vector<8x256xf32>
      %23 = arith.maximumf %21, %22 : vector<8x256xf32>
      %24 = arith.truncf %23 : vector<8x256xf32> to vector<8x256xbf16>
      %c0_18 = arith.constant 0 : index
      %c0_19 = arith.constant 0 : index
      %25 = vector.load %arg8[%c0_18, %c0_19] : memref<8x256xbf16, #tpu.memory_space<vmem>>, vector<8x256xbf16>
      tpu.vector_store %arg8[%c0_18, %c0_19], %24 {strides = array<i32>} : memref<8x256xbf16, #tpu.memory_space<vmem>>, vector<8x256xbf16>,
    } else {
    }
    return
  }
  func.func @transform_0(%arg0: i32, %arg1: i32, %arg2: i32) -> (i32, i32) {
    %c0_i32 = arith.constant 0 : i32
    return %arg0, %arg2 : i32, i32
  }
  func.func @transform_1(%arg0: i32, %arg1: i32, %arg2: i32) -> (i32, i32) {
    %c0_i32 = arith.constant 0 : i32
    return %arg2, %arg1 : i32, i32
  }
  func.func @transform_2(%arg0: i32, %arg1: i32, %arg2: i32) -> (i32, i32) {
    %c0_i32 = arith.constant 0 : i32
    %c0_i32_0 = arith.constant 0 : i32
    return %c0_i32, %arg1 : i32, i32
  }
  func.func @transform_3(%arg0: i32, %arg1: i32, %arg2: i32) -> (i32, i32) {
    %c0_i32 = arith.constant 0 : i32
    %c0_i32_0 = arith.constant 0 : i32
    return %c0_i32, %arg1 : i32, i32
  }
  func.func @transform_4(%arg0: i32, %arg1: i32, %arg2: i32) -> (i32, i32) {
    %c0_i32 = arith.constant 0 : i32
    return %arg0, %arg1 : i32, i32
  }
  func.func @transform_5(%arg0: i32, %arg1: i32, %arg2: i32) -> (i32, i32) {
    %c0_i32 = arith.constant 0 : i32
    return %arg0, %arg1 : i32, i32
  }
}

module attributes {stable_mosaic.version = 11 : i64} {
  func.func @_mm_kernel(%arg0: i32, %arg1: i32, %arg2: i32, %arg3: memref<8x384xbf16, #tpu.memory_space<vmem>>, %arg4: memref<384x256xbf16, #tpu.memory_space<vmem>>, %arg5: memref<1x256xf32, #tpu.memory_space<vmem>>, %arg6: memref<1x256xf32, #tpu.memory_space<vmem>>, %arg7: memref<8x256xbf16, #tpu.memory_space<vmem>>, %arg8: memref<8x256xf32, #tpu.memory_space<vmem>>) attributes {dimension_semantics = [#tpu.dimension_semantics<parallel>, #tpu.dimension_semantics<parallel>, #tpu.dimension_semantics<arbitrary>], iteration_bounds = array<i64: 1, 1, 6>, scalar_prefetch = 0 : i64, scratch_operands = 1 : i64, tpu.core_type = #tpu.core_type<tc>, window_params = [{transform_indices = @transform_0, window_bounds = array<i64: 8, 384>}, {transform_indices = @transform_1, window_bounds = array<i64: 384, 256>}, {transform_indices = @transform_2, window_bounds = array<i64: 1, 256>}, {transform_indices = @transform_3, window_bounds = array<i64: 1, 256>}, {transform_indices = @transform_4, window_bounds = array<i64: 8, 256>}]} {
    %c0_i32 = arith.constant 0 : i32
    %0 = arith.cmpi eq, %arg2, %c0_i32 : i32
    %1 = arith.extui %0 : i1 to i32
    %c0_i32_0 = arith.constant 0 : i32
    %2 = arith.cmpi ne, %1, %c0_i32_0 : i32
    scf.if %2 {
      %cst_9 = arith.constant 0.000000e+00 : f32
      %12 = vector.broadcast %cst_9 : f32 to vector<8x256xf32>
      %c0_10 = arith.constant 0 : index
      %c0_11 = arith.constant 0 : index
      %13 = vector.load %arg8[%c0_10, %c0_11] : memref<8x256xf32, #tpu.memory_space<vmem>>, vector<8x256xf32>
      tpu.vector_store %arg8[%c0_10, %c0_11], %12 {strides = array<i32>} : memref<8x256xf32, #tpu.memory_space<vmem>>, vector<8x256xf32>,
    } else {
    }
    %c0 = arith.constant 0 : index
    %c0_1 = arith.constant 0 : index
    %3 = vector.load %arg8[%c0, %c0_1] : memref<8x256xf32, #tpu.memory_space<vmem>>, vector<8x256xf32>
    %c0_2 = arith.constant 0 : index
    %c0_3 = arith.constant 0 : index
    %4 = vector.load %arg3[%c0_2, %c0_3] : memref<8x384xbf16, #tpu.memory_space<vmem>>, vector<8x384xbf16>
    %c0_4 = arith.constant 0 : index
    %c0_5 = arith.constant 0 : index
    %5 = vector.load %arg4[%c0_4, %c0_5] : memref<384x256xbf16, #tpu.memory_space<vmem>>, vector<384x256xbf16>
    %cst = arith.constant dense<0.000000e+00> : vector<8x256xf32>
    %6 = tpu.matmul %4, %5, %cst {dimension_numbers = #tpu.dot_dimension_numbers<[1], [0], [0], [1], [0, 0, 1, 1], [], []>} : vector<8x384xbf16>, vector<384x256xbf16>, vector<8x256xf32> -> vector<8x256xf32>
    %7 = arith.addf %3, %6 : vector<8x256xf32>
    %c0_6 = arith.constant 0 : index
    %c0_7 = arith.constant 0 : index
    %8 = vector.load %arg8[%c0_6, %c0_7] : memref<8x256xf32, #tpu.memory_space<vmem>>, vector<8x256xf32>
    tpu.vector_store %arg8[%c0_6, %c0_7], %7 {strides = array<i32>} : memref<8x256xf32, #tpu.memory_space<vmem>>, vector<8x256xf32>,
    %c5_i32 = arith.constant 5 : i32
    %9 = arith.cmpi eq, %arg2, %c5_i32 : i32
    %10 = arith.extui %9 : i1 to i32
    %c0_i32_8 = arith.constant 0 : i32
    %11 = arith.cmpi ne, %10, %c0_i32_8 : i32
    scf.if %11 {
      %c0_9 = arith.constant 0 : index
      %c0_10 = arith.constant 0 : index
      %12 = vector.load %arg8[%c0_9, %c0_10] : memref<8x256xf32, #tpu.memory_space<vmem>>, vector<8x256xf32>
      %c0_11 = arith.constant 0 : index
      %c0_12 = arith.constant 0 : index
      %13 = vector.load %arg5[%c0_11, %c0_12] : memref<1x256xf32, #tpu.memory_space<vmem>>, vector<1x256xf32>
      %14 = vector.broadcast %13 : vector<1x256xf32> to vector<8x256xf32>
      %15 = arith.mulf %12, %14 : vector<8x256xf32>
      %c0_13 = arith.constant 0 : index
      %c0_14 = arith.constant 0 : index
      %16 = vector.load %arg6[%c0_13, %c0_14] : memref<1x256xf32, #tpu.memory_space<vmem>>, vector<1x256xf32>
      %17 = vector.broadcast %16 : vector<1x256xf32> to vector<8x256xf32>
      %18 = arith.addf %15, %17 : vector<8x256xf32>
      %cst_15 = arith.constant 0.000000e+00 : f32
      %19 = vector.broadcast %cst_15 : f32 to vector<8x256xf32>
      %20 = arith.maximumf %18, %19 : vector<8x256xf32>
      %21 = arith.truncf %20 : vector<8x256xf32> to vector<8x256xbf16>
      %c0_16 = arith.constant 0 : index
      %c0_17 = arith.constant 0 : index
      %22 = vector.load %arg7[%c0_16, %c0_17] : memref<8x256xbf16, #tpu.memory_space<vmem>>, vector<8x256xbf16>
      tpu.vector_store %arg7[%c0_16, %c0_17], %21 {strides = array<i32>} : memref<8x256xbf16, #tpu.memory_space<vmem>>, vector<8x256xbf16>,
    } else {
    }
    return
  }
  func.func @transform_0(%arg0: i32, %arg1: i32, %arg2: i32) -> (i32, i32) {
    %c0_i32 = arith.constant 0 : i32
    return %arg0, %arg2 : i32, i32
  }
  func.func @transform_1(%arg0: i32, %arg1: i32, %arg2: i32) -> (i32, i32) {
    %c0_i32 = arith.constant 0 : i32
    return %arg2, %arg1 : i32, i32
  }
  func.func @transform_2(%arg0: i32, %arg1: i32, %arg2: i32) -> (i32, i32) {
    %c0_i32 = arith.constant 0 : i32
    %c0_i32_0 = arith.constant 0 : i32
    return %c0_i32, %arg1 : i32, i32
  }
  func.func @transform_3(%arg0: i32, %arg1: i32, %arg2: i32) -> (i32, i32) {
    %c0_i32 = arith.constant 0 : i32
    %c0_i32_0 = arith.constant 0 : i32
    return %c0_i32, %arg1 : i32, i32
  }
  func.func @transform_4(%arg0: i32, %arg1: i32, %arg2: i32) -> (i32, i32) {
    %c0_i32 = arith.constant 0 : i32
    return %arg0, %arg1 : i32, i32
  }
}

module attributes {stable_mosaic.version = 11 : i64} {
  func.func @_mm_kernel(%arg0: i32, %arg1: i32, %arg2: i32, %arg3: memref<8x384xbf16, #tpu.memory_space<vmem>>, %arg4: memref<384x256xbf16, #tpu.memory_space<vmem>>, %arg5: memref<1x256xf32, #tpu.memory_space<vmem>>, %arg6: memref<1x256xf32, #tpu.memory_space<vmem>>, %arg7: memref<8x256xbf16, #tpu.memory_space<vmem>>, %arg8: memref<8x256xf32, #tpu.memory_space<vmem>>) attributes {dimension_semantics = [#tpu.dimension_semantics<parallel>, #tpu.dimension_semantics<parallel>, #tpu.dimension_semantics<arbitrary>], iteration_bounds = array<i64: 1, 2, 6>, scalar_prefetch = 0 : i64, scratch_operands = 1 : i64, tpu.core_type = #tpu.core_type<tc>, window_params = [{transform_indices = @transform_0, window_bounds = array<i64: 8, 384>}, {transform_indices = @transform_1, window_bounds = array<i64: 384, 256>}, {transform_indices = @transform_2, window_bounds = array<i64: 1, 256>}, {transform_indices = @transform_3, window_bounds = array<i64: 1, 256>}, {transform_indices = @transform_4, window_bounds = array<i64: 8, 256>}]} {
    %c0_i32 = arith.constant 0 : i32
    %0 = arith.cmpi eq, %arg2, %c0_i32 : i32
    %1 = arith.extui %0 : i1 to i32
    %c0_i32_0 = arith.constant 0 : i32
    %2 = arith.cmpi ne, %1, %c0_i32_0 : i32
    scf.if %2 {
      %cst_9 = arith.constant 0.000000e+00 : f32
      %12 = vector.broadcast %cst_9 : f32 to vector<8x256xf32>
      %c0_10 = arith.constant 0 : index
      %c0_11 = arith.constant 0 : index
      %13 = vector.load %arg8[%c0_10, %c0_11] : memref<8x256xf32, #tpu.memory_space<vmem>>, vector<8x256xf32>
      tpu.vector_store %arg8[%c0_10, %c0_11], %12 {strides = array<i32>} : memref<8x256xf32, #tpu.memory_space<vmem>>, vector<8x256xf32>,
    } else {
    }
    %c0 = arith.constant 0 : index
    %c0_1 = arith.constant 0 : index
    %3 = vector.load %arg8[%c0, %c0_1] : memref<8x256xf32, #tpu.memory_space<vmem>>, vector<8x256xf32>
    %c0_2 = arith.constant 0 : index
    %c0_3 = arith.constant 0 : index
    %4 = vector.load %arg3[%c0_2, %c0_3] : memref<8x384xbf16, #tpu.memory_space<vmem>>, vector<8x384xbf16>
    %c0_4 = arith.constant 0 : index
    %c0_5 = arith.constant 0 : index
    %5 = vector.load %arg4[%c0_4, %c0_5] : memref<384x256xbf16, #tpu.memory_space<vmem>>, vector<384x256xbf16>
    %cst = arith.constant dense<0.000000e+00> : vector<8x256xf32>
    %6 = tpu.matmul %4, %5, %cst {dimension_numbers = #tpu.dot_dimension_numbers<[1], [0], [0], [1], [0, 0, 1, 1], [], []>} : vector<8x384xbf16>, vector<384x256xbf16>, vector<8x256xf32> -> vector<8x256xf32>
    %7 = arith.addf %3, %6 : vector<8x256xf32>
    %c0_6 = arith.constant 0 : index
    %c0_7 = arith.constant 0 : index
    %8 = vector.load %arg8[%c0_6, %c0_7] : memref<8x256xf32, #tpu.memory_space<vmem>>, vector<8x256xf32>
    tpu.vector_store %arg8[%c0_6, %c0_7], %7 {strides = array<i32>} : memref<8x256xf32, #tpu.memory_space<vmem>>, vector<8x256xf32>,
    %c5_i32 = arith.constant 5 : i32
    %9 = arith.cmpi eq, %arg2, %c5_i32 : i32
    %10 = arith.extui %9 : i1 to i32
    %c0_i32_8 = arith.constant 0 : i32
    %11 = arith.cmpi ne, %10, %c0_i32_8 : i32
    scf.if %11 {
      %c0_9 = arith.constant 0 : index
      %c0_10 = arith.constant 0 : index
      %12 = vector.load %arg8[%c0_9, %c0_10] : memref<8x256xf32, #tpu.memory_space<vmem>>, vector<8x256xf32>
      %c0_11 = arith.constant 0 : index
      %c0_12 = arith.constant 0 : index
      %13 = vector.load %arg5[%c0_11, %c0_12] : memref<1x256xf32, #tpu.memory_space<vmem>>, vector<1x256xf32>
      %14 = vector.broadcast %13 : vector<1x256xf32> to vector<8x256xf32>
      %15 = arith.mulf %12, %14 : vector<8x256xf32>
      %c0_13 = arith.constant 0 : index
      %c0_14 = arith.constant 0 : index
      %16 = vector.load %arg6[%c0_13, %c0_14] : memref<1x256xf32, #tpu.memory_space<vmem>>, vector<1x256xf32>
      %17 = vector.broadcast %16 : vector<1x256xf32> to vector<8x256xf32>
      %18 = arith.addf %15, %17 : vector<8x256xf32>
      %cst_15 = arith.constant 0.000000e+00 : f32
      %19 = vector.broadcast %cst_15 : f32 to vector<8x256xf32>
      %20 = arith.maximumf %18, %19 : vector<8x256xf32>
      %21 = arith.truncf %20 : vector<8x256xf32> to vector<8x256xbf16>
      %c0_16 = arith.constant 0 : index
      %c0_17 = arith.constant 0 : index
      %22 = vector.load %arg7[%c0_16, %c0_17] : memref<8x256xbf16, #tpu.memory_space<vmem>>, vector<8x256xbf16>
      tpu.vector_store %arg7[%c0_16, %c0_17], %21 {strides = array<i32>} : memref<8x256xbf16, #tpu.memory_space<vmem>>, vector<8x256xbf16>,
    } else {
    }
    return
  }
  func.func @transform_0(%arg0: i32, %arg1: i32, %arg2: i32) -> (i32, i32) {
    %c0_i32 = arith.constant 0 : i32
    return %arg0, %arg2 : i32, i32
  }
  func.func @transform_1(%arg0: i32, %arg1: i32, %arg2: i32) -> (i32, i32) {
    %c0_i32 = arith.constant 0 : i32
    return %arg2, %arg1 : i32, i32
  }
  func.func @transform_2(%arg0: i32, %arg1: i32, %arg2: i32) -> (i32, i32) {
    %c0_i32 = arith.constant 0 : i32
    %c0_i32_0 = arith.constant 0 : i32
    return %c0_i32, %arg1 : i32, i32
  }
  func.func @transform_3(%arg0: i32, %arg1: i32, %arg2: i32) -> (i32, i32) {
    %c0_i32 = arith.constant 0 : i32
    %c0_i32_0 = arith.constant 0 : i32
    return %c0_i32, %arg1 : i32, i32
  }
  func.func @transform_4(%arg0: i32, %arg1: i32, %arg2: i32) -> (i32, i32) {
    %c0_i32 = arith.constant 0 : i32
    return %arg0, %arg1 : i32, i32
  }
}

module attributes {stable_mosaic.version = 11 : i64} {
  func.func @_mm_kernel(%arg0: i32, %arg1: i32, %arg2: i32, %arg3: memref<8x256xbf16, #tpu.memory_space<vmem>>, %arg4: memref<256x256xbf16, #tpu.memory_space<vmem>>, %arg5: memref<1x256xf32, #tpu.memory_space<vmem>>, %arg6: memref<1x256xf32, #tpu.memory_space<vmem>>, %arg7: memref<8x256xbf16, #tpu.memory_space<vmem>>, %arg8: memref<8x256xf32, #tpu.memory_space<vmem>>) attributes {dimension_semantics = [#tpu.dimension_semantics<parallel>, #tpu.dimension_semantics<parallel>, #tpu.dimension_semantics<arbitrary>], iteration_bounds = array<i64: 1, 2, 1>, scalar_prefetch = 0 : i64, scratch_operands = 1 : i64, tpu.core_type = #tpu.core_type<tc>, window_params = [{transform_indices = @transform_0, window_bounds = array<i64: 8, 256>}, {transform_indices = @transform_1, window_bounds = array<i64: 256, 256>}, {transform_indices = @transform_2, window_bounds = array<i64: 1, 256>}, {transform_indices = @transform_3, window_bounds = array<i64: 1, 256>}, {transform_indices = @transform_4, window_bounds = array<i64: 8, 256>}]} {
    %c0_i32 = arith.constant 0 : i32
    %0 = arith.cmpi eq, %arg2, %c0_i32 : i32
    %1 = arith.extui %0 : i1 to i32
    %c0_i32_0 = arith.constant 0 : i32
    %2 = arith.cmpi ne, %1, %c0_i32_0 : i32
    scf.if %2 {
      %cst_10 = arith.constant 0.000000e+00 : f32
      %12 = vector.broadcast %cst_10 : f32 to vector<8x256xf32>
      %c0_11 = arith.constant 0 : index
      %c0_12 = arith.constant 0 : index
      %13 = vector.load %arg8[%c0_11, %c0_12] : memref<8x256xf32, #tpu.memory_space<vmem>>, vector<8x256xf32>
      tpu.vector_store %arg8[%c0_11, %c0_12], %12 {strides = array<i32>} : memref<8x256xf32, #tpu.memory_space<vmem>>, vector<8x256xf32>,
    } else {
    }
    %c0 = arith.constant 0 : index
    %c0_1 = arith.constant 0 : index
    %3 = vector.load %arg8[%c0, %c0_1] : memref<8x256xf32, #tpu.memory_space<vmem>>, vector<8x256xf32>
    %c0_2 = arith.constant 0 : index
    %c0_3 = arith.constant 0 : index
    %4 = vector.load %arg3[%c0_2, %c0_3] : memref<8x256xbf16, #tpu.memory_space<vmem>>, vector<8x256xbf16>
    %c0_4 = arith.constant 0 : index
    %c0_5 = arith.constant 0 : index
    %5 = vector.load %arg4[%c0_4, %c0_5] : memref<256x256xbf16, #tpu.memory_space<vmem>>, vector<256x256xbf16>
    %cst = arith.constant dense<0.000000e+00> : vector<8x256xf32>
    %6 = tpu.matmul %4, %5, %cst {dimension_numbers = #tpu.dot_dimension_numbers<[1], [0], [0], [1], [0, 0, 1, 1], [], []>} : vector<8x256xbf16>, vector<256x256xbf16>, vector<8x256xf32> -> vector<8x256xf32>
    %7 = arith.addf %3, %6 : vector<8x256xf32>
    %c0_6 = arith.constant 0 : index
    %c0_7 = arith.constant 0 : index
    %8 = vector.load %arg8[%c0_6, %c0_7] : memref<8x256xf32, #tpu.memory_space<vmem>>, vector<8x256xf32>
    tpu.vector_store %arg8[%c0_6, %c0_7], %7 {strides = array<i32>} : memref<8x256xf32, #tpu.memory_space<vmem>>, vector<8x256xf32>,
    %c0_i32_8 = arith.constant 0 : i32
    %9 = arith.cmpi eq, %arg2, %c0_i32_8 : i32
    %10 = arith.extui %9 : i1 to i32
    %c0_i32_9 = arith.constant 0 : i32
    %11 = arith.cmpi ne, %10, %c0_i32_9 : i32
    scf.if %11 {
      %c0_10 = arith.constant 0 : index
      %c0_11 = arith.constant 0 : index
      %12 = vector.load %arg8[%c0_10, %c0_11] : memref<8x256xf32, #tpu.memory_space<vmem>>, vector<8x256xf32>
      %c0_12 = arith.constant 0 : index
      %c0_13 = arith.constant 0 : index
      %13 = vector.load %arg5[%c0_12, %c0_13] : memref<1x256xf32, #tpu.memory_space<vmem>>, vector<1x256xf32>
      %14 = vector.broadcast %13 : vector<1x256xf32> to vector<8x256xf32>
      %15 = arith.mulf %12, %14 : vector<8x256xf32>
      %c0_14 = arith.constant 0 : index
      %c0_15 = arith.constant 0 : index
      %16 = vector.load %arg6[%c0_14, %c0_15] : memref<1x256xf32, #tpu.memory_space<vmem>>, vector<1x256xf32>
      %17 = vector.broadcast %16 : vector<1x256xf32> to vector<8x256xf32>
      %18 = arith.addf %15, %17 : vector<8x256xf32>
      %19 = arith.truncf %18 : vector<8x256xf32> to vector<8x256xbf16>
      %c0_16 = arith.constant 0 : index
      %c0_17 = arith.constant 0 : index
      %20 = vector.load %arg7[%c0_16, %c0_17] : memref<8x256xbf16, #tpu.memory_space<vmem>>, vector<8x256xbf16>
      tpu.vector_store %arg7[%c0_16, %c0_17], %19 {strides = array<i32>} : memref<8x256xbf16, #tpu.memory_space<vmem>>, vector<8x256xbf16>,
    } else {
    }
    return
  }
  func.func @transform_0(%arg0: i32, %arg1: i32, %arg2: i32) -> (i32, i32) {
    %c0_i32 = arith.constant 0 : i32
    return %arg0, %arg2 : i32, i32
  }
  func.func @transform_1(%arg0: i32, %arg1: i32, %arg2: i32) -> (i32, i32) {
    %c0_i32 = arith.constant 0 : i32
    return %arg2, %arg1 : i32, i32
  }
  func.func @transform_2(%arg0: i32, %arg1: i32, %arg2: i32) -> (i32, i32) {
    %c0_i32 = arith.constant 0 : i32
    %c0_i32_0 = arith.constant 0 : i32
    return %c0_i32, %arg1 : i32, i32
  }
  func.func @transform_3(%arg0: i32, %arg1: i32, %arg2: i32) -> (i32, i32) {
    %c0_i32 = arith.constant 0 : i32
    %c0_i32_0 = arith.constant 0 : i32
    return %c0_i32, %arg1 : i32, i32
  }
  func.func @transform_4(%arg0: i32, %arg1: i32, %arg2: i32) -> (i32, i32) {
    %c0_i32 = arith.constant 0 : i32
    return %arg0, %arg1 : i32, i32
  }
}

module attributes {stable_mosaic.version = 11 : i64} {
  func.func @_mm_kernel(%arg0: i32, %arg1: i32, %arg2: i32, %arg3: memref<8x512xbf16, #tpu.memory_space<vmem>>, %arg4: memref<512x256xbf16, #tpu.memory_space<vmem>>, %arg5: memref<1x256xf32, #tpu.memory_space<vmem>>, %arg6: memref<1x256xf32, #tpu.memory_space<vmem>>, %arg7: memref<8x256xbf16, #tpu.memory_space<vmem>>, %arg8: memref<8x256xf32, #tpu.memory_space<vmem>>) attributes {dimension_semantics = [#tpu.dimension_semantics<parallel>, #tpu.dimension_semantics<parallel>, #tpu.dimension_semantics<arbitrary>], iteration_bounds = array<i64: 1, 2, 9>, scalar_prefetch = 0 : i64, scratch_operands = 1 : i64, tpu.core_type = #tpu.core_type<tc>, window_params = [{transform_indices = @transform_0, window_bounds = array<i64: 8, 512>}, {transform_indices = @transform_1, window_bounds = array<i64: 512, 256>}, {transform_indices = @transform_2, window_bounds = array<i64: 1, 256>}, {transform_indices = @transform_3, window_bounds = array<i64: 1, 256>}, {transform_indices = @transform_4, window_bounds = array<i64: 8, 256>}]} {
    %c0_i32 = arith.constant 0 : i32
    %0 = arith.cmpi eq, %arg2, %c0_i32 : i32
    %1 = arith.extui %0 : i1 to i32
    %c0_i32_0 = arith.constant 0 : i32
    %2 = arith.cmpi ne, %1, %c0_i32_0 : i32
    scf.if %2 {
      %cst_9 = arith.constant 0.000000e+00 : f32
      %12 = vector.broadcast %cst_9 : f32 to vector<8x256xf32>
      %c0_10 = arith.constant 0 : index
      %c0_11 = arith.constant 0 : index
      %13 = vector.load %arg8[%c0_10, %c0_11] : memref<8x256xf32, #tpu.memory_space<vmem>>, vector<8x256xf32>
      tpu.vector_store %arg8[%c0_10, %c0_11], %12 {strides = array<i32>} : memref<8x256xf32, #tpu.memory_space<vmem>>, vector<8x256xf32>,
    } else {
    }
    %c0 = arith.constant 0 : index
    %c0_1 = arith.constant 0 : index
    %3 = vector.load %arg8[%c0, %c0_1] : memref<8x256xf32, #tpu.memory_space<vmem>>, vector<8x256xf32>
    %c0_2 = arith.constant 0 : index
    %c0_3 = arith.constant 0 : index
    %4 = vector.load %arg3[%c0_2, %c0_3] : memref<8x512xbf16, #tpu.memory_space<vmem>>, vector<8x512xbf16>
    %c0_4 = arith.constant 0 : index
    %c0_5 = arith.constant 0 : index
    %5 = vector.load %arg4[%c0_4, %c0_5] : memref<512x256xbf16, #tpu.memory_space<vmem>>, vector<512x256xbf16>
    %cst = arith.constant dense<0.000000e+00> : vector<8x256xf32>
    %6 = tpu.matmul %4, %5, %cst {dimension_numbers = #tpu.dot_dimension_numbers<[1], [0], [0], [1], [0, 0, 1, 1], [], []>} : vector<8x512xbf16>, vector<512x256xbf16>, vector<8x256xf32> -> vector<8x256xf32>
    %7 = arith.addf %3, %6 : vector<8x256xf32>
    %c0_6 = arith.constant 0 : index
    %c0_7 = arith.constant 0 : index
    %8 = vector.load %arg8[%c0_6, %c0_7] : memref<8x256xf32, #tpu.memory_space<vmem>>, vector<8x256xf32>
    tpu.vector_store %arg8[%c0_6, %c0_7], %7 {strides = array<i32>} : memref<8x256xf32, #tpu.memory_space<vmem>>, vector<8x256xf32>,
    %c8_i32 = arith.constant 8 : i32
    %9 = arith.cmpi eq, %arg2, %c8_i32 : i32
    %10 = arith.extui %9 : i1 to i32
    %c0_i32_8 = arith.constant 0 : i32
    %11 = arith.cmpi ne, %10, %c0_i32_8 : i32
    scf.if %11 {
      %c0_9 = arith.constant 0 : index
      %c0_10 = arith.constant 0 : index
      %12 = vector.load %arg8[%c0_9, %c0_10] : memref<8x256xf32, #tpu.memory_space<vmem>>, vector<8x256xf32>
      %c0_11 = arith.constant 0 : index
      %c0_12 = arith.constant 0 : index
      %13 = vector.load %arg5[%c0_11, %c0_12] : memref<1x256xf32, #tpu.memory_space<vmem>>, vector<1x256xf32>
      %14 = vector.broadcast %13 : vector<1x256xf32> to vector<8x256xf32>
      %15 = arith.mulf %12, %14 : vector<8x256xf32>
      %c0_13 = arith.constant 0 : index
      %c0_14 = arith.constant 0 : index
      %16 = vector.load %arg6[%c0_13, %c0_14] : memref<1x256xf32, #tpu.memory_space<vmem>>, vector<1x256xf32>
      %17 = vector.broadcast %16 : vector<1x256xf32> to vector<8x256xf32>
      %18 = arith.addf %15, %17 : vector<8x256xf32>
      %cst_15 = arith.constant 0.000000e+00 : f32
      %19 = vector.broadcast %cst_15 : f32 to vector<8x256xf32>
      %20 = arith.maximumf %18, %19 : vector<8x256xf32>
      %21 = arith.truncf %20 : vector<8x256xf32> to vector<8x256xbf16>
      %c0_16 = arith.constant 0 : index
      %c0_17 = arith.constant 0 : index
      %22 = vector.load %arg7[%c0_16, %c0_17] : memref<8x256xbf16, #tpu.memory_space<vmem>>, vector<8x256xbf16>
      tpu.vector_store %arg7[%c0_16, %c0_17], %21 {strides = array<i32>} : memref<8x256xbf16, #tpu.memory_space<vmem>>, vector<8x256xbf16>,
    } else {
    }
    return
  }
  func.func @transform_0(%arg0: i32, %arg1: i32, %arg2: i32) -> (i32, i32) {
    %c0_i32 = arith.constant 0 : i32
    return %arg0, %arg2 : i32, i32
  }
  func.func @transform_1(%arg0: i32, %arg1: i32, %arg2: i32) -> (i32, i32) {
    %c0_i32 = arith.constant 0 : i32
    return %arg2, %arg1 : i32, i32
  }
  func.func @transform_2(%arg0: i32, %arg1: i32, %arg2: i32) -> (i32, i32) {
    %c0_i32 = arith.constant 0 : i32
    %c0_i32_0 = arith.constant 0 : i32
    return %c0_i32, %arg1 : i32, i32
  }
  func.func @transform_3(%arg0: i32, %arg1: i32, %arg2: i32) -> (i32, i32) {
    %c0_i32 = arith.constant 0 : i32
    %c0_i32_0 = arith.constant 0 : i32
    return %c0_i32, %arg1 : i32, i32
  }
  func.func @transform_4(%arg0: i32, %arg1: i32, %arg2: i32) -> (i32, i32) {
    %c0_i32 = arith.constant 0 : i32
    return %arg0, %arg1 : i32, i32
  }
}

module attributes {stable_mosaic.version = 11 : i64} {
  func.func @_mm_kernel(%arg0: i32, %arg1: i32, %arg2: i32, %arg3: memref<8x512xbf16, #tpu.memory_space<vmem>>, %arg4: memref<512x256xbf16, #tpu.memory_space<vmem>>, %arg5: memref<1x256xf32, #tpu.memory_space<vmem>>, %arg6: memref<1x256xf32, #tpu.memory_space<vmem>>, %arg7: memref<8x256xbf16, #tpu.memory_space<vmem>>, %arg8: memref<8x256xbf16, #tpu.memory_space<vmem>>, %arg9: memref<8x256xf32, #tpu.memory_space<vmem>>) attributes {dimension_semantics = [#tpu.dimension_semantics<parallel>, #tpu.dimension_semantics<parallel>, #tpu.dimension_semantics<arbitrary>], iteration_bounds = array<i64: 1, 2, 9>, scalar_prefetch = 0 : i64, scratch_operands = 1 : i64, tpu.core_type = #tpu.core_type<tc>, window_params = [{transform_indices = @transform_0, window_bounds = array<i64: 8, 512>}, {transform_indices = @transform_1, window_bounds = array<i64: 512, 256>}, {transform_indices = @transform_2, window_bounds = array<i64: 1, 256>}, {transform_indices = @transform_3, window_bounds = array<i64: 1, 256>}, {transform_indices = @transform_4, window_bounds = array<i64: 8, 256>}, {transform_indices = @transform_5, window_bounds = array<i64: 8, 256>}]} {
    %c0_i32 = arith.constant 0 : i32
    %0 = arith.cmpi eq, %arg2, %c0_i32 : i32
    %1 = arith.extui %0 : i1 to i32
    %c0_i32_0 = arith.constant 0 : i32
    %2 = arith.cmpi ne, %1, %c0_i32_0 : i32
    scf.if %2 {
      %cst_9 = arith.constant 0.000000e+00 : f32
      %12 = vector.broadcast %cst_9 : f32 to vector<8x256xf32>
      %c0_10 = arith.constant 0 : index
      %c0_11 = arith.constant 0 : index
      %13 = vector.load %arg9[%c0_10, %c0_11] : memref<8x256xf32, #tpu.memory_space<vmem>>, vector<8x256xf32>
      tpu.vector_store %arg9[%c0_10, %c0_11], %12 {strides = array<i32>} : memref<8x256xf32, #tpu.memory_space<vmem>>, vector<8x256xf32>,
    } else {
    }
    %c0 = arith.constant 0 : index
    %c0_1 = arith.constant 0 : index
    %3 = vector.load %arg9[%c0, %c0_1] : memref<8x256xf32, #tpu.memory_space<vmem>>, vector<8x256xf32>
    %c0_2 = arith.constant 0 : index
    %c0_3 = arith.constant 0 : index
    %4 = vector.load %arg3[%c0_2, %c0_3] : memref<8x512xbf16, #tpu.memory_space<vmem>>, vector<8x512xbf16>
    %c0_4 = arith.constant 0 : index
    %c0_5 = arith.constant 0 : index
    %5 = vector.load %arg4[%c0_4, %c0_5] : memref<512x256xbf16, #tpu.memory_space<vmem>>, vector<512x256xbf16>
    %cst = arith.constant dense<0.000000e+00> : vector<8x256xf32>
    %6 = tpu.matmul %4, %5, %cst {dimension_numbers = #tpu.dot_dimension_numbers<[1], [0], [0], [1], [0, 0, 1, 1], [], []>} : vector<8x512xbf16>, vector<512x256xbf16>, vector<8x256xf32> -> vector<8x256xf32>
    %7 = arith.addf %3, %6 : vector<8x256xf32>
    %c0_6 = arith.constant 0 : index
    %c0_7 = arith.constant 0 : index
    %8 = vector.load %arg9[%c0_6, %c0_7] : memref<8x256xf32, #tpu.memory_space<vmem>>, vector<8x256xf32>
    tpu.vector_store %arg9[%c0_6, %c0_7], %7 {strides = array<i32>} : memref<8x256xf32, #tpu.memory_space<vmem>>, vector<8x256xf32>,
    %c8_i32 = arith.constant 8 : i32
    %9 = arith.cmpi eq, %arg2, %c8_i32 : i32
    %10 = arith.extui %9 : i1 to i32
    %c0_i32_8 = arith.constant 0 : i32
    %11 = arith.cmpi ne, %10, %c0_i32_8 : i32
    scf.if %11 {
      %c0_9 = arith.constant 0 : index
      %c0_10 = arith.constant 0 : index
      %12 = vector.load %arg9[%c0_9, %c0_10] : memref<8x256xf32, #tpu.memory_space<vmem>>, vector<8x256xf32>
      %c0_11 = arith.constant 0 : index
      %c0_12 = arith.constant 0 : index
      %13 = vector.load %arg5[%c0_11, %c0_12] : memref<1x256xf32, #tpu.memory_space<vmem>>, vector<1x256xf32>
      %14 = vector.broadcast %13 : vector<1x256xf32> to vector<8x256xf32>
      %15 = arith.mulf %12, %14 : vector<8x256xf32>
      %c0_13 = arith.constant 0 : index
      %c0_14 = arith.constant 0 : index
      %16 = vector.load %arg6[%c0_13, %c0_14] : memref<1x256xf32, #tpu.memory_space<vmem>>, vector<1x256xf32>
      %17 = vector.broadcast %16 : vector<1x256xf32> to vector<8x256xf32>
      %18 = arith.addf %15, %17 : vector<8x256xf32>
      %c0_15 = arith.constant 0 : index
      %c0_16 = arith.constant 0 : index
      %19 = vector.load %arg7[%c0_15, %c0_16] : memref<8x256xbf16, #tpu.memory_space<vmem>>, vector<8x256xbf16>
      %20 = arith.extf %19 : vector<8x256xbf16> to vector<8x256xf32>
      %21 = arith.addf %18, %20 : vector<8x256xf32>
      %cst_17 = arith.constant 0.000000e+00 : f32
      %22 = vector.broadcast %cst_17 : f32 to vector<8x256xf32>
      %23 = arith.maximumf %21, %22 : vector<8x256xf32>
      %24 = arith.truncf %23 : vector<8x256xf32> to vector<8x256xbf16>
      %c0_18 = arith.constant 0 : index
      %c0_19 = arith.constant 0 : index
      %25 = vector.load %arg8[%c0_18, %c0_19] : memref<8x256xbf16, #tpu.memory_space<vmem>>, vector<8x256xbf16>
      tpu.vector_store %arg8[%c0_18, %c0_19], %24 {strides = array<i32>} : memref<8x256xbf16, #tpu.memory_space<vmem>>, vector<8x256xbf16>,
    } else {
    }
    return
  }
  func.func @transform_0(%arg0: i32, %arg1: i32, %arg2: i32) -> (i32, i32) {
    %c0_i32 = arith.constant 0 : i32
    return %arg0, %arg2 : i32, i32
  }
  func.func @transform_1(%arg0: i32, %arg1: i32, %arg2: i32) -> (i32, i32) {
    %c0_i32 = arith.constant 0 : i32
    return %arg2, %arg1 : i32, i32
  }
  func.func @transform_2(%arg0: i32, %arg1: i32, %arg2: i32) -> (i32, i32) {
    %c0_i32 = arith.constant 0 : i32
    %c0_i32_0 = arith.constant 0 : i32
    return %c0_i32, %arg1 : i32, i32
  }
  func.func @transform_3(%arg0: i32, %arg1: i32, %arg2: i32) -> (i32, i32) {
    %c0_i32 = arith.constant 0 : i32
    %c0_i32_0 = arith.constant 0 : i32
    return %c0_i32, %arg1 : i32, i32
  }
  func.func @transform_4(%arg0: i32, %arg1: i32, %arg2: i32) -> (i32, i32) {
    %c0_i32 = arith.constant 0 : i32
    return %arg0, %arg1 : i32, i32
  }
  func.func @transform_5(%arg0: i32, %arg1: i32, %arg2: i32) -> (i32, i32) {
    %c0_i32 = arith.constant 0 : i32
    return %arg0, %arg1 : i32, i32
  }
}

module attributes {stable_mosaic.version = 11 : i64} {
  func.func @_head_kernel(%arg0: i32, %arg1: memref<8x8xf32, #tpu.memory_space<vmem>>, %arg2: memref<8x512xbf16, #tpu.memory_space<vmem>>, %arg3: memref<512x512xbf16, #tpu.memory_space<vmem>>, %arg4: memref<1x512xf32, #tpu.memory_space<vmem>>, %arg5: memref<1x512xf32, #tpu.memory_space<vmem>>, %arg6: memref<512x128xbf16, #tpu.memory_space<vmem>>, %arg7: memref<1x128xf32, #tpu.memory_space<vmem>>, %arg8: memref<8x128xf32, #tpu.memory_space<vmem>>) attributes {dimension_semantics = [#tpu.dimension_semantics<arbitrary>], iteration_bounds = array<i64: 1>, scalar_prefetch = 0 : i64, scratch_operands = 0 : i64, tpu.core_type = #tpu.core_type<tc>, window_params = [{pipeline_mode = #tpu.pipeline_mode<synchronous>, transform_indices = @transform_0, window_bounds = array<i64: 8, 8>}, {pipeline_mode = #tpu.pipeline_mode<synchronous>, transform_indices = @transform_1, window_bounds = array<i64: 8, 512>}, {pipeline_mode = #tpu.pipeline_mode<synchronous>, transform_indices = @transform_2, window_bounds = array<i64: 512, 512>}, {pipeline_mode = #tpu.pipeline_mode<synchronous>, transform_indices = @transform_3, window_bounds = array<i64: 1, 512>}, {pipeline_mode = #tpu.pipeline_mode<synchronous>, transform_indices = @transform_4, window_bounds = array<i64: 1, 512>}, {pipeline_mode = #tpu.pipeline_mode<synchronous>, transform_indices = @transform_5, window_bounds = array<i64: 512, 128>}, {pipeline_mode = #tpu.pipeline_mode<synchronous>, transform_indices = @transform_6, window_bounds = array<i64: 1, 128>}, {pipeline_mode = #tpu.pipeline_mode<synchronous>, transform_indices = @transform_7, window_bounds = array<i64: 8, 128>}]} {
    %c0 = arith.constant 0 : index
    %c0_0 = arith.constant 0 : index
    %0 = vector.load %arg1[%c0, %c0_0] : memref<8x8xf32, #tpu.memory_space<vmem>>, vector<8x8xf32>
    %c0_1 = arith.constant 0 : index
    %c0_2 = arith.constant 0 : index
    %1 = vector.load %arg2[%c0_1, %c0_2] : memref<8x512xbf16, #tpu.memory_space<vmem>>, vector<8x512xbf16>
    %2 = arith.extf %1 : vector<8x512xbf16> to vector<8x512xf32>
    %cst = arith.constant dense<0.000000e+00> : vector<8x512xf32>
    %3 = tpu.matmul %0, %2, %cst {dimension_numbers = #tpu.dot_dimension_numbers<[1], [0], [0], [1], [0, 0, 1, 1], [], []>} : vector<8x8xf32>, vector<8x512xf32>, vector<8x512xf32> -> vector<8x512xf32>
    %4 = arith.truncf %3 : vector<8x512xf32> to vector<8x512xbf16>
    %c0_3 = arith.constant 0 : index
    %c0_4 = arith.constant 0 : index
    %5 = vector.load %arg3[%c0_3, %c0_4] : memref<512x512xbf16, #tpu.memory_space<vmem>>, vector<512x512xbf16>
    %cst_5 = arith.constant dense<0.000000e+00> : vector<8x512xf32>
    %6 = tpu.matmul %4, %5, %cst_5 {dimension_numbers = #tpu.dot_dimension_numbers<[1], [0], [0], [1], [0, 0, 1, 1], [], []>} : vector<8x512xbf16>, vector<512x512xbf16>, vector<8x512xf32> -> vector<8x512xf32>
    %c0_6 = arith.constant 0 : index
    %c0_7 = arith.constant 0 : index
    %7 = vector.load %arg4[%c0_6, %c0_7] : memref<1x512xf32, #tpu.memory_space<vmem>>, vector<1x512xf32>
    %8 = vector.broadcast %7 : vector<1x512xf32> to vector<8x512xf32>
    %9 = arith.mulf %6, %8 : vector<8x512xf32>
    %c0_8 = arith.constant 0 : index
    %c0_9 = arith.constant 0 : index
    %10 = vector.load %arg5[%c0_8, %c0_9] : memref<1x512xf32, #tpu.memory_space<vmem>>, vector<1x512xf32>
    %11 = vector.broadcast %10 : vector<1x512xf32> to vector<8x512xf32>
    %12 = arith.addf %9, %11 : vector<8x512xf32>
    %cst_10 = arith.constant 0.000000e+00 : f32
    %13 = vector.broadcast %cst_10 : f32 to vector<8x512xf32>
    %14 = arith.maximumf %12, %13 : vector<8x512xf32>
    %15 = arith.truncf %14 : vector<8x512xf32> to vector<8x512xbf16>
    %c0_11 = arith.constant 0 : index
    %c0_12 = arith.constant 0 : index
    %16 = vector.load %arg6[%c0_11, %c0_12] : memref<512x128xbf16, #tpu.memory_space<vmem>>, vector<512x128xbf16>
    %cst_13 = arith.constant dense<0.000000e+00> : vector<8x128xf32>
    %17 = tpu.matmul %15, %16, %cst_13 {dimension_numbers = #tpu.dot_dimension_numbers<[1], [0], [0], [1], [0, 0, 1, 1], [], []>} : vector<8x512xbf16>, vector<512x128xbf16>, vector<8x128xf32> -> vector<8x128xf32>
    %c0_14 = arith.constant 0 : index
    %c0_15 = arith.constant 0 : index
    %18 = vector.load %arg7[%c0_14, %c0_15] : memref<1x128xf32, #tpu.memory_space<vmem>>, vector<1x128xf32>
    %19 = vector.broadcast %18 : vector<1x128xf32> to vector<8x128xf32>
    %20 = arith.addf %17, %19 : vector<8x128xf32>
    %c0_16 = arith.constant 0 : index
    %c0_17 = arith.constant 0 : index
    %21 = vector.load %arg8[%c0_16, %c0_17] : memref<8x128xf32, #tpu.memory_space<vmem>>, vector<8x128xf32>
    tpu.vector_store %arg8[%c0_16, %c0_17], %20 {strides = array<i32>} : memref<8x128xf32, #tpu.memory_space<vmem>>, vector<8x128xf32>,
    return
  }
  func.func @transform_0(%arg0: i32) -> (i32, i32) {
    %c0_i32 = arith.constant 0 : i32
    %c0_i32_0 = arith.constant 0 : i32
    %c0_i32_1 = arith.constant 0 : i32
    return %c0_i32, %c0_i32_0 : i32, i32
  }
  func.func @transform_1(%arg0: i32) -> (i32, i32) {
    %c0_i32 = arith.constant 0 : i32
    %c0_i32_0 = arith.constant 0 : i32
    %c0_i32_1 = arith.constant 0 : i32
    return %c0_i32, %c0_i32_0 : i32, i32
  }
  func.func @transform_2(%arg0: i32) -> (i32, i32) {
    %c0_i32 = arith.constant 0 : i32
    %c0_i32_0 = arith.constant 0 : i32
    %c0_i32_1 = arith.constant 0 : i32
    return %c0_i32, %c0_i32_0 : i32, i32
  }
  func.func @transform_3(%arg0: i32) -> (i32, i32) {
    %c0_i32 = arith.constant 0 : i32
    %c0_i32_0 = arith.constant 0 : i32
    %c0_i32_1 = arith.constant 0 : i32
    return %c0_i32, %c0_i32_0 : i32, i32
  }
  func.func @transform_4(%arg0: i32) -> (i32, i32) {
    %c0_i32 = arith.constant 0 : i32
    %c0_i32_0 = arith.constant 0 : i32
    %c0_i32_1 = arith.constant 0 : i32
    return %c0_i32, %c0_i32_0 : i32, i32
  }
  func.func @transform_5(%arg0: i32) -> (i32, i32) {
    %c0_i32 = arith.constant 0 : i32
    %c0_i32_0 = arith.constant 0 : i32
    %c0_i32_1 = arith.constant 0 : i32
    return %c0_i32, %c0_i32_0 : i32, i32
  }
  func.func @transform_6(%arg0: i32) -> (i32, i32) {
    %c0_i32 = arith.constant 0 : i32
    %c0_i32_0 = arith.constant 0 : i32
    %c0_i32_1 = arith.constant 0 : i32
    return %c0_i32, %c0_i32_0 : i32, i32
  }
  func.func @transform_7(%arg0: i32) -> (i32, i32) {
    %c0_i32 = arith.constant 0 : i32
    %c0_i32_0 = arith.constant 0 : i32
    %c0_i32_1 = arith.constant 0 : i32
    return %c0_i32, %c0_i32_0 : i32, i32
  }
}

</mosaic_0001>

<bundles_post_ra>
// kernel: _lambda_.21
= control target key start
LH: loop header
LB: loop body
LE: loop exit
PB: predicated region body
PF: predicated region fallthrough
CT: control target
= control target key end

     0   :  { %s1843_s15 = smov 0   ;;  %s1845_s16 = smov 0   ;;  %s2054_s0 = inlined_call_operand.vmem [shape: bf16[512,256], index: 0, kind: input, shape index: {}]   ;;  %s2055_s1 = inlined_call_operand.vmem [shape: bf16[256,128], index: 1, kind: input, shape index: {}]   ;;  %s2056_s2 = inlined_call_operand.vmem [shape: f32[1,128], index: 2, kind: input, shape index: {}]   ;;  %s2057_s3 = inlined_call_operand.vmem [shape: f32[1,128], index: 3, kind: input, shape index: {}]   ;;  %s2058_s4 = inlined_call_operand.vmem [shape: bf16[512,128], index: 4, kind: output, shape index: {}]  }
   0x1   :  { %s1847_s17 = smov 0  }
   0x2 LB: > { %s33_s18 = sadd.s32 1, %s1812_s16  ;;  %p1360_p0 = scmp.ge.s32.totalorder %s1816_s17, 1  ;;  %s1816_s17 = sphi %s1847_s17, %s14_s17   ;;  %s1812_s16 = sphi %s1845_s16, %s2060_s16   ;;  %s1808_s15 = sphi %s1843_s15, %s2059_s15  }
   0x3   : > { %p35_p1 = scmp.ge.s32.totalorder %s33_s18, 2  ;;  %p224_p2 = scmp.lt.s32.totalorder %s1816_s17, 3 }
   0x5   : > { %s2062_s18 = smov (%p35_p1, %s33_s18), 0  ;;  %p225_p3 = pnand %p1360_p0, %p224_p2 }
   0x6   : > { %s1361_s21 = sshll.u32 (!%p225_p3), %s1808_s15, 5 }
   0x7   : > { %228 = sbr.rel (%p225_p3) target bundleno = 311 (0x137), region = 36  ;;  %p274_p4 = scmp.lt.s32.totalorder (!%p225_p3), %s1361_s21, 63 }
   0xc   : > { %v1730_v0 = vld [vmem:[%s2055_s1 + $0x78] sm:$0xff]   ;;  %v1732_v2 = vld [vmem:[%s2055_s1 + $0x70] sm:$0xff]   ;;  %v1734_v4 = vld [vmem:[%s2055_s1 + $0x68] sm:$0xff]   ;;  %s2064_s21 = smov (!%p274_p4, %s1361_s21), 63 }
   0xd   : > { %v1731_v1 = vld [vmem:[%s2055_s1 + $0x38] sm:$0xff]   ;;  %1578 = vmatprep.subr.bf16.mxu0 %v1730_v0  ;;  %1690 = vmatprep.subr.bf16.mxu1 %v1730_v0  ;;  %v1733_v3 = vld [vmem:[%s2055_s1 + $0x30] sm:$0xff]   ;;  %v1735_v5 = vld [vmem:[%s2055_s1 + $0x28] sm:$0xff]   ;;  %s1450_s10 = sshll.u32 %s2064_s21, 3  ;;  %s1365_s12 = sshll.u32 %s2064_s21, 2 }
   0xe   : > { %1579 = vmatpush3.bf16.msra.mxu0 %v1731_v1  ;;  %1698 = vmatpush3.bf16.msra.mxu1 %v1731_v1  ;;  %v1736_v6 = vld [vmem:[%s2055_s1 + $0x60] sm:$0xff]   ;;  %v1738_v8 = vld [vmem:[%s2055_s1 + $0x58] sm:$0xff]   ;;  %s1894_s15 = scalar_lea.vmem %s2054_s0, %s1450_s10  ;;  %v1740_v10 = vld [vmem:[%s2055_s1 + $0x50] sm:$0xff]  }
   0xf   : > { %1580 = vmatprep.subr.bf16.mxu0 %v1732_v2  ;;  %1691 = vmatprep.subr.bf16.mxu1 %v1732_v2  ;;  %v1737_v7 = vld [vmem:[%s2055_s1 + $0x20] sm:$0xff]   ;;  %v1739_v9 = vld [vmem:[%s2055_s1 + $0x18] sm:$0xff]   ;;  %v1741_v13 = vld [vmem:[%s2055_s1 + $0x10] sm:$0xff]  }
  0x10   : > { %v1748_v11 = vld [vmem:[%s1894_s15 + $0x4] ss:$8 sps:$4 sm:$0xff]   ;;  %v1746_v18 = vld [vmem:[%s1894_s15] ss:$8 sps:$4 sm:$0xff]   ;;  %v1752_v20 = vld [vmem:[%s1894_s15 + $0x14] ss:$8 sps:$4 sm:$0xff]  }
  0x11   : > { %v1751_v12 = vld [vmem:[%s1894_s15 + $0x84] ss:$8 sps:$4 sm:$0xff]   ;;  %729 = vmatprep.mubr.bf16.mxu0 %v1748_v11  ;;  %v1749_v19 = vld [vmem:[%s1894_s15 + $0x80] ss:$8 sps:$4 sm:$0xff]   ;;  %v1754_v21 = vld [vmem:[%s1894_s15 + $0x94] ss:$8 sps:$4 sm:$0xff]  }
  0x12   : > { %1581 = vmatpush3.bf16.msra.mxu0 %v1733_v3  ;;  %1699 = vmatpush3.bf16.msra.mxu1 %v1733_v3  ;;  %v1742_v14 = vld [vmem:[%s2055_s1 + $0x48] sm:$0xff]   ;;  %v1744_v16 = vld [vmem:[%s2055_s1 + $0x40] sm:$0xff]   ;;  %v1756_v22 = vld [vmem:[%s1894_s15 + $0x10] ss:$8 sps:$4 sm:$0xff]  }
  0x13   : > { %1582 = vmatprep.subr.bf16.mxu0 %v1734_v4  ;;  %1692 = vmatprep.subr.bf16.mxu1 %v1734_v4  ;;  %v1743_v15 = vld [vmem:[%s2055_s1 + $0x8] sm:$0xff]   ;;  %v1745_v17 = vld [vmem:[%s2055_s1] sm:$0xff]   ;;  %v1757_v23 = vld [vmem:[%s1894_s15 + $0x90] ss:$8 sps:$4 sm:$0xff]  }
  0x14   : > { %793 = vmatprep.mubr.bf16.mxu1 %v1751_v12  ;;  %v1758_v24 = vld [vmem:[%s1894_s15 + $0x24] ss:$8 sps:$4 sm:$0xff]   ;;  %v1762_v26 = vld [vmem:[%s1894_s15 + $0x20] ss:$8 sps:$4 sm:$0xff]   ;;  %v1764_v28 = vld [vmem:[%s1894_s15 + $0x34] ss:$8 sps:$4 sm:$0xff]  }
  0x15   : > { %v1760_v25 = vld [vmem:[%s1894_s15 + $0xa4] ss:$8 sps:$4 sm:$0xff]   ;;  %v1763_v27 = vld [vmem:[%s1894_s15 + $0xa0] ss:$8 sps:$4 sm:$0xff]   ;;  %v1766_v29 = vld [vmem:[%s1894_s15 + $0xb4] ss:$8 sps:$4 sm:$0xff]  }
  0x16   : > { %1583 = vmatpush3.bf16.msra.mxu0 %v1735_v5  ;;  %1700 = vmatpush3.bf16.msra.mxu1 %v1735_v5  ;;  %v1768_v30 = vld [vmem:[%s1894_s15 + $0x30] ss:$8 sps:$4 sm:$0xff]   ;;  %v1770_v32 = vld [vmem:[%s1894_s15 + $0x44] ss:$8 sps:$4 sm:$0xff]   ;;  %v1774_v34 = vld [vmem:[%s1894_s15 + $0x40] ss:$8 sps:$4 sm:$0xff]  }
  0x17   : > { %1584 = vmatprep.subr.bf16.mxu0 %v1736_v6  ;;  %1693 = vmatprep.subr.bf16.mxu1 %v1736_v6  ;;  %v1769_v31 = vld [vmem:[%s1894_s15 + $0xb0] ss:$8 sps:$4 sm:$0xff]   ;;  %v1772_v33 = vld [vmem:[%s1894_s15 + $0xc4] ss:$8 sps:$4 sm:$0xff]   ;;  %v1775_v35 = vld [vmem:[%s1894_s15 + $0xc0] ss:$8 sps:$4 sm:$0xff]  }
  0x18   : > { %v1776_v36 = vld [vmem:[%s1894_s15 + $0x54] ss:$8 sps:$4 sm:$0xff]   ;;  %v1780_v38 = vld [vmem:[%s1894_s15 + $0x50] ss:$8 sps:$4 sm:$0xff]   ;;  %v1782_v40 = vld [vmem:[%s1894_s15 + $0x64] ss:$8 sps:$4 sm:$0xff]  }
  0x19   : > { %v1778_v37 = vld [vmem:[%s1894_s15 + $0xd4] ss:$8 sps:$4 sm:$0xff]   ;;  %v1781_v39 = vld [vmem:[%s1894_s15 + $0xd0] ss:$8 sps:$4 sm:$0xff]   ;;  %v1784_v41 = vld [vmem:[%s1894_s15 + $0xe4] ss:$8 sps:$4 sm:$0xff]  }
  0x1a   : > { %1585 = vmatpush3.bf16.msra.mxu0 %v1737_v7  ;;  %1701 = vmatpush3.bf16.msra.mxu1 %v1737_v7  ;;  %v1786_v42 = vld [vmem:[%s1894_s15 + $0x60] ss:$8 sps:$4 sm:$0xff]   ;;  %v1788_v44 = vld [vmem:[%s1894_s15 + $0x74] ss:$8 sps:$4 sm:$0xff]   ;;  %v1792_v46 = vld [vmem:[%s1894_s15 + $0x70] ss:$8 sps:$4 sm:$0xff]  }
  0x1b   : > { %1586 = vmatprep.subr.bf16.mxu0 %v1738_v8  ;;  %1694 = vmatprep.subr.bf16.mxu1 %v1738_v8  ;;  %v1787_v43 = vld [vmem:[%s1894_s15 + $0xe0] ss:$8 sps:$4 sm:$0xff]   ;;  %v1790_v45 = vld [vmem:[%s1894_s15 + $0xf4] ss:$8 sps:$4 sm:$0xff]   ;;  %v1793_v47 = vld [vmem:[%s1894_s15 + $0xf0] ss:$8 sps:$4 sm:$0xff]   ;;  %s1971_s15 = scalar_lea.vmem %s2058_s4, %s1365_s12 }
  0x1c   : > { %v1952_v51 = vld [vmem:[%s2056_s2] ss:$0 sm:$0xff] }
  0x1d   : > { %v1959_v59 = vld [vmem:[%s2057_s3] ss:$0 sm:$0xff] }
  0x1e   : > { %1587 = vmatpush3.bf16.msra.mxu0 %v1739_v9  ;;  %1702 = vmatpush3.bf16.msra.mxu1 %v1739_v9 }
  0x1f   : > { %1588 = vmatprep.subr.bf16.mxu0 %v1740_v10  ;;  %1695 = vmatprep.subr.bf16.mxu1 %v1740_v10 }
  0x22   : > { %1589 = vmatpush3.bf16.msra.mxu0 %v1741_v13  ;;  %1703 = vmatpush3.bf16.msra.mxu1 %v1741_v13 }
  0x23   : > { %1590 = vmatprep.subr.bf16.mxu0 %v1742_v14  ;;  %1696 = vmatprep.subr.bf16.mxu1 %v1742_v14 }
  0x26   : > { %1591 = vmatpush3.bf16.msra.mxu0 %v1743_v15  ;;  %1704 = vmatpush3.bf16.msra.mxu1 %v1743_v15 }
  0x27   : > { %1592 = vmatprep.subr.bf16.mxu0 %v1744_v16  ;;  %1697 = vmatprep.subr.bf16.mxu1 %v1744_v16 }
  0x2a   : > { %1593 = vmatpush3.bf16.msra.mxu0 %v1745_v17  ;;  %1705 = vmatpush3.bf16.msra.mxu1 %v1745_v17 }
  0x2d   : > { %730 = vmatmul.mubr.bf16.vlgmr.msra.gmra.mxu0 %v1746_v18  ;;  %794 = vmatmul.mubr.bf16.vlgmr.msra.gmra.mxu1 %v1749_v19 }
  0x2e   : > { %737 = vmatprep.mubr.bf16.mxu0 %v1752_v20  ;;  %801 = vmatprep.mubr.bf16.mxu1 %v1754_v21 }
  0x35   : > { %738 = vmatmul.mubr.bf16.gmra.mxu0 %v1756_v22  ;;  %802 = vmatmul.mubr.bf16.gmra.mxu1 %v1757_v23 }
  0x36   : > { %745 = vmatprep.mubr.bf16.mxu0 %v1758_v24  ;;  %809 = vmatprep.mubr.bf16.mxu1 %v1760_v25 }
  0x3d   : > { %746 = vmatmul.mubr.bf16.gmra.mxu0 %v1762_v26  ;;  %810 = vmatmul.mubr.bf16.gmra.mxu1 %v1763_v27 }
  0x3e   : > { %753 = vmatprep.mubr.bf16.mxu0 %v1764_v28  ;;  %817 = vmatprep.mubr.bf16.mxu1 %v1766_v29 }
  0x45   : > { %754 = vmatmul.mubr.bf16.gmra.mxu0 %v1768_v30  ;;  %818 = vmatmul.mubr.bf16.gmra.mxu1 %v1769_v31 }
  0x46   : > { %761 = vmatprep.mubr.bf16.mxu0 %v1770_v32  ;;  %825 = vmatprep.mubr.bf16.mxu1 %v1772_v33 }
  0x4d   : > { %762 = vmatmul.mubr.bf16.gmra.mxu0 %v1774_v34  ;;  %826 = vmatmul.mubr.bf16.gmra.mxu1 %v1775_v35 }
  0x4e   : > { %769 = vmatprep.mubr.bf16.mxu0 %v1776_v36  ;;  %833 = vmatprep.mubr.bf16.mxu1 %v1778_v37 }
  0x55   : > { %770 = vmatmul.mubr.bf16.gmra.mxu0 %v1780_v38  ;;  %834 = vmatmul.mubr.bf16.gmra.mxu1 %v1781_v39 }
  0x56   : > { %777 = vmatprep.mubr.bf16.mxu0 %v1782_v40  ;;  %841 = vmatprep.mubr.bf16.mxu1 %v1784_v41 }
  0x5d   : > { %778 = vmatmul.mubr.bf16.gmra.mxu0 %v1786_v42  ;;  %842 = vmatmul.mubr.bf16.gmra.mxu1 %v1787_v43 }
  0x5e   : > { %785 = vmatprep.mubr.bf16.mxu0 %v1788_v44  ;;  %849 = vmatprep.mubr.bf16.mxu1 %v1790_v45 }
  0x65   : > { %786 = vmatmul.mubr.bf16.gmra.mxu0 %v1792_v46  ;;  %850 = vmatmul.mubr.bf16.gmra.mxu1 %v1793_v47 }
  0xed   : > { %v1594_v48 = vpop.f32.mrf.mxu0  ;;  %v1642_v49 = vpop.f32.mrf.mxu1 }
  0xef   : > { %v1595_v50 = vpop.f32.mrf.mxu0  ;;  %v1643_v52 = vpop.f32.mrf.mxu1 }
  0xf0   : > { %v1596_v53 = vadd.f32 %v1595_v50, %v1594_v48  ;;  %v1644_v54 = vadd.f32 %v1643_v52, %v1642_v49 }
  0xf1   : > { %v1597_v55 = vpop.f32.mrf.mxu0  ;;  %v1645_v56 = vpop.f32.mrf.mxu1 }
  0xf2   : > { %v964_v57 = vmul.f32 %v1596_v53, %v1952_v51  ;;  %v980_v58 = vmul.f32 %v1644_v54, %v1952_v51 }
  0xf3   : > { %v1598_v60 = vpop.f32.mrf.mxu0  ;;  %v1646_v61 = vpop.f32.mrf.mxu1 }
  0xf4   : > { %v1599_v62 = vadd.f32 %v1598_v60, %v1597_v55  ;;  %v1647_v63 = vadd.f32 %v1646_v61, %v1645_v56  ;;  %v1003_v2 = vadd.f32 %v1959_v59, %v964_v57  ;;  %v1019_v3 = vadd.f32 %v1959_v59, %v980_v58 }
  0xf5   : > { %v1600_v0 = vpop.f32.mrf.mxu0  ;;  %v1648_v1 = vpop.f32.mrf.mxu1 }
  0xf6   : > { %v965_v4 = vmul.f32 %v1599_v62, %v1952_v51  ;;  %v981_v5 = vmul.f32 %v1647_v63, %v1952_v51  ;;  %v1035_v14 = vmax.f32 %v1003_v2, 0.0  ;;  %v1051_v15 = vmax.f32 %v1019_v3, 0.0 }
  0xf7   : > { %v1601_v6 = vpop.f32.mrf.mxu0  ;;  %v1649_v7 = vpop.f32.mrf.mxu1 }
  0xf8   : > { %v1004_v8 = vadd.f32 %v1959_v59, %v965_v4  ;;  %v1020_v9 = vadd.f32 %v1959_v59, %v981_v5  ;;  %v1602_v10 = vadd.f32 %v1601_v6, %v1600_v0  ;;  %v1650_v11 = vadd.f32 %v1649_v7, %v1648_v1 }
  0xf9   : > { %v1603_v12 = vpop.f32.mrf.mxu0  ;;  %v1651_v13 = vpop.f32.mrf.mxu1 }
  0xfa   : > { %v1036_v16 = vmax.f32 %v1004_v8, 0.0  ;;  %v1052_v17 = vmax.f32 %v1020_v9, 0.0  ;;  %v966_v18 = vmul.f32 %v1602_v10, %v1952_v51  ;;  %v982_v19 = vmul.f32 %v1650_v11, %v1952_v51 }
  0xfb   : > { %v1604_v20 = vpop.f32.mrf.mxu0  ;;  %v1652_v21 = vpop.f32.mrf.mxu1 }
  0xfc   : > { %v1486_v22 = vpack.c.bf16 %v1036_v16, %v1035_v14  ;;  %v1526_v23 = vpack.c.bf16 %v1052_v17, %v1051_v15  ;;  %v1605_v24 = vadd.f32 %v1604_v20, %v1603_v12  ;;  %v1653_v25 = vadd.f32 %v1652_v21, %v1651_v13 }
  0xfd   : > { %v1606_v26 = vpop.f32.mrf.mxu0  ;;  %v1654_v27 = vpop.f32.mrf.mxu1  ;;  %v1005_v28 = vadd.f32 %v1959_v59, %v966_v18  ;;  %v1021_v29 = vadd.f32 %v1959_v59, %v982_v19 }
  0xfe   : > { %1487 = vst [vmem:[%s1971_s15] sm:$0xff] %v1486_v22   ;;  %1570 = vst [vmem:[%s1971_s15 + $0x40] sm:$0xff] %v1526_v23   ;;  %v967_v30 = vmul.f32 %v1605_v24, %v1952_v51  ;;  %v983_v31 = vmul.f32 %v1653_v25, %v1952_v51 }
  0xff   : > { %v1607_v32 = vpop.f32.mrf.mxu0  ;;  %v1655_v33 = vpop.f32.mrf.mxu1  ;;  %v1037_v42 = vmax.f32 %v1005_v28, 0.0  ;;  %v1053_v43 = vmax.f32 %v1021_v29, 0.0 }
 0x100   : > { %v1608_v34 = vadd.f32 %v1607_v32, %v1606_v26  ;;  %v1656_v35 = vadd.f32 %v1655_v33, %v1654_v27  ;;  %v1006_v36 = vadd.f32 %v1959_v59, %v967_v30  ;;  %v1022_v37 = vadd.f32 %v1959_v59, %v983_v31 }
 0x101   : > { %v1609_v38 = vpop.f32.mrf.mxu0  ;;  %v1657_v39 = vpop.f32.mrf.mxu1 }
 0x102   : > { %v968_v40 = vmul.f32 %v1608_v34, %v1952_v51  ;;  %v984_v41 = vmul.f32 %v1656_v35, %v1952_v51  ;;  %v1038_v44 = vmax.f32 %v1006_v36, 0.0  ;;  %v1054_v45 = vmax.f32 %v1022_v37, 0.0 }
 0x103   : > { %v1610_v46 = vpop.f32.mrf.mxu0  ;;  %v1658_v47 = vpop.f32.mrf.mxu1 }
 0x104   : > { %v1611_v48 = vadd.f32 %v1610_v46, %v1609_v38  ;;  %v1659_v49 = vadd.f32 %v1658_v47, %v1657_v39  ;;  %v1491_v50 = vpack.c.bf16 %v1038_v44, %v1037_v42  ;;  %v1531_v52 = vpack.c.bf16 %v1054_v45, %v1053_v43 }
 0x105   : > { %v1612_v53 = vpop.f32.mrf.mxu0  ;;  %v1660_v54 = vpop.f32.mrf.mxu1  ;;  %v1007_v55 = vadd.f32 %v1959_v59, %v968_v40  ;;  %v1023_v56 = vadd.f32 %v1959_v59, %v984_v41 }
 0x106   : > { %v969_v57 = vmul.f32 %v1611_v48, %v1952_v51  ;;  %v985_v58 = vmul.f32 %v1659_v49, %v1952_v51  ;;  %1563 = vst [vmem:[%s1971_s15 + $0x8] sm:$0xff] %v1491_v50   ;;  %1571 = vst [vmem:[%s1971_s15 + $0x48] sm:$0xff] %v1531_v52  }
 0x107   : > { %v1613_v60 = vpop.f32.mrf.mxu0  ;;  %v1661_v61 = vpop.f32.mrf.mxu1  ;;  %v1039_v4 = vmax.f32 %v1007_v55, 0.0  ;;  %v1055_v5 = vmax.f32 %v1023_v56, 0.0 }
 0x108   : > { %v1008_v62 = vadd.f32 %v1959_v59, %v969_v57  ;;  %v1024_v63 = vadd.f32 %v1959_v59, %v985_v58  ;;  %v1614_v0 = vadd.f32 %v1613_v60, %v1612_v53  ;;  %v1662_v1 = vadd.f32 %v1661_v61, %v1660_v54 }
 0x109   : > { %v1615_v2 = vpop.f32.mrf.mxu0  ;;  %v1663_v3 = vpop.f32.mrf.mxu1 }
 0x10a   : > { %v1040_v6 = vmax.f32 %v1008_v62, 0.0  ;;  %v1056_v7 = vmax.f32 %v1024_v63, 0.0  ;;  %v970_v8 = vmul.f32 %v1614_v0, %v1952_v51  ;;  %v986_v9 = vmul.f32 %v1662_v1, %v1952_v51 }
 0x10b   : > { %v1616_v10 = vpop.f32.mrf.mxu0  ;;  %v1664_v11 = vpop.f32.mrf.mxu1 }
 0x10c   : > { %v1496_v12 = vpack.c.bf16 %v1040_v6, %v1039_v4  ;;  %v1536_v13 = vpack.c.bf16 %v1056_v7, %v1055_v5  ;;  %v1617_v14 = vadd.f32 %v1616_v10, %v1615_v2  ;;  %v1665_v15 = vadd.f32 %v1664_v11, %v1663_v3 }
 0x10d   : > { %v1618_v16 = vpop.f32.mrf.mxu0  ;;  %v1666_v17 = vpop.f32.mrf.mxu1  ;;  %v1009_v18 = vadd.f32 %v1959_v59, %v970_v8  ;;  %v1025_v19 = vadd.f32 %v1959_v59, %v986_v9 }
 0x10e   : > { %1564 = vst [vmem:[%s1971_s15 + $0x10] sm:$0xff] %v1496_v12   ;;  %1572 = vst [vmem:[%s1971_s15 + $0x50] sm:$0xff] %v1536_v13   ;;  %v971_v20 = vmul.f32 %v1617_v14, %v1952_v51  ;;  %v987_v21 = vmul.f32 %v1665_v15, %v1952_v51 }
 0x10f   : > { %v1619_v22 = vpop.f32.mrf.mxu0  ;;  %v1667_v23 = vpop.f32.mrf.mxu1  ;;  %v1041_v32 = vmax.f32 %v1009_v18, 0.0  ;;  %v1057_v33 = vmax.f32 %v1025_v19, 0.0 }
 0x110   : > { %v1620_v24 = vadd.f32 %v1619_v22, %v1618_v16  ;;  %v1668_v25 = vadd.f32 %v1667_v23, %v1666_v17  ;;  %v1010_v26 = vadd.f32 %v1959_v59, %v971_v20  ;;  %v1026_v27 = vadd.f32 %v1959_v59, %v987_v21 }
 0x111   : > { %v1621_v28 = vpop.f32.mrf.mxu0  ;;  %v1669_v29 = vpop.f32.mrf.mxu1 }
 0x112   : > { %v972_v30 = vmul.f32 %v1620_v24, %v1952_v51  ;;  %v988_v31 = vmul.f32 %v1668_v25, %v1952_v51  ;;  %v1042_v34 = vmax.f32 %v1010_v26, 0.0  ;;  %v1058_v35 = vmax.f32 %v1026_v27, 0.0 }
 0x113   : > { %v1622_v36 = vpop.f32.mrf.mxu0  ;;  %v1670_v37 = vpop.f32.mrf.mxu1 }
 0x114   : > { %v1623_v38 = vadd.f32 %v1622_v36, %v1621_v28  ;;  %v1671_v39 = vadd.f32 %v1670_v37, %v1669_v29  ;;  %v1501_v40 = vpack.c.bf16 %v1042_v34, %v1041_v32  ;;  %v1541_v41 = vpack.c.bf16 %v1058_v35, %v1057_v33 }
 0x115   : > { %v1624_v42 = vpop.f32.mrf.mxu0  ;;  %v1672_v43 = vpop.f32.mrf.mxu1  ;;  %v1011_v44 = vadd.f32 %v1959_v59, %v972_v30  ;;  %v1027_v45 = vadd.f32 %v1959_v59, %v988_v31 }
 0x116   : > { %v973_v46 = vmul.f32 %v1623_v38, %v1952_v51  ;;  %v989_v47 = vmul.f32 %v1671_v39, %v1952_v51  ;;  %1565 = vst [vmem:[%s1971_s15 + $0x18] sm:$0xff] %v1501_v40   ;;  %1573 = vst [vmem:[%s1971_s15 + $0x58] sm:$0xff] %v1541_v41  }
 0x117   : > { %v1625_v48 = vpop.f32.mrf.mxu0  ;;  %v1673_v49 = vpop.f32.mrf.mxu1  ;;  %v1043_v57 = vmax.f32 %v1011_v44, 0.0  ;;  %v1059_v58 = vmax.f32 %v1027_v45, 0.0 }
 0x118   : > { %v1012_v50 = vadd.f32 %v1959_v59, %v973_v46  ;;  %v1028_v52 = vadd.f32 %v1959_v59, %v989_v47  ;;  %v1626_v53 = vadd.f32 %v1625_v48, %v1624_v42  ;;  %v1674_v54 = vadd.f32 %v1673_v49, %v1672_v43 }
 0x119   : > { %v1627_v55 = vpop.f32.mrf.mxu0  ;;  %v1675_v56 = vpop.f32.mrf.mxu1 }
 0x11a   : > { %v1044_v60 = vmax.f32 %v1012_v50, 0.0  ;;  %v1060_v61 = vmax.f32 %v1028_v52, 0.0  ;;  %v974_v62 = vmul.f32 %v1626_v53, %v1952_v51  ;;  %v990_v63 = vmul.f32 %v1674_v54, %v1952_v51 }
 0x11b   : > { %v1628_v0 = vpop.f32.mrf.mxu0  ;;  %v1676_v1 = vpop.f32.mrf.mxu1 }
 0x11c   : > { %v1506_v2 = vpack.c.bf16 %v1044_v60, %v1043_v57  ;;  %v1546_v3 = vpack.c.bf16 %v1060_v61, %v1059_v58  ;;  %v1629_v4 = vadd.f32 %v1628_v0, %v1627_v55  ;;  %v1677_v5 = vadd.f32 %v1676_v1, %v1675_v56 }
 0x11d   : > { %v1630_v6 = vpop.f32.mrf.mxu0  ;;  %v1678_v7 = vpop.f32.mrf.mxu1  ;;  %v1013_v8 = vadd.f32 %v1959_v59, %v974_v62  ;;  %v1029_v9 = vadd.f32 %v1959_v59, %v990_v63 }
 0x11e   : > { %1566 = vst [vmem:[%s1971_s15 + $0x20] sm:$0xff] %v1506_v2   ;;  %1574 = vst [vmem:[%s1971_s15 + $0x60] sm:$0xff] %v1546_v3   ;;  %v975_v10 = vmul.f32 %v1629_v4, %v1952_v51  ;;  %v991_v11 = vmul.f32 %v1677_v5, %v1952_v51 }
 0x11f   : > { %v1631_v12 = vpop.f32.mrf.mxu0  ;;  %v1679_v13 = vpop.f32.mrf.mxu1  ;;  %v1045_v22 = vmax.f32 %v1013_v8, 0.0  ;;  %v1061_v23 = vmax.f32 %v1029_v9, 0.0 }
 0x120   : > { %v1632_v14 = vadd.f32 %v1631_v12, %v1630_v6  ;;  %v1680_v15 = vadd.f32 %v1679_v13, %v1678_v7  ;;  %v1014_v16 = vadd.f32 %v1959_v59, %v975_v10  ;;  %v1030_v17 = vadd.f32 %v1959_v59, %v991_v11 }
 0x121   : > { %v1633_v18 = vpop.f32.mrf.mxu0  ;;  %v1681_v19 = vpop.f32.mrf.mxu1 }
 0x122   : > { %v976_v20 = vmul.f32 %v1632_v14, %v1952_v51  ;;  %v992_v21 = vmul.f32 %v1680_v15, %v1952_v51  ;;  %v1046_v24 = vmax.f32 %v1014_v16, 0.0  ;;  %v1062_v25 = vmax.f32 %v1030_v17, 0.0 }
 0x123   : > { %v1634_v26 = vpop.f32.mrf.mxu0  ;;  %v1682_v27 = vpop.f32.mrf.mxu1 }
 0x124   : > { %v1635_v28 = vadd.f32 %v1634_v26, %v1633_v18  ;;  %v1683_v29 = vadd.f32 %v1682_v27, %v1681_v19  ;;  %v1511_v30 = vpack.c.bf16 %v1046_v24, %v1045_v22  ;;  %v1551_v31 = vpack.c.bf16 %v1062_v25, %v1061_v23 }
 0x125   : > { %v1636_v32 = vpop.f32.mrf.mxu0  ;;  %v1684_v33 = vpop.f32.mrf.mxu1  ;;  %v1015_v34 = vadd.f32 %v1959_v59, %v976_v20  ;;  %v1031_v35 = vadd.f32 %v1959_v59, %v992_v21 }
 0x126   : > { %v977_v36 = vmul.f32 %v1635_v28, %v1952_v51  ;;  %v993_v37 = vmul.f32 %v1683_v29, %v1952_v51  ;;  %1567 = vst [vmem:[%s1971_s15 + $0x28] sm:$0xff] %v1511_v30   ;;  %1575 = vst [vmem:[%s1971_s15 + $0x68] sm:$0xff] %v1551_v31  }
 0x127   : > { %v1637_v38 = vpop.f32.mrf.mxu0  ;;  %v1685_v39 = vpop.f32.mrf.mxu1  ;;  %v1047_v46 = vmax.f32 %v1015_v34, 0.0  ;;  %v1063_v47 = vmax.f32 %v1031_v35, 0.0 }
 0x128   : > { %v1016_v40 = vadd.f32 %v1959_v59, %v977_v36  ;;  %v1032_v41 = vadd.f32 %v1959_v59, %v993_v37  ;;  %v1638_v42 = vadd.f32 %v1637_v38, %v1636_v32  ;;  %v1686_v43 = vadd.f32 %v1685_v39, %v1684_v33 }
 0x129   : > { %v1639_v44 = vpop.f32.mrf.mxu0  ;;  %v1687_v45 = vpop.f32.mrf.mxu1 }
 0x12a   : > { %v1048_v48 = vmax.f32 %v1016_v40, 0.0  ;;  %v1064_v49 = vmax.f32 %v1032_v41, 0.0  ;;  %v978_v50 = vmul.f32 %v1638_v42, %v1952_v51  ;;  %v994_v52 = vmul.f32 %v1686_v43, %v1952_v51 }
 0x12b   : > { %v1640_v53 = vpop.f32.mrf.mxu0  ;;  %v1688_v54 = vpop.f32.mrf.mxu1 }
 0x12c   : > { %v1516_v55 = vpack.c.bf16 %v1048_v48, %v1047_v46  ;;  %v1556_v56 = vpack.c.bf16 %v1064_v49, %v1063_v47  ;;  %v1641_v57 = vadd.f32 %v1640_v53, %v1639_v44  ;;  %v1689_v58 = vadd.f32 %v1688_v54, %v1687_v45 }
 0x12d   : > { %v1017_v60 = vadd.f32 %v1959_v59, %v978_v50  ;;  %v1033_v61 = vadd.f32 %v1959_v59, %v994_v52 }
 0x12e   : > { %1568 = vst [vmem:[%s1971_s15 + $0x30] sm:$0xff] %v1516_v55   ;;  %1576 = vst [vmem:[%s1971_s15 + $0x70] sm:$0xff] %v1556_v56   ;;  %v979_v62 = vmul.f32 %v1641_v57, %v1952_v51  ;;  %v995_v63 = vmul.f32 %v1689_v58, %v1952_v51 }
 0x12f   : > { %v1049_v2 = vmax.f32 %v1017_v60, 0.0  ;;  %v1065_v3 = vmax.f32 %v1033_v61, 0.0 }
 0x130   : > { %v1018_v0 = vadd.f32 %v1959_v59, %v979_v62  ;;  %v1034_v1 = vadd.f32 %v1959_v59, %v995_v63 }
 0x132   : > { %v1050_v4 = vmax.f32 %v1018_v0, 0.0  ;;  %v1066_v5 = vmax.f32 %v1034_v1, 0.0 }
 0x134   : > { %v1521_v6 = vpack.c.bf16 %v1050_v4, %v1049_v2  ;;  %v1561_v7 = vpack.c.bf16 %v1066_v5, %v1065_v3 }
 0x136   : > { %1569 = vst [vmem:[%s1971_s15 + $0x38] sm:$0xff] %v1521_v6   ;;  %1577 = vst [vmem:[%s1971_s15 + $0x78] sm:$0xff] %v1561_v7  }
 0x137 PF: > { %s14_s17 = sadd.s32 1, %s1816_s17   ;;  %s2059_s15 = smov %s1812_s16 }
 0x138   : > { %p11_p5 = scmp.ge.s32.totalorder %s14_s17, 4   ;;  %s2060_s16 = smov %s2062_s18 }
 0x13a   :  { %13 = sbr.rel (!%p11_p5) target bundleno = 2 (0x2), region = 83 }

// kernel: _lambda_.22
= control target key start
LH: loop header
LB: loop body
LE: loop exit
PB: predicated region body
PF: predicated region fallthrough
CT: control target
= control target key end

     0   :  { %s1275_s15 = smov 0   ;;  %s1277_s16 = smov 0   ;;  %s1446_s0 = inlined_call_operand.vmem [shape: bf16[128,640], index: 0, kind: input, shape index: {}]   ;;  %s1447_s1 = inlined_call_operand.vmem [shape: bf16[640,128], index: 1, kind: input, shape index: {}]   ;;  %s1448_s2 = inlined_call_operand.vmem [shape: f32[1,128], index: 2, kind: input, shape index: {}]   ;;  %s1449_s3 = inlined_call_operand.vmem [shape: f32[1,128], index: 3, kind: input, shape index: {}]   ;;  %s1450_s4 = inlined_call_operand.vmem [shape: bf16[128,128], index: 4, kind: output, shape index: {}]  }
   0x1   :  { %s1279_s17 = smov 0   ;;  %s1281_s18 = smov 0  }
   0x2   :  { %s1283_s19 = smov 0  }
   0x3 LB: > { %s26_s20 = sadd.s32 1, %s1243_s18  ;;  %p49_p1 = scmp.ne.s32.totalorder %s1235_s16, %s1231_s15  ;;  %s1247_s19 = sphi %s1283_s19, %s14_s19   ;;  %s1243_s18 = sphi %s1281_s18, %s1454_s18   ;;  %s1239_s17 = sphi %s1279_s17, %s1453_s17   ;;  %s1235_s16 = sphi %s1277_s16, %s1452_s16   ;;  %s1231_s15 = sphi %s1275_s15, %s1451_s15  }
   0x4   : > { %p27_p0 = scmp.ge.s32.totalorder %s26_s20, 5  ;;  %p50_p2 = scmp.eq.s32.totalorder %s1247_s19, 0 }
   0x5   : > { %s42_s22 = sadd.s32 1, %s1235_s16  ;;  %p978_p5 = scmp.ge.s32.totalorder %s1247_s19, 5 }
   0x6   : > { %s1456_s20 = smov (%p27_p0, %s26_s20), 0  ;;  %p51_p3 = por %p50_p2, %p49_p1 }
   0x7   : > { %s38_s21 = ssub.s32 %s1243_s18, %s1456_s20  ;;  %195 = sbr.rel (%p978_p5) target bundleno = 26 (0x1a), region = 24 }
   0x8   : > { %p40_p4 = scmp.eq.s32.totalorder %s38_s21, 0 }
   0xa   : > { %s1310_s23 = scalar_select %p40_p4, %s1235_s16, %s42_s22  }
   0xc   : > { %198 = sbr.rel (!%p51_p3) target bundleno = 26 (0x1a), region = 28  ;;  %s200_s24 = sand.u32 (%p51_p3), 1, %s1235_s16  }
   0xd   : > { %s980_s25 = sshll.u32 (%p51_p3), %s1243_s18, 2  ;;  %s979_s26 = sshll.u32 (%p51_p3), %s200_s24, 6 }
   0xe   : > { %s1318_s29 = scalar_lea.vmem (%p51_p3), %s1446_s0, %s980_s25  ;;  %s202_s30 = scalar_lea.vmem (%p51_p3), [#allocation3], %s979_s26 }
   0xf   : > { %v224_v0 = vld [vmem:[%s1318_s29] sm:$0xf] (%p51_p3)  ;;  %v226_v1 = vld [vmem:[%s1318_s29 + $0x14] sm:$0xf] (%p51_p3)  ;;  %v228_v2 = vld [vmem:[%s1318_s29 + $0x28] sm:$0xf] (%p51_p3) }
  0x10   : > { %225 = vst [vmem:[%s202_s30] sm:$0xf] (%p51_p3), %v224_v0  ;;  %227 = vst [vmem:[%s202_s30 + $0x4] sm:$0xf] (%p51_p3), %v226_v1  ;;  %v230_v3 = vld [vmem:[%s1318_s29 + $0x3c] sm:$0xf] (%p51_p3) }
  0x11   : > { %v232_v4 = vld [vmem:[%s1318_s29 + $0x50] sm:$0xf]  ;;  %229 = vst [vmem:[%s202_s30 + $0x8] sm:$0xf] %v228_v2  ;;  %231 = vst [vmem:[%s202_s30 + $0xc] sm:$0xf] %v230_v3 }
  0x12   : > { %233 = vst [vmem:[%s202_s30 + $0x10] sm:$0xf] %v232_v4  ;;  %v234_v5 = vld [vmem:[%s1318_s29 + $0x64] sm:$0xf]  ;;  %v236_v6 = vld [vmem:[%s1318_s29 + $0x78] sm:$0xf] }
  0x13   : > { %v238_v7 = vld [vmem:[%s1318_s29 + $0x8c] sm:$0xf]  ;;  %235 = vst [vmem:[%s202_s30 + $0x14] sm:$0xf] %v234_v5  ;;  %237 = vst [vmem:[%s202_s30 + $0x18] sm:$0xf] %v236_v6 }
  0x14   : > { %239 = vst [vmem:[%s202_s30 + $0x1c] sm:$0xf] %v238_v7  ;;  %v240_v8 = vld [vmem:[%s1318_s29 + $0xa0] sm:$0xf]  ;;  %v242_v9 = vld [vmem:[%s1318_s29 + $0xb4] sm:$0xf] }
  0x15   : > { %v244_v10 = vld [vmem:[%s1318_s29 + $0xc8] sm:$0xf]  ;;  %241 = vst [vmem:[%s202_s30 + $0x20] sm:$0xf] %v240_v8  ;;  %243 = vst [vmem:[%s202_s30 + $0x24] sm:$0xf] %v242_v9 }
  0x16   : > { %245 = vst [vmem:[%s202_s30 + $0x28] sm:$0xf] %v244_v10  ;;  %v246_v11 = vld [vmem:[%s1318_s29 + $0xdc] sm:$0xf]  ;;  %v248_v12 = vld [vmem:[%s1318_s29 + $0xf0] sm:$0xf] }
  0x17   : > { %v250_v13 = vld [vmem:[%s1318_s29 + $0x104] sm:$0xf]  ;;  %247 = vst [vmem:[%s202_s30 + $0x2c] sm:$0xf] %v246_v11  ;;  %249 = vst [vmem:[%s202_s30 + $0x30] sm:$0xf] %v248_v12 }
  0x18   : > { %251 = vst [vmem:[%s202_s30 + $0x34] sm:$0xf] %v250_v13  ;;  %v252_v14 = vld [vmem:[%s1318_s29 + $0x118] sm:$0xf]  ;;  %v254_v15 = vld [vmem:[%s1318_s29 + $0x12c] sm:$0xf] }
  0x19   : > { %253 = vst [vmem:[%s202_s30 + $0x38] sm:$0xf] %v252_v14  ;;  %255 = vst [vmem:[%s202_s30 + $0x3c] sm:$0xf] %v254_v15 }
  0x1a PF: > { %p981_p6 = scmp.ge.s32.totalorder %s1247_s19, 1  ;;  %p322_p7 = scmp.lt.s32.totalorder %s1247_s19, 6 }
  0x1c   : > { %p323_p8 = pnand %p981_p6, %p322_p7 }
  0x1d   : > { %s329_s5 = sand.u32 (!%p323_p8), 1, %s1231_s15   ;;  %s983_s6 = sshll.u32 (!%p323_p8), %s1239_s17, 4 }
  0x1e   : > { %326 = sbr.rel (%p323_p8) target bundleno = 313 (0x139), region = 73  ;;  %s982_s7 = sshll.u32 (!%p323_p8), %s329_s5, 6 }
  0x1f   : > { %p373_p9 = scmp.lt.s32.totalorder (!%p323_p8), %s983_s6, 79  ;;  %s1345_s12 = scalar_lea.vmem (!%p323_p8), [#allocation3], %s982_s7 }
  0x20   : > { %p985_p10 = scmp.ne.s32.totalorder (!%p323_p8), %s1239_s17, 0 }
  0x23   : > { %s1458_s6 = smov (!%p373_p9, %s983_s6), 79  ;;  %400 = sbr.rel (%p985_p10) target bundleno = 49 (0x31), region = 81 }
  0x24   : > { %s984_s8 = sshll.u32 %s1458_s6, 2 }
  0x25   : > { %s1343_s11 = scalar_lea.vmem %s1447_s1, %s984_s8 }
  0x28   : > { %v1249_v16 = vmov 0.0  }
  0x29   : > { %401 = vst [vmem:[#allocation2 + $0x30] sm:$0xff] %v1249_v16  ;;  %402 = vst [vmem:[#allocation2] sm:$0xff] %v1249_v16 }
  0x2a   : > { %403 = vst [vmem:[#allocation2 + $0x58] sm:$0xff] %v1249_v16  ;;  %404 = vst [vmem:[#allocation2 + $0x18] sm:$0xff] %v1249_v16 }
  0x2b   : > { %405 = vst [vmem:[#allocation2 + $0x50] sm:$0xff] %v1249_v16  ;;  %406 = vst [vmem:[#allocation2 + $0x68] sm:$0xff] %v1249_v16 }
  0x2c   : > { %407 = vst [vmem:[#allocation2 + $0x8] sm:$0xff] %v1249_v16  ;;  %408 = vst [vmem:[#allocation2 + $0x48] sm:$0xff] %v1249_v16 }
  0x2d   : > { %409 = vst [vmem:[#allocation2 + $0x40] sm:$0xff] %v1249_v16  ;;  %410 = vst [vmem:[#allocation2 + $0x20] sm:$0xff] %v1249_v16 }
  0x2e   : > { %411 = vst [vmem:[#allocation2 + $0x10] sm:$0xff] %v1249_v16  ;;  %412 = vst [vmem:[#allocation2 + $0x38] sm:$0xff] %v1249_v16 }
  0x2f   : > { %413 = vst [vmem:[#allocation2 + $0x60] sm:$0xff] %v1249_v16  ;;  %414 = vst [vmem:[#allocation2 + $0x70] sm:$0xff] %v1249_v16 }
  0x30   : > { %415 = vst [vmem:[#allocation2 + $0x78] sm:$0xff] %v1249_v16  ;;  %416 = vst [vmem:[#allocation2 + $0x28] sm:$0xff] %v1249_v16 }
  0x31 PF: > { %v1193_v17 = vld [vmem:[%s1343_s11 + $0x38] sm:$0xff]   ;;  %v1194_v18 = vld [vmem:[%s1343_s11 + $0x30] sm:$0xff]   ;;  %v1195_v19 = vld [vmem:[%s1343_s11 + $0x28] sm:$0xff]   ;;  %p1002_p11 = scmp.ne.s32.totalorder %s1239_s17, 4 }
  0x32   : > { %1104 = vmatprep.subr.bf16.mxu0 %v1193_v17  ;;  %1136 = vmatprep.subr.bf16.mxu1 %v1193_v17  ;;  %v1196_v20 = vld [vmem:[%s1343_s11 + $0x20] sm:$0xff]   ;;  %v1197_v23 = vld [vmem:[%s1343_s11 + $0x18] sm:$0xff]   ;;  %v1198_v24 = vld [vmem:[%s1343_s11 + $0x10] sm:$0xff]  }
  0x33   : > { %1105 = vmatpush3.bf16.msra.mxu0 %v1193_v17  ;;  %1144 = vmatpush3.bf16.msra.mxu1 %v1193_v17  ;;  %v1201_v21 = vld [vmem:[%s1345_s12] sm:$0xff]   ;;  %v1199_v25 = vld [vmem:[%s1343_s11 + $0x8] sm:$0xff]   ;;  %v1205_v29 = vld [vmem:[%s1345_s12 + $0x10] sm:$0xff]  }
  0x34   : > { %1106 = vmatprep.subr.bf16.mxu0 %v1194_v18  ;;  %1137 = vmatprep.subr.bf16.mxu1 %v1194_v18  ;;  %v1202_v22 = vld [vmem:[%s1345_s12 + $0x20] sm:$0xff]   ;;  %v1203_v27 = vld [vmem:[%s1345_s12 + $0x8] sm:$0xff]   ;;  %v1206_v30 = vld [vmem:[%s1345_s12 + $0x30] sm:$0xff]  }
  0x35   : > { %1120 = vmatprep.mubr.bf16.mxu0 %v1201_v21  ;;  %1128 = vmatprep.mubr.bf16.mxu1 %v1202_v22  ;;  %v1200_v26 = vld [vmem:[%s1343_s11] sm:$0xff]   ;;  %v1204_v28 = vld [vmem:[%s1345_s12 + $0x28] sm:$0xff]   ;;  %v1207_v31 = vld [vmem:[%s1345_s12 + $0x18] sm:$0xff]  }
  0x36   : > { %v1208_v32 = vld [vmem:[%s1345_s12 + $0x38] sm:$0xff]   ;;  %v427_v34 = vld [vmem:[#allocation2 + $0x10] sm:$0xff]  ;;  %v425_v38 = vld [vmem:[#allocation2 + $0x40] sm:$0xff] }
  0x37   : > { %1107 = vmatpush3.bf16.msra.mxu0 %v1194_v18  ;;  %1145 = vmatpush3.bf16.msra.mxu1 %v1194_v18  ;;  %v419_v33 = vld [vmem:[#allocation2 + $0x58] sm:$0xff]  ;;  %v417_v37 = vld [vmem:[#allocation2 + $0x30] sm:$0xff]  ;;  %v418_v49 = vld [vmem:[#allocation2] sm:$0xff] }
  0x38   : > { %1108 = vmatprep.subr.bf16.mxu0 %v1195_v19  ;;  %1138 = vmatprep.subr.bf16.mxu1 %v1195_v19  ;;  %v420_v43 = vld [vmem:[#allocation2 + $0x18] sm:$0xff]  ;;  %v426_v50 = vld [vmem:[#allocation2 + $0x20] sm:$0xff]  ;;  %v423_v55 = vld [vmem:[#allocation2 + $0x8] sm:$0xff] }
  0x39   : > { %v428_v44 = vld [vmem:[#allocation2 + $0x38] sm:$0xff]  ;;  %v421_v61 = vld [vmem:[#allocation2 + $0x50] sm:$0xff]  ;;  %v429_v62 = vld [vmem:[#allocation2 + $0x60] sm:$0xff] }
  0x3a   : > { %v431_v56 = vld [vmem:[#allocation2 + $0x78] sm:$0xff]  ;;  %v424_v3 = vld [vmem:[#allocation2 + $0x48] sm:$0xff]  ;;  %v430_v10 = vld [vmem:[#allocation2 + $0x70] sm:$0xff] }
  0x3b   : > { %1109 = vmatpush3.bf16.msra.mxu0 %v1195_v19  ;;  %1146 = vmatpush3.bf16.msra.mxu1 %v1195_v19  ;;  %v432_v4 = vld [vmem:[#allocation2 + $0x28] sm:$0xff] }
  0x3c   : > { %1110 = vmatprep.subr.bf16.mxu0 %v1196_v20  ;;  %1139 = vmatprep.subr.bf16.mxu1 %v1196_v20  ;;  %v422_v9 = vld [vmem:[#allocation2 + $0x68] sm:$0xff] }
  0x3f   : > { %1111 = vmatpush3.bf16.msra.mxu0 %v1196_v20  ;;  %1147 = vmatpush3.bf16.msra.mxu1 %v1196_v20 }
  0x40   : > { %1112 = vmatprep.subr.bf16.mxu0 %v1197_v23  ;;  %1140 = vmatprep.subr.bf16.mxu1 %v1197_v23 }
  0x43   : > { %1113 = vmatpush3.bf16.msra.mxu0 %v1197_v23  ;;  %1148 = vmatpush3.bf16.msra.mxu1 %v1197_v23 }
  0x44   : > { %1114 = vmatprep.subr.bf16.mxu0 %v1198_v24  ;;  %1141 = vmatprep.subr.bf16.mxu1 %v1198_v24 }
  0x47   : > { %1115 = vmatpush3.bf16.msra.mxu0 %v1198_v24  ;;  %1149 = vmatpush3.bf16.msra.mxu1 %v1198_v24 }
  0x48   : > { %1116 = vmatprep.subr.bf16.mxu0 %v1199_v25  ;;  %1142 = vmatprep.subr.bf16.mxu1 %v1199_v25 }
  0x4b   : > { %1117 = vmatpush3.bf16.msra.mxu0 %v1199_v25  ;;  %1150 = vmatpush3.bf16.msra.mxu1 %v1199_v25 }
  0x4c   : > { %1118 = vmatprep.subr.bf16.mxu0 %v1200_v26  ;;  %1143 = vmatprep.subr.bf16.mxu1 %v1200_v26 }
  0x4f   : > { %1119 = vmatpush3.bf16.msra.mxu0 %v1200_v26  ;;  %1151 = vmatpush3.bf16.msra.mxu1 %v1200_v26 }
  0x52   : > { %1121 = vmatmul.mubr.bf16.vlgmr.msra.gmra.mxu0 %v1203_v27  ;;  %1129 = vmatmul.mubr.bf16.vlgmr.msra.gmra.mxu1 %v1204_v28 }
  0x53   : > { %1124 = vmatprep.mubr.bf16.mxu0 %v1205_v29  ;;  %1132 = vmatprep.mubr.bf16.mxu1 %v1206_v30 }
  0x5a   : > { %1125 = vmatmul.mubr.bf16.gmra.mxu0 %v1207_v31  ;;  %1133 = vmatmul.mubr.bf16.gmra.mxu1 %v1208_v32 }
 0x112   : > { %v1122_v35 = vpop.f32.mrf.mxu0  ;;  %v1130_v36 = vpop.f32.mrf.mxu1 }
 0x113   : > { %v660_v39 = vadd.f32 %v1122_v35, %v419_v33  ;;  %v668_v40 = vadd.f32 %v1130_v36, %v427_v34 }
 0x114   : > { %v595_v41 = vpop.f32.mrf.mxu0  ;;  %v627_v42 = vpop.f32.mrf.mxu1 }
 0x115   : > { %676 = vst [vmem:[#allocation2 + $0x58] sm:$0xff] %v660_v39  ;;  %684 = vst [vmem:[#allocation2 + $0x10] sm:$0xff] %v668_v40  ;;  %v658_v45 = vadd.f32 %v595_v41, %v417_v37  ;;  %v666_v46 = vadd.f32 %v627_v42, %v425_v38 }
 0x116   : > { %v1123_v47 = vpop.f32.mrf.mxu0  ;;  %v1131_v48 = vpop.f32.mrf.mxu1 }
 0x117   : > { %674 = vst [vmem:[#allocation2 + $0x30] sm:$0xff] %v658_v45  ;;  %682 = vst [vmem:[#allocation2 + $0x40] sm:$0xff] %v666_v46  ;;  %v661_v51 = vadd.f32 %v1123_v47, %v420_v43  ;;  %v669_v52 = vadd.f32 %v1131_v48, %v428_v44 }
 0x118   : > { %v598_v53 = vpop.f32.mrf.mxu0  ;;  %v630_v54 = vpop.f32.mrf.mxu1 }
 0x119   : > { %677 = vst [vmem:[#allocation2 + $0x18] sm:$0xff] %v661_v51  ;;  %685 = vst [vmem:[#allocation2 + $0x38] sm:$0xff] %v669_v52  ;;  %v659_v57 = vadd.f32 %v598_v53, %v418_v49  ;;  %v667_v58 = vadd.f32 %v630_v54, %v426_v50 }
 0x11a   : > { %v1126_v59 = vpop.f32.mrf.mxu0  ;;  %v1134_v60 = vpop.f32.mrf.mxu1 }
 0x11b   : > { %675 = vst [vmem:[#allocation2] sm:$0xff] %v659_v57  ;;  %683 = vst [vmem:[#allocation2 + $0x20] sm:$0xff] %v667_v58  ;;  %v664_v63 = vadd.f32 %v1126_v59, %v423_v55  ;;  %v672_v0 = vadd.f32 %v1134_v60, %v431_v56 }
 0x11c   : > { %v611_v1 = vpop.f32.mrf.mxu0  ;;  %v643_v2 = vpop.f32.mrf.mxu1 }
 0x11d   : > { %680 = vst [vmem:[#allocation2 + $0x8] sm:$0xff] %v664_v63  ;;  %688 = vst [vmem:[#allocation2 + $0x78] sm:$0xff] %v672_v0  ;;  %v662_v5 = vadd.f32 %v611_v1, %v421_v61  ;;  %v670_v6 = vadd.f32 %v643_v2, %v429_v62 }
 0x11e   : > { %v1127_v7 = vpop.f32.mrf.mxu0  ;;  %v1135_v8 = vpop.f32.mrf.mxu1 }
 0x11f   : > { %678 = vst [vmem:[#allocation2 + $0x50] sm:$0xff] %v662_v5  ;;  %686 = vst [vmem:[#allocation2 + $0x60] sm:$0xff] %v670_v6  ;;  %v665_v11 = vadd.f32 %v1127_v7, %v424_v3  ;;  %v673_v12 = vadd.f32 %v1135_v8, %v432_v4  ;;  %693 = sbr.rel (%p1002_p11) target bundleno = 313 (0x139), region = 85 }
 0x120   : > { %v614_v13 = vpop.f32.mrf.mxu0  ;;  %v646_v14 = vpop.f32.mrf.mxu1 }
 0x121   : > { %681 = vst [vmem:[#allocation2 + $0x48] sm:$0xff] %v665_v11  ;;  %689 = vst [vmem:[#allocation2 + $0x28] sm:$0xff] %v673_v12  ;;  %v663_v15 = vadd.f32 %v614_v13, %v422_v9  ;;  %v671_v16 = vadd.f32 %v646_v14, %v430_v10 }
 0x123   : > { %679 = vst [vmem:[#allocation2 + $0x68] sm:$0xff] %v663_v15  ;;  %687 = vst [vmem:[#allocation2 + $0x70] sm:$0xff] %v671_v16 }
 0x124   : > { %v694_v17 = vld [vmem:[#allocation2 + $0x30] sm:$0xff]  ;;  %v695_v18 = vld [vmem:[#allocation2] sm:$0xff]  ;;  %v696_v23 = vld [vmem:[#allocation2 + $0x58] sm:$0xff] }
 0x125   : > { %v1368_v19 = vld [vmem:[%s1448_s2] ss:$0 sm:$0xff]  ;;  %v697_v24 = vld [vmem:[#allocation2 + $0x18] sm:$0xff]  ;;  %v700_v29 = vld [vmem:[#allocation2 + $0x8] sm:$0xff] }
 0x126   : > { %v717_v20 = vmul.f32 %v1368_v19, %v694_v17  ;;  %v718_v21 = vmul.f32 %v1368_v19, %v695_v18  ;;  %v1375_v22 = vld [vmem:[%s1449_s3] ss:$0 sm:$0xff]  ;;  %v719_v25 = vmul.f32 %v1368_v19, %v696_v23  ;;  %v720_v26 = vmul.f32 %v1368_v19, %v697_v24  ;;  %v698_v27 = vld [vmem:[#allocation2 + $0x50] sm:$0xff]  ;;  %v705_v50 = vld [vmem:[#allocation2 + $0x38] sm:$0xff] }
 0x127   : > { %v721_v32 = vmul.f32 %v1368_v19, %v698_v27  ;;  %v723_v37 = vmul.f32 %v1368_v19, %v700_v29  ;;  %v702_v39 = vld [vmem:[#allocation2 + $0x40] sm:$0xff]  ;;  %v704_v49 = vld [vmem:[#allocation2 + $0x10] sm:$0xff]  ;;  %v708_v61 = vld [vmem:[#allocation2 + $0x78] sm:$0xff]  ;;  %v728_v1 = vmul.f32 %v1368_v19, %v705_v50 }
 0x128   : > { %v740_v30 = vadd.f32 %v1375_v22, %v717_v20  ;;  %v741_v31 = vadd.f32 %v1375_v22, %v718_v21  ;;  %v701_v34 = vld [vmem:[#allocation2 + $0x48] sm:$0xff]  ;;  %v742_v35 = vadd.f32 %v1375_v22, %v719_v25  ;;  %v743_v36 = vadd.f32 %v1375_v22, %v720_v26  ;;  %v703_v44 = vld [vmem:[#allocation2 + $0x20] sm:$0xff] }
 0x129   : > { %v724_v38 = vmul.f32 %v1368_v19, %v701_v34  ;;  %v744_v42 = vadd.f32 %v1375_v22, %v721_v32  ;;  %v746_v47 = vadd.f32 %v1375_v22, %v723_v37  ;;  %v725_v54 = vmul.f32 %v1368_v19, %v702_v39  ;;  %v706_v55 = vld [vmem:[#allocation2 + $0x60] sm:$0xff]  ;;  %v709_v2 = vld [vmem:[#allocation2 + $0x28] sm:$0xff] }
 0x12a   : > { %v699_v28 = vld [vmem:[#allocation2 + $0x68] sm:$0xff]  ;;  %v756_v40 = vmax.f32 %v740_v30, 0.0  ;;  %v757_v41 = vmax.f32 %v741_v31, 0.0  ;;  %v758_v45 = vmax.f32 %v742_v35, 0.0  ;;  %v759_v46 = vmax.f32 %v743_v36, 0.0  ;;  %v707_v56 = vld [vmem:[#allocation2 + $0x70] sm:$0xff] }
 0x12b   : > { %v722_v33 = vmul.f32 %v1368_v19, %v699_v28  ;;  %v747_v48 = vadd.f32 %v1375_v22, %v724_v38  ;;  %v760_v52 = vmax.f32 %v744_v42, 0.0  ;;  %v762_v58 = vmax.f32 %v746_v47, 0.0 }
 0x12c   : > { %v1044_v51 = vpack.c.bf16 %v757_v41, %v756_v40  ;;  %v1049_v57 = vpack.c.bf16 %v759_v46, %v758_v45  ;;  %v726_v60 = vmul.f32 %v1368_v19, %v703_v44  ;;  %v748_v63 = vadd.f32 %v1375_v22, %v725_v54 }
 0x12d   : > { %v745_v43 = vadd.f32 %v1375_v22, %v722_v33  ;;  %v763_v59 = vmax.f32 %v747_v48, 0.0  ;;  %v727_v0 = vmul.f32 %v1368_v19, %v704_v49  ;;  %v729_v5 = vmul.f32 %v1368_v19, %v706_v55 }
 0x12e   : > { %1045 = vst [vmem:[%s1450_s4] sm:$0xff] %v1044_v51   ;;  %1081 = vst [vmem:[%s1450_s4 + $0x8] sm:$0xff] %v1049_v57   ;;  %v749_v4 = vadd.f32 %v1375_v22, %v726_v60  ;;  %v730_v6 = vmul.f32 %v1368_v19, %v707_v56  ;;  %v764_v7 = vmax.f32 %v748_v63, 0.0  ;;  %v751_v9 = vadd.f32 %v1375_v22, %v728_v1 }
 0x12f   : > { %v761_v53 = vmax.f32 %v745_v43, 0.0  ;;  %v1059_v3 = vpack.c.bf16 %v763_v59, %v762_v58  ;;  %v750_v8 = vadd.f32 %v1375_v22, %v727_v0  ;;  %v731_v10 = vmul.f32 %v1368_v19, %v708_v61 }
 0x130   : > { %v765_v11 = vmax.f32 %v749_v4, 0.0  ;;  %v752_v12 = vadd.f32 %v1375_v22, %v729_v5  ;;  %v753_v13 = vadd.f32 %v1375_v22, %v730_v6  ;;  %v732_v14 = vmul.f32 %v1368_v19, %v709_v2 }
 0x131   : > { %v1054_v62 = vpack.c.bf16 %v761_v53, %v760_v52  ;;  %1083 = vst [vmem:[%s1450_s4 + $0x18] sm:$0xff] %v1059_v3   ;;  %v766_v15 = vmax.f32 %v750_v8, 0.0  ;;  %v767_v16 = vmax.f32 %v751_v9, 0.0  ;;  %v754_v17 = vadd.f32 %v1375_v22, %v731_v10 }
 0x132   : > { %v1064_v18 = vpack.c.bf16 %v765_v11, %v764_v7  ;;  %v768_v20 = vmax.f32 %v752_v12, 0.0  ;;  %v769_v21 = vmax.f32 %v753_v13, 0.0  ;;  %v755_v23 = vadd.f32 %v1375_v22, %v732_v14 }
 0x133   : > { %1082 = vst [vmem:[%s1450_s4 + $0x10] sm:$0xff] %v1054_v62   ;;  %v1069_v24 = vpack.c.bf16 %v767_v16, %v766_v15  ;;  %v770_v25 = vmax.f32 %v754_v17, 0.0 }
 0x134   : > { %1084 = vst [vmem:[%s1450_s4 + $0x20] sm:$0xff] %v1064_v18   ;;  %v1074_v26 = vpack.c.bf16 %v769_v21, %v768_v20  ;;  %v771_v27 = vmax.f32 %v755_v23, 0.0 }
 0x135   : > { %1085 = vst [vmem:[%s1450_s4 + $0x28] sm:$0xff] %v1069_v24  }
 0x136   : > { %1086 = vst [vmem:[%s1450_s4 + $0x30] sm:$0xff] %v1074_v26   ;;  %v1079_v19 = vpack.c.bf16 %v771_v27, %v770_v25 }
 0x138   : > { %1087 = vst [vmem:[%s1450_s4 + $0x38] sm:$0xff] %v1079_v19  }
 0x139 PF: > { %s14_s19 = sadd.s32 1, %s1247_s19   ;;  %s1451_s15 = smov %s1235_s16 }
 0x13a   : > { %p11_p12 = scmp.ge.s32.totalorder %s14_s19, 7   ;;  %s1452_s16 = smov %s1310_s23 }
 0x13b   : > { %s1453_s17 = smov %s1243_s18  ;;  %s1454_s18 = smov %s1456_s20 }
 0x13c   :  { %13 = sbr.rel (!%p11_p12) target bundleno = 3 (0x3), region = 129 }

// kernel: _lambda_.23
= control target key start
LH: loop header
LB: loop body
LE: loop exit
PB: predicated region body
PF: predicated region fallthrough
CT: control target
= control target key end

     0   :  { %s1446_s18 = smov 0   ;;  %s1448_s19 = smov 0   ;;  %s1641_s0 = inlined_call_operand.vmem [shape: bf16[128,640], index: 0, kind: input, shape index: {}]   ;;  %s1642_s1 = inlined_call_operand.vmem [shape: bf16[640,128], index: 1, kind: input, shape index: {}]   ;;  %s1643_s2 = inlined_call_operand.vmem [shape: f32[1,128], index: 2, kind: input, shape index: {}]   ;;  %s1644_s3 = inlined_call_operand.vmem [shape: f32[1,128], index: 3, kind: input, shape index: {}]   ;;  %s1645_s4 = inlined_call_operand.vmem [shape: bf16[128,128], index: 4, kind: input, shape index: {}]   ;;  %s1646_s5 = inlined_call_operand.vmem [shape: bf16[128,128], index: 5, kind: output, shape index: {}]  }
   0x1   :  { %s1450_s20 = smov 0   ;;  %s1452_s21 = smov 0  }
   0x2   :  { %s1454_s22 = smov 0  }
   0x3 LB: > { %s27_s23 = sadd.s32 1, %s1409_s21  ;;  %p50_p1 = scmp.ne.s32.totalorder %s1401_s19, %s1397_s18  ;;  %s1413_s22 = sphi %s1454_s22, %s15_s22   ;;  %s1409_s21 = sphi %s1452_s21, %s1650_s21   ;;  %s1405_s20 = sphi %s1450_s20, %s1649_s20   ;;  %s1401_s19 = sphi %s1448_s19, %s1648_s19   ;;  %s1397_s18 = sphi %s1446_s18, %s1647_s18  }
   0x4   : > { %p28_p0 = scmp.ge.s32.totalorder %s27_s23, 5  ;;  %p51_p2 = scmp.eq.s32.totalorder %s1413_s22, 0 }
   0x5   : > { %s43_s25 = sadd.s32 1, %s1401_s19  ;;  %p1105_p5 = scmp.ge.s32.totalorder %s1413_s22, 5 }
   0x6   : > { %s1652_s23 = smov (%p28_p0, %s27_s23), 0  ;;  %p52_p3 = por %p51_p2, %p50_p1 }
   0x7   : > { %s39_s24 = ssub.s32 %s1409_s21, %s1652_s23  ;;  %236 = sbr.rel (%p1105_p5) target bundleno = 26 (0x1a), region = 28 }
   0x8   : > { %p41_p4 = scmp.eq.s32.totalorder %s39_s24, 0 }
   0xa   : > { %s1481_s26 = scalar_select %p41_p4, %s1401_s19, %s43_s25  }
   0xc   : > { %239 = sbr.rel (!%p52_p3) target bundleno = 26 (0x1a), region = 32  ;;  %s241_s27 = sand.u32 (%p52_p3), 1, %s1401_s19  }
   0xd   : > { %s1107_s28 = sshll.u32 (%p52_p3), %s1409_s21, 2  ;;  %s1106_s29 = sshll.u32 (%p52_p3), %s241_s27, 6 }
   0xe   : > { %s1489_s7 = scalar_lea.vmem (%p52_p3), %s1641_s0, %s1107_s28  ;;  %s243_s8 = scalar_lea.vmem (%p52_p3), [#allocation3], %s1106_s29 }
   0xf   : > { %v265_v0 = vld [vmem:[%s1489_s7] sm:$0xf] (%p52_p3)  ;;  %v267_v1 = vld [vmem:[%s1489_s7 + $0x14] sm:$0xf] (%p52_p3)  ;;  %v269_v2 = vld [vmem:[%s1489_s7 + $0x28] sm:$0xf] (%p52_p3) }
  0x10   : > { %266 = vst [vmem:[%s243_s8] sm:$0xf] (%p52_p3), %v265_v0  ;;  %268 = vst [vmem:[%s243_s8 + $0x4] sm:$0xf] (%p52_p3), %v267_v1  ;;  %v271_v3 = vld [vmem:[%s1489_s7 + $0x3c] sm:$0xf] (%p52_p3) }
  0x11   : > { %v273_v4 = vld [vmem:[%s1489_s7 + $0x50] sm:$0xf]  ;;  %270 = vst [vmem:[%s243_s8 + $0x8] sm:$0xf] %v269_v2  ;;  %272 = vst [vmem:[%s243_s8 + $0xc] sm:$0xf] %v271_v3 }
  0x12   : > { %274 = vst [vmem:[%s243_s8 + $0x10] sm:$0xf] %v273_v4  ;;  %v275_v5 = vld [vmem:[%s1489_s7 + $0x64] sm:$0xf]  ;;  %v277_v6 = vld [vmem:[%s1489_s7 + $0x78] sm:$0xf] }
  0x13   : > { %v279_v7 = vld [vmem:[%s1489_s7 + $0x8c] sm:$0xf]  ;;  %276 = vst [vmem:[%s243_s8 + $0x14] sm:$0xf] %v275_v5  ;;  %278 = vst [vmem:[%s243_s8 + $0x18] sm:$0xf] %v277_v6 }
  0x14   : > { %280 = vst [vmem:[%s243_s8 + $0x1c] sm:$0xf] %v279_v7  ;;  %v281_v8 = vld [vmem:[%s1489_s7 + $0xa0] sm:$0xf]  ;;  %v283_v9 = vld [vmem:[%s1489_s7 + $0xb4] sm:$0xf] }
  0x15   : > { %v285_v10 = vld [vmem:[%s1489_s7 + $0xc8] sm:$0xf]  ;;  %282 = vst [vmem:[%s243_s8 + $0x20] sm:$0xf] %v281_v8  ;;  %284 = vst [vmem:[%s243_s8 + $0x24] sm:$0xf] %v283_v9 }
  0x16   : > { %286 = vst [vmem:[%s243_s8 + $0x28] sm:$0xf] %v285_v10  ;;  %v287_v11 = vld [vmem:[%s1489_s7 + $0xdc] sm:$0xf]  ;;  %v289_v12 = vld [vmem:[%s1489_s7 + $0xf0] sm:$0xf] }
  0x17   : > { %v291_v13 = vld [vmem:[%s1489_s7 + $0x104] sm:$0xf]  ;;  %288 = vst [vmem:[%s243_s8 + $0x2c] sm:$0xf] %v287_v11  ;;  %290 = vst [vmem:[%s243_s8 + $0x30] sm:$0xf] %v289_v12 }
  0x18   : > { %292 = vst [vmem:[%s243_s8 + $0x34] sm:$0xf] %v291_v13  ;;  %v293_v14 = vld [vmem:[%s1489_s7 + $0x118] sm:$0xf]  ;;  %v295_v15 = vld [vmem:[%s1489_s7 + $0x12c] sm:$0xf] }
  0x19   : > { %294 = vst [vmem:[%s243_s8 + $0x38] sm:$0xf] %v293_v14  ;;  %296 = vst [vmem:[%s243_s8 + $0x3c] sm:$0xf] %v295_v15 }
  0x1a PF: > { %p1108_p6 = scmp.ge.s32.totalorder %s1413_s22, 1  ;;  %p363_p7 = scmp.lt.s32.totalorder %s1413_s22, 6 }
  0x1c   : > { %p364_p8 = pnand %p1108_p6, %p363_p7 }
  0x1d   : > { %s370_s9 = sand.u32 (!%p364_p8), 1, %s1397_s18   ;;  %s1110_s10 = sshll.u32 (!%p364_p8), %s1405_s20, 4 }
  0x1e   : > { %367 = sbr.rel (%p364_p8) target bundleno = 322 (0x142), region = 77  ;;  %s1109_s11 = sshll.u32 (!%p364_p8), %s370_s9, 6 }
  0x1f   : > { %p424_p9 = scmp.lt.s32.totalorder (!%p364_p8), %s1110_s10, 79  ;;  %s1516_s16 = scalar_lea.vmem (!%p364_p8), [#allocation3], %s1109_s11 }
  0x20   : > { %p1112_p10 = scmp.ne.s32.totalorder (!%p364_p8), %s1405_s20, 0 }
  0x23   : > { %s1654_s10 = smov (!%p424_p9, %s1110_s10), 79  ;;  %460 = sbr.rel (%p1112_p10) target bundleno = 49 (0x31), region = 85 }
  0x24   : > { %s1111_s12 = sshll.u32 %s1654_s10, 2 }
  0x25   : > { %s1514_s15 = scalar_lea.vmem %s1642_s1, %s1111_s12 }
  0x28   : > { %v1415_v16 = vmov 0.0  }
  0x29   : > { %461 = vst [vmem:[#allocation2 + $0x30] sm:$0xff] %v1415_v16  ;;  %462 = vst [vmem:[#allocation2] sm:$0xff] %v1415_v16 }
  0x2a   : > { %463 = vst [vmem:[#allocation2 + $0x58] sm:$0xff] %v1415_v16  ;;  %464 = vst [vmem:[#allocation2 + $0x18] sm:$0xff] %v1415_v16 }
  0x2b   : > { %465 = vst [vmem:[#allocation2 + $0x50] sm:$0xff] %v1415_v16  ;;  %466 = vst [vmem:[#allocation2 + $0x68] sm:$0xff] %v1415_v16 }
  0x2c   : > { %467 = vst [vmem:[#allocation2 + $0x8] sm:$0xff] %v1415_v16  ;;  %468 = vst [vmem:[#allocation2 + $0x48] sm:$0xff] %v1415_v16 }
  0x2d   : > { %469 = vst [vmem:[#allocation2 + $0x40] sm:$0xff] %v1415_v16  ;;  %470 = vst [vmem:[#allocation2 + $0x20] sm:$0xff] %v1415_v16 }
  0x2e   : > { %471 = vst [vmem:[#allocation2 + $0x10] sm:$0xff] %v1415_v16  ;;  %472 = vst [vmem:[#allocation2 + $0x38] sm:$0xff] %v1415_v16 }
  0x2f   : > { %473 = vst [vmem:[#allocation2 + $0x60] sm:$0xff] %v1415_v16  ;;  %474 = vst [vmem:[#allocation2 + $0x70] sm:$0xff] %v1415_v16 }
  0x30   : > { %475 = vst [vmem:[#allocation2 + $0x78] sm:$0xff] %v1415_v16  ;;  %476 = vst [vmem:[#allocation2 + $0x28] sm:$0xff] %v1415_v16 }
  0x31 PF: > { %v1359_v17 = vld [vmem:[%s1514_s15 + $0x38] sm:$0xff]   ;;  %v1360_v18 = vld [vmem:[%s1514_s15 + $0x30] sm:$0xff]   ;;  %v1361_v19 = vld [vmem:[%s1514_s15 + $0x28] sm:$0xff]   ;;  %p1129_p11 = scmp.ne.s32.totalorder %s1405_s20, 4 }
  0x32   : > { %1270 = vmatprep.subr.bf16.mxu0 %v1359_v17  ;;  %1302 = vmatprep.subr.bf16.mxu1 %v1359_v17  ;;  %v1362_v20 = vld [vmem:[%s1514_s15 + $0x20] sm:$0xff]   ;;  %v1363_v23 = vld [vmem:[%s1514_s15 + $0x18] sm:$0xff]   ;;  %v1364_v24 = vld [vmem:[%s1514_s15 + $0x10] sm:$0xff]  }
  0x33   : > { %1271 = vmatpush3.bf16.msra.mxu0 %v1359_v17  ;;  %1310 = vmatpush3.bf16.msra.mxu1 %v1359_v17  ;;  %v1367_v21 = vld [vmem:[%s1516_s16] sm:$0xff]   ;;  %v1365_v25 = vld [vmem:[%s1514_s15 + $0x8] sm:$0xff]   ;;  %v1371_v29 = vld [vmem:[%s1516_s16 + $0x10] sm:$0xff]  }
  0x34   : > { %1272 = vmatprep.subr.bf16.mxu0 %v1360_v18  ;;  %1303 = vmatprep.subr.bf16.mxu1 %v1360_v18  ;;  %v1368_v22 = vld [vmem:[%s1516_s16 + $0x20] sm:$0xff]   ;;  %v1369_v27 = vld [vmem:[%s1516_s16 + $0x8] sm:$0xff]   ;;  %v1372_v30 = vld [vmem:[%s1516_s16 + $0x30] sm:$0xff]  }
  0x35   : > { %1286 = vmatprep.mubr.bf16.mxu0 %v1367_v21  ;;  %1294 = vmatprep.mubr.bf16.mxu1 %v1368_v22  ;;  %v1366_v26 = vld [vmem:[%s1514_s15] sm:$0xff]   ;;  %v1370_v28 = vld [vmem:[%s1516_s16 + $0x28] sm:$0xff]   ;;  %v1373_v31 = vld [vmem:[%s1516_s16 + $0x18] sm:$0xff]  }
  0x36   : > { %v1374_v32 = vld [vmem:[%s1516_s16 + $0x38] sm:$0xff]   ;;  %v487_v34 = vld [vmem:[#allocation2 + $0x10] sm:$0xff]  ;;  %v485_v38 = vld [vmem:[#allocation2 + $0x40] sm:$0xff] }
  0x37   : > { %1273 = vmatpush3.bf16.msra.mxu0 %v1360_v18  ;;  %1311 = vmatpush3.bf16.msra.mxu1 %v1360_v18  ;;  %v479_v33 = vld [vmem:[#allocation2 + $0x58] sm:$0xff]  ;;  %v477_v37 = vld [vmem:[#allocation2 + $0x30] sm:$0xff]  ;;  %v478_v49 = vld [vmem:[#allocation2] sm:$0xff] }
  0x38   : > { %1274 = vmatprep.subr.bf16.mxu0 %v1361_v19  ;;  %1304 = vmatprep.subr.bf16.mxu1 %v1361_v19  ;;  %v480_v43 = vld [vmem:[#allocation2 + $0x18] sm:$0xff]  ;;  %v486_v50 = vld [vmem:[#allocation2 + $0x20] sm:$0xff]  ;;  %v483_v55 = vld [vmem:[#allocation2 + $0x8] sm:$0xff] }
  0x39   : > { %v488_v44 = vld [vmem:[#allocation2 + $0x38] sm:$0xff]  ;;  %v481_v61 = vld [vmem:[#allocation2 + $0x50] sm:$0xff]  ;;  %v489_v62 = vld [vmem:[#allocation2 + $0x60] sm:$0xff] }
  0x3a   : > { %v491_v56 = vld [vmem:[#allocation2 + $0x78] sm:$0xff]  ;;  %v484_v3 = vld [vmem:[#allocation2 + $0x48] sm:$0xff]  ;;  %v490_v10 = vld [vmem:[#allocation2 + $0x70] sm:$0xff] }
  0x3b   : > { %1275 = vmatpush3.bf16.msra.mxu0 %v1361_v19  ;;  %1312 = vmatpush3.bf16.msra.mxu1 %v1361_v19  ;;  %v492_v4 = vld [vmem:[#allocation2 + $0x28] sm:$0xff] }
  0x3c   : > { %1276 = vmatprep.subr.bf16.mxu0 %v1362_v20  ;;  %1305 = vmatprep.subr.bf16.mxu1 %v1362_v20  ;;  %v482_v9 = vld [vmem:[#allocation2 + $0x68] sm:$0xff] }
  0x3f   : > { %1277 = vmatpush3.bf16.msra.mxu0 %v1362_v20  ;;  %1313 = vmatpush3.bf16.msra.mxu1 %v1362_v20 }
  0x40   : > { %1278 = vmatprep.subr.bf16.mxu0 %v1363_v23  ;;  %1306 = vmatprep.subr.bf16.mxu1 %v1363_v23 }
  0x43   : > { %1279 = vmatpush3.bf16.msra.mxu0 %v1363_v23  ;;  %1314 = vmatpush3.bf16.msra.mxu1 %v1363_v23 }
  0x44   : > { %1280 = vmatprep.subr.bf16.mxu0 %v1364_v24  ;;  %1307 = vmatprep.subr.bf16.mxu1 %v1364_v24 }
  0x47   : > { %1281 = vmatpush3.bf16.msra.mxu0 %v1364_v24  ;;  %1315 = vmatpush3.bf16.msra.mxu1 %v1364_v24 }
  0x48   : > { %1282 = vmatprep.subr.bf16.mxu0 %v1365_v25  ;;  %1308 = vmatprep.subr.bf16.mxu1 %v1365_v25 }
  0x4b   : > { %1283 = vmatpush3.bf16.msra.mxu0 %v1365_v25  ;;  %1316 = vmatpush3.bf16.msra.mxu1 %v1365_v25 }
  0x4c   : > { %1284 = vmatprep.subr.bf16.mxu0 %v1366_v26  ;;  %1309 = vmatprep.subr.bf16.mxu1 %v1366_v26 }
  0x4f   : > { %1285 = vmatpush3.bf16.msra.mxu0 %v1366_v26  ;;  %1317 = vmatpush3.bf16.msra.mxu1 %v1366_v26 }
  0x52   : > { %1287 = vmatmul.mubr.bf16.vlgmr.msra.gmra.mxu0 %v1369_v27  ;;  %1295 = vmatmul.mubr.bf16.vlgmr.msra.gmra.mxu1 %v1370_v28 }
  0x53   : > { %1290 = vmatprep.mubr.bf16.mxu0 %v1371_v29  ;;  %1298 = vmatprep.mubr.bf16.mxu1 %v1372_v30 }
  0x5a   : > { %1291 = vmatmul.mubr.bf16.gmra.mxu0 %v1373_v31  ;;  %1299 = vmatmul.mubr.bf16.gmra.mxu1 %v1374_v32 }
 0x112   : > { %v1288_v35 = vpop.f32.mrf.mxu0  ;;  %v1296_v36 = vpop.f32.mrf.mxu1 }
 0x113   : > { %v720_v39 = vadd.f32 %v1288_v35, %v479_v33  ;;  %v728_v40 = vadd.f32 %v1296_v36, %v487_v34 }
 0x114   : > { %v655_v41 = vpop.f32.mrf.mxu0  ;;  %v687_v42 = vpop.f32.mrf.mxu1 }
 0x115   : > { %736 = vst [vmem:[#allocation2 + $0x58] sm:$0xff] %v720_v39  ;;  %744 = vst [vmem:[#allocation2 + $0x10] sm:$0xff] %v728_v40  ;;  %v718_v45 = vadd.f32 %v655_v41, %v477_v37  ;;  %v726_v46 = vadd.f32 %v687_v42, %v485_v38 }
 0x116   : > { %v1289_v47 = vpop.f32.mrf.mxu0  ;;  %v1297_v48 = vpop.f32.mrf.mxu1 }
 0x117   : > { %734 = vst [vmem:[#allocation2 + $0x30] sm:$0xff] %v718_v45  ;;  %742 = vst [vmem:[#allocation2 + $0x40] sm:$0xff] %v726_v46  ;;  %v721_v51 = vadd.f32 %v1289_v47, %v480_v43  ;;  %v729_v52 = vadd.f32 %v1297_v48, %v488_v44 }
 0x118   : > { %v658_v53 = vpop.f32.mrf.mxu0  ;;  %v690_v54 = vpop.f32.mrf.mxu1 }
 0x119   : > { %737 = vst [vmem:[#allocation2 + $0x18] sm:$0xff] %v721_v51  ;;  %745 = vst [vmem:[#allocation2 + $0x38] sm:$0xff] %v729_v52  ;;  %v719_v57 = vadd.f32 %v658_v53, %v478_v49  ;;  %v727_v58 = vadd.f32 %v690_v54, %v486_v50 }
 0x11a   : > { %v1292_v59 = vpop.f32.mrf.mxu0  ;;  %v1300_v60 = vpop.f32.mrf.mxu1 }
 0x11b   : > { %735 = vst [vmem:[#allocation2] sm:$0xff] %v719_v57  ;;  %743 = vst [vmem:[#allocation2 + $0x20] sm:$0xff] %v727_v58  ;;  %v724_v63 = vadd.f32 %v1292_v59, %v483_v55  ;;  %v732_v0 = vadd.f32 %v1300_v60, %v491_v56 }
 0x11c   : > { %v671_v1 = vpop.f32.mrf.mxu0  ;;  %v703_v2 = vpop.f32.mrf.mxu1 }
 0x11d   : > { %740 = vst [vmem:[#allocation2 + $0x8] sm:$0xff] %v724_v63  ;;  %748 = vst [vmem:[#allocation2 + $0x78] sm:$0xff] %v732_v0  ;;  %v722_v5 = vadd.f32 %v671_v1, %v481_v61  ;;  %v730_v6 = vadd.f32 %v703_v2, %v489_v62 }
 0x11e   : > { %v1293_v7 = vpop.f32.mrf.mxu0  ;;  %v1301_v8 = vpop.f32.mrf.mxu1 }
 0x11f   : > { %738 = vst [vmem:[#allocation2 + $0x50] sm:$0xff] %v722_v5  ;;  %746 = vst [vmem:[#allocation2 + $0x60] sm:$0xff] %v730_v6  ;;  %v725_v11 = vadd.f32 %v1293_v7, %v484_v3  ;;  %v733_v12 = vadd.f32 %v1301_v8, %v492_v4  ;;  %753 = sbr.rel (%p1129_p11) target bundleno = 322 (0x142), region = 89 }
 0x120   : > { %v674_v13 = vpop.f32.mrf.mxu0  ;;  %v706_v14 = vpop.f32.mrf.mxu1 }
 0x121   : > { %741 = vst [vmem:[#allocation2 + $0x48] sm:$0xff] %v725_v11  ;;  %749 = vst [vmem:[#allocation2 + $0x28] sm:$0xff] %v733_v12  ;;  %v723_v15 = vadd.f32 %v674_v13, %v482_v9  ;;  %v731_v16 = vadd.f32 %v706_v14, %v490_v10 }
 0x123   : > { %739 = vst [vmem:[#allocation2 + $0x68] sm:$0xff] %v723_v15  ;;  %747 = vst [vmem:[#allocation2 + $0x70] sm:$0xff] %v731_v16 }
 0x124   : > { %v754_v17 = vld [vmem:[#allocation2 + $0x30] sm:$0xff]  ;;  %v755_v18 = vld [vmem:[#allocation2] sm:$0xff]  ;;  %v756_v24 = vld [vmem:[#allocation2 + $0x58] sm:$0xff] }
 0x125   : > { %v1539_v19 = vld [vmem:[%s1643_s2] ss:$0 sm:$0xff]  ;;  %v757_v27 = vld [vmem:[#allocation2 + $0x18] sm:$0xff]  ;;  %v1240_v29 = vld [vmem:[%s1645_s4 + $0x8] sm:$0xff]  }
 0x126   : > { %v777_v20 = vmul.f32 %v1539_v19, %v754_v17  ;;  %v778_v21 = vmul.f32 %v1539_v19, %v755_v18  ;;  %v1546_v22 = vld [vmem:[%s1644_s3] ss:$0 sm:$0xff]  ;;  %v779_v28 = vmul.f32 %v1539_v19, %v756_v24  ;;  %v758_v30 = vld [vmem:[#allocation2 + $0x50] sm:$0xff]  ;;  %v780_v33 = vmul.f32 %v1539_v19, %v757_v27  ;;  %v760_v41 = vld [vmem:[#allocation2 + $0x8] sm:$0xff] }
 0x127   : > { %v1169_v23 = vld [vmem:[%s1645_s4] sm:$0xff]   ;;  %v1174_v34 = vunpack.c.l.bf16 %v1240_v29  ;;  %v1241_v36 = vld [vmem:[%s1645_s4 + $0x10] sm:$0xff]   ;;  %v1175_v38 = vunpack.c.h.bf16 %v1240_v29  ;;  %v781_v39 = vmul.f32 %v1539_v19, %v758_v30  ;;  %v1242_v51 = vld [vmem:[%s1645_s4 + $0x18] sm:$0xff]   ;;  %v783_v55 = vmul.f32 %v1539_v19, %v760_v41 }
 0x128   : > { %v1170_v25 = vunpack.c.l.bf16 %v1169_v23  ;;  %v1171_v26 = vunpack.c.h.bf16 %v1169_v23  ;;  %v800_v31 = vadd.f32 %v1546_v22, %v777_v20  ;;  %v801_v32 = vadd.f32 %v1546_v22, %v778_v21  ;;  %v761_v46 = vld [vmem:[#allocation2 + $0x48] sm:$0xff]  ;;  %v762_v60 = vld [vmem:[#allocation2 + $0x40] sm:$0xff]  ;;  %v764_v7 = vld [vmem:[#allocation2 + $0x10] sm:$0xff] }
 0x129   : > { %v802_v37 = vadd.f32 %v1546_v22, %v779_v28  ;;  %v803_v44 = vadd.f32 %v1546_v22, %v780_v33  ;;  %v1178_v45 = vunpack.c.l.bf16 %v1241_v36  ;;  %v804_v48 = vadd.f32 %v1546_v22, %v781_v39  ;;  %v763_v61 = vld [vmem:[#allocation2 + $0x20] sm:$0xff]  ;;  %v765_v12 = vld [vmem:[#allocation2 + $0x38] sm:$0xff]  ;;  %v1244_v13 = vld [vmem:[%s1645_s4 + $0x28] sm:$0xff]  }
 0x12a   : > { %v759_v35 = vld [vmem:[#allocation2 + $0x68] sm:$0xff]  ;;  %v848_v42 = vadd.f32 %v1170_v25, %v800_v31  ;;  %v849_v43 = vadd.f32 %v1171_v26, %v801_v32  ;;  %v1179_v50 = vunpack.c.h.bf16 %v1241_v36  ;;  %v784_v59 = vmul.f32 %v1539_v19, %v761_v46  ;;  %v1243_v2 = vld [vmem:[%s1645_s4 + $0x20] sm:$0xff]   ;;  %v767_v25 = vld [vmem:[#allocation2 + $0x70] sm:$0xff] }
 0x12b   : > { %v782_v40 = vmul.f32 %v1539_v19, %v759_v35  ;;  %v850_v47 = vadd.f32 %v1174_v34, %v802_v37  ;;  %v851_v54 = vadd.f32 %v1175_v38, %v803_v44  ;;  %v852_v57 = vadd.f32 %v1178_v45, %v804_v48  ;;  %v766_v18 = vld [vmem:[#allocation2 + $0x60] sm:$0xff]  ;;  %v1245_v26 = vld [vmem:[%s1645_s4 + $0x30] sm:$0xff]   ;;  %v768_v35 = vld [vmem:[#allocation2 + $0x78] sm:$0xff] }
 0x12c   : > { %v864_v52 = vmax.f32 %v848_v42, 0.0  ;;  %v865_v53 = vmax.f32 %v849_v43, 0.0  ;;  %v806_v0 = vadd.f32 %v1546_v22, %v783_v55  ;;  %v1182_v1 = vunpack.c.l.bf16 %v1242_v51  ;;  %v1246_v45 = vld [vmem:[%s1645_s4 + $0x38] sm:$0xff]  }
 0x12d   : > { %v805_v49 = vadd.f32 %v1546_v22, %v782_v40  ;;  %v866_v56 = vmax.f32 %v850_v47, 0.0  ;;  %v867_v63 = vmax.f32 %v851_v54, 0.0  ;;  %v868_v3 = vmax.f32 %v852_v57, 0.0  ;;  %v769_v40 = vld [vmem:[#allocation2 + $0x28] sm:$0xff] }
 0x12e   : > { %v1203_v62 = vpack.c.bf16 %v865_v53, %v864_v52  ;;  %v807_v5 = vadd.f32 %v1546_v22, %v784_v59  ;;  %v1183_v6 = vunpack.c.h.bf16 %v1242_v51  ;;  %v854_v9 = vadd.f32 %v1182_v1, %v806_v0 }
 0x12f   : > { %v853_v58 = vadd.f32 %v1179_v50, %v805_v49  ;;  %v1208_v8 = vpack.c.bf16 %v867_v63, %v866_v56  ;;  %v785_v10 = vmul.f32 %v1539_v19, %v762_v60  ;;  %v786_v11 = vmul.f32 %v1539_v19, %v763_v61 }
 0x130   : > { %1204 = vst [vmem:[%s1646_s5] sm:$0xff] %v1203_v62   ;;  %v855_v15 = vadd.f32 %v1183_v6, %v807_v5  ;;  %v1186_v16 = vunpack.c.l.bf16 %v1243_v2  ;;  %v1187_v17 = vunpack.c.h.bf16 %v1243_v2  ;;  %v870_v20 = vmax.f32 %v854_v9, 0.0 }
 0x131   : > { %v869_v4 = vmax.f32 %v853_v58, 0.0  ;;  %1247 = vst [vmem:[%s1646_s5 + $0x8] sm:$0xff] %v1208_v8   ;;  %v808_v21 = vadd.f32 %v1546_v22, %v785_v10  ;;  %v809_v23 = vadd.f32 %v1546_v22, %v786_v11  ;;  %v787_v24 = vmul.f32 %v1539_v19, %v764_v7 }
 0x132   : > { %v871_v27 = vmax.f32 %v855_v15, 0.0  ;;  %v788_v28 = vmul.f32 %v1539_v19, %v765_v12  ;;  %v1190_v29 = vunpack.c.l.bf16 %v1244_v13  ;;  %v1191_v30 = vunpack.c.h.bf16 %v1244_v13 }
 0x133   : > { %v1213_v14 = vpack.c.bf16 %v869_v4, %v868_v3  ;;  %v856_v31 = vadd.f32 %v1186_v16, %v808_v21  ;;  %v857_v32 = vadd.f32 %v1187_v17, %v809_v23  ;;  %v810_v33 = vadd.f32 %v1546_v22, %v787_v24 }
 0x134   : > { %v789_v34 = vmul.f32 %v1539_v19, %v766_v18  ;;  %v1218_v36 = vpack.c.bf16 %v871_v27, %v870_v20  ;;  %v811_v37 = vadd.f32 %v1546_v22, %v788_v28  ;;  %v790_v38 = vmul.f32 %v1539_v19, %v767_v25 }
 0x135   : > { %1248 = vst [vmem:[%s1646_s5 + $0x10] sm:$0xff] %v1213_v14   ;;  %v1194_v39 = vunpack.c.l.bf16 %v1245_v26  ;;  %v872_v41 = vmax.f32 %v856_v31, 0.0  ;;  %v873_v42 = vmax.f32 %v857_v32, 0.0  ;;  %v858_v43 = vadd.f32 %v1190_v29, %v810_v33 }
 0x136   : > { %v812_v44 = vadd.f32 %v1546_v22, %v789_v34  ;;  %1249 = vst [vmem:[%s1646_s5 + $0x18] sm:$0xff] %v1218_v36   ;;  %v859_v46 = vadd.f32 %v1191_v30, %v811_v37  ;;  %v813_v47 = vadd.f32 %v1546_v22, %v790_v38  ;;  %v1195_v48 = vunpack.c.h.bf16 %v1245_v26 }
 0x137   : > { %v791_v49 = vmul.f32 %v1539_v19, %v768_v35  ;;  %v1223_v50 = vpack.c.bf16 %v873_v42, %v872_v41  ;;  %v874_v51 = vmax.f32 %v858_v43, 0.0  ;;  %v792_v53 = vmul.f32 %v1539_v19, %v769_v40 }
 0x138   : > { %v860_v52 = vadd.f32 %v1194_v39, %v812_v44  ;;  %v875_v54 = vmax.f32 %v859_v46, 0.0  ;;  %v861_v55 = vadd.f32 %v1195_v48, %v813_v47  ;;  %v1198_v57 = vunpack.c.l.bf16 %v1246_v45 }
 0x139   : > { %v814_v56 = vadd.f32 %v1546_v22, %v791_v49  ;;  %1250 = vst [vmem:[%s1646_s5 + $0x20] sm:$0xff] %v1223_v50   ;;  %v815_v59 = vadd.f32 %v1546_v22, %v792_v53  ;;  %v1199_v60 = vunpack.c.h.bf16 %v1246_v45 }
 0x13a   : > { %v876_v58 = vmax.f32 %v860_v52, 0.0  ;;  %v1228_v61 = vpack.c.bf16 %v875_v54, %v874_v51  ;;  %v877_v62 = vmax.f32 %v861_v55, 0.0 }
 0x13b   : > { %v862_v63 = vadd.f32 %v1198_v57, %v814_v56  ;;  %v863_v0 = vadd.f32 %v1199_v60, %v815_v59 }
 0x13c   : > { %1251 = vst [vmem:[%s1646_s5 + $0x28] sm:$0xff] %v1228_v61   ;;  %v1233_v19 = vpack.c.bf16 %v877_v62, %v876_v58 }
 0x13d   : > { %v878_v1 = vmax.f32 %v862_v63, 0.0  ;;  %v879_v2 = vmax.f32 %v863_v0, 0.0 }
 0x13e   : > { %1252 = vst [vmem:[%s1646_s5 + $0x30] sm:$0xff] %v1233_v19  }
 0x13f   : > { %v1238_v3 = vpack.c.bf16 %v879_v2, %v878_v1 }
 0x141   : > { %1253 = vst [vmem:[%s1646_s5 + $0x38] sm:$0xff] %v1238_v3  }
 0x142 PF: > { %s15_s22 = sadd.s32 1, %s1413_s22   ;;  %s1647_s18 = smov %s1401_s19 }
 0x143   : > { %p12_p12 = scmp.ge.s32.totalorder %s15_s22, 7   ;;  %s1648_s19 = smov %s1481_s26 }
 0x144   : > { %s1649_s20 = smov %s1409_s21  ;;  %s1650_s21 = smov %s1652_s23 }
 0x145   :  { %14 = sbr.rel (!%p12_p12) target bundleno = 3 (0x3), region = 136 }

// kernel: _lambda_.26
= control target key start
LH: loop header
LB: loop body
LE: loop exit
PB: predicated region body
PF: predicated region fallthrough
CT: control target
= control target key end

     0   :  { %s869_s15 = smov 0   ;;  %s871_s16 = smov 0   ;;  %s965_s0 = inlined_call_operand.vmem [shape: bf16[32,640], index: 0, kind: input, shape index: {}]   ;;  %s966_s1 = inlined_call_operand.vmem [shape: bf16[640,128], index: 1, kind: input, shape index: {}]   ;;  %s967_s2 = inlined_call_operand.vmem [shape: f32[1,128], index: 2, kind: input, shape index: {}]   ;;  %s968_s3 = inlined_call_operand.vmem [shape: f32[1,128], index: 3, kind: input, shape index: {}]   ;;  %s969_s4 = inlined_call_operand.vmem [shape: bf16[32,128], index: 4, kind: output, shape index: {}]  }
   0x1   :  { %s873_s17 = smov 0   ;;  %s875_s18 = smov 0  }
   0x2   :  { %s877_s19 = smov 0  }
   0x3 LB: > { %s26_s20 = sadd.s32 1, %s837_s18  ;;  %p49_p1 = scmp.ne.s32.totalorder %s829_s16, %s825_s15  ;;  %s841_s19 = sphi %s877_s19, %s14_s19   ;;  %s837_s18 = sphi %s875_s18, %s973_s18   ;;  %s833_s17 = sphi %s873_s17, %s972_s17   ;;  %s829_s16 = sphi %s871_s16, %s971_s16   ;;  %s825_s15 = sphi %s869_s15, %s970_s15  }
   0x4   : > { %p27_p0 = scmp.ge.s32.totalorder %s26_s20, 5  ;;  %p50_p2 = scmp.eq.s32.totalorder %s841_s19, 0 }
   0x5   : > { %s42_s22 = sadd.s32 1, %s829_s16  ;;  %p678_p5 = scmp.ge.s32.totalorder %s841_s19, 5 }
   0x6   : > { %s975_s20 = smov (%p27_p0, %s26_s20), 0  ;;  %p51_p3 = por %p50_p2, %p49_p1 }
   0x7   : > { %s38_s21 = ssub.s32 %s837_s18, %s975_s20  ;;  %195 = sbr.rel (%p678_p5) target bundleno = 18 (0x12), region = 24 }
   0x8   : > { %p40_p4 = scmp.eq.s32.totalorder %s38_s21, 0 }
   0xa   : > { %s904_s23 = scalar_select %p40_p4, %s829_s16, %s42_s22  }
   0xc   : > { %198 = sbr.rel (!%p51_p3) target bundleno = 18 (0x12), region = 28  ;;  %s200_s24 = sand.u32 (%p51_p3), 1, %s829_s16  }
   0xd   : > { %s680_s25 = sshll.u32 (%p51_p3), %s837_s18, 2  ;;  %s679_s26 = sshll.u32 (%p51_p3), %s200_s24, 4 }
   0xe   : > { %s207_s29 = scalar_lea.vmem (%p51_p3), %s965_s0, %s680_s25  ;;  %s202_s30 = scalar_lea.vmem (%p51_p3), [#allocation3], %s679_s26 }
   0xf   : > { %v224_v0 = vld [vmem:[%s207_s29] sm:$0xf] (%p51_p3)  ;;  %v226_v1 = vld [vmem:[%s207_s29 + $0x14] sm:$0xf] (%p51_p3)  ;;  %v228_v2 = vld [vmem:[%s207_s29 + $0x28] sm:$0xf] (%p51_p3) }
  0x10   : > { %225 = vst [vmem:[%s202_s30] sm:$0xf] (%p51_p3), %v224_v0  ;;  %227 = vst [vmem:[%s202_s30 + $0x4] sm:$0xf] (%p51_p3), %v226_v1  ;;  %v230_v3 = vld [vmem:[%s207_s29 + $0x3c] sm:$0xf] (%p51_p3) }
  0x11   : > { %229 = vst [vmem:[%s202_s30 + $0x8] sm:$0xf] %v228_v2  ;;  %231 = vst [vmem:[%s202_s30 + $0xc] sm:$0xf] %v230_v3 }
  0x12 PF: > { %p681_p6 = scmp.ge.s32.totalorder %s841_s19, 1  ;;  %p274_p7 = scmp.lt.s32.totalorder %s841_s19, 6 }
  0x14   : > { %p275_p8 = pnand %p681_p6, %p274_p7 }
  0x15   : > { %s281_s5 = sand.u32 (!%p275_p8), 1, %s825_s15   ;;  %s683_s6 = sshll.u32 (!%p275_p8), %s833_s17, 4 }
  0x16   : > { %278 = sbr.rel (%p275_p8) target bundleno = 286 (0x11e), region = 73  ;;  %s916_s7 = sshll.u32 (!%p275_p8), %s281_s5, 4 }
  0x17   : > { %p325_p9 = scmp.lt.s32.totalorder (!%p275_p8), %s683_s6, 79  ;;  %s283_s12 = scalar_lea.vmem (!%p275_p8), [#allocation3], %s916_s7 }
  0x18   : > { %p685_p10 = scmp.ne.s32.totalorder (!%p275_p8), %s833_s17, 0 }
  0x1b   : > { %s977_s6 = smov (!%p325_p9, %s683_s6), 79  ;;  %352 = sbr.rel (%p685_p10) target bundleno = 35 (0x23), region = 81 }
  0x1c   : > { %s684_s8 = sshll.u32 %s977_s6, 2 }
  0x1d   : > { %s921_s11 = scalar_lea.vmem %s966_s1, %s684_s8 }
  0x20   : > { %v843_v4 = vmov 0.0  }
  0x21   : > { %353 = vst [vmem:[#allocation2 + $0x10] sm:$0xff] %v843_v4  ;;  %354 = vst [vmem:[#allocation2] sm:$0xff] %v843_v4 }
  0x22   : > { %355 = vst [vmem:[#allocation2 + $0x18] sm:$0xff] %v843_v4  ;;  %356 = vst [vmem:[#allocation2 + $0x8] sm:$0xff] %v843_v4 }
  0x23 PF: > { %v793_v5 = vld [vmem:[%s921_s11 + $0x38] sm:$0xff]   ;;  %v794_v6 = vld [vmem:[%s921_s11 + $0x30] sm:$0xff]   ;;  %v795_v7 = vld [vmem:[%s921_s11 + $0x28] sm:$0xff]   ;;  %p696_p11 = scmp.ne.s32.totalorder %s833_s17, 4 }
  0x24   : > { %732 = vmatprep.subr.bf16.mxu0 %v793_v5  ;;  %v796_v8 = vld [vmem:[%s921_s11 + $0x20] sm:$0xff]   ;;  %v797_v10 = vld [vmem:[%s921_s11 + $0x18] sm:$0xff]   ;;  %v798_v11 = vld [vmem:[%s921_s11 + $0x10] sm:$0xff]  }
  0x25   : > { %733 = vmatpush3.bf16.msra.mxu0 %v793_v5  ;;  %v801_v9 = vld [vmem:[%s283_s12] sm:$0xff]   ;;  %v799_v12 = vld [vmem:[%s921_s11 + $0x8] sm:$0xff]  }
  0x26   : > { %734 = vmatprep.subr.bf16.mxu0 %v794_v6  ;;  %748 = vmatprep.mubr.bf16.mxu0 %v801_v9  ;;  %v800_v13 = vld [vmem:[%s921_s11] sm:$0xff]   ;;  %v802_v14 = vld [vmem:[%s283_s12 + $0x8] sm:$0xff]  }
  0x28   : > { %v357_v17 = vld [vmem:[#allocation2 + $0x10] sm:$0xff]  ;;  %v358_v23 = vld [vmem:[#allocation2] sm:$0xff] }
  0x29   : > { %735 = vmatpush3.bf16.msra.mxu0 %v794_v6  ;;  %v359_v15 = vld [vmem:[#allocation2 + $0x18] sm:$0xff]  ;;  %v360_v20 = vld [vmem:[#allocation2 + $0x8] sm:$0xff] }
  0x2a   : > { %736 = vmatprep.subr.bf16.mxu0 %v795_v7 }
  0x2d   : > { %737 = vmatpush3.bf16.msra.mxu0 %v795_v7 }
  0x2e   : > { %738 = vmatprep.subr.bf16.mxu0 %v796_v8 }
  0x31   : > { %739 = vmatpush3.bf16.msra.mxu0 %v796_v8 }
  0x32   : > { %740 = vmatprep.subr.bf16.mxu0 %v797_v10 }
  0x35   : > { %741 = vmatpush3.bf16.msra.mxu0 %v797_v10 }
  0x36   : > { %742 = vmatprep.subr.bf16.mxu0 %v798_v11 }
  0x39   : > { %743 = vmatpush3.bf16.msra.mxu0 %v798_v11 }
  0x3a   : > { %744 = vmatprep.subr.bf16.mxu0 %v799_v12 }
  0x3d   : > { %745 = vmatpush3.bf16.msra.mxu0 %v799_v12 }
  0x3e   : > { %746 = vmatprep.subr.bf16.mxu0 %v800_v13 }
  0x41   : > { %747 = vmatpush3.bf16.msra.mxu0 %v800_v13 }
  0x44   : > { %749 = vmatmul.mubr.bf16.vlgmr.msra.gmra.mxu0 %v802_v14 }
 0x104   : > { %v750_v16 = vpop.f32.mrf.mxu0 }
 0x105   : > { %v492_v18 = vadd.f32 %v750_v16, %v359_v15 }
 0x106   : > { %v475_v19 = vpop.f32.mrf.mxu0 }
 0x107   : > { %496 = vst [vmem:[#allocation2 + $0x18] sm:$0xff] %v492_v18  ;;  %v490_v21 = vadd.f32 %v475_v19, %v357_v17 }
 0x108   : > { %v751_v22 = vpop.f32.mrf.mxu0 }
 0x109   : > { %494 = vst [vmem:[#allocation2 + $0x10] sm:$0xff] %v490_v21  ;;  %v493_v24 = vadd.f32 %v751_v22, %v360_v20  ;;  %501 = sbr.rel (%p696_p11) target bundleno = 286 (0x11e), region = 85 }
 0x10a   : > { %v478_v25 = vpop.f32.mrf.mxu0 }
 0x10b   : > { %497 = vst [vmem:[#allocation2 + $0x8] sm:$0xff] %v493_v24  ;;  %v491_v26 = vadd.f32 %v478_v25, %v358_v23 }
 0x10d   : > { %495 = vst [vmem:[#allocation2] sm:$0xff] %v491_v26 }
 0x10e   : > { %v697_v29 = vld [vmem:[%s967_s2] ss:$0 sm:$0xff]  ;;  %v504_v33 = vld [vmem:[#allocation2 + $0x18] sm:$0xff] }
 0x10f   : > { %v698_v32 = vld [vmem:[%s968_s3] ss:$0 sm:$0xff]  ;;  %v515_v35 = vmul.f32 %v697_v29, %v504_v33 }
 0x110   : > { %v502_v27 = vld [vmem:[#allocation2 + $0x10] sm:$0xff] }
 0x111   : > { %v513_v30 = vmul.f32 %v697_v29, %v502_v27  ;;  %v526_v39 = vadd.f32 %v698_v32, %v515_v35 }
 0x112   : > { %v505_v34 = vld [vmem:[#allocation2 + $0x8] sm:$0xff] }
 0x113   : > { %v516_v36 = vmul.f32 %v697_v29, %v505_v34  ;;  %v524_v37 = vadd.f32 %v698_v32, %v513_v30  ;;  %v530_v43 = vmax.f32 %v526_v39, 0.0 }
 0x114   : > { %v503_v28 = vld [vmem:[#allocation2] sm:$0xff] }
 0x115   : > { %v514_v31 = vmul.f32 %v697_v29, %v503_v28  ;;  %v527_v40 = vadd.f32 %v698_v32, %v516_v36  ;;  %v528_v41 = vmax.f32 %v524_v37, 0.0 }
 0x117   : > { %v525_v38 = vadd.f32 %v698_v32, %v514_v31  ;;  %v531_v44 = vmax.f32 %v527_v40, 0.0 }
 0x119   : > { %v529_v42 = vmax.f32 %v525_v38, 0.0  ;;  %v719_v46 = vpack.c.bf16 %v531_v44, %v530_v43 }
 0x11b   : > { %v714_v45 = vpack.c.bf16 %v529_v42, %v528_v41  ;;  %721 = vst [vmem:[%s969_s4 + $0x8] sm:$0xff] %v719_v46  }
 0x11d   : > { %715 = vst [vmem:[%s969_s4] sm:$0xff] %v714_v45  }
 0x11e PF: > { %s14_s19 = sadd.s32 1, %s841_s19   ;;  %s970_s15 = smov %s829_s16 }
 0x11f   : > { %p11_p12 = scmp.ge.s32.totalorder %s14_s19, 7   ;;  %s971_s16 = smov %s904_s23 }
 0x120   : > { %s972_s17 = smov %s837_s18  ;;  %s973_s18 = smov %s975_s20 }
 0x121   :  { %13 = sbr.rel (!%p11_p12) target bundleno = 3 (0x3), region = 129 }

// kernel: _lambda_.29
= control target key start
LH: loop header
LB: loop body
LE: loop exit
PB: predicated region body
PF: predicated region fallthrough
CT: control target
= control target key end

     0   :  { %s1143_s15 = smov 0   ;;  %s1145_s16 = smov 0   ;;  %s1256_s0 = inlined_call_operand.vmem [shape: bf16[32,1152], index: 0, kind: input, shape index: {}]   ;;  %s1257_s1 = inlined_call_operand.vmem [shape: bf16[1152,128], index: 1, kind: input, shape index: {}]   ;;  %s1258_s2 = inlined_call_operand.vmem [shape: f32[1,128], index: 2, kind: input, shape index: {}]   ;;  %s1259_s3 = inlined_call_operand.vmem [shape: f32[1,128], index: 3, kind: input, shape index: {}]   ;;  %s1260_s4 = inlined_call_operand.vmem [shape: bf16[32,128], index: 4, kind: output, shape index: {}]  }
   0x1   :  { %s1147_s17 = smov 0   ;;  %s1149_s18 = smov 0  }
   0x2   :  { %s1151_s19 = smov 0  }
   0x3 LB: > { %s26_s20 = sadd.s32 1, %s1111_s18  ;;  %p49_p1 = scmp.ne.s32.totalorder %s1103_s16, %s1099_s15  ;;  %s1115_s19 = sphi %s1151_s19, %s14_s19   ;;  %s1111_s18 = sphi %s1149_s18, %s1264_s18   ;;  %s1107_s17 = sphi %s1147_s17, %s1263_s17   ;;  %s1103_s16 = sphi %s1145_s16, %s1262_s16   ;;  %s1099_s15 = sphi %s1143_s15, %s1261_s15  }
   0x4   : > { %p27_p0 = scmp.ge.s32.totalorder %s26_s20, 3  ;;  %p50_p2 = scmp.eq.s32.totalorder %s1115_s19, 0 }
   0x5   : > { %s42_s22 = sadd.s32 1, %s1103_s16  ;;  %p874_p5 = scmp.ge.s32.totalorder %s1115_s19, 3 }
   0x6   : > { %s1266_s20 = smov (%p27_p0, %s26_s20), 0  ;;  %p51_p3 = por %p50_p2, %p49_p1 }
   0x7   : > { %s38_s21 = ssub.s32 %s1111_s18, %s1266_s20  ;;  %195 = sbr.rel (%p874_p5) target bundleno = 21 (0x15), region = 24 }
   0x8   : > { %p40_p4 = scmp.eq.s32.totalorder %s38_s21, 0 }
   0xa   : > { %s1178_s23 = scalar_select %p40_p4, %s1103_s16, %s42_s22  }
   0xc   : > { %198 = sbr.rel (!%p51_p3) target bundleno = 21 (0x15), region = 28  ;;  %s200_s24 = sand.u32 (%p51_p3), 1, %s1103_s16  }
   0xd   : > { %s928_s25 = smul.u32 (%p51_p3), 12, %s1111_s18 }
   0xe   : > { %s1002_s26 = smul.u32 (%p51_p3), 48, %s200_s24 }
   0xf   : > { %s208_s29 = scalar_lea.vmem (%p51_p3), %s1256_s0, %s928_s25 }
  0x10   : > { %v223_v0 = vld [vmem:[%s208_s29] sm:$0xff] (%p51_p3)  ;;  %v227_v2 = vld [vmem:[%s208_s29 + $0x48] sm:$0xff] (%p51_p3)  ;;  %s202_s30 = scalar_lea.vmem (%p51_p3), [#allocation3], %s1002_s26  ;;  %v880_v6 = vld [vmem:[%s208_s29 + $0x50] sm:$0xf] (%p51_p3) }
  0x11   : > { %v225_v1 = vld [vmem:[%s208_s29 + $0x24] sm:$0xff]  ;;  %224 = vst [vmem:[%s202_s30] sm:$0xff] %v223_v0  ;;  %228 = vst [vmem:[%s202_s30 + $0x18] sm:$0xff] %v227_v2  ;;  %v229_v3 = vld [vmem:[%s208_s29 + $0x6c] sm:$0xff] }
  0x12   : > { %226 = vst [vmem:[%s202_s30 + $0xc] sm:$0xff] %v225_v1  ;;  %v876_v4 = vld [vmem:[%s208_s29 + $0x8] sm:$0xf]  ;;  %v878_v5 = vld [vmem:[%s208_s29 + $0x2c] sm:$0xf]  ;;  %230 = vst [vmem:[%s202_s30 + $0x24] sm:$0xff] %v229_v3 }
  0x13   : > { %877 = vst [vmem:[%s202_s30 + $0x8] sm:$0xf] %v876_v4  ;;  %879 = vst [vmem:[%s202_s30 + $0x14] sm:$0xf] %v878_v5  ;;  %v882_v7 = vld [vmem:[%s208_s29 + $0x74] sm:$0xf] }
  0x14   : > { %881 = vst [vmem:[%s202_s30 + $0x20] sm:$0xf] %v880_v6  ;;  %883 = vst [vmem:[%s202_s30 + $0x2c] sm:$0xf] %v882_v7 }
  0x15 PF: > { %p884_p6 = scmp.ge.s32.totalorder %s1115_s19, 1  ;;  %p263_p7 = scmp.lt.s32.totalorder %s1115_s19, 4 }
  0x17   : > { %p264_p8 = pnand %p884_p6, %p263_p7 }
  0x18   : > { %s270_s5 = sand.u32 (!%p264_p8), 1, %s1099_s15   ;;  %s314_s6 = smul.u32 (!%p264_p8), 48, %s1107_s17 }
  0x19   : > { %267 = sbr.rel (%p264_p8) target bundleno = 301 (0x12d), region = 58  ;;  %p886_p10 = scmp.ne.s32.totalorder (!%p264_p8), %s1107_s17, 0 }
  0x1a   : > { %s1003_s7 = smul.u32 (!%p264_p8), 48, %s270_s5  ;;  %p315_p9 = scmp.lt.s32.totalorder (!%p264_p8), %s314_s6, 143 }
  0x1c   : > { %s1195_s12 = scalar_lea.vmem (!%p264_p8), [#allocation3], %s1003_s7 }
  0x1e   : > { %s1268_s6 = smov (!%p315_p9, %s314_s6), 143  ;;  %342 = sbr.rel (%p886_p10) target bundleno = 38 (0x26), region = 66 }
  0x1f   : > { %s885_s8 = sshll.u32 %s1268_s6, 2 }
  0x20   : > { %s1193_s11 = scalar_lea.vmem %s1257_s1, %s885_s8 }
  0x23   : > { %v1117_v8 = vmov 0.0  }
  0x24   : > { %343 = vst [vmem:[#allocation2 + $0x10] sm:$0xff] %v1117_v8  ;;  %344 = vst [vmem:[#allocation2] sm:$0xff] %v1117_v8 }
  0x25   : > { %345 = vst [vmem:[#allocation2 + $0x18] sm:$0xff] %v1117_v8  ;;  %346 = vst [vmem:[#allocation2 + $0x8] sm:$0xff] %v1117_v8 }
  0x26 PF: > { %v1045_v9 = vld [vmem:[%s1193_s11 + $0x78] sm:$0xff]   ;;  %v1048_v12 = vld [vmem:[%s1193_s11 + $0x70] sm:$0xff]   ;;  %v1051_v15 = vld [vmem:[%s1193_s11 + $0x68] sm:$0xff]   ;;  %p917_p11 = scmp.ne.s32.totalorder %s1107_s17, 2 }
  0x27   : > { %v1046_v10 = vld [vmem:[%s1193_s11 + $0x38] sm:$0xff]   ;;  %944 = vmatprep.subr.bf16.mxu0 %v1045_v9  ;;  %v1049_v13 = vld [vmem:[%s1193_s11 + $0x30] sm:$0xff]   ;;  %v1052_v16 = vld [vmem:[%s1193_s11 + $0x28] sm:$0xff]  }
  0x28   : > { %v1047_v11 = vld [vmem:[%s1193_s11 + $0xb8] sm:$0xff]   ;;  %945 = vmatpush3.bf16.msra.mxu0 %v1046_v10  ;;  %v1050_v14 = vld [vmem:[%s1193_s11 + $0xb0] sm:$0xff]   ;;  %v1053_v17 = vld [vmem:[%s1193_s11 + $0xa8] sm:$0xff]  }
  0x29   : > { %982 = vmatprep.subr.bf16.mxu1 %v1047_v11  ;;  %946 = vmatprep.subr.bf16.mxu0 %v1048_v12  ;;  %v1054_v18 = vld [vmem:[%s1193_s11 + $0x60] sm:$0xff]   ;;  %v1057_v21 = vld [vmem:[%s1193_s11 + $0x58] sm:$0xff]   ;;  %v1060_v24 = vld [vmem:[%s1193_s11 + $0x50] sm:$0xff]  }
  0x2a   : > { %983 = vmatpush3.bf16.msra.mxu1 %v1047_v11  ;;  %v1055_v19 = vld [vmem:[%s1193_s11 + $0x20] sm:$0xff]   ;;  %v1059_v22 = vld [vmem:[%s1193_s11 + $0x98] sm:$0xff]   ;;  %v1062_v25 = vld [vmem:[%s1193_s11 + $0x90] sm:$0xff]  }
  0x2b   : > { %984 = vmatprep.subr.bf16.mxu1 %v1050_v14  ;;  %v1056_v20 = vld [vmem:[%s1193_s11 + $0xa0] sm:$0xff]   ;;  %v1058_v23 = vld [vmem:[%s1193_s11 + $0x18] sm:$0xff]   ;;  %v1061_v26 = vld [vmem:[%s1193_s11 + $0x10] sm:$0xff]  }
  0x2c   : > { %947 = vmatpush3.bf16.msra.mxu0 %v1049_v13  ;;  %v1063_v27 = vld [vmem:[%s1193_s11 + $0x48] sm:$0xff]   ;;  %v1066_v30 = vld [vmem:[%s1193_s11 + $0x40] sm:$0xff]   ;;  %v347_v44 = vld [vmem:[#allocation2 + $0x10] sm:$0xff] }
  0x2d   : > { %948 = vmatprep.subr.bf16.mxu0 %v1051_v15  ;;  %v1064_v28 = vld [vmem:[%s1193_s11 + $0x8] sm:$0xff]   ;;  %v1068_v31 = vld [vmem:[%s1193_s11 + $0x80] sm:$0xff]   ;;  %v349_v58 = vld [vmem:[#allocation2 + $0x18] sm:$0xff] }
  0x2e   : > { %985 = vmatpush3.bf16.msra.mxu1 %v1050_v14  ;;  %v1065_v29 = vld [vmem:[%s1193_s11 + $0x88] sm:$0xff]   ;;  %v1071_v32 = vld [vmem:[%s1195_s12 + $0x4] ss:$12 sps:$4 sm:$0xff]  }
  0x2f   : > { %986 = vmatprep.subr.bf16.mxu1 %v1053_v17  ;;  %v1072_v33 = vld [vmem:[%s1195_s12 + $0x8] ss:$12 sps:$4 sm:$0xff]   ;;  %615 = vmatprep.mubr.bf16.mxu0 %v1071_v32  ;;  %v1069_v35 = vld [vmem:[%s1195_s12] ss:$12 sps:$4 sm:$0xff]   ;;  %v1076_v38 = vld [vmem:[%s1195_s12 + $0x18] ss:$12 sps:$4 sm:$0xff]  }
  0x30   : > { %949 = vmatpush3.bf16.msra.mxu0 %v1052_v16  ;;  %v1067_v34 = vld [vmem:[%s1193_s11] sm:$0xff]   ;;  %998 = vmatprep.mubr.bf16.mxu1 %v1072_v33  ;;  %v1074_v36 = vld [vmem:[%s1195_s12 + $0x1c] ss:$12 sps:$4 sm:$0xff]  }
  0x31   : > { %950 = vmatprep.subr.bf16.mxu0 %v1054_v18  ;;  %v1073_v37 = vld [vmem:[%s1195_s12 + $0x20] ss:$12 sps:$4 sm:$0xff]  }
  0x32   : > { %987 = vmatpush3.bf16.msra.mxu1 %v1053_v17  ;;  %v348_v52 = vld [vmem:[#allocation2] sm:$0xff]  ;;  %v350_v0 = vld [vmem:[#allocation2 + $0x8] sm:$0xff] }
  0x33   : > { %988 = vmatprep.subr.bf16.mxu1 %v1056_v20 }
  0x34   : > { %951 = vmatpush3.bf16.msra.mxu0 %v1055_v19 }
  0x35   : > { %952 = vmatprep.subr.bf16.mxu0 %v1057_v21 }
  0x36   : > { %989 = vmatpush3.bf16.msra.mxu1 %v1056_v20 }
  0x37   : > { %990 = vmatprep.subr.bf16.mxu1 %v1059_v22 }
  0x38   : > { %953 = vmatpush3.bf16.msra.mxu0 %v1058_v23 }
  0x39   : > { %954 = vmatprep.subr.bf16.mxu0 %v1060_v24 }
  0x3a   : > { %991 = vmatpush3.bf16.msra.mxu1 %v1059_v22 }
  0x3b   : > { %992 = vmatprep.subr.bf16.mxu1 %v1062_v25 }
  0x3c   : > { %955 = vmatpush3.bf16.msra.mxu0 %v1061_v26 }
  0x3d   : > { %956 = vmatprep.subr.bf16.mxu0 %v1063_v27 }
  0x3e   : > { %993 = vmatpush3.bf16.msra.mxu1 %v1062_v25 }
  0x3f   : > { %994 = vmatprep.subr.bf16.mxu1 %v1065_v29 }
  0x40   : > { %957 = vmatpush3.bf16.msra.mxu0 %v1064_v28 }
  0x41   : > { %958 = vmatprep.subr.bf16.mxu0 %v1066_v30 }
  0x42   : > { %995 = vmatpush3.bf16.msra.mxu1 %v1065_v29 }
  0x43   : > { %996 = vmatprep.subr.bf16.mxu1 %v1068_v31 }
  0x44   : > { %959 = vmatpush3.bf16.msra.mxu0 %v1067_v34 }
  0x46   : > { %997 = vmatpush3.bf16.msra.mxu1 %v1068_v31 }
  0x47   : > { %616 = vmatmul.mubr.bf16.vlgmr.msra.gmra.mxu0 %v1069_v35 }
  0x48   : > { %623 = vmatprep.mubr.bf16.mxu0 %v1074_v36 }
  0x49   : > { %999 = vmatmul.mubr.bf16.vlgmr.msra.gmra.mxu1 %v1073_v37 }
  0x4f   : > { %624 = vmatmul.mubr.bf16.gmra.mxu0 %v1076_v38 }
 0x107   : > { %v960_v39 = vpop.f32.mrf.mxu0 }
 0x109   : > { %v961_v40 = vpop.f32.mrf.mxu0  ;;  %v1000_v41 = vpop.f32.mrf.mxu1 }
 0x10a   : > { %v962_v42 = vadd.f32 %v961_v40, %v960_v39 }
 0x10b   : > { %v963_v43 = vpop.f32.mrf.mxu0  ;;  %v666_v45 = vpop.f32.mrf.mxu1 }
 0x10c   : > { %v667_v46 = vadd.f32 %v962_v42, %v666_v45 }
 0x10d   : > { %v964_v47 = vpop.f32.mrf.mxu0  ;;  %v1001_v48 = vpop.f32.mrf.mxu1 }
 0x10e   : > { %v681_v49 = vadd.f32 %v667_v46, %v347_v44  ;;  %v965_v50 = vadd.f32 %v964_v47, %v963_v43 }
 0x10f   : > { %v966_v51 = vpop.f32.mrf.mxu0  ;;  %v669_v53 = vpop.f32.mrf.mxu1 }
 0x110   : > { %685 = vst [vmem:[#allocation2 + $0x10] sm:$0xff] %v681_v49  ;;  %v670_v54 = vadd.f32 %v965_v50, %v669_v53 }
 0x111   : > { %v967_v55 = vpop.f32.mrf.mxu0 }
 0x112   : > { %v682_v56 = vadd.f32 %v670_v54, %v348_v52  ;;  %v968_v57 = vadd.f32 %v967_v55, %v966_v51 }
 0x113   : > { %v969_v59 = vpop.f32.mrf.mxu0 }
 0x114   : > { %686 = vst [vmem:[#allocation2] sm:$0xff] %v682_v56  ;;  %v675_v60 = vadd.f32 %v1000_v41, %v968_v57 }
 0x115   : > { %v970_v61 = vpop.f32.mrf.mxu0 }
 0x116   : > { %v683_v62 = vadd.f32 %v675_v60, %v349_v58  ;;  %v971_v63 = vadd.f32 %v970_v61, %v969_v59 }
 0x118   : > { %687 = vst [vmem:[#allocation2 + $0x18] sm:$0xff] %v683_v62  ;;  %v678_v1 = vadd.f32 %v1001_v48, %v971_v63  ;;  %692 = sbr.rel (%p917_p11) target bundleno = 301 (0x12d), region = 70 }
 0x11a   : > { %v684_v2 = vadd.f32 %v678_v1, %v350_v0 }
 0x11c   : > { %688 = vst [vmem:[#allocation2 + $0x8] sm:$0xff] %v684_v2 }
 0x11d   : > { %v693_v3 = vld [vmem:[#allocation2 + $0x10] sm:$0xff]  ;;  %v694_v4 = vld [vmem:[#allocation2] sm:$0xff] }
 0x11e   : > { %v918_v5 = vld [vmem:[%s1258_s2] ss:$0 sm:$0xff] }
 0x11f   : > { %v704_v6 = vmul.f32 %v918_v5, %v693_v3  ;;  %v705_v7 = vmul.f32 %v918_v5, %v694_v4  ;;  %v919_v8 = vld [vmem:[%s1259_s3] ss:$0 sm:$0xff]  ;;  %v695_v9 = vld [vmem:[#allocation2 + $0x18] sm:$0xff] }
 0x120   : > { %v706_v11 = vmul.f32 %v918_v5, %v695_v9 }
 0x121   : > { %v715_v13 = vadd.f32 %v919_v8, %v704_v6  ;;  %v716_v14 = vadd.f32 %v919_v8, %v705_v7 }
 0x122   : > { %v717_v15 = vadd.f32 %v919_v8, %v706_v11 }
 0x123   : > { %v696_v10 = vld [vmem:[#allocation2 + $0x8] sm:$0xff]  ;;  %v719_v17 = vmax.f32 %v715_v13, 0.0  ;;  %v720_v18 = vmax.f32 %v716_v14, 0.0 }
 0x124   : > { %v707_v12 = vmul.f32 %v918_v5, %v696_v10  ;;  %v721_v19 = vmax.f32 %v717_v15, 0.0 }
 0x125   : > { %v936_v21 = vpack.c.bf16 %v720_v18, %v719_v17 }
 0x126   : > { %v718_v16 = vadd.f32 %v919_v8, %v707_v12 }
 0x127   : > { %937 = vst [vmem:[%s1260_s4] sm:$0xff] %v936_v21  }
 0x128   : > { %v722_v20 = vmax.f32 %v718_v16, 0.0 }
 0x12a   : > { %v941_v22 = vpack.c.bf16 %v722_v20, %v721_v19 }
 0x12c   : > { %943 = vst [vmem:[%s1260_s4 + $0x8] sm:$0xff] %v941_v22  }
 0x12d PF: > { %s14_s19 = sadd.s32 1, %s1115_s19   ;;  %s1261_s15 = smov %s1103_s16 }
 0x12e   : > { %p11_p12 = scmp.ge.s32.totalorder %s14_s19, 5   ;;  %s1262_s16 = smov %s1178_s23 }
 0x12f   : > { %s1263_s17 = smov %s1111_s18  ;;  %s1264_s18 = smov %s1266_s20 }
 0x130   :  { %13 = sbr.rel (!%p11_p12) target bundleno = 3 (0x3), region = 120 }

// kernel: _lambda_.27
= control target key start
LH: loop header
LB: loop body
LE: loop exit
PB: predicated region body
PF: predicated region fallthrough
CT: control target
= control target key end

     0   :  { %s358_s1 = inlined_call_operand.vmem [shape: bf16[128,128], index: 1, kind: input, shape index: {}]   ;;  %s359_s0 = inlined_call_operand.vmem [shape: bf16[32,128], index: 0, kind: input, shape index: {}]   ;;  %s360_s2 = inlined_call_operand.vmem [shape: f32[1,128], index: 2, kind: input, shape index: {}]   ;;  %s361_s3 = inlined_call_operand.vmem [shape: f32[1,128], index: 3, kind: input, shape index: {}]   ;;  %s362_s4 = inlined_call_operand.vmem [shape: bf16[32,128], index: 4, kind: output, shape index: {}]  }
   0x1   :  { %v281_v0 = vld [vmem:[%s358_s1 + $0x38] sm:$0xff]   ;;  %v282_v1 = vld [vmem:[%s358_s1 + $0x30] sm:$0xff]   ;;  %v283_v2 = vld [vmem:[%s358_s1 + $0x28] sm:$0xff]  }
   0x2   :  { %261 = vmatprep.subr.bf16.mxu0 %v281_v0  ;;  %v284_v3 = vld [vmem:[%s358_s1 + $0x20] sm:$0xff]   ;;  %v285_v5 = vld [vmem:[%s358_s1 + $0x18] sm:$0xff]   ;;  %v286_v6 = vld [vmem:[%s358_s1 + $0x10] sm:$0xff]  }
   0x3   :  { %262 = vmatpush3.bf16.msra.mxu0 %v281_v0  ;;  %v289_v4 = vld [vmem:[%s359_s0] sm:$0xff]   ;;  %v287_v7 = vld [vmem:[%s358_s1 + $0x8] sm:$0xff]  }
   0x4   :  { %263 = vmatprep.subr.bf16.mxu0 %v282_v1  ;;  %277 = vmatprep.mubr.bf16.mxu0 %v289_v4  ;;  %v288_v8 = vld [vmem:[%s358_s1] sm:$0xff]   ;;  %v290_v9 = vld [vmem:[%s359_s0 + $0x8] sm:$0xff]  }
   0x5   :  { %v230_v11 = vld [vmem:[%s360_s2] ss:$0 sm:$0xff] }
   0x6   :  { %v231_v14 = vld [vmem:[%s361_s3] ss:$0 sm:$0xff] }
   0x7   :  { %264 = vmatpush3.bf16.msra.mxu0 %v282_v1 }
   0x8   :  { %265 = vmatprep.subr.bf16.mxu0 %v283_v2 }
   0xb   :  { %266 = vmatpush3.bf16.msra.mxu0 %v283_v2 }
   0xc   :  { %267 = vmatprep.subr.bf16.mxu0 %v284_v3 }
   0xf   :  { %268 = vmatpush3.bf16.msra.mxu0 %v284_v3 }
  0x10   :  { %269 = vmatprep.subr.bf16.mxu0 %v285_v5 }
  0x13   :  { %270 = vmatpush3.bf16.msra.mxu0 %v285_v5 }
  0x14   :  { %271 = vmatprep.subr.bf16.mxu0 %v286_v6 }
  0x17   :  { %272 = vmatpush3.bf16.msra.mxu0 %v286_v6 }
  0x18   :  { %273 = vmatprep.subr.bf16.mxu0 %v287_v7 }
  0x1b   :  { %274 = vmatpush3.bf16.msra.mxu0 %v287_v7 }
  0x1c   :  { %275 = vmatprep.subr.bf16.mxu0 %v288_v8 }
  0x1f   :  { %276 = vmatpush3.bf16.msra.mxu0 %v288_v8 }
  0x22   :  { %278 = vmatmul.mubr.bf16.vlgmr.msra.gmra.mxu0 %v290_v9 }
  0xe2   :  { %v279_v10 = vpop.f32.mrf.mxu0 }
  0xe3   :  { %v183_v13 = vmul.f32 %v279_v10, %v230_v11 }
  0xe4   :  { %v144_v12 = vpop.f32.mrf.mxu0 }
  0xe5   :  { %v181_v16 = vmul.f32 %v230_v11, %v144_v12  ;;  %v194_v19 = vadd.f32 %v231_v14, %v183_v13 }
  0xe6   :  { %v280_v15 = vpop.f32.mrf.mxu0 }
  0xe7   :  { %v184_v17 = vmul.f32 %v280_v15, %v230_v11  ;;  %v192_v22 = vadd.f32 %v231_v14, %v181_v16 }
  0xe8   :  { %v147_v18 = vpop.f32.mrf.mxu0 }
  0xe9   :  { %v195_v20 = vadd.f32 %v231_v14, %v184_v17  ;;  %v182_v21 = vmul.f32 %v230_v11, %v147_v18 }
  0xeb   :  { %v248_v23 = vpack.c.bf16 %v195_v20, %v194_v19  ;;  %v193_v24 = vadd.f32 %v231_v14, %v182_v21 }
  0xed   :  { %250 = vst [vmem:[%s362_s4 + $0x8] sm:$0xff] %v248_v23   ;;  %v243_v25 = vpack.c.bf16 %v193_v24, %v192_v22 }
  0xef   :  { %244 = vst [vmem:[%s362_s4] sm:$0xff] %v243_v25  }

// kernel: _lambda_.28
= control target key start
LH: loop header
LB: loop body
LE: loop exit
PB: predicated region body
PF: predicated region fallthrough
CT: control target
= control target key end

     0   :  { %s1248_s18 = smov 0   ;;  %s1250_s19 = smov 0   ;;  %s1367_s0 = inlined_call_operand.vmem [shape: bf16[32,1152], index: 0, kind: input, shape index: {}]   ;;  %s1368_s1 = inlined_call_operand.vmem [shape: bf16[1152,128], index: 1, kind: input, shape index: {}]   ;;  %s1369_s2 = inlined_call_operand.vmem [shape: f32[1,128], index: 2, kind: input, shape index: {}]   ;;  %s1370_s3 = inlined_call_operand.vmem [shape: f32[1,128], index: 3, kind: input, shape index: {}]   ;;  %s1371_s4 = inlined_call_operand.vmem [shape: bf16[32,128], index: 4, kind: input, shape index: {}]   ;;  %s1372_s5 = inlined_call_operand.vmem [shape: bf16[32,128], index: 5, kind: output, shape index: {}]  }
   0x1   :  { %s1252_s20 = smov 0   ;;  %s1254_s21 = smov 0  }
   0x2   :  { %s1256_s22 = smov 0  }
   0x3 LB: > { %s27_s23 = sadd.s32 1, %s1211_s21  ;;  %p50_p1 = scmp.ne.s32.totalorder %s1203_s19, %s1199_s18  ;;  %s1215_s22 = sphi %s1256_s22, %s15_s22   ;;  %s1211_s21 = sphi %s1254_s21, %s1376_s21   ;;  %s1207_s20 = sphi %s1252_s20, %s1375_s20   ;;  %s1203_s19 = sphi %s1250_s19, %s1374_s19   ;;  %s1199_s18 = sphi %s1248_s18, %s1373_s18  }
   0x4   : > { %p28_p0 = scmp.ge.s32.totalorder %s27_s23, 3  ;;  %p51_p2 = scmp.eq.s32.totalorder %s1215_s22, 0 }
   0x5   : > { %s43_s25 = sadd.s32 1, %s1203_s19  ;;  %p965_p5 = scmp.ge.s32.totalorder %s1215_s22, 3 }
   0x6   : > { %s1378_s23 = smov (%p28_p0, %s27_s23), 0  ;;  %p52_p3 = por %p51_p2, %p50_p1 }
   0x7   : > { %s39_s24 = ssub.s32 %s1211_s21, %s1378_s23  ;;  %236 = sbr.rel (%p965_p5) target bundleno = 21 (0x15), region = 28 }
   0x8   : > { %p41_p4 = scmp.eq.s32.totalorder %s39_s24, 0 }
   0xa   : > { %s1283_s26 = scalar_select %p41_p4, %s1203_s19, %s43_s25  }
   0xc   : > { %239 = sbr.rel (!%p52_p3) target bundleno = 21 (0x15), region = 32  ;;  %s241_s27 = sand.u32 (%p52_p3), 1, %s1203_s19  }
   0xd   : > { %s1019_s28 = smul.u32 (%p52_p3), 12, %s1211_s21 }
   0xe   : > { %s1102_s29 = smul.u32 (%p52_p3), 48, %s241_s27 }
   0xf   : > { %s249_s7 = scalar_lea.vmem (%p52_p3), %s1367_s0, %s1019_s28 }
  0x10   : > { %v264_v0 = vld [vmem:[%s249_s7] sm:$0xff] (%p52_p3)  ;;  %v268_v2 = vld [vmem:[%s249_s7 + $0x48] sm:$0xff] (%p52_p3)  ;;  %s243_s8 = scalar_lea.vmem (%p52_p3), [#allocation3], %s1102_s29  ;;  %v971_v6 = vld [vmem:[%s249_s7 + $0x50] sm:$0xf] (%p52_p3) }
  0x11   : > { %v266_v1 = vld [vmem:[%s249_s7 + $0x24] sm:$0xff]  ;;  %265 = vst [vmem:[%s243_s8] sm:$0xff] %v264_v0  ;;  %269 = vst [vmem:[%s243_s8 + $0x18] sm:$0xff] %v268_v2  ;;  %v270_v3 = vld [vmem:[%s249_s7 + $0x6c] sm:$0xff] }
  0x12   : > { %267 = vst [vmem:[%s243_s8 + $0xc] sm:$0xff] %v266_v1  ;;  %v967_v4 = vld [vmem:[%s249_s7 + $0x8] sm:$0xf]  ;;  %v969_v5 = vld [vmem:[%s249_s7 + $0x2c] sm:$0xf]  ;;  %271 = vst [vmem:[%s243_s8 + $0x24] sm:$0xff] %v270_v3 }
  0x13   : > { %968 = vst [vmem:[%s243_s8 + $0x8] sm:$0xf] %v967_v4  ;;  %970 = vst [vmem:[%s243_s8 + $0x14] sm:$0xf] %v969_v5  ;;  %v973_v7 = vld [vmem:[%s249_s7 + $0x74] sm:$0xf] }
  0x14   : > { %972 = vst [vmem:[%s243_s8 + $0x20] sm:$0xf] %v971_v6  ;;  %974 = vst [vmem:[%s243_s8 + $0x2c] sm:$0xf] %v973_v7 }
  0x15 PF: > { %p975_p6 = scmp.ge.s32.totalorder %s1215_s22, 1  ;;  %p304_p7 = scmp.lt.s32.totalorder %s1215_s22, 4 }
  0x17   : > { %p305_p8 = pnand %p975_p6, %p304_p7 }
  0x18   : > { %s311_s9 = sand.u32 (!%p305_p8), 1, %s1199_s18   ;;  %s365_s10 = smul.u32 (!%p305_p8), 48, %s1207_s20 }
  0x19   : > { %308 = sbr.rel (%p305_p8) target bundleno = 303 (0x12f), region = 62  ;;  %p977_p10 = scmp.ne.s32.totalorder (!%p305_p8), %s1207_s20, 0 }
  0x1a   : > { %s1103_s11 = smul.u32 (!%p305_p8), 48, %s311_s9  ;;  %p366_p9 = scmp.lt.s32.totalorder (!%p305_p8), %s365_s10, 143 }
  0x1c   : > { %s1300_s16 = scalar_lea.vmem (!%p305_p8), [#allocation3], %s1103_s11 }
  0x1e   : > { %s1380_s10 = smov (!%p366_p9, %s365_s10), 143  ;;  %402 = sbr.rel (%p977_p10) target bundleno = 38 (0x26), region = 70 }
  0x1f   : > { %s976_s12 = sshll.u32 %s1380_s10, 2 }
  0x20   : > { %s1298_s15 = scalar_lea.vmem %s1368_s1, %s976_s12 }
  0x23   : > { %v1217_v8 = vmov 0.0  }
  0x24   : > { %403 = vst [vmem:[#allocation2 + $0x10] sm:$0xff] %v1217_v8  ;;  %404 = vst [vmem:[#allocation2] sm:$0xff] %v1217_v8 }
  0x25   : > { %405 = vst [vmem:[#allocation2 + $0x18] sm:$0xff] %v1217_v8  ;;  %406 = vst [vmem:[#allocation2 + $0x8] sm:$0xff] %v1217_v8 }
  0x26 PF: > { %v1145_v9 = vld [vmem:[%s1298_s15 + $0x78] sm:$0xff]   ;;  %v1148_v12 = vld [vmem:[%s1298_s15 + $0x70] sm:$0xff]   ;;  %v1151_v15 = vld [vmem:[%s1298_s15 + $0x68] sm:$0xff]   ;;  %p1008_p11 = scmp.ne.s32.totalorder %s1207_s20, 2 }
  0x27   : > { %v1146_v10 = vld [vmem:[%s1298_s15 + $0x38] sm:$0xff]   ;;  %1044 = vmatprep.subr.bf16.mxu0 %v1145_v9  ;;  %v1149_v13 = vld [vmem:[%s1298_s15 + $0x30] sm:$0xff]   ;;  %v1152_v16 = vld [vmem:[%s1298_s15 + $0x28] sm:$0xff]  }
  0x28   : > { %v1147_v11 = vld [vmem:[%s1298_s15 + $0xb8] sm:$0xff]   ;;  %1045 = vmatpush3.bf16.msra.mxu0 %v1146_v10  ;;  %v1150_v14 = vld [vmem:[%s1298_s15 + $0xb0] sm:$0xff]   ;;  %v1153_v17 = vld [vmem:[%s1298_s15 + $0xa8] sm:$0xff]  }
  0x29   : > { %1082 = vmatprep.subr.bf16.mxu1 %v1147_v11  ;;  %1046 = vmatprep.subr.bf16.mxu0 %v1148_v12  ;;  %v1154_v18 = vld [vmem:[%s1298_s15 + $0x60] sm:$0xff]   ;;  %v1157_v21 = vld [vmem:[%s1298_s15 + $0x58] sm:$0xff]   ;;  %v1160_v24 = vld [vmem:[%s1298_s15 + $0x50] sm:$0xff]  }
  0x2a   : > { %1083 = vmatpush3.bf16.msra.mxu1 %v1147_v11  ;;  %v1155_v19 = vld [vmem:[%s1298_s15 + $0x20] sm:$0xff]   ;;  %v1159_v22 = vld [vmem:[%s1298_s15 + $0x98] sm:$0xff]   ;;  %v1162_v25 = vld [vmem:[%s1298_s15 + $0x90] sm:$0xff]  }
  0x2b   : > { %1084 = vmatprep.subr.bf16.mxu1 %v1150_v14  ;;  %v1156_v20 = vld [vmem:[%s1298_s15 + $0xa0] sm:$0xff]   ;;  %v1158_v23 = vld [vmem:[%s1298_s15 + $0x18] sm:$0xff]   ;;  %v1161_v26 = vld [vmem:[%s1298_s15 + $0x10] sm:$0xff]  }
  0x2c   : > { %1047 = vmatpush3.bf16.msra.mxu0 %v1149_v13  ;;  %v1163_v27 = vld [vmem:[%s1298_s15 + $0x48] sm:$0xff]   ;;  %v1166_v30 = vld [vmem:[%s1298_s15 + $0x40] sm:$0xff]   ;;  %v407_v44 = vld [vmem:[#allocation2 + $0x10] sm:$0xff] }
  0x2d   : > { %1048 = vmatprep.subr.bf16.mxu0 %v1151_v15  ;;  %v1164_v28 = vld [vmem:[%s1298_s15 + $0x8] sm:$0xff]   ;;  %v1168_v31 = vld [vmem:[%s1298_s15 + $0x80] sm:$0xff]   ;;  %v409_v58 = vld [vmem:[#allocation2 + $0x18] sm:$0xff] }
  0x2e   : > { %1085 = vmatpush3.bf16.msra.mxu1 %v1150_v14  ;;  %v1165_v29 = vld [vmem:[%s1298_s15 + $0x88] sm:$0xff]   ;;  %v1171_v32 = vld [vmem:[%s1300_s16 + $0x4] ss:$12 sps:$4 sm:$0xff]  }
  0x2f   : > { %1086 = vmatprep.subr.bf16.mxu1 %v1153_v17  ;;  %v1172_v33 = vld [vmem:[%s1300_s16 + $0x8] ss:$12 sps:$4 sm:$0xff]   ;;  %675 = vmatprep.mubr.bf16.mxu0 %v1171_v32  ;;  %v1169_v35 = vld [vmem:[%s1300_s16] ss:$12 sps:$4 sm:$0xff]   ;;  %v1176_v38 = vld [vmem:[%s1300_s16 + $0x18] ss:$12 sps:$4 sm:$0xff]  }
  0x30   : > { %1049 = vmatpush3.bf16.msra.mxu0 %v1152_v16  ;;  %v1167_v34 = vld [vmem:[%s1298_s15] sm:$0xff]   ;;  %1098 = vmatprep.mubr.bf16.mxu1 %v1172_v33  ;;  %v1174_v36 = vld [vmem:[%s1300_s16 + $0x1c] ss:$12 sps:$4 sm:$0xff]  }
  0x31   : > { %1050 = vmatprep.subr.bf16.mxu0 %v1154_v18  ;;  %v1173_v37 = vld [vmem:[%s1300_s16 + $0x20] ss:$12 sps:$4 sm:$0xff]  }
  0x32   : > { %1087 = vmatpush3.bf16.msra.mxu1 %v1153_v17  ;;  %v408_v52 = vld [vmem:[#allocation2] sm:$0xff]  ;;  %v410_v0 = vld [vmem:[#allocation2 + $0x8] sm:$0xff] }
  0x33   : > { %1088 = vmatprep.subr.bf16.mxu1 %v1156_v20 }
  0x34   : > { %1051 = vmatpush3.bf16.msra.mxu0 %v1155_v19 }
  0x35   : > { %1052 = vmatprep.subr.bf16.mxu0 %v1157_v21 }
  0x36   : > { %1089 = vmatpush3.bf16.msra.mxu1 %v1156_v20 }
  0x37   : > { %1090 = vmatprep.subr.bf16.mxu1 %v1159_v22 }
  0x38   : > { %1053 = vmatpush3.bf16.msra.mxu0 %v1158_v23 }
  0x39   : > { %1054 = vmatprep.subr.bf16.mxu0 %v1160_v24 }
  0x3a   : > { %1091 = vmatpush3.bf16.msra.mxu1 %v1159_v22 }
  0x3b   : > { %1092 = vmatprep.subr.bf16.mxu1 %v1162_v25 }
  0x3c   : > { %1055 = vmatpush3.bf16.msra.mxu0 %v1161_v26 }
  0x3d   : > { %1056 = vmatprep.subr.bf16.mxu0 %v1163_v27 }
  0x3e   : > { %1093 = vmatpush3.bf16.msra.mxu1 %v1162_v25 }
  0x3f   : > { %1094 = vmatprep.subr.bf16.mxu1 %v1165_v29 }
  0x40   : > { %1057 = vmatpush3.bf16.msra.mxu0 %v1164_v28 }
  0x41   : > { %1058 = vmatprep.subr.bf16.mxu0 %v1166_v30 }
  0x42   : > { %1095 = vmatpush3.bf16.msra.mxu1 %v1165_v29 }
  0x43   : > { %1096 = vmatprep.subr.bf16.mxu1 %v1168_v31 }
  0x44   : > { %1059 = vmatpush3.bf16.msra.mxu0 %v1167_v34 }
  0x46   : > { %1097 = vmatpush3.bf16.msra.mxu1 %v1168_v31 }
  0x47   : > { %676 = vmatmul.mubr.bf16.vlgmr.msra.gmra.mxu0 %v1169_v35 }
  0x48   : > { %683 = vmatprep.mubr.bf16.mxu0 %v1174_v36 }
  0x49   : > { %1099 = vmatmul.mubr.bf16.vlgmr.msra.gmra.mxu1 %v1173_v37 }
  0x4f   : > { %684 = vmatmul.mubr.bf16.gmra.mxu0 %v1176_v38 }
 0x107   : > { %v1060_v39 = vpop.f32.mrf.mxu0 }
 0x109   : > { %v1061_v40 = vpop.f32.mrf.mxu0  ;;  %v1100_v41 = vpop.f32.mrf.mxu1 }
 0x10a   : > { %v1062_v42 = vadd.f32 %v1061_v40, %v1060_v39 }
 0x10b   : > { %v1063_v43 = vpop.f32.mrf.mxu0  ;;  %v726_v45 = vpop.f32.mrf.mxu1 }
 0x10c   : > { %v727_v46 = vadd.f32 %v1062_v42, %v726_v45 }
 0x10d   : > { %v1064_v47 = vpop.f32.mrf.mxu0  ;;  %v1101_v48 = vpop.f32.mrf.mxu1 }
 0x10e   : > { %v741_v49 = vadd.f32 %v727_v46, %v407_v44  ;;  %v1065_v50 = vadd.f32 %v1064_v47, %v1063_v43 }
 0x10f   : > { %v1066_v51 = vpop.f32.mrf.mxu0  ;;  %v729_v53 = vpop.f32.mrf.mxu1 }
 0x110   : > { %745 = vst [vmem:[#allocation2 + $0x10] sm:$0xff] %v741_v49  ;;  %v730_v54 = vadd.f32 %v1065_v50, %v729_v53 }
 0x111   : > { %v1067_v55 = vpop.f32.mrf.mxu0 }
 0x112   : > { %v742_v56 = vadd.f32 %v730_v54, %v408_v52  ;;  %v1068_v57 = vadd.f32 %v1067_v55, %v1066_v51 }
 0x113   : > { %v1069_v59 = vpop.f32.mrf.mxu0 }
 0x114   : > { %746 = vst [vmem:[#allocation2] sm:$0xff] %v742_v56  ;;  %v735_v60 = vadd.f32 %v1100_v41, %v1068_v57 }
 0x115   : > { %v1070_v61 = vpop.f32.mrf.mxu0 }
 0x116   : > { %v743_v62 = vadd.f32 %v735_v60, %v409_v58  ;;  %v1071_v63 = vadd.f32 %v1070_v61, %v1069_v59 }
 0x118   : > { %747 = vst [vmem:[#allocation2 + $0x18] sm:$0xff] %v743_v62  ;;  %v738_v1 = vadd.f32 %v1101_v48, %v1071_v63  ;;  %752 = sbr.rel (%p1008_p11) target bundleno = 303 (0x12f), region = 74 }
 0x11a   : > { %v744_v2 = vadd.f32 %v738_v1, %v410_v0 }
 0x11c   : > { %748 = vst [vmem:[#allocation2 + $0x8] sm:$0xff] %v744_v2 }
 0x11d   : > { %v753_v3 = vld [vmem:[#allocation2 + $0x10] sm:$0xff]  ;;  %v754_v4 = vld [vmem:[#allocation2] sm:$0xff]  ;;  %v1042_v15 = vld [vmem:[%s1371_s4 + $0x8] sm:$0xff]  }
 0x11e   : > { %v1009_v5 = vld [vmem:[%s1369_s2] ss:$0 sm:$0xff]  ;;  %v1030_v19 = vunpack.c.l.bf16 %v1042_v15  ;;  %v1031_v21 = vunpack.c.h.bf16 %v1042_v15 }
 0x11f   : > { %v764_v6 = vmul.f32 %v1009_v5, %v753_v3  ;;  %v765_v7 = vmul.f32 %v1009_v5, %v754_v4  ;;  %v1010_v8 = vld [vmem:[%s1370_s3] ss:$0 sm:$0xff]  ;;  %v755_v10 = vld [vmem:[#allocation2 + $0x18] sm:$0xff] }
 0x120   : > { %v1025_v9 = vld [vmem:[%s1371_s4] sm:$0xff]   ;;  %v766_v14 = vmul.f32 %v1009_v5, %v755_v10 }
 0x121   : > { %v1026_v11 = vunpack.c.l.bf16 %v1025_v9  ;;  %v1027_v12 = vunpack.c.h.bf16 %v1025_v9  ;;  %v775_v16 = vadd.f32 %v1010_v8, %v764_v6  ;;  %v776_v17 = vadd.f32 %v1010_v8, %v765_v7 }
 0x122   : > { %v777_v20 = vadd.f32 %v1010_v8, %v766_v14 }
 0x123   : > { %v756_v13 = vld [vmem:[#allocation2 + $0x8] sm:$0xff]  ;;  %v787_v22 = vadd.f32 %v1026_v11, %v775_v16  ;;  %v788_v23 = vadd.f32 %v1027_v12, %v776_v17 }
 0x124   : > { %v767_v18 = vmul.f32 %v1009_v5, %v756_v13  ;;  %v789_v25 = vadd.f32 %v1030_v19, %v777_v20 }
 0x125   : > { %v791_v26 = vmax.f32 %v787_v22, 0.0  ;;  %v792_v27 = vmax.f32 %v788_v23, 0.0 }
 0x126   : > { %v778_v24 = vadd.f32 %v1010_v8, %v767_v18  ;;  %v793_v29 = vmax.f32 %v789_v25, 0.0 }
 0x127   : > { %v1035_v30 = vpack.c.bf16 %v792_v27, %v791_v26 }
 0x128   : > { %v790_v28 = vadd.f32 %v1031_v21, %v778_v24 }
 0x129   : > { %1036 = vst [vmem:[%s1372_s5] sm:$0xff] %v1035_v30  }
 0x12a   : > { %v794_v31 = vmax.f32 %v790_v28, 0.0 }
 0x12c   : > { %v1040_v32 = vpack.c.bf16 %v794_v31, %v793_v29 }
 0x12e   : > { %1043 = vst [vmem:[%s1372_s5 + $0x8] sm:$0xff] %v1040_v32  }
 0x12f PF: > { %s15_s22 = sadd.s32 1, %s1215_s22   ;;  %s1373_s18 = smov %s1203_s19 }
 0x130   : > { %p12_p12 = scmp.ge.s32.totalorder %s15_s22, 5   ;;  %s1374_s19 = smov %s1283_s26 }
 0x131   : > { %s1375_s20 = smov %s1211_s21  ;;  %s1376_s21 = smov %s1378_s23 }
 0x132   :  { %14 = sbr.rel (!%p12_p12) target bundleno = 3 (0x3), region = 127 }

// kernel: _lambda_.31
= control target key start
LH: loop header
LB: loop body
LE: loop exit
PB: predicated region body
PF: predicated region fallthrough
CT: control target
= control target key end

     0   :  { %s1114_s15 = smov 0   ;;  %s1116_s16 = smov 0   ;;  %s1216_s0 = inlined_call_operand.vmem [shape: bf16[8,1152], index: 0, kind: input, shape index: {}]   ;;  %s1217_s1 = inlined_call_operand.vmem [shape: bf16[1152,256], index: 1, kind: input, shape index: {}]   ;;  %s1218_s2 = inlined_call_operand.vmem [shape: f32[1,256], index: 2, kind: input, shape index: {}]   ;;  %s1219_s3 = inlined_call_operand.vmem [shape: f32[1,256], index: 3, kind: input, shape index: {}]   ;;  %s1220_s4 = inlined_call_operand.vmem [shape: bf16[8,256], index: 4, kind: output, shape index: {}]  }
   0x1   :  { %s1118_s17 = smov 0  }
   0x2 LB: > { %s26_s18 = sadd.s32 1, %s1081_s16  ;;  %p898_p0 = scmp.ge.s32.totalorder %s1085_s17, 1  ;;  %s1085_s17 = sphi %s1118_s17, %s14_s17   ;;  %s1081_s16 = sphi %s1116_s16, %s1222_s16   ;;  %s1077_s15 = sphi %s1114_s15, %s1221_s15  }
   0x3   : > { %p27_p1 = scmp.ge.s32.totalorder %s26_s18, 3  ;;  %p229_p2 = scmp.lt.s32.totalorder %s1085_s17, 4 }
   0x5   : > { %s1224_s18 = smov (%p27_p1, %s26_s18), 0  ;;  %p230_p3 = pnand %p898_p0, %p229_p2 }
   0x6   : > { %s281_s19 = smul.u32 (!%p230_p3), 3, %s1077_s15  ;;  %p902_p6 = scmp.ne.s32.totalorder (!%p230_p3), %s1077_s15, 0 }
   0x7   : > { %233 = sbr.rel (%p230_p3) target bundleno = 304 (0x130), region = 36 }
   0x8   : > { %s291_s20 = smul.u32 (!%p230_p3), 48, %s1077_s15  ;;  %p284_p4 = scmp.lt.s32.totalorder (!%p230_p3), %s281_s19, 8 }
   0xa   : > { %p293_p5 = scmp.lt.s32.totalorder (!%p230_p3), %s291_s20, 143 }
   0xc   : > { %s1226_s19 = smov (!%p284_p4, %s281_s19), 8  ;;  %s1228_s20 = smov (!%p293_p5, %s291_s20), 143 }
   0xd   : > { %s899_s21 = sshll.u32 %s1226_s19, 2  ;;  %s960_s25 = sshll.u32 %s1228_s20, 3 }
   0xe   : > { %s1139_s24 = scalar_lea.vmem %s1216_s0, %s899_s21  ;;  %s1144_s28 = scalar_lea.vmem %s1217_s1, %s960_s25 }
   0xf   : > { %327 = sbr.rel (%p902_p6) target bundleno = 22 (0x16), region = 40 }
  0x14   : > { %v1087_v0 = vmov 0.0  }
  0x15   : > { %328 = vst [vmem:[#allocation2] sm:$0xff] %v1087_v0  ;;  %329 = vst [vmem:[#allocation2 + $0x8] sm:$0xff] %v1087_v0 }
  0x16 PF: > { %v988_v1 = vld [vmem:[%s1144_s28 + $0x74] ss:$8 sps:$4 sm:$0xff]   ;;  %v990_v2 = vld [vmem:[%s1144_s28 + $0x70] ss:$8 sps:$4 sm:$0xff]   ;;  %v1088_v3 = vmov 0   ;;  %v332_v34 = vld [vmem:[%s1139_s24] sm:$0xff] }
  0x17   : > { %706 = vmatprep.mubr.bf16.mxu1 %v1088_v3  ;;  %633 = vmatprep.subr.bf16.mxu0 %v988_v1  ;;  %v991_v4 = vld [vmem:[%s1144_s28 + $0x64] ss:$8 sps:$4 sm:$0xff]   ;;  %v993_v5 = vld [vmem:[%s1144_s28 + $0x60] ss:$8 sps:$4 sm:$0xff]   ;;  %v994_v6 = vld [vmem:[%s1144_s28 + $0x54] ss:$8 sps:$4 sm:$0xff]   ;;  %v904_v36 = vcombine.high %v332_v34, %v332_v34  ;;  %v903_v53 = vcombine.low %v332_v34, %v332_v34 }
  0x18   : > { %634 = vmatpush1.bf16.msra.mxu0 %v990_v2  ;;  %v996_v7 = vld [vmem:[%s1144_s28 + $0x50] ss:$8 sps:$4 sm:$0xff]   ;;  %v997_v8 = vld [vmem:[%s1144_s28 + $0x44] ss:$8 sps:$4 sm:$0xff]   ;;  %v1009_v9 = vld [vmem:[%s1144_s28 + $0x174] ss:$8 sps:$4 sm:$0xff]  }
  0x19   : > { %635 = vmatprep.subr.bf16.mxu0 %v991_v4  ;;  %v1011_v10 = vld [vmem:[%s1144_s28 + $0x170] ss:$8 sps:$4 sm:$0xff]   ;;  %v999_v11 = vld [vmem:[%s1144_s28 + $0x40] ss:$8 sps:$4 sm:$0xff]   ;;  %v1000_v12 = vld [vmem:[%s1144_s28 + $0x34] ss:$8 sps:$4 sm:$0xff]   ;;  %674 = vmatprep.subr.bf16.mxu1 %v1009_v9 }
  0x1a   : > { %v1015_v13 = vld [vmem:[%s1144_s28 + $0x164] ss:$8 sps:$4 sm:$0xff]   ;;  %675 = vmatpush1.bf16.msra.mxu1 %v1011_v10  ;;  %v1017_v14 = vld [vmem:[%s1144_s28 + $0x160] ss:$8 sps:$4 sm:$0xff]   ;;  %v1002_v15 = vld [vmem:[%s1144_s28 + $0x30] ss:$8 sps:$4 sm:$0xff]   ;;  %665 = vmatprep.mubr.bf16.mxu0 %v904_v36 }
  0x1b   : > { %676 = vmatprep.subr.bf16.mxu1 %v1015_v13  ;;  %v1021_v16 = vld [vmem:[%s1144_s28 + $0x154] ss:$8 sps:$4 sm:$0xff]   ;;  %v1003_v17 = vld [vmem:[%s1144_s28 + $0x24] ss:$8 sps:$4 sm:$0xff]   ;;  %v1023_v18 = vld [vmem:[%s1144_s28 + $0x150] ss:$8 sps:$4 sm:$0xff]  }
  0x1c   : > { %636 = vmatpush1.bf16.msra.mxu0 %v993_v5  ;;  %v1027_v19 = vld [vmem:[%s1144_s28 + $0x144] ss:$8 sps:$4 sm:$0xff]   ;;  %v1005_v20 = vld [vmem:[%s1144_s28 + $0x20] ss:$8 sps:$4 sm:$0xff]   ;;  %v1006_v21 = vld [vmem:[%s1144_s28 + $0x14] ss:$8 sps:$4 sm:$0xff]  }
  0x1d   : > { %637 = vmatprep.subr.bf16.mxu0 %v994_v6  ;;  %v1029_v22 = vld [vmem:[%s1144_s28 + $0x140] ss:$8 sps:$4 sm:$0xff]   ;;  %v1033_v23 = vld [vmem:[%s1144_s28 + $0x134] ss:$8 sps:$4 sm:$0xff]   ;;  %v1008_v24 = vld [vmem:[%s1144_s28 + $0x10] ss:$8 sps:$4 sm:$0xff]  }
  0x1e   : > { %677 = vmatpush1.bf16.msra.mxu1 %v1017_v14  ;;  %v1012_v25 = vld [vmem:[%s1144_s28 + $0x4] ss:$8 sps:$4 sm:$0xff]   ;;  %v1035_v26 = vld [vmem:[%s1144_s28 + $0x130] ss:$8 sps:$4 sm:$0xff]   ;;  %v1014_v28 = vld [vmem:[%s1144_s28] ss:$8 sps:$4 sm:$0xff]  }
  0x1f   : > { %678 = vmatprep.subr.bf16.mxu1 %v1021_v16  ;;  %v1039_v27 = vld [vmem:[%s1144_s28 + $0x124] ss:$8 sps:$4 sm:$0xff]   ;;  %v1018_v29 = vld [vmem:[%s1144_s28 + $0xf4] ss:$8 sps:$4 sm:$0xff]   ;;  %v1041_v30 = vld [vmem:[%s1144_s28 + $0x120] ss:$8 sps:$4 sm:$0xff]  }
  0x20   : > { %638 = vmatpush1.bf16.msra.mxu0 %v996_v7  ;;  %v1045_v31 = vld [vmem:[%s1144_s28 + $0x114] ss:$8 sps:$4 sm:$0xff]   ;;  %v1020_v32 = vld [vmem:[%s1144_s28 + $0xf0] ss:$8 sps:$4 sm:$0xff]   ;;  %v1024_v33 = vld [vmem:[%s1144_s28 + $0xe4] ss:$8 sps:$4 sm:$0xff]  }
  0x21   : > { %639 = vmatprep.subr.bf16.mxu0 %v997_v8  ;;  %v1047_v35 = vld [vmem:[%s1144_s28 + $0x110] ss:$8 sps:$4 sm:$0xff]   ;;  %v1051_v37 = vld [vmem:[%s1144_s28 + $0x104] ss:$8 sps:$4 sm:$0xff]   ;;  %v1026_v38 = vld [vmem:[%s1144_s28 + $0xe0] ss:$8 sps:$4 sm:$0xff]  }
  0x22   : > { %679 = vmatpush1.bf16.msra.mxu1 %v1023_v18  ;;  %v1030_v39 = vld [vmem:[%s1144_s28 + $0xd4] ss:$8 sps:$4 sm:$0xff]   ;;  %v1053_v40 = vld [vmem:[%s1144_s28 + $0x100] ss:$8 sps:$4 sm:$0xff]   ;;  %v1032_v41 = vld [vmem:[%s1144_s28 + $0xd0] ss:$8 sps:$4 sm:$0xff]  }
  0x23   : > { %680 = vmatprep.subr.bf16.mxu1 %v1027_v19  ;;  %v1036_v42 = vld [vmem:[%s1144_s28 + $0xc4] ss:$8 sps:$4 sm:$0xff]   ;;  %v1057_v43 = vld [vmem:[%s1139_s24 + $0x8] ss:$0 sps:$4 sm:$0xff]   ;;  %v1042_v45 = vld [vmem:[%s1144_s28 + $0xb4] ss:$8 sps:$4 sm:$0xff]  }
  0x24   : > { %640 = vmatpush1.bf16.msra.mxu0 %v999_v11  ;;  %v1038_v44 = vld [vmem:[%s1144_s28 + $0xc0] ss:$8 sps:$4 sm:$0xff]   ;;  %v1044_v46 = vld [vmem:[%s1144_s28 + $0xb0] ss:$8 sps:$4 sm:$0xff]   ;;  %v1048_v47 = vld [vmem:[%s1144_s28 + $0xa4] ss:$8 sps:$4 sm:$0xff]  }
  0x25   : > { %641 = vmatprep.subr.bf16.mxu0 %v1000_v12  ;;  %v1050_v48 = vld [vmem:[%s1144_s28 + $0xa0] ss:$8 sps:$4 sm:$0xff]   ;;  %v1054_v49 = vld [vmem:[%s1144_s28 + $0x94] ss:$8 sps:$4 sm:$0xff]   ;;  %v1056_v50 = vld [vmem:[%s1144_s28 + $0x90] ss:$8 sps:$4 sm:$0xff]  }
  0x26   : > { %681 = vmatpush1.bf16.msra.mxu1 %v1029_v22  ;;  %v1058_v51 = vld [vmem:[%s1144_s28 + $0x84] ss:$8 sps:$4 sm:$0xff]   ;;  %v1060_v52 = vld [vmem:[%s1144_s28 + $0x80] ss:$8 sps:$4 sm:$0xff]   ;;  %p954_p7 = scmp.ne.s32.totalorder %s1077_s15, 2 }
  0x27   : > { %682 = vmatprep.subr.bf16.mxu1 %v1033_v23  ;;  %v330_v58 = vld [vmem:[#allocation2] sm:$0xff]  ;;  %v331_v61 = vld [vmem:[#allocation2 + $0x8] sm:$0xff] }
  0x28   : > { %642 = vmatpush1.bf16.msra.mxu0 %v1002_v15 }
  0x29   : > { %643 = vmatprep.subr.bf16.mxu0 %v1003_v17 }
  0x2a   : > { %683 = vmatpush1.bf16.msra.mxu1 %v1035_v26 }
  0x2b   : > { %684 = vmatprep.subr.bf16.mxu1 %v1039_v27 }
  0x2c   : > { %644 = vmatpush1.bf16.msra.mxu0 %v1005_v20 }
  0x2d   : > { %645 = vmatprep.subr.bf16.mxu0 %v1006_v21 }
  0x2e   : > { %685 = vmatpush1.bf16.msra.mxu1 %v1041_v30 }
  0x2f   : > { %686 = vmatprep.subr.bf16.mxu1 %v1045_v31 }
  0x30   : > { %646 = vmatpush1.bf16.msra.mxu0 %v1008_v24 }
  0x31   : > { %647 = vmatprep.subr.bf16.mxu0 %v1012_v25 }
  0x32   : > { %687 = vmatpush1.bf16.msra.mxu1 %v1047_v35 }
  0x33   : > { %688 = vmatprep.subr.bf16.mxu1 %v1051_v37 }
  0x34   : > { %648 = vmatpush1.bf16.msra.mxu0 %v1014_v28 }
  0x35   : > { %649 = vmatprep.subr.bf16.mxu0 %v1018_v29 }
  0x36   : > { %689 = vmatpush1.bf16.msra.mxu1 %v1053_v40 }
  0x38   : > { %650 = vmatpush2.bf16.msra.mxu0 %v1020_v32 }
  0x39   : > { %651 = vmatprep.subr.bf16.mxu0 %v1024_v33  ;;  %707 = vmatmul.mubr.bf16.vlgmr.msra.gmra.mxu1 %v1057_v43 }
  0x3c   : > { %652 = vmatpush2.bf16.msra.mxu0 %v1026_v38 }
  0x3d   : > { %653 = vmatprep.subr.bf16.mxu0 %v1030_v39 }
  0x40   : > { %654 = vmatpush2.bf16.msra.mxu0 %v1032_v41 }
  0x41   : > { %655 = vmatprep.subr.bf16.mxu0 %v1036_v42 }
  0x44   : > { %656 = vmatpush2.bf16.msra.mxu0 %v1038_v44 }
  0x45   : > { %657 = vmatprep.subr.bf16.mxu0 %v1042_v45 }
  0x48   : > { %658 = vmatpush2.bf16.msra.mxu0 %v1044_v46 }
  0x49   : > { %659 = vmatprep.subr.bf16.mxu0 %v1048_v47 }
  0x4c   : > { %660 = vmatpush2.bf16.msra.mxu0 %v1050_v48 }
  0x4d   : > { %661 = vmatprep.subr.bf16.mxu0 %v1054_v49 }
  0x50   : > { %662 = vmatpush2.bf16.msra.mxu0 %v1056_v50 }
  0x51   : > { %663 = vmatprep.subr.bf16.mxu0 %v1058_v51 }
  0x54   : > { %664 = vmatpush2.bf16.msra.mxu0 %v1060_v52 }
  0x57   : > { %666 = vmatmul.mubr.bf16.vlgmr.msra.gmra.mxu0 %v903_v53 }
  0xf9   : > { %v708_v54 = vpop.f32.mrf.mxu1 }
  0xfb   : > { %v710_v55 = vpop.f32.mrf.mxu1 }
  0xfd   : > { %v712_v56 = vpop.f32.mrf.mxu1 }
  0xff   : > { %v713_v57 = vpop.f32.mrf.mxu1 }
 0x117   : > { %v667_v59 = vpop.f32.mrf.mxu0 }
 0x118   : > { %v709_v60 = vadd.f32 %v708_v54, %v667_v59 }
 0x119   : > { %v669_v62 = vpop.f32.mrf.mxu0 }
 0x11a   : > { %v715_v63 = vadd.f32 %v709_v60, %v330_v58  ;;  %v711_v0 = vadd.f32 %v710_v55, %v669_v62  ;;  %722 = sbr.rel (%p954_p7) target bundleno = 304 (0x130), region = 44 }
 0x11b   : > { %v671_v1 = vpop.f32.mrf.mxu0 }
 0x11c   : > { %717 = vst [vmem:[#allocation2] sm:$0xff] %v715_v63  ;;  %v716_v2 = vadd.f32 %v711_v0, %v331_v61 }
 0x11d   : > { %v672_v3 = vpop.f32.mrf.mxu0 }
 0x11e   : > { %718 = vst [vmem:[#allocation2 + $0x8] sm:$0xff] %v716_v2 }
 0x11f   : > { %v727_v4 = vlaneseq  ;;  %v725_v6 = vld [vmem:[%s1218_s2] sm:$0x3] }
 0x120   : > { %v739_v7 = vld [vmem:[%s1219_s3] sm:$0x3] }
 0x121   : > { %v728_v5 = vshrl.u32 %v727_v4, 7 }
 0x123   : > { %v729_v8 = vsub.s32 0, %v728_v5  ;;  %v733_v9 = vsub.s32 1, %v728_v5  ;;  %v723_v10 = vld [vmem:[#allocation2] sm:$0xff] }
 0x125   : > { %v724_v11 = vld [vmem:[#allocation2 + $0x8] sm:$0xff]  ;;  %v730_v12 = vrot.slane %v725_v6, %v729_v8  ;;  %v734_v13 = vrot.slane %v725_v6, %v733_v9  ;;  %v744_v14 = vrot.slane %v739_v7, %v729_v8  ;;  %v748_v15 = vrot.slane %v739_v7, %v733_v9 }
 0x127   : > { %v737_v16 = vmul.f32 %v730_v12, %v723_v10  ;;  %v738_v17 = vmul.f32 %v734_v13, %v724_v11 }
 0x129   : > { %v751_v18 = vadd.f32 %v744_v14, %v737_v16  ;;  %v752_v19 = vadd.f32 %v748_v15, %v738_v17 }
 0x12b   : > { %v753_v20 = vmax.f32 %v751_v18, 0.0  ;;  %v754_v21 = vmax.f32 %v752_v19, 0.0 }
 0x12d   : > { %v961_v22 = vpack.c.bf16 %v754_v21, %v753_v20 }
 0x12f   : > { %763 = vst [vmem:[%s1220_s4] sm:$0xff] %v961_v22 }
 0x130 PF: > { %s14_s17 = sadd.s32 1, %s1085_s17   ;;  %s1221_s15 = smov %s1081_s16 }
 0x131   : > { %p11_p8 = scmp.ge.s32.totalorder %s14_s17, 5   ;;  %s1222_s16 = smov %s1224_s18 }
 0x133   :  { %13 = sbr.rel (!%p11_p8) target bundleno = 2 (0x2), region = 83 }

// kernel: _lambda_.32
= control target key start
LH: loop header
LB: loop body
LE: loop exit
PB: predicated region body
PF: predicated region fallthrough
CT: control target
= control target key end

     0   :  { %v257_v1 = vmov 0   ;;  %v175_v18 = vlaneseq  ;;  %s343_s1 = inlined_call_operand.vmem [shape: bf16[128,256], index: 1, kind: input, shape index: {}]   ;;  %s344_s0 = inlined_call_operand.vmem [shape: bf16[8,128], index: 0, kind: input, shape index: {}]   ;;  %s345_s2 = inlined_call_operand.vmem [shape: f32[1,256], index: 2, kind: input, shape index: {}]   ;;  %s346_s3 = inlined_call_operand.vmem [shape: f32[1,256], index: 3, kind: input, shape index: {}]   ;;  %s347_s4 = inlined_call_operand.vmem [shape: bf16[8,256], index: 4, kind: output, shape index: {}]  }
   0x1   :  { %v233_v0 = vld [vmem:[%s343_s1 + $0x74] ss:$8 sps:$4 sm:$0xff]   ;;  %155 = vmatprep.mubr.bf16.mxu0 %v257_v1  ;;  %v235_v2 = vld [vmem:[%s343_s1 + $0x70] ss:$8 sps:$4 sm:$0xff]   ;;  %v236_v3 = vld [vmem:[%s343_s1 + $0x64] ss:$8 sps:$4 sm:$0xff]  }
   0x2   :  { %123 = vmatprep.subr.bf16.mxu0 %v233_v0  ;;  %v238_v4 = vld [vmem:[%s343_s1 + $0x60] ss:$8 sps:$4 sm:$0xff]   ;;  %v239_v5 = vld [vmem:[%s343_s1 + $0x54] ss:$8 sps:$4 sm:$0xff]   ;;  %v241_v6 = vld [vmem:[%s343_s1 + $0x50] ss:$8 sps:$4 sm:$0xff]  }
   0x3   :  { %124 = vmatpush1.bf16.msra.mxu0 %v235_v2  ;;  %v242_v7 = vld [vmem:[%s343_s1 + $0x44] ss:$8 sps:$4 sm:$0xff]   ;;  %v244_v8 = vld [vmem:[%s343_s1 + $0x40] ss:$8 sps:$4 sm:$0xff]   ;;  %v245_v9 = vld [vmem:[%s343_s1 + $0x34] ss:$8 sps:$4 sm:$0xff]  }
   0x4   :  { %125 = vmatprep.subr.bf16.mxu0 %v236_v3  ;;  %v247_v10 = vld [vmem:[%s343_s1 + $0x30] ss:$8 sps:$4 sm:$0xff]   ;;  %v248_v11 = vld [vmem:[%s343_s1 + $0x24] ss:$8 sps:$4 sm:$0xff]   ;;  %v250_v12 = vld [vmem:[%s343_s1 + $0x20] ss:$8 sps:$4 sm:$0xff]  }
   0x5   :  { %v251_v13 = vld [vmem:[%s343_s1 + $0x14] ss:$8 sps:$4 sm:$0xff]   ;;  %v253_v14 = vld [vmem:[%s343_s1 + $0x10] ss:$8 sps:$4 sm:$0xff]   ;;  %v254_v15 = vld [vmem:[%s343_s1 + $0x4] ss:$8 sps:$4 sm:$0xff]  }
   0x6   :  { %v256_v16 = vld [vmem:[%s343_s1] ss:$8 sps:$4 sm:$0xff]   ;;  %v176_v19 = vshrl.u32 %v175_v18, 7 }
   0x7   :  { %126 = vmatpush1.bf16.msra.mxu0 %v238_v4  ;;  %v26_v17 = vld [vmem:[%s344_s0] sm:$0xf] }
   0x8   :  { %127 = vmatprep.subr.bf16.mxu0 %v239_v5  ;;  %v177_v20 = vsub.s32 0, %v176_v19  ;;  %v173_v21 = vld [vmem:[%s345_s2] sm:$0x3]  ;;  %v181_v22 = vsub.s32 1, %v176_v19 }
   0x9   :  { %v187_v24 = vld [vmem:[%s346_s3] sm:$0x3] }
   0xa   :  { %v178_v23 = vrot.slane %v173_v21, %v177_v20  ;;  %v182_v25 = vrot.slane %v173_v21, %v181_v22  ;;  %v192_v28 = vrot.slane %v187_v24, %v177_v20  ;;  %v196_v29 = vrot.slane %v187_v24, %v181_v22 }
   0xb   :  { %128 = vmatpush1.bf16.msra.mxu0 %v241_v6 }
   0xc   :  { %129 = vmatprep.subr.bf16.mxu0 %v242_v7 }
   0xf   :  { %130 = vmatpush1.bf16.msra.mxu0 %v244_v8 }
  0x10   :  { %131 = vmatprep.subr.bf16.mxu0 %v245_v9 }
  0x13   :  { %132 = vmatpush1.bf16.msra.mxu0 %v247_v10 }
  0x14   :  { %133 = vmatprep.subr.bf16.mxu0 %v248_v11 }
  0x17   :  { %134 = vmatpush1.bf16.msra.mxu0 %v250_v12 }
  0x18   :  { %135 = vmatprep.subr.bf16.mxu0 %v251_v13 }
  0x1b   :  { %136 = vmatpush1.bf16.msra.mxu0 %v253_v14 }
  0x1c   :  { %137 = vmatprep.subr.bf16.mxu0 %v254_v15 }
  0x1f   :  { %138 = vmatpush1.bf16.msra.mxu0 %v256_v16 }
  0x22   :  { %156 = vmatmul.mubr.bf16.vlgmr.msra.gmra.mxu0 %v26_v17 }
  0xe2   :  { %v157_v26 = vpop.f32.mrf.mxu0 }
  0xe3   :  { %v185_v27 = vmul.f32 %v178_v23, %v157_v26 }
  0xe4   :  { %v159_v30 = vpop.f32.mrf.mxu0 }
  0xe5   :  { %v186_v31 = vmul.f32 %v182_v25, %v159_v30  ;;  %v199_v33 = vadd.f32 %v192_v28, %v185_v27 }
  0xe6   :  { %v161_v32 = vpop.f32.mrf.mxu0 }
  0xe7   :  { %v200_v34 = vadd.f32 %v196_v29, %v186_v31 }
  0xe8   :  { %v162_v35 = vpop.f32.mrf.mxu0 }
  0xe9   :  { %v231_v36 = vpack.c.bf16 %v200_v34, %v199_v33 }
  0xeb   :  { %209 = vst [vmem:[%s347_s4] sm:$0xff] %v231_v36 }

// kernel: _lambda_.33
= control target key start
LH: loop header
LB: loop body
LE: loop exit
PB: predicated region body
PF: predicated region fallthrough
CT: control target
= control target key end

     0   :  { %s1209_s18 = smov 0   ;;  %s1211_s19 = smov 0   ;;  %s1314_s0 = inlined_call_operand.vmem [shape: bf16[8,2304], index: 0, kind: input, shape index: {}]   ;;  %s1315_s1 = inlined_call_operand.vmem [shape: bf16[2304,256], index: 1, kind: input, shape index: {}]   ;;  %s1316_s2 = inlined_call_operand.vmem [shape: f32[1,256], index: 2, kind: input, shape index: {}]   ;;  %s1317_s3 = inlined_call_operand.vmem [shape: f32[1,256], index: 3, kind: input, shape index: {}]   ;;  %s1318_s4 = inlined_call_operand.vmem [shape: bf16[8,256], index: 4, kind: input, shape index: {}]   ;;  %s1319_s5 = inlined_call_operand.vmem [shape: bf16[8,256], index: 5, kind: output, shape index: {}]  }
   0x1   :  { %s1213_s20 = smov 0  }
   0x2 LB: > { %s27_s21 = sadd.s32 1, %s1171_s19  ;;  %p988_p0 = scmp.ge.s32.totalorder %s1175_s20, 1  ;;  %s1175_s20 = sphi %s1213_s20, %s15_s20   ;;  %s1171_s19 = sphi %s1211_s19, %s1321_s19   ;;  %s1167_s18 = sphi %s1209_s18, %s1320_s18  }
   0x3   : > { %p28_p1 = scmp.ge.s32.totalorder %s27_s21, 6  ;;  %p271_p2 = scmp.lt.s32.totalorder %s1175_s20, 7 }
   0x5   : > { %s1323_s21 = smov (%p28_p1, %s27_s21), 0  ;;  %p272_p3 = pnand %p988_p0, %p271_p2 }
   0x6   : > { %s334_s22 = smul.u32 (!%p272_p3), 3, %s1167_s18  ;;  %p992_p6 = scmp.ne.s32.totalorder (!%p272_p3), %s1167_s18, 0 }
   0x7   : > { %275 = sbr.rel (%p272_p3) target bundleno = 306 (0x132), region = 40 }
   0x8   : > { %s344_s23 = smul.u32 (!%p272_p3), 48, %s1167_s18  ;;  %p337_p4 = scmp.lt.s32.totalorder (!%p272_p3), %s334_s22, 17 }
   0xa   : > { %p346_p5 = scmp.lt.s32.totalorder (!%p272_p3), %s344_s23, 287 }
   0xc   : > { %s1325_s22 = smov (!%p337_p4, %s334_s22), 17  ;;  %s1327_s23 = smov (!%p346_p5, %s344_s23), 287 }
   0xd   : > { %s989_s24 = sshll.u32 %s1325_s22, 2  ;;  %s1050_s28 = sshll.u32 %s1327_s23, 3 }
   0xe   : > { %s1234_s27 = scalar_lea.vmem %s1314_s0, %s989_s24  ;;  %s1239_s6 = scalar_lea.vmem %s1315_s1, %s1050_s28 }
   0xf   : > { %390 = sbr.rel (%p992_p6) target bundleno = 22 (0x16), region = 44 }
  0x14   : > { %v1177_v0 = vmov 0.0  }
  0x15   : > { %391 = vst [vmem:[#allocation2] sm:$0xff] %v1177_v0  ;;  %392 = vst [vmem:[#allocation2 + $0x8] sm:$0xff] %v1177_v0 }
  0x16 PF: > { %v1078_v1 = vld [vmem:[%s1239_s6 + $0x74] ss:$8 sps:$4 sm:$0xff]   ;;  %v1080_v2 = vld [vmem:[%s1239_s6 + $0x70] ss:$8 sps:$4 sm:$0xff]   ;;  %v1178_v3 = vmov 0   ;;  %v395_v34 = vld [vmem:[%s1234_s27] sm:$0xff] }
  0x17   : > { %769 = vmatprep.mubr.bf16.mxu1 %v1178_v3  ;;  %696 = vmatprep.subr.bf16.mxu0 %v1078_v1  ;;  %v1081_v4 = vld [vmem:[%s1239_s6 + $0x64] ss:$8 sps:$4 sm:$0xff]   ;;  %v1083_v5 = vld [vmem:[%s1239_s6 + $0x60] ss:$8 sps:$4 sm:$0xff]   ;;  %v1084_v6 = vld [vmem:[%s1239_s6 + $0x54] ss:$8 sps:$4 sm:$0xff]   ;;  %v994_v36 = vcombine.high %v395_v34, %v395_v34  ;;  %v993_v53 = vcombine.low %v395_v34, %v395_v34 }
  0x18   : > { %697 = vmatpush1.bf16.msra.mxu0 %v1080_v2  ;;  %v1086_v7 = vld [vmem:[%s1239_s6 + $0x50] ss:$8 sps:$4 sm:$0xff]   ;;  %v1087_v8 = vld [vmem:[%s1239_s6 + $0x44] ss:$8 sps:$4 sm:$0xff]   ;;  %v1099_v9 = vld [vmem:[%s1239_s6 + $0x174] ss:$8 sps:$4 sm:$0xff]  }
  0x19   : > { %698 = vmatprep.subr.bf16.mxu0 %v1081_v4  ;;  %v1101_v10 = vld [vmem:[%s1239_s6 + $0x170] ss:$8 sps:$4 sm:$0xff]   ;;  %v1089_v11 = vld [vmem:[%s1239_s6 + $0x40] ss:$8 sps:$4 sm:$0xff]   ;;  %v1090_v12 = vld [vmem:[%s1239_s6 + $0x34] ss:$8 sps:$4 sm:$0xff]   ;;  %737 = vmatprep.subr.bf16.mxu1 %v1099_v9 }
  0x1a   : > { %v1105_v13 = vld [vmem:[%s1239_s6 + $0x164] ss:$8 sps:$4 sm:$0xff]   ;;  %738 = vmatpush1.bf16.msra.mxu1 %v1101_v10  ;;  %v1107_v14 = vld [vmem:[%s1239_s6 + $0x160] ss:$8 sps:$4 sm:$0xff]   ;;  %v1092_v15 = vld [vmem:[%s1239_s6 + $0x30] ss:$8 sps:$4 sm:$0xff]   ;;  %728 = vmatprep.mubr.bf16.mxu0 %v994_v36 }
  0x1b   : > { %739 = vmatprep.subr.bf16.mxu1 %v1105_v13  ;;  %v1111_v16 = vld [vmem:[%s1239_s6 + $0x154] ss:$8 sps:$4 sm:$0xff]   ;;  %v1093_v17 = vld [vmem:[%s1239_s6 + $0x24] ss:$8 sps:$4 sm:$0xff]   ;;  %v1113_v18 = vld [vmem:[%s1239_s6 + $0x150] ss:$8 sps:$4 sm:$0xff]  }
  0x1c   : > { %699 = vmatpush1.bf16.msra.mxu0 %v1083_v5  ;;  %v1117_v19 = vld [vmem:[%s1239_s6 + $0x144] ss:$8 sps:$4 sm:$0xff]   ;;  %v1095_v20 = vld [vmem:[%s1239_s6 + $0x20] ss:$8 sps:$4 sm:$0xff]   ;;  %v1096_v21 = vld [vmem:[%s1239_s6 + $0x14] ss:$8 sps:$4 sm:$0xff]  }
  0x1d   : > { %700 = vmatprep.subr.bf16.mxu0 %v1084_v6  ;;  %v1119_v22 = vld [vmem:[%s1239_s6 + $0x140] ss:$8 sps:$4 sm:$0xff]   ;;  %v1123_v23 = vld [vmem:[%s1239_s6 + $0x134] ss:$8 sps:$4 sm:$0xff]   ;;  %v1098_v24 = vld [vmem:[%s1239_s6 + $0x10] ss:$8 sps:$4 sm:$0xff]  }
  0x1e   : > { %740 = vmatpush1.bf16.msra.mxu1 %v1107_v14  ;;  %v1102_v25 = vld [vmem:[%s1239_s6 + $0x4] ss:$8 sps:$4 sm:$0xff]   ;;  %v1125_v26 = vld [vmem:[%s1239_s6 + $0x130] ss:$8 sps:$4 sm:$0xff]   ;;  %v1104_v28 = vld [vmem:[%s1239_s6] ss:$8 sps:$4 sm:$0xff]  }
  0x1f   : > { %741 = vmatprep.subr.bf16.mxu1 %v1111_v16  ;;  %v1129_v27 = vld [vmem:[%s1239_s6 + $0x124] ss:$8 sps:$4 sm:$0xff]   ;;  %v1108_v29 = vld [vmem:[%s1239_s6 + $0xf4] ss:$8 sps:$4 sm:$0xff]   ;;  %v1131_v30 = vld [vmem:[%s1239_s6 + $0x120] ss:$8 sps:$4 sm:$0xff]  }
  0x20   : > { %701 = vmatpush1.bf16.msra.mxu0 %v1086_v7  ;;  %v1135_v31 = vld [vmem:[%s1239_s6 + $0x114] ss:$8 sps:$4 sm:$0xff]   ;;  %v1110_v32 = vld [vmem:[%s1239_s6 + $0xf0] ss:$8 sps:$4 sm:$0xff]   ;;  %v1114_v33 = vld [vmem:[%s1239_s6 + $0xe4] ss:$8 sps:$4 sm:$0xff]  }
  0x21   : > { %702 = vmatprep.subr.bf16.mxu0 %v1087_v8  ;;  %v1137_v35 = vld [vmem:[%s1239_s6 + $0x110] ss:$8 sps:$4 sm:$0xff]   ;;  %v1141_v37 = vld [vmem:[%s1239_s6 + $0x104] ss:$8 sps:$4 sm:$0xff]   ;;  %v1116_v38 = vld [vmem:[%s1239_s6 + $0xe0] ss:$8 sps:$4 sm:$0xff]  }
  0x22   : > { %742 = vmatpush1.bf16.msra.mxu1 %v1113_v18  ;;  %v1120_v39 = vld [vmem:[%s1239_s6 + $0xd4] ss:$8 sps:$4 sm:$0xff]   ;;  %v1143_v40 = vld [vmem:[%s1239_s6 + $0x100] ss:$8 sps:$4 sm:$0xff]   ;;  %v1122_v41 = vld [vmem:[%s1239_s6 + $0xd0] ss:$8 sps:$4 sm:$0xff]  }
  0x23   : > { %743 = vmatprep.subr.bf16.mxu1 %v1117_v19  ;;  %v1126_v42 = vld [vmem:[%s1239_s6 + $0xc4] ss:$8 sps:$4 sm:$0xff]   ;;  %v1147_v43 = vld [vmem:[%s1234_s27 + $0x8] ss:$0 sps:$4 sm:$0xff]   ;;  %v1132_v45 = vld [vmem:[%s1239_s6 + $0xb4] ss:$8 sps:$4 sm:$0xff]  }
  0x24   : > { %703 = vmatpush1.bf16.msra.mxu0 %v1089_v11  ;;  %v1128_v44 = vld [vmem:[%s1239_s6 + $0xc0] ss:$8 sps:$4 sm:$0xff]   ;;  %v1134_v46 = vld [vmem:[%s1239_s6 + $0xb0] ss:$8 sps:$4 sm:$0xff]   ;;  %v1138_v47 = vld [vmem:[%s1239_s6 + $0xa4] ss:$8 sps:$4 sm:$0xff]  }
  0x25   : > { %704 = vmatprep.subr.bf16.mxu0 %v1090_v12  ;;  %v1140_v48 = vld [vmem:[%s1239_s6 + $0xa0] ss:$8 sps:$4 sm:$0xff]   ;;  %v1144_v49 = vld [vmem:[%s1239_s6 + $0x94] ss:$8 sps:$4 sm:$0xff]   ;;  %v1146_v50 = vld [vmem:[%s1239_s6 + $0x90] ss:$8 sps:$4 sm:$0xff]  }
  0x26   : > { %744 = vmatpush1.bf16.msra.mxu1 %v1119_v22  ;;  %v1148_v51 = vld [vmem:[%s1239_s6 + $0x84] ss:$8 sps:$4 sm:$0xff]   ;;  %v1150_v52 = vld [vmem:[%s1239_s6 + $0x80] ss:$8 sps:$4 sm:$0xff]   ;;  %p1044_p7 = scmp.ne.s32.totalorder %s1167_s18, 5 }
  0x27   : > { %745 = vmatprep.subr.bf16.mxu1 %v1123_v23  ;;  %v393_v58 = vld [vmem:[#allocation2] sm:$0xff]  ;;  %v394_v61 = vld [vmem:[#allocation2 + $0x8] sm:$0xff] }
  0x28   : > { %705 = vmatpush1.bf16.msra.mxu0 %v1092_v15 }
  0x29   : > { %706 = vmatprep.subr.bf16.mxu0 %v1093_v17 }
  0x2a   : > { %746 = vmatpush1.bf16.msra.mxu1 %v1125_v26 }
  0x2b   : > { %747 = vmatprep.subr.bf16.mxu1 %v1129_v27 }
  0x2c   : > { %707 = vmatpush1.bf16.msra.mxu0 %v1095_v20 }
  0x2d   : > { %708 = vmatprep.subr.bf16.mxu0 %v1096_v21 }
  0x2e   : > { %748 = vmatpush1.bf16.msra.mxu1 %v1131_v30 }
  0x2f   : > { %749 = vmatprep.subr.bf16.mxu1 %v1135_v31 }
  0x30   : > { %709 = vmatpush1.bf16.msra.mxu0 %v1098_v24 }
  0x31   : > { %710 = vmatprep.subr.bf16.mxu0 %v1102_v25 }
  0x32   : > { %750 = vmatpush1.bf16.msra.mxu1 %v1137_v35 }
  0x33   : > { %751 = vmatprep.subr.bf16.mxu1 %v1141_v37 }
  0x34   : > { %711 = vmatpush1.bf16.msra.mxu0 %v1104_v28 }
  0x35   : > { %712 = vmatprep.subr.bf16.mxu0 %v1108_v29 }
  0x36   : > { %752 = vmatpush1.bf16.msra.mxu1 %v1143_v40 }
  0x38   : > { %713 = vmatpush2.bf16.msra.mxu0 %v1110_v32 }
  0x39   : > { %714 = vmatprep.subr.bf16.mxu0 %v1114_v33  ;;  %770 = vmatmul.mubr.bf16.vlgmr.msra.gmra.mxu1 %v1147_v43 }
  0x3c   : > { %715 = vmatpush2.bf16.msra.mxu0 %v1116_v38 }
  0x3d   : > { %716 = vmatprep.subr.bf16.mxu0 %v1120_v39 }
  0x40   : > { %717 = vmatpush2.bf16.msra.mxu0 %v1122_v41 }
  0x41   : > { %718 = vmatprep.subr.bf16.mxu0 %v1126_v42 }
  0x44   : > { %719 = vmatpush2.bf16.msra.mxu0 %v1128_v44 }
  0x45   : > { %720 = vmatprep.subr.bf16.mxu0 %v1132_v45 }
  0x48   : > { %721 = vmatpush2.bf16.msra.mxu0 %v1134_v46 }
  0x49   : > { %722 = vmatprep.subr.bf16.mxu0 %v1138_v47 }
  0x4c   : > { %723 = vmatpush2.bf16.msra.mxu0 %v1140_v48 }
  0x4d   : > { %724 = vmatprep.subr.bf16.mxu0 %v1144_v49 }
  0x50   : > { %725 = vmatpush2.bf16.msra.mxu0 %v1146_v50 }
  0x51   : > { %726 = vmatprep.subr.bf16.mxu0 %v1148_v51 }
  0x54   : > { %727 = vmatpush2.bf16.msra.mxu0 %v1150_v52 }
  0x57   : > { %729 = vmatmul.mubr.bf16.vlgmr.msra.gmra.mxu0 %v993_v53 }
  0xf9   : > { %v771_v54 = vpop.f32.mrf.mxu1 }
  0xfb   : > { %v773_v55 = vpop.f32.mrf.mxu1 }
  0xfd   : > { %v775_v56 = vpop.f32.mrf.mxu1 }
  0xff   : > { %v776_v57 = vpop.f32.mrf.mxu1 }
 0x117   : > { %v730_v59 = vpop.f32.mrf.mxu0 }
 0x118   : > { %v772_v60 = vadd.f32 %v771_v54, %v730_v59 }
 0x119   : > { %v732_v62 = vpop.f32.mrf.mxu0 }
 0x11a   : > { %v778_v63 = vadd.f32 %v772_v60, %v393_v58  ;;  %v774_v0 = vadd.f32 %v773_v55, %v732_v62  ;;  %785 = sbr.rel (%p1044_p7) target bundleno = 306 (0x132), region = 48 }
 0x11b   : > { %v734_v1 = vpop.f32.mrf.mxu0 }
 0x11c   : > { %780 = vst [vmem:[#allocation2] sm:$0xff] %v778_v63  ;;  %v779_v2 = vadd.f32 %v774_v0, %v394_v61 }
 0x11d   : > { %v735_v3 = vpop.f32.mrf.mxu0 }
 0x11e   : > { %781 = vst [vmem:[#allocation2 + $0x8] sm:$0xff] %v779_v2 }
 0x11f   : > { %v790_v4 = vlaneseq  ;;  %v788_v6 = vld [vmem:[%s1316_s2] sm:$0x3] }
 0x120   : > { %v802_v7 = vld [vmem:[%s1317_s3] sm:$0x3] }
 0x121   : > { %v791_v5 = vshrl.u32 %v790_v4, 7  ;;  %v816_v12 = vld [vmem:[%s1318_s4] sm:$0xff] }
 0x122   : > { %v817_v19 = vunpack.c.l.bf16 %v816_v12  ;;  %v818_v20 = vunpack.c.h.bf16 %v816_v12 }
 0x123   : > { %v792_v8 = vsub.s32 0, %v791_v5  ;;  %v796_v9 = vsub.s32 1, %v791_v5  ;;  %v786_v10 = vld [vmem:[#allocation2] sm:$0xff] }
 0x125   : > { %v787_v11 = vld [vmem:[#allocation2 + $0x8] sm:$0xff]  ;;  %v793_v13 = vrot.slane %v788_v6, %v792_v8  ;;  %v797_v14 = vrot.slane %v788_v6, %v796_v9  ;;  %v807_v15 = vrot.slane %v802_v7, %v792_v8  ;;  %v811_v16 = vrot.slane %v802_v7, %v796_v9 }
 0x127   : > { %v800_v17 = vmul.f32 %v793_v13, %v786_v10  ;;  %v801_v18 = vmul.f32 %v797_v14, %v787_v11 }
 0x129   : > { %v814_v21 = vadd.f32 %v807_v15, %v800_v17  ;;  %v815_v22 = vadd.f32 %v811_v16, %v801_v18 }
 0x12b   : > { %v819_v23 = vadd.f32 %v817_v19, %v814_v21  ;;  %v820_v24 = vadd.f32 %v818_v20, %v815_v22 }
 0x12d   : > { %v821_v25 = vmax.f32 %v819_v23, 0.0  ;;  %v822_v26 = vmax.f32 %v820_v24, 0.0 }
 0x12f   : > { %v1051_v27 = vpack.c.bf16 %v822_v26, %v821_v25 }
 0x131   : > { %831 = vst [vmem:[%s1319_s5] sm:$0xff] %v1051_v27 }
 0x132 PF: > { %s15_s20 = sadd.s32 1, %s1175_s20   ;;  %s1320_s18 = smov %s1171_s19 }
 0x133   : > { %p12_p8 = scmp.ge.s32.totalorder %s15_s20, 8   ;;  %s1321_s19 = smov %s1323_s21 }
 0x135   :  { %14 = sbr.rel (!%p12_p8) target bundleno = 2 (0x2), region = 90 }

// kernel: _lambda_.34
= control target key start
LH: loop header
LB: loop body
LE: loop exit
PB: predicated region body
PF: predicated region fallthrough
CT: control target
= control target key end

     0   :  { %s1114_s15 = smov 0   ;;  %s1116_s16 = smov 0   ;;  %s1216_s0 = inlined_call_operand.vmem [shape: bf16[8,2304], index: 0, kind: input, shape index: {}]   ;;  %s1217_s1 = inlined_call_operand.vmem [shape: bf16[2304,256], index: 1, kind: input, shape index: {}]   ;;  %s1218_s2 = inlined_call_operand.vmem [shape: f32[1,256], index: 2, kind: input, shape index: {}]   ;;  %s1219_s3 = inlined_call_operand.vmem [shape: f32[1,256], index: 3, kind: input, shape index: {}]   ;;  %s1220_s4 = inlined_call_operand.vmem [shape: bf16[8,256], index: 4, kind: output, shape index: {}]  }
   0x1   :  { %s1118_s17 = smov 0  }
   0x2 LB: > { %s26_s18 = sadd.s32 1, %s1081_s16  ;;  %p898_p0 = scmp.ge.s32.totalorder %s1085_s17, 1  ;;  %s1085_s17 = sphi %s1118_s17, %s14_s17   ;;  %s1081_s16 = sphi %s1116_s16, %s1222_s16   ;;  %s1077_s15 = sphi %s1114_s15, %s1221_s15  }
   0x3   : > { %p27_p1 = scmp.ge.s32.totalorder %s26_s18, 6  ;;  %p229_p2 = scmp.lt.s32.totalorder %s1085_s17, 7 }
   0x5   : > { %s1224_s18 = smov (%p27_p1, %s26_s18), 0  ;;  %p230_p3 = pnand %p898_p0, %p229_p2 }
   0x6   : > { %s281_s19 = smul.u32 (!%p230_p3), 3, %s1077_s15  ;;  %p902_p6 = scmp.ne.s32.totalorder (!%p230_p3), %s1077_s15, 0 }
   0x7   : > { %233 = sbr.rel (%p230_p3) target bundleno = 304 (0x130), region = 36 }
   0x8   : > { %s291_s20 = smul.u32 (!%p230_p3), 48, %s1077_s15  ;;  %p284_p4 = scmp.lt.s32.totalorder (!%p230_p3), %s281_s19, 17 }
   0xa   : > { %p293_p5 = scmp.lt.s32.totalorder (!%p230_p3), %s291_s20, 287 }
   0xc   : > { %s1226_s19 = smov (!%p284_p4, %s281_s19), 17  ;;  %s1228_s20 = smov (!%p293_p5, %s291_s20), 287 }
   0xd   : > { %s899_s21 = sshll.u32 %s1226_s19, 2  ;;  %s960_s25 = sshll.u32 %s1228_s20, 3 }
   0xe   : > { %s1139_s24 = scalar_lea.vmem %s1216_s0, %s899_s21  ;;  %s1144_s28 = scalar_lea.vmem %s1217_s1, %s960_s25 }
   0xf   : > { %327 = sbr.rel (%p902_p6) target bundleno = 22 (0x16), region = 40 }
  0x14   : > { %v1087_v0 = vmov 0.0  }
  0x15   : > { %328 = vst [vmem:[#allocation2] sm:$0xff] %v1087_v0  ;;  %329 = vst [vmem:[#allocation2 + $0x8] sm:$0xff] %v1087_v0 }
  0x16 PF: > { %v988_v1 = vld [vmem:[%s1144_s28 + $0x74] ss:$8 sps:$4 sm:$0xff]   ;;  %v990_v2 = vld [vmem:[%s1144_s28 + $0x70] ss:$8 sps:$4 sm:$0xff]   ;;  %v1088_v3 = vmov 0   ;;  %v332_v34 = vld [vmem:[%s1139_s24] sm:$0xff] }
  0x17   : > { %706 = vmatprep.mubr.bf16.mxu1 %v1088_v3  ;;  %633 = vmatprep.subr.bf16.mxu0 %v988_v1  ;;  %v991_v4 = vld [vmem:[%s1144_s28 + $0x64] ss:$8 sps:$4 sm:$0xff]   ;;  %v993_v5 = vld [vmem:[%s1144_s28 + $0x60] ss:$8 sps:$4 sm:$0xff]   ;;  %v994_v6 = vld [vmem:[%s1144_s28 + $0x54] ss:$8 sps:$4 sm:$0xff]   ;;  %v904_v36 = vcombine.high %v332_v34, %v332_v34  ;;  %v903_v53 = vcombine.low %v332_v34, %v332_v34 }
  0x18   : > { %634 = vmatpush1.bf16.msra.mxu0 %v990_v2  ;;  %v996_v7 = vld [vmem:[%s1144_s28 + $0x50] ss:$8 sps:$4 sm:$0xff]   ;;  %v997_v8 = vld [vmem:[%s1144_s28 + $0x44] ss:$8 sps:$4 sm:$0xff]   ;;  %v1009_v9 = vld [vmem:[%s1144_s28 + $0x174] ss:$8 sps:$4 sm:$0xff]  }
  0x19   : > { %635 = vmatprep.subr.bf16.mxu0 %v991_v4  ;;  %v1011_v10 = vld [vmem:[%s1144_s28 + $0x170] ss:$8 sps:$4 sm:$0xff]   ;;  %v999_v11 = vld [vmem:[%s1144_s28 + $0x40] ss:$8 sps:$4 sm:$0xff]   ;;  %v1000_v12 = vld [vmem:[%s1144_s28 + $0x34] ss:$8 sps:$4 sm:$0xff]   ;;  %674 = vmatprep.subr.bf16.mxu1 %v1009_v9 }
  0x1a   : > { %v1015_v13 = vld [vmem:[%s1144_s28 + $0x164] ss:$8 sps:$4 sm:$0xff]   ;;  %675 = vmatpush1.bf16.msra.mxu1 %v1011_v10  ;;  %v1017_v14 = vld [vmem:[%s1144_s28 + $0x160] ss:$8 sps:$4 sm:$0xff]   ;;  %v1002_v15 = vld [vmem:[%s1144_s28 + $0x30] ss:$8 sps:$4 sm:$0xff]   ;;  %665 = vmatprep.mubr.bf16.mxu0 %v904_v36 }
  0x1b   : > { %676 = vmatprep.subr.bf16.mxu1 %v1015_v13  ;;  %v1021_v16 = vld [vmem:[%s1144_s28 + $0x154] ss:$8 sps:$4 sm:$0xff]   ;;  %v1003_v17 = vld [vmem:[%s1144_s28 + $0x24] ss:$8 sps:$4 sm:$0xff]   ;;  %v1023_v18 = vld [vmem:[%s1144_s28 + $0x150] ss:$8 sps:$4 sm:$0xff]  }
  0x1c   : > { %636 = vmatpush1.bf16.msra.mxu0 %v993_v5  ;;  %v1027_v19 = vld [vmem:[%s1144_s28 + $0x144] ss:$8 sps:$4 sm:$0xff]   ;;  %v1005_v20 = vld [vmem:[%s1144_s28 + $0x20] ss:$8 sps:$4 sm:$0xff]   ;;  %v1006_v21 = vld [vmem:[%s1144_s28 + $0x14] ss:$8 sps:$4 sm:$0xff]  }
  0x1d   : > { %637 = vmatprep.subr.bf16.mxu0 %v994_v6  ;;  %v1029_v22 = vld [vmem:[%s1144_s28 + $0x140] ss:$8 sps:$4 sm:$0xff]   ;;  %v1033_v23 = vld [vmem:[%s1144_s28 + $0x134] ss:$8 sps:$4 sm:$0xff]   ;;  %v1008_v24 = vld [vmem:[%s1144_s28 + $0x10] ss:$8 sps:$4 sm:$0xff]  }
  0x1e   : > { %677 = vmatpush1.bf16.msra.mxu1 %v1017_v14  ;;  %v1012_v25 = vld [vmem:[%s1144_s28 + $0x4] ss:$8 sps:$4 sm:$0xff]   ;;  %v1035_v26 = vld [vmem:[%s1144_s28 + $0x130] ss:$8 sps:$4 sm:$0xff]   ;;  %v1014_v28 = vld [vmem:[%s1144_s28] ss:$8 sps:$4 sm:$0xff]  }
  0x1f   : > { %678 = vmatprep.subr.bf16.mxu1 %v1021_v16  ;;  %v1039_v27 = vld [vmem:[%s1144_s28 + $0x124] ss:$8 sps:$4 sm:$0xff]   ;;  %v1018_v29 = vld [vmem:[%s1144_s28 + $0xf4] ss:$8 sps:$4 sm:$0xff]   ;;  %v1041_v30 = vld [vmem:[%s1144_s28 + $0x120] ss:$8 sps:$4 sm:$0xff]  }
  0x20   : > { %638 = vmatpush1.bf16.msra.mxu0 %v996_v7  ;;  %v1045_v31 = vld [vmem:[%s1144_s28 + $0x114] ss:$8 sps:$4 sm:$0xff]   ;;  %v1020_v32 = vld [vmem:[%s1144_s28 + $0xf0] ss:$8 sps:$4 sm:$0xff]   ;;  %v1024_v33 = vld [vmem:[%s1144_s28 + $0xe4] ss:$8 sps:$4 sm:$0xff]  }
  0x21   : > { %639 = vmatprep.subr.bf16.mxu0 %v997_v8  ;;  %v1047_v35 = vld [vmem:[%s1144_s28 + $0x110] ss:$8 sps:$4 sm:$0xff]   ;;  %v1051_v37 = vld [vmem:[%s1144_s28 + $0x104] ss:$8 sps:$4 sm:$0xff]   ;;  %v1026_v38 = vld [vmem:[%s1144_s28 + $0xe0] ss:$8 sps:$4 sm:$0xff]  }
  0x22   : > { %679 = vmatpush1.bf16.msra.mxu1 %v1023_v18  ;;  %v1030_v39 = vld [vmem:[%s1144_s28 + $0xd4] ss:$8 sps:$4 sm:$0xff]   ;;  %v1053_v40 = vld [vmem:[%s1144_s28 + $0x100] ss:$8 sps:$4 sm:$0xff]   ;;  %v1032_v41 = vld [vmem:[%s1144_s28 + $0xd0] ss:$8 sps:$4 sm:$0xff]  }
  0x23   : > { %680 = vmatprep.subr.bf16.mxu1 %v1027_v19  ;;  %v1036_v42 = vld [vmem:[%s1144_s28 + $0xc4] ss:$8 sps:$4 sm:$0xff]   ;;  %v1057_v43 = vld [vmem:[%s1139_s24 + $0x8] ss:$0 sps:$4 sm:$0xff]   ;;  %v1042_v45 = vld [vmem:[%s1144_s28 + $0xb4] ss:$8 sps:$4 sm:$0xff]  }
  0x24   : > { %640 = vmatpush1.bf16.msra.mxu0 %v999_v11  ;;  %v1038_v44 = vld [vmem:[%s1144_s28 + $0xc0] ss:$8 sps:$4 sm:$0xff]   ;;  %v1044_v46 = vld [vmem:[%s1144_s28 + $0xb0] ss:$8 sps:$4 sm:$0xff]   ;;  %v1048_v47 = vld [vmem:[%s1144_s28 + $0xa4] ss:$8 sps:$4 sm:$0xff]  }
  0x25   : > { %641 = vmatprep.subr.bf16.mxu0 %v1000_v12  ;;  %v1050_v48 = vld [vmem:[%s1144_s28 + $0xa0] ss:$8 sps:$4 sm:$0xff]   ;;  %v1054_v49 = vld [vmem:[%s1144_s28 + $0x94] ss:$8 sps:$4 sm:$0xff]   ;;  %v1056_v50 = vld [vmem:[%s1144_s28 + $0x90] ss:$8 sps:$4 sm:$0xff]  }
  0x26   : > { %681 = vmatpush1.bf16.msra.mxu1 %v1029_v22  ;;  %v1058_v51 = vld [vmem:[%s1144_s28 + $0x84] ss:$8 sps:$4 sm:$0xff]   ;;  %v1060_v52 = vld [vmem:[%s1144_s28 + $0x80] ss:$8 sps:$4 sm:$0xff]   ;;  %p954_p7 = scmp.ne.s32.totalorder %s1077_s15, 5 }
  0x27   : > { %682 = vmatprep.subr.bf16.mxu1 %v1033_v23  ;;  %v330_v58 = vld [vmem:[#allocation2] sm:$0xff]  ;;  %v331_v61 = vld [vmem:[#allocation2 + $0x8] sm:$0xff] }
  0x28   : > { %642 = vmatpush1.bf16.msra.mxu0 %v1002_v15 }
  0x29   : > { %643 = vmatprep.subr.bf16.mxu0 %v1003_v17 }
  0x2a   : > { %683 = vmatpush1.bf16.msra.mxu1 %v1035_v26 }
  0x2b   : > { %684 = vmatprep.subr.bf16.mxu1 %v1039_v27 }
  0x2c   : > { %644 = vmatpush1.bf16.msra.mxu0 %v1005_v20 }
  0x2d   : > { %645 = vmatprep.subr.bf16.mxu0 %v1006_v21 }
  0x2e   : > { %685 = vmatpush1.bf16.msra.mxu1 %v1041_v30 }
  0x2f   : > { %686 = vmatprep.subr.bf16.mxu1 %v1045_v31 }
  0x30   : > { %646 = vmatpush1.bf16.msra.mxu0 %v1008_v24 }
  0x31   : > { %647 = vmatprep.subr.bf16.mxu0 %v1012_v25 }
  0x32   : > { %687 = vmatpush1.bf16.msra.mxu1 %v1047_v35 }
  0x33   : > { %688 = vmatprep.subr.bf16.mxu1 %v1051_v37 }
  0x34   : > { %648 = vmatpush1.bf16.msra.mxu0 %v1014_v28 }
  0x35   : > { %649 = vmatprep.subr.bf16.mxu0 %v1018_v29 }
  0x36   : > { %689 = vmatpush1.bf16.msra.mxu1 %v1053_v40 }
  0x38   : > { %650 = vmatpush2.bf16.msra.mxu0 %v1020_v32 }
  0x39   : > { %651 = vmatprep.subr.bf16.mxu0 %v1024_v33  ;;  %707 = vmatmul.mubr.bf16.vlgmr.msra.gmra.mxu1 %v1057_v43 }
  0x3c   : > { %652 = vmatpush2.bf16.msra.mxu0 %v1026_v38 }
  0x3d   : > { %653 = vmatprep.subr.bf16.mxu0 %v1030_v39 }
  0x40   : > { %654 = vmatpush2.bf16.msra.mxu0 %v1032_v41 }
  0x41   : > { %655 = vmatprep.subr.bf16.mxu0 %v1036_v42 }
  0x44   : > { %656 = vmatpush2.bf16.msra.mxu0 %v1038_v44 }
  0x45   : > { %657 = vmatprep.subr.bf16.mxu0 %v1042_v45 }
  0x48   : > { %658 = vmatpush2.bf16.msra.mxu0 %v1044_v46 }
  0x49   : > { %659 = vmatprep.subr.bf16.mxu0 %v1048_v47 }
  0x4c   : > { %660 = vmatpush2.bf16.msra.mxu0 %v1050_v48 }
  0x4d   : > { %661 = vmatprep.subr.bf16.mxu0 %v1054_v49 }
  0x50   : > { %662 = vmatpush2.bf16.msra.mxu0 %v1056_v50 }
  0x51   : > { %663 = vmatprep.subr.bf16.mxu0 %v1058_v51 }
  0x54   : > { %664 = vmatpush2.bf16.msra.mxu0 %v1060_v52 }
  0x57   : > { %666 = vmatmul.mubr.bf16.vlgmr.msra.gmra.mxu0 %v903_v53 }
  0xf9   : > { %v708_v54 = vpop.f32.mrf.mxu1 }
  0xfb   : > { %v710_v55 = vpop.f32.mrf.mxu1 }
  0xfd   : > { %v712_v56 = vpop.f32.mrf.mxu1 }
  0xff   : > { %v713_v57 = vpop.f32.mrf.mxu1 }
 0x117   : > { %v667_v59 = vpop.f32.mrf.mxu0 }
 0x118   : > { %v709_v60 = vadd.f32 %v708_v54, %v667_v59 }
 0x119   : > { %v669_v62 = vpop.f32.mrf.mxu0 }
 0x11a   : > { %v715_v63 = vadd.f32 %v709_v60, %v330_v58  ;;  %v711_v0 = vadd.f32 %v710_v55, %v669_v62  ;;  %722 = sbr.rel (%p954_p7) target bundleno = 304 (0x130), region = 44 }
 0x11b   : > { %v671_v1 = vpop.f32.mrf.mxu0 }
 0x11c   : > { %717 = vst [vmem:[#allocation2] sm:$0xff] %v715_v63  ;;  %v716_v2 = vadd.f32 %v711_v0, %v331_v61 }
 0x11d   : > { %v672_v3 = vpop.f32.mrf.mxu0 }
 0x11e   : > { %718 = vst [vmem:[#allocation2 + $0x8] sm:$0xff] %v716_v2 }
 0x11f   : > { %v727_v4 = vlaneseq  ;;  %v725_v6 = vld [vmem:[%s1218_s2] sm:$0x3] }
 0x120   : > { %v739_v7 = vld [vmem:[%s1219_s3] sm:$0x3] }
 0x121   : > { %v728_v5 = vshrl.u32 %v727_v4, 7 }
 0x123   : > { %v729_v8 = vsub.s32 0, %v728_v5  ;;  %v733_v9 = vsub.s32 1, %v728_v5  ;;  %v723_v10 = vld [vmem:[#allocation2] sm:$0xff] }
 0x125   : > { %v724_v11 = vld [vmem:[#allocation2 + $0x8] sm:$0xff]  ;;  %v730_v12 = vrot.slane %v725_v6, %v729_v8  ;;  %v734_v13 = vrot.slane %v725_v6, %v733_v9  ;;  %v744_v14 = vrot.slane %v739_v7, %v729_v8  ;;  %v748_v15 = vrot.slane %v739_v7, %v733_v9 }
 0x127   : > { %v737_v16 = vmul.f32 %v730_v12, %v723_v10  ;;  %v738_v17 = vmul.f32 %v734_v13, %v724_v11 }
 0x129   : > { %v751_v18 = vadd.f32 %v744_v14, %v737_v16  ;;  %v752_v19 = vadd.f32 %v748_v15, %v738_v17 }
 0x12b   : > { %v753_v20 = vmax.f32 %v751_v18, 0.0  ;;  %v754_v21 = vmax.f32 %v752_v19, 0.0 }
 0x12d   : > { %v961_v22 = vpack.c.bf16 %v754_v21, %v753_v20 }
 0x12f   : > { %763 = vst [vmem:[%s1220_s4] sm:$0xff] %v961_v22 }
 0x130 PF: > { %s14_s17 = sadd.s32 1, %s1085_s17   ;;  %s1221_s15 = smov %s1081_s16 }
 0x131   : > { %p11_p8 = scmp.ge.s32.totalorder %s14_s17, 8   ;;  %s1222_s16 = smov %s1224_s18 }
 0x133   :  { %13 = sbr.rel (!%p11_p8) target bundleno = 2 (0x2), region = 83 }

// kernel: _lambda_.36
= control target key start
LH: loop header
LB: loop body
LE: loop exit
PB: predicated region body
PF: predicated region fallthrough
CT: control target
= control target key end

     0   :  { %s1395_s15 = smov 0   ;;  %s1397_s16 = smov 0   ;;  %s1667_s0 = inlined_call_operand.vmem [shape: bf16[8,2304], index: 0, kind: input, shape index: {}]   ;;  %s1668_s1 = inlined_call_operand.vmem [shape: bf16[2304,512], index: 1, kind: input, shape index: {}]   ;;  %s1669_s2 = inlined_call_operand.vmem [shape: f32[1,512], index: 2, kind: input, shape index: {}]   ;;  %s1670_s3 = inlined_call_operand.vmem [shape: f32[1,512], index: 3, kind: input, shape index: {}]   ;;  %s1671_s4 = inlined_call_operand.vmem [shape: bf16[8,512], index: 4, kind: output, shape index: {}]  }
   0x1   :  { %s1399_s17 = smov 0   ;;  %s1401_s18 = smov 0  }
   0x2   :  { %s1403_s19 = smov 0   ;;  %s1405_s20 = smov 0  }
   0x3   :  { %s1407_s21 = smov 0  }
   0x4 LB: > { %s26_s22 = sadd.s32 1, %s1358_s19  ;;  %s29_s23 = sadd.s32 1, %s1362_s20  ;;  %s1366_s21 = sphi %s1407_s21, %s14_s21   ;;  %s1362_s20 = sphi %s1405_s20, %s1677_s20   ;;  %s1358_s19 = sphi %s1403_s19, %s1676_s19   ;;  %s1354_s18 = sphi %s1401_s18, %s1675_s18   ;;  %s1350_s17 = sphi %s1399_s17, %s1674_s17   ;;  %s1346_s16 = sphi %s1397_s16, %s1673_s16   ;;  %s1342_s15 = sphi %s1395_s15, %s1672_s15  }
   0x5   : > { %p27_p0 = scmp.ge.s32.totalorder %s26_s22, 6  ;;  %p77_p1 = scmp.ne.s32.totalorder %s1346_s16, %s1342_s15 }
   0x6   : > { %p78_p2 = scmp.eq.s32.totalorder %s1366_s21, 0  ;;  %s70_s27 = sadd.s32 1, %s1346_s16 }
   0x7   : > { %s1679_s22 = smov (%p27_p0, %s26_s22), 0  ;;  %s1681_s23 = smov (!%p27_p0, %s29_s23), %s1362_s20 }
   0x8   : > { %p79_p3 = por %p78_p2, %p77_p1  ;;  %p31_p4 = scmp.ge.s32.totalorder %s1681_s23, 2 }
   0x9   : > { %s65_s24 = ssub.s32 %s1358_s19, %s1679_s22  ;;  %p1109_p6 = scmp.ge.s32.totalorder %s1366_s21, 12 }
   0xa   : > { %s1683_s23 = smov (%p31_p4, %s1681_s23), 0 }
   0xb   : > { %s66_s25 = ssub.s32 %s1362_s20, %s1683_s23  ;;  %183 = sbr.rel (%p1109_p6) target bundleno = 48 (0x30), region = 16 }
   0xc   : > { %s67_s26 = sor.u32 %s66_s25, %s65_s24 }
   0xd   : > { %p68_p5 = scmp.eq.s32.totalorder %s67_s26, 0 }
   0xf   : > { %s1446_s28 = scalar_select %p68_p5, %s1346_s16, %s70_s27  }
  0x10   : > { %199 = sbr.rel (!%p79_p3) target bundleno = 48 (0x30), region = 24  ;;  %s201_s29 = sand.u32 (%p79_p3), 1, %s1346_s16  }
  0x11   : > { %s1177_s30 = smul.u32 (%p79_p3), 384, %s201_s29  ;;  %s1110_s5 = sshll.u32 (%p79_p3), %s1362_s20, 1 }
  0x12   : > { %s1175_s6 = smul.u32 (%p79_p3), 192, %s1358_s19 }
  0x13   : > { %s1460_s12 = scalar_lea.vmem (%p79_p3), [#allocation3], %s1177_s30 }
  0x14   : > { %s207_s7 = sadd.s32 (%p79_p3), %s1175_s6, %s1110_s5 }
  0x15   : > { %s1112_s8 = sshll.u32 %s207_s7, 2 }
  0x16   : > { %s1455_s11 = scalar_lea.vmem %s1668_s1, %s1112_s8 }
  0x17   : > { %v332_v0 = vld [vmem:[%s1455_s11] sm:$0xff]  ;;  %v334_v1 = vld [vmem:[%s1455_s11 + $0x10] sm:$0xff] }
  0x18   : > { %v336_v2 = vld [vmem:[%s1455_s11 + $0x20] sm:$0xff]  ;;  %333 = vst [vmem:[%s1460_s12] sm:$0xff] %v332_v0  ;;  %335 = vst [vmem:[%s1460_s12 + $0x8] sm:$0xff] %v334_v1  ;;  %v338_v3 = vld [vmem:[%s1455_s11 + $0x30] sm:$0xff] }
  0x19   : > { %337 = vst [vmem:[%s1460_s12 + $0x10] sm:$0xff] %v336_v2  ;;  %v340_v4 = vld [vmem:[%s1455_s11 + $0x40] sm:$0xff]  ;;  %v342_v5 = vld [vmem:[%s1455_s11 + $0x50] sm:$0xff]  ;;  %339 = vst [vmem:[%s1460_s12 + $0x18] sm:$0xff] %v338_v3 }
  0x1a   : > { %341 = vst [vmem:[%s1460_s12 + $0x20] sm:$0xff] %v340_v4  ;;  %343 = vst [vmem:[%s1460_s12 + $0x28] sm:$0xff] %v342_v5  ;;  %v344_v6 = vld [vmem:[%s1455_s11 + $0x60] sm:$0xff]  ;;  %v346_v7 = vld [vmem:[%s1455_s11 + $0x70] sm:$0xff] }
  0x1b   : > { %v348_v8 = vld [vmem:[%s1455_s11 + $0x80] sm:$0xff]  ;;  %345 = vst [vmem:[%s1460_s12 + $0x30] sm:$0xff] %v344_v6  ;;  %347 = vst [vmem:[%s1460_s12 + $0x38] sm:$0xff] %v346_v7  ;;  %v350_v9 = vld [vmem:[%s1455_s11 + $0x90] sm:$0xff] }
  0x1c   : > { %349 = vst [vmem:[%s1460_s12 + $0x40] sm:$0xff] %v348_v8  ;;  %v352_v10 = vld [vmem:[%s1455_s11 + $0xa0] sm:$0xff]  ;;  %v354_v11 = vld [vmem:[%s1455_s11 + $0xb0] sm:$0xff]  ;;  %351 = vst [vmem:[%s1460_s12 + $0x48] sm:$0xff] %v350_v9 }
  0x1d   : > { %353 = vst [vmem:[%s1460_s12 + $0x50] sm:$0xff] %v352_v10  ;;  %355 = vst [vmem:[%s1460_s12 + $0x58] sm:$0xff] %v354_v11  ;;  %v356_v12 = vld [vmem:[%s1455_s11 + $0xc0] sm:$0xff]  ;;  %v358_v13 = vld [vmem:[%s1455_s11 + $0xd0] sm:$0xff] }
  0x1e   : > { %v360_v14 = vld [vmem:[%s1455_s11 + $0xe0] sm:$0xff]  ;;  %357 = vst [vmem:[%s1460_s12 + $0x60] sm:$0xff] %v356_v12  ;;  %359 = vst [vmem:[%s1460_s12 + $0x68] sm:$0xff] %v358_v13  ;;  %v362_v15 = vld [vmem:[%s1455_s11 + $0xf0] sm:$0xff] }
  0x1f   : > { %361 = vst [vmem:[%s1460_s12 + $0x70] sm:$0xff] %v360_v14  ;;  %v364_v16 = vld [vmem:[%s1455_s11 + $0x100] sm:$0xff]  ;;  %v366_v17 = vld [vmem:[%s1455_s11 + $0x110] sm:$0xff]  ;;  %363 = vst [vmem:[%s1460_s12 + $0x78] sm:$0xff] %v362_v15 }
  0x20   : > { %365 = vst [vmem:[%s1460_s12 + $0x80] sm:$0xff] %v364_v16  ;;  %367 = vst [vmem:[%s1460_s12 + $0x88] sm:$0xff] %v366_v17  ;;  %v368_v18 = vld [vmem:[%s1455_s11 + $0x120] sm:$0xff]  ;;  %v370_v19 = vld [vmem:[%s1455_s11 + $0x130] sm:$0xff] }
  0x21   : > { %v372_v20 = vld [vmem:[%s1455_s11 + $0x140] sm:$0xff]  ;;  %369 = vst [vmem:[%s1460_s12 + $0x90] sm:$0xff] %v368_v18  ;;  %371 = vst [vmem:[%s1460_s12 + $0x98] sm:$0xff] %v370_v19  ;;  %v374_v21 = vld [vmem:[%s1455_s11 + $0x150] sm:$0xff] }
  0x22   : > { %373 = vst [vmem:[%s1460_s12 + $0xa0] sm:$0xff] %v372_v20  ;;  %v376_v22 = vld [vmem:[%s1455_s11 + $0x160] sm:$0xff]  ;;  %v378_v23 = vld [vmem:[%s1455_s11 + $0x170] sm:$0xff]  ;;  %375 = vst [vmem:[%s1460_s12 + $0xa8] sm:$0xff] %v374_v21 }
  0x23   : > { %377 = vst [vmem:[%s1460_s12 + $0xb0] sm:$0xff] %v376_v22  ;;  %379 = vst [vmem:[%s1460_s12 + $0xb8] sm:$0xff] %v378_v23  ;;  %v380_v24 = vld [vmem:[%s1455_s11 + $0x180] sm:$0xff]  ;;  %v382_v25 = vld [vmem:[%s1455_s11 + $0x190] sm:$0xff] }
  0x24   : > { %v384_v26 = vld [vmem:[%s1455_s11 + $0x1a0] sm:$0xff]  ;;  %381 = vst [vmem:[%s1460_s12 + $0xc0] sm:$0xff] %v380_v24  ;;  %383 = vst [vmem:[%s1460_s12 + $0xc8] sm:$0xff] %v382_v25  ;;  %v386_v27 = vld [vmem:[%s1455_s11 + $0x1b0] sm:$0xff] }
  0x25   : > { %385 = vst [vmem:[%s1460_s12 + $0xd0] sm:$0xff] %v384_v26  ;;  %v388_v28 = vld [vmem:[%s1455_s11 + $0x1c0] sm:$0xff]  ;;  %v390_v29 = vld [vmem:[%s1455_s11 + $0x1d0] sm:$0xff]  ;;  %387 = vst [vmem:[%s1460_s12 + $0xd8] sm:$0xff] %v386_v27 }
  0x26   : > { %389 = vst [vmem:[%s1460_s12 + $0xe0] sm:$0xff] %v388_v28  ;;  %391 = vst [vmem:[%s1460_s12 + $0xe8] sm:$0xff] %v390_v29  ;;  %v392_v30 = vld [vmem:[%s1455_s11 + $0x1e0] sm:$0xff]  ;;  %v394_v31 = vld [vmem:[%s1455_s11 + $0x1f0] sm:$0xff] }
  0x27   : > { %v396_v32 = vld [vmem:[%s1455_s11 + $0x200] sm:$0xff]  ;;  %393 = vst [vmem:[%s1460_s12 + $0xf0] sm:$0xff] %v392_v30  ;;  %395 = vst [vmem:[%s1460_s12 + $0xf8] sm:$0xff] %v394_v31  ;;  %v398_v33 = vld [vmem:[%s1455_s11 + $0x210] sm:$0xff] }
  0x28   : > { %397 = vst [vmem:[%s1460_s12 + $0x100] sm:$0xff] %v396_v32  ;;  %v400_v34 = vld [vmem:[%s1455_s11 + $0x220] sm:$0xff]  ;;  %v402_v35 = vld [vmem:[%s1455_s11 + $0x230] sm:$0xff]  ;;  %399 = vst [vmem:[%s1460_s12 + $0x108] sm:$0xff] %v398_v33 }
  0x29   : > { %401 = vst [vmem:[%s1460_s12 + $0x110] sm:$0xff] %v400_v34  ;;  %403 = vst [vmem:[%s1460_s12 + $0x118] sm:$0xff] %v402_v35  ;;  %v404_v36 = vld [vmem:[%s1455_s11 + $0x240] sm:$0xff]  ;;  %v406_v37 = vld [vmem:[%s1455_s11 + $0x250] sm:$0xff] }
  0x2a   : > { %v408_v38 = vld [vmem:[%s1455_s11 + $0x260] sm:$0xff]  ;;  %405 = vst [vmem:[%s1460_s12 + $0x120] sm:$0xff] %v404_v36  ;;  %407 = vst [vmem:[%s1460_s12 + $0x128] sm:$0xff] %v406_v37  ;;  %v410_v39 = vld [vmem:[%s1455_s11 + $0x270] sm:$0xff] }
  0x2b   : > { %409 = vst [vmem:[%s1460_s12 + $0x130] sm:$0xff] %v408_v38  ;;  %v412_v40 = vld [vmem:[%s1455_s11 + $0x280] sm:$0xff]  ;;  %v414_v41 = vld [vmem:[%s1455_s11 + $0x290] sm:$0xff]  ;;  %411 = vst [vmem:[%s1460_s12 + $0x138] sm:$0xff] %v410_v39 }
  0x2c   : > { %413 = vst [vmem:[%s1460_s12 + $0x140] sm:$0xff] %v412_v40  ;;  %415 = vst [vmem:[%s1460_s12 + $0x148] sm:$0xff] %v414_v41  ;;  %v416_v42 = vld [vmem:[%s1455_s11 + $0x2a0] sm:$0xff]  ;;  %v418_v43 = vld [vmem:[%s1455_s11 + $0x2b0] sm:$0xff] }
  0x2d   : > { %v420_v44 = vld [vmem:[%s1455_s11 + $0x2c0] sm:$0xff]  ;;  %417 = vst [vmem:[%s1460_s12 + $0x150] sm:$0xff] %v416_v42  ;;  %419 = vst [vmem:[%s1460_s12 + $0x158] sm:$0xff] %v418_v43  ;;  %v422_v45 = vld [vmem:[%s1455_s11 + $0x2d0] sm:$0xff] }
  0x2e   : > { %421 = vst [vmem:[%s1460_s12 + $0x160] sm:$0xff] %v420_v44  ;;  %v424_v46 = vld [vmem:[%s1455_s11 + $0x2e0] sm:$0xff]  ;;  %v426_v47 = vld [vmem:[%s1455_s11 + $0x2f0] sm:$0xff]  ;;  %423 = vst [vmem:[%s1460_s12 + $0x168] sm:$0xff] %v422_v45 }
  0x2f   : > { %425 = vst [vmem:[%s1460_s12 + $0x170] sm:$0xff] %v424_v46  ;;  %427 = vst [vmem:[%s1460_s12 + $0x178] sm:$0xff] %v426_v47 }
  0x30 PF: > { %p1113_p7 = scmp.ge.s32.totalorder %s1366_s21, 1  ;;  %p448_p8 = scmp.lt.s32.totalorder %s1366_s21, 13 }
  0x32   : > { %p449_p9 = pnand %p1113_p7, %p448_p8 }
  0x33   : > { %s455_s13 = sand.u32 (!%p449_p9), 1, %s1342_s15   ;;  %s501_s14 = smul.u32 (!%p449_p9), 3, %s1350_s17 }
  0x34   : > { %452 = sbr.rel (%p449_p9) target bundleno = 349 (0x15d), region = 70  ;;  %s1115_s25 = sshll.u32 (!%p449_p9), %s1354_s18, 1 }
  0x35   : > { %s1178_s24 = smul.u32 (!%p449_p9), 384, %s455_s13  ;;  %p504_p10 = scmp.lt.s32.totalorder (!%p449_p9), %s501_s14, 17 }
  0x36   : > { %p514_p11 = scmp.lt.s32.totalorder (!%p449_p9), %s1115_s25, 3  ;;  %p1119_p12 = scmp.ne.s32.totalorder (!%p449_p9), %s1350_s17, 0 }
  0x37   : > { %s1581_s13 = scalar_lea.vmem (!%p449_p9), [#allocation3], %s1178_s24 }
  0x39   : > { %s1685_s14 = smov (!%p504_p10, %s501_s14), 17  ;;  %s1687_s25 = smov (!%p514_p11, %s1115_s25), 3 }
  0x3a   : > { %s1114_s26 = sshll.u32 %s1685_s14, 2  ;;  %s516_s15 = scalar_lea.vmem %s1669_s2, %s1687_s25 }
  0x3b   : > { %s1565_s30 = scalar_lea.vmem %s1667_s0, %s1114_s26  ;;  %s521_s8 = scalar_lea.vmem %s1670_s3, %s1687_s25 }
  0x3c   : > { %s1118_s9 = sshll.u32 %s1687_s25, 2  ;;  %537 = sbr.rel (%p1119_p12) target bundleno = 67 (0x43), region = 78 }
  0x3d   : > { %s1579_s12 = scalar_lea.vmem %s1671_s4, %s1118_s9 }
  0x41   : > { %v1368_v48 = vmov 0.0  }
  0x42   : > { %538 = vst [vmem:[#allocation2] sm:$0xff] %v1368_v48  ;;  %539 = vst [vmem:[#allocation2 + $0x8] sm:$0xff] %v1368_v48 }
  0x43 PF: > { %v1237_v49 = vld [vmem:[%s1581_s13 + $0x74] ss:$8 sps:$4 sm:$0xff]   ;;  %v1239_v50 = vld [vmem:[%s1581_s13 + $0x70] ss:$8 sps:$4 sm:$0xff]   ;;  %v1369_v51 = vmov 0   ;;  %p1171_p13 = scmp.ne.s32.totalorder %s1350_s17, 5 }
  0x44   : > { %916 = vmatprep.mubr.bf16.mxu1 %v1369_v51  ;;  %843 = vmatprep.subr.bf16.mxu0 %v1237_v49  ;;  %v1240_v52 = vld [vmem:[%s1581_s13 + $0x64] ss:$8 sps:$4 sm:$0xff]   ;;  %v1242_v53 = vld [vmem:[%s1581_s13 + $0x60] ss:$8 sps:$4 sm:$0xff]   ;;  %v1243_v54 = vld [vmem:[%s1581_s13 + $0x54] ss:$8 sps:$4 sm:$0xff]  }
  0x45   : > { %844 = vmatpush1.bf16.msra.mxu0 %v1239_v50  ;;  %v1245_v55 = vld [vmem:[%s1581_s13 + $0x50] ss:$8 sps:$4 sm:$0xff]   ;;  %v1246_v56 = vld [vmem:[%s1581_s13 + $0x44] ss:$8 sps:$4 sm:$0xff]   ;;  %v1258_v57 = vld [vmem:[%s1581_s13 + $0x174] ss:$8 sps:$4 sm:$0xff]  }
  0x46   : > { %845 = vmatprep.subr.bf16.mxu0 %v1240_v52  ;;  %v1260_v58 = vld [vmem:[%s1581_s13 + $0x170] ss:$8 sps:$4 sm:$0xff]   ;;  %v1248_v59 = vld [vmem:[%s1581_s13 + $0x40] ss:$8 sps:$4 sm:$0xff]   ;;  %v1249_v60 = vld [vmem:[%s1581_s13 + $0x34] ss:$8 sps:$4 sm:$0xff]   ;;  %884 = vmatprep.subr.bf16.mxu1 %v1258_v57 }
  0x47   : > { %v1264_v61 = vld [vmem:[%s1581_s13 + $0x164] ss:$8 sps:$4 sm:$0xff]   ;;  %885 = vmatpush1.bf16.msra.mxu1 %v1260_v58  ;;  %v1266_v62 = vld [vmem:[%s1581_s13 + $0x160] ss:$8 sps:$4 sm:$0xff]   ;;  %v1251_v63 = vld [vmem:[%s1581_s13 + $0x30] ss:$8 sps:$4 sm:$0xff]  }
  0x48   : > { %886 = vmatprep.subr.bf16.mxu1 %v1264_v61  ;;  %v1270_v0 = vld [vmem:[%s1581_s13 + $0x154] ss:$8 sps:$4 sm:$0xff]   ;;  %v1252_v1 = vld [vmem:[%s1581_s13 + $0x24] ss:$8 sps:$4 sm:$0xff]   ;;  %v1272_v2 = vld [vmem:[%s1581_s13 + $0x150] ss:$8 sps:$4 sm:$0xff]  }
  0x49   : > { %846 = vmatpush1.bf16.msra.mxu0 %v1242_v53  ;;  %v1276_v3 = vld [vmem:[%s1581_s13 + $0x144] ss:$8 sps:$4 sm:$0xff]   ;;  %v1254_v4 = vld [vmem:[%s1581_s13 + $0x20] ss:$8 sps:$4 sm:$0xff]   ;;  %v1255_v5 = vld [vmem:[%s1581_s13 + $0x14] ss:$8 sps:$4 sm:$0xff]  }
  0x4a   : > { %847 = vmatprep.subr.bf16.mxu0 %v1243_v54  ;;  %v1278_v6 = vld [vmem:[%s1581_s13 + $0x140] ss:$8 sps:$4 sm:$0xff]   ;;  %v1282_v7 = vld [vmem:[%s1581_s13 + $0x134] ss:$8 sps:$4 sm:$0xff]   ;;  %v1257_v8 = vld [vmem:[%s1581_s13 + $0x10] ss:$8 sps:$4 sm:$0xff]  }
  0x4b   : > { %887 = vmatpush1.bf16.msra.mxu1 %v1266_v62  ;;  %v1261_v9 = vld [vmem:[%s1581_s13 + $0x4] ss:$8 sps:$4 sm:$0xff]   ;;  %v1284_v10 = vld [vmem:[%s1581_s13 + $0x130] ss:$8 sps:$4 sm:$0xff]   ;;  %v1263_v12 = vld [vmem:[%s1581_s13] ss:$8 sps:$4 sm:$0xff]  }
  0x4c   : > { %888 = vmatprep.subr.bf16.mxu1 %v1270_v0  ;;  %v1288_v11 = vld [vmem:[%s1581_s13 + $0x124] ss:$8 sps:$4 sm:$0xff]   ;;  %v1267_v13 = vld [vmem:[%s1581_s13 + $0xf4] ss:$8 sps:$4 sm:$0xff]   ;;  %v1290_v14 = vld [vmem:[%s1581_s13 + $0x120] ss:$8 sps:$4 sm:$0xff]  }
  0x4d   : > { %848 = vmatpush1.bf16.msra.mxu0 %v1245_v55  ;;  %v1294_v15 = vld [vmem:[%s1581_s13 + $0x114] ss:$8 sps:$4 sm:$0xff]   ;;  %v1269_v16 = vld [vmem:[%s1581_s13 + $0xf0] ss:$8 sps:$4 sm:$0xff]   ;;  %v1273_v17 = vld [vmem:[%s1581_s13 + $0xe4] ss:$8 sps:$4 sm:$0xff]  }
  0x4e   : > { %849 = vmatprep.subr.bf16.mxu0 %v1246_v56  ;;  %v542_v18 = vld [vmem:[%s1565_s30] sm:$0xff]  ;;  %v1300_v21 = vld [vmem:[%s1581_s13 + $0x104] ss:$8 sps:$4 sm:$0xff]   ;;  %v1275_v22 = vld [vmem:[%s1581_s13 + $0xe0] ss:$8 sps:$4 sm:$0xff]  }
  0x4f   : > { %889 = vmatpush1.bf16.msra.mxu1 %v1272_v2  ;;  %v1296_v19 = vld [vmem:[%s1581_s13 + $0x110] ss:$8 sps:$4 sm:$0xff]   ;;  %v1121_v20 = vcombine.high %v542_v18, %v542_v18  ;;  %v1279_v23 = vld [vmem:[%s1581_s13 + $0xd4] ss:$8 sps:$4 sm:$0xff]   ;;  %v1302_v24 = vld [vmem:[%s1581_s13 + $0x100] ss:$8 sps:$4 sm:$0xff]   ;;  %v1120_v37 = vcombine.low %v542_v18, %v542_v18 }
  0x50   : > { %890 = vmatprep.subr.bf16.mxu1 %v1276_v3  ;;  %v1281_v25 = vld [vmem:[%s1581_s13 + $0xd0] ss:$8 sps:$4 sm:$0xff]   ;;  %v1285_v26 = vld [vmem:[%s1581_s13 + $0xc4] ss:$8 sps:$4 sm:$0xff]   ;;  %v1287_v28 = vld [vmem:[%s1581_s13 + $0xc0] ss:$8 sps:$4 sm:$0xff]  }
  0x51   : > { %850 = vmatpush1.bf16.msra.mxu0 %v1248_v59  ;;  %875 = vmatprep.mubr.bf16.mxu0 %v1121_v20  ;;  %v1306_v27 = vld [vmem:[%s1565_s30 + $0x8] ss:$0 sps:$4 sm:$0xff]   ;;  %v1291_v29 = vld [vmem:[%s1581_s13 + $0xb4] ss:$8 sps:$4 sm:$0xff]   ;;  %v1297_v31 = vld [vmem:[%s1581_s13 + $0xa4] ss:$8 sps:$4 sm:$0xff]  }
  0x52   : > { %851 = vmatprep.subr.bf16.mxu0 %v1249_v60  ;;  %v1293_v30 = vld [vmem:[%s1581_s13 + $0xb0] ss:$8 sps:$4 sm:$0xff]   ;;  %v1299_v32 = vld [vmem:[%s1581_s13 + $0xa0] ss:$8 sps:$4 sm:$0xff]   ;;  %v1303_v33 = vld [vmem:[%s1581_s13 + $0x94] ss:$8 sps:$4 sm:$0xff]  }
  0x53   : > { %891 = vmatpush1.bf16.msra.mxu1 %v1278_v6  ;;  %v1305_v34 = vld [vmem:[%s1581_s13 + $0x90] ss:$8 sps:$4 sm:$0xff]   ;;  %v1307_v35 = vld [vmem:[%s1581_s13 + $0x84] ss:$8 sps:$4 sm:$0xff]   ;;  %v1309_v36 = vld [vmem:[%s1581_s13 + $0x80] ss:$8 sps:$4 sm:$0xff]  }
  0x54   : > { %892 = vmatprep.subr.bf16.mxu1 %v1282_v7  ;;  %v540_v42 = vld [vmem:[#allocation2] sm:$0xff]  ;;  %v541_v45 = vld [vmem:[#allocation2 + $0x8] sm:$0xff] }
  0x55   : > { %852 = vmatpush1.bf16.msra.mxu0 %v1251_v63 }
  0x56   : > { %853 = vmatprep.subr.bf16.mxu0 %v1252_v1 }
  0x57   : > { %893 = vmatpush1.bf16.msra.mxu1 %v1284_v10 }
  0x58   : > { %894 = vmatprep.subr.bf16.mxu1 %v1288_v11 }
  0x59   : > { %854 = vmatpush1.bf16.msra.mxu0 %v1254_v4 }
  0x5a   : > { %855 = vmatprep.subr.bf16.mxu0 %v1255_v5 }
  0x5b   : > { %895 = vmatpush1.bf16.msra.mxu1 %v1290_v14 }
  0x5c   : > { %896 = vmatprep.subr.bf16.mxu1 %v1294_v15 }
  0x5d   : > { %856 = vmatpush1.bf16.msra.mxu0 %v1257_v8 }
  0x5e   : > { %857 = vmatprep.subr.bf16.mxu0 %v1261_v9 }
  0x5f   : > { %897 = vmatpush1.bf16.msra.mxu1 %v1296_v19 }
  0x60   : > { %898 = vmatprep.subr.bf16.mxu1 %v1300_v21 }
  0x61   : > { %858 = vmatpush1.bf16.msra.mxu0 %v1263_v12 }
  0x62   : > { %859 = vmatprep.subr.bf16.mxu0 %v1267_v13 }
  0x63   : > { %899 = vmatpush1.bf16.msra.mxu1 %v1302_v24 }
  0x65   : > { %860 = vmatpush2.bf16.msra.mxu0 %v1269_v16 }
  0x66   : > { %861 = vmatprep.subr.bf16.mxu0 %v1273_v17  ;;  %917 = vmatmul.mubr.bf16.vlgmr.msra.gmra.mxu1 %v1306_v27 }
  0x69   : > { %862 = vmatpush2.bf16.msra.mxu0 %v1275_v22 }
  0x6a   : > { %863 = vmatprep.subr.bf16.mxu0 %v1279_v23 }
  0x6d   : > { %864 = vmatpush2.bf16.msra.mxu0 %v1281_v25 }
  0x6e   : > { %865 = vmatprep.subr.bf16.mxu0 %v1285_v26 }
  0x71   : > { %866 = vmatpush2.bf16.msra.mxu0 %v1287_v28 }
  0x72   : > { %867 = vmatprep.subr.bf16.mxu0 %v1291_v29 }
  0x75   : > { %868 = vmatpush2.bf16.msra.mxu0 %v1293_v30 }
  0x76   : > { %869 = vmatprep.subr.bf16.mxu0 %v1297_v31 }
  0x79   : > { %870 = vmatpush2.bf16.msra.mxu0 %v1299_v32 }
  0x7a   : > { %871 = vmatprep.subr.bf16.mxu0 %v1303_v33 }
  0x7d   : > { %872 = vmatpush2.bf16.msra.mxu0 %v1305_v34 }
  0x7e   : > { %873 = vmatprep.subr.bf16.mxu0 %v1307_v35 }
  0x81   : > { %874 = vmatpush2.bf16.msra.mxu0 %v1309_v36 }
  0x84   : > { %876 = vmatmul.mubr.bf16.vlgmr.msra.gmra.mxu0 %v1120_v37 }
 0x126   : > { %v918_v38 = vpop.f32.mrf.mxu1 }
 0x128   : > { %v920_v39 = vpop.f32.mrf.mxu1 }
 0x12a   : > { %v922_v40 = vpop.f32.mrf.mxu1 }
 0x12c   : > { %v923_v41 = vpop.f32.mrf.mxu1 }
 0x144   : > { %v877_v43 = vpop.f32.mrf.mxu0 }
 0x145   : > { %v919_v44 = vadd.f32 %v918_v38, %v877_v43 }
 0x146   : > { %v879_v46 = vpop.f32.mrf.mxu0 }
 0x147   : > { %v925_v47 = vadd.f32 %v919_v44, %v540_v42  ;;  %v921_v48 = vadd.f32 %v920_v39, %v879_v46  ;;  %932 = sbr.rel (%p1171_p13) target bundleno = 349 (0x15d), region = 82 }
 0x148   : > { %v881_v49 = vpop.f32.mrf.mxu0 }
 0x149   : > { %927 = vst [vmem:[#allocation2] sm:$0xff] %v925_v47  ;;  %v926_v50 = vadd.f32 %v921_v48, %v541_v45 }
 0x14a   : > { %v882_v51 = vpop.f32.mrf.mxu0 }
 0x14b   : > { %928 = vst [vmem:[#allocation2 + $0x8] sm:$0xff] %v926_v50 }
 0x14c   : > { %v937_v52 = vlaneseq  ;;  %v935_v54 = vld [vmem:[%s516_s15] sm:$0x3] }
 0x14d   : > { %v949_v55 = vld [vmem:[%s521_s8] sm:$0x3] }
 0x14e   : > { %v938_v53 = vshrl.u32 %v937_v52, 7 }
 0x150   : > { %v939_v56 = vsub.s32 0, %v938_v53  ;;  %v943_v57 = vsub.s32 1, %v938_v53  ;;  %v933_v58 = vld [vmem:[#allocation2] sm:$0xff] }
 0x152   : > { %v934_v59 = vld [vmem:[#allocation2 + $0x8] sm:$0xff]  ;;  %v940_v60 = vrot.slane %v935_v54, %v939_v56  ;;  %v944_v61 = vrot.slane %v935_v54, %v943_v57  ;;  %v954_v62 = vrot.slane %v949_v55, %v939_v56  ;;  %v958_v63 = vrot.slane %v949_v55, %v943_v57 }
 0x154   : > { %v947_v0 = vmul.f32 %v940_v60, %v933_v58  ;;  %v948_v1 = vmul.f32 %v944_v61, %v934_v59 }
 0x156   : > { %v961_v2 = vadd.f32 %v954_v62, %v947_v0  ;;  %v962_v3 = vadd.f32 %v958_v63, %v948_v1 }
 0x158   : > { %v963_v4 = vmax.f32 %v961_v2, 0.0  ;;  %v964_v5 = vmax.f32 %v962_v3, 0.0 }
 0x15a   : > { %v1176_v6 = vpack.c.bf16 %v964_v5, %v963_v4 }
 0x15c   : > { %973 = vst [vmem:[%s1579_s12] sm:$0xff] %v1176_v6 }
 0x15d PF: > { %s14_s21 = sadd.s32 1, %s1366_s21   ;;  %s1672_s15 = smov %s1346_s16 }
 0x15e   : > { %p11_p0 = scmp.ge.s32.totalorder %s14_s21, 14   ;;  %s1673_s16 = smov %s1446_s28 }
 0x15f   : > { %s1674_s17 = smov %s1358_s19  ;;  %s1675_s18 = smov %s1362_s20 }
 0x160   : > { %s1676_s19 = smov %s1679_s22  ;;  %s1677_s20 = smov %s1683_s23 }
 0x161   :  { %13 = sbr.rel (!%p11_p0) target bundleno = 4 (0x4), region = 126 }

// kernel: _lambda_.37
= control target key start
LH: loop header
LB: loop body
LE: loop exit
PB: predicated region body
PF: predicated region fallthrough
CT: control target
= control target key end

     0   :  { %s1104_s15 = smov 0   ;;  %s1106_s16 = smov 0   ;;  %s1286_s0 = inlined_call_operand.vmem [shape: bf16[8,256], index: 0, kind: input, shape index: {}]   ;;  %s1287_s1 = inlined_call_operand.vmem [shape: bf16[256,512], index: 1, kind: input, shape index: {}]   ;;  %s1288_s2 = inlined_call_operand.vmem [shape: f32[1,512], index: 2, kind: input, shape index: {}]   ;;  %s1289_s3 = inlined_call_operand.vmem [shape: f32[1,512], index: 3, kind: input, shape index: {}]   ;;  %s1290_s4 = inlined_call_operand.vmem [shape: bf16[8,512], index: 4, kind: output, shape index: {}]  }
   0x1   :  { %s1108_s17 = smov 0   ;;  %s1110_s18 = smov 0  }
   0x2   :  { %s1112_s19 = smov 0  }
   0x3 LB: > { %s29_s20 = sadd.s32 1, %s1073_s18  ;;  %p77_p1 = scmp.ne.s32.totalorder %s1065_s16, %s1061_s15  ;;  %s1077_s19 = sphi %s1112_s19, %s14_s19   ;;  %s1073_s18 = sphi %s1110_s18, %s1294_s18   ;;  %s1069_s17 = sphi %s1108_s17, %s1293_s17   ;;  %s1065_s16 = sphi %s1106_s16, %s1292_s16   ;;  %s1061_s15 = sphi %s1104_s15, %s1291_s15  }
   0x4   : > { %p31_p0 = scmp.ge.s32.totalorder %s29_s20, 2  ;;  %p78_p2 = scmp.eq.s32.totalorder %s1077_s19, 0 }
   0x5   : > { %s70_s22 = sadd.s32 1, %s1065_s16  ;;  %p900_p5 = scmp.ge.s32.totalorder %s1077_s19, 2 }
   0x6   : > { %s1296_s20 = smov (%p31_p0, %s29_s20), 0  ;;  %p79_p3 = por %p78_p2, %p77_p1 }
   0x7   : > { %s66_s21 = ssub.s32 %s1073_s18, %s1296_s20  ;;  %196 = sbr.rel (%p900_p5) target bundleno = 32 (0x20), region = 20 }
   0x8   : > { %p68_p4 = scmp.eq.s32.totalorder %s66_s21, 0 }
   0xa   : > { %s1139_s23 = scalar_select %p68_p4, %s1065_s16, %s70_s22  }
   0xc   : > { %199 = sbr.rel (!%p79_p3) target bundleno = 32 (0x20), region = 24  ;;  %s201_s24 = sand.u32 (%p79_p3), 1, %s1065_s16  }
   0xd   : > { %s947_s25 = sshll.u32 (%p79_p3), %s1073_s18, 3  ;;  %s901_s26 = sshll.u32 (%p79_p3), %s201_s24, 8 }
   0xe   : > { %s1147_s29 = scalar_lea.vmem (%p79_p3), %s1287_s1, %s947_s25  ;;  %s1152_s30 = scalar_lea.vmem (%p79_p3), [#allocation3], %s901_s26 }
   0xf   : > { %v300_v0 = vld [vmem:[%s1147_s29] sm:$0xff] (%p79_p3)  ;;  %v302_v1 = vld [vmem:[%s1147_s29 + $0x10] sm:$0xff] (%p79_p3) }
  0x10   : > { %v304_v2 = vld [vmem:[%s1147_s29 + $0x20] sm:$0xff] (%p79_p3)  ;;  %301 = vst [vmem:[%s1152_s30] sm:$0xff] (%p79_p3), %v300_v0  ;;  %303 = vst [vmem:[%s1152_s30 + $0x8] sm:$0xff] (%p79_p3), %v302_v1  ;;  %v306_v3 = vld [vmem:[%s1147_s29 + $0x30] sm:$0xff] (%p79_p3) }
  0x11   : > { %305 = vst [vmem:[%s1152_s30 + $0x10] sm:$0xff] %v304_v2  ;;  %v308_v4 = vld [vmem:[%s1147_s29 + $0x40] sm:$0xff]  ;;  %v310_v5 = vld [vmem:[%s1147_s29 + $0x50] sm:$0xff]  ;;  %307 = vst [vmem:[%s1152_s30 + $0x18] sm:$0xff] %v306_v3 }
  0x12   : > { %309 = vst [vmem:[%s1152_s30 + $0x20] sm:$0xff] %v308_v4  ;;  %311 = vst [vmem:[%s1152_s30 + $0x28] sm:$0xff] %v310_v5  ;;  %v312_v6 = vld [vmem:[%s1147_s29 + $0x60] sm:$0xff]  ;;  %v314_v7 = vld [vmem:[%s1147_s29 + $0x70] sm:$0xff] }
  0x13   : > { %v316_v8 = vld [vmem:[%s1147_s29 + $0x80] sm:$0xff]  ;;  %313 = vst [vmem:[%s1152_s30 + $0x30] sm:$0xff] %v312_v6  ;;  %315 = vst [vmem:[%s1152_s30 + $0x38] sm:$0xff] %v314_v7  ;;  %v318_v9 = vld [vmem:[%s1147_s29 + $0x90] sm:$0xff] }
  0x14   : > { %317 = vst [vmem:[%s1152_s30 + $0x40] sm:$0xff] %v316_v8  ;;  %v320_v10 = vld [vmem:[%s1147_s29 + $0xa0] sm:$0xff]  ;;  %v322_v11 = vld [vmem:[%s1147_s29 + $0xb0] sm:$0xff]  ;;  %319 = vst [vmem:[%s1152_s30 + $0x48] sm:$0xff] %v318_v9 }
  0x15   : > { %321 = vst [vmem:[%s1152_s30 + $0x50] sm:$0xff] %v320_v10  ;;  %323 = vst [vmem:[%s1152_s30 + $0x58] sm:$0xff] %v322_v11  ;;  %v324_v12 = vld [vmem:[%s1147_s29 + $0xc0] sm:$0xff]  ;;  %v326_v13 = vld [vmem:[%s1147_s29 + $0xd0] sm:$0xff] }
  0x16   : > { %v328_v14 = vld [vmem:[%s1147_s29 + $0xe0] sm:$0xff]  ;;  %325 = vst [vmem:[%s1152_s30 + $0x60] sm:$0xff] %v324_v12  ;;  %327 = vst [vmem:[%s1152_s30 + $0x68] sm:$0xff] %v326_v13  ;;  %v330_v15 = vld [vmem:[%s1147_s29 + $0xf0] sm:$0xff] }
  0x17   : > { %329 = vst [vmem:[%s1152_s30 + $0x70] sm:$0xff] %v328_v14  ;;  %v332_v16 = vld [vmem:[%s1147_s29 + $0x100] sm:$0xff]  ;;  %v334_v17 = vld [vmem:[%s1147_s29 + $0x110] sm:$0xff]  ;;  %331 = vst [vmem:[%s1152_s30 + $0x78] sm:$0xff] %v330_v15 }
  0x18   : > { %333 = vst [vmem:[%s1152_s30 + $0x80] sm:$0xff] %v332_v16  ;;  %335 = vst [vmem:[%s1152_s30 + $0x88] sm:$0xff] %v334_v17  ;;  %v336_v18 = vld [vmem:[%s1147_s29 + $0x120] sm:$0xff]  ;;  %v338_v19 = vld [vmem:[%s1147_s29 + $0x130] sm:$0xff] }
  0x19   : > { %v340_v20 = vld [vmem:[%s1147_s29 + $0x140] sm:$0xff]  ;;  %337 = vst [vmem:[%s1152_s30 + $0x90] sm:$0xff] %v336_v18  ;;  %339 = vst [vmem:[%s1152_s30 + $0x98] sm:$0xff] %v338_v19  ;;  %v342_v21 = vld [vmem:[%s1147_s29 + $0x150] sm:$0xff] }
  0x1a   : > { %341 = vst [vmem:[%s1152_s30 + $0xa0] sm:$0xff] %v340_v20  ;;  %v344_v22 = vld [vmem:[%s1147_s29 + $0x160] sm:$0xff]  ;;  %v346_v23 = vld [vmem:[%s1147_s29 + $0x170] sm:$0xff]  ;;  %343 = vst [vmem:[%s1152_s30 + $0xa8] sm:$0xff] %v342_v21 }
  0x1b   : > { %345 = vst [vmem:[%s1152_s30 + $0xb0] sm:$0xff] %v344_v22  ;;  %347 = vst [vmem:[%s1152_s30 + $0xb8] sm:$0xff] %v346_v23  ;;  %v348_v24 = vld [vmem:[%s1147_s29 + $0x180] sm:$0xff]  ;;  %v350_v25 = vld [vmem:[%s1147_s29 + $0x190] sm:$0xff] }
  0x1c   : > { %v352_v26 = vld [vmem:[%s1147_s29 + $0x1a0] sm:$0xff]  ;;  %349 = vst [vmem:[%s1152_s30 + $0xc0] sm:$0xff] %v348_v24  ;;  %351 = vst [vmem:[%s1152_s30 + $0xc8] sm:$0xff] %v350_v25  ;;  %v354_v27 = vld [vmem:[%s1147_s29 + $0x1b0] sm:$0xff] }
  0x1d   : > { %353 = vst [vmem:[%s1152_s30 + $0xd0] sm:$0xff] %v352_v26  ;;  %v356_v28 = vld [vmem:[%s1147_s29 + $0x1c0] sm:$0xff]  ;;  %v358_v29 = vld [vmem:[%s1147_s29 + $0x1d0] sm:$0xff]  ;;  %355 = vst [vmem:[%s1152_s30 + $0xd8] sm:$0xff] %v354_v27 }
  0x1e   : > { %357 = vst [vmem:[%s1152_s30 + $0xe0] sm:$0xff] %v356_v28  ;;  %359 = vst [vmem:[%s1152_s30 + $0xe8] sm:$0xff] %v358_v29  ;;  %v360_v30 = vld [vmem:[%s1147_s29 + $0x1e0] sm:$0xff]  ;;  %v362_v31 = vld [vmem:[%s1147_s29 + $0x1f0] sm:$0xff] }
  0x1f   : > { %361 = vst [vmem:[%s1152_s30 + $0xf0] sm:$0xff] %v360_v30  ;;  %363 = vst [vmem:[%s1152_s30 + $0xf8] sm:$0xff] %v362_v31 }
  0x20 PF: > { %p904_p6 = scmp.ge.s32.totalorder %s1077_s19, 1  ;;  %p384_p7 = scmp.lt.s32.totalorder %s1077_s19, 3 }
  0x22   : > { %p385_p8 = pnand %p904_p6, %p384_p7 }
  0x23   : > { %s391_s5 = sand.u32 (!%p385_p8), 1, %s1061_s15   ;;  %s906_s10 = sshll.u32 (!%p385_p8), %s1069_s17, 1 }
  0x24   : > { %388 = sbr.rel (%p385_p8) target bundleno = 308 (0x134), region = 70  ;;  %s905_s8 = sshll.u32 (!%p385_p8), %s391_s5, 8 }
  0x25   : > { %s1225_s9 = scalar_lea.vmem (!%p385_p8), [#allocation3], %s905_s8  ;;  %p450_p9 = scmp.lt.s32.totalorder (!%p385_p8), %s906_s10, 3 }
  0x29   : > { %v1221_v32 = vld [vmem:[%s1286_s0] sm:$0xff]  ;;  %v989_v34 = vld [vmem:[%s1225_s9 + $0x74] ss:$8 sps:$4 sm:$0xff]   ;;  %v991_v35 = vld [vmem:[%s1225_s9 + $0x70] ss:$8 sps:$4 sm:$0xff]   ;;  %v729_v3 = vlaneseq  ;;  %s1298_s10 = smov (!%p450_p9, %s906_s10), 3 }
  0x2a   : > { %v911_v33 = vcombine.high %v1221_v32, %v1221_v32  ;;  %677 = vmatprep.subr.bf16.mxu0 %v989_v34  ;;  %v992_v36 = vld [vmem:[%s1225_s9 + $0x64] ss:$8 sps:$4 sm:$0xff]   ;;  %v994_v37 = vld [vmem:[%s1225_s9 + $0x60] ss:$8 sps:$4 sm:$0xff]   ;;  %v995_v38 = vld [vmem:[%s1225_s9 + $0x54] ss:$8 sps:$4 sm:$0xff]   ;;  %v910_v2 = vcombine.low %v1221_v32, %v1221_v32  ;;  %s452_s13 = scalar_lea.vmem %s1288_s2, %s1298_s10  ;;  %s457_s21 = scalar_lea.vmem %s1289_s3, %s1298_s10 }
  0x2b   : > { %678 = vmatpush1.bf16.msra.mxu0 %v991_v35  ;;  %v997_v39 = vld [vmem:[%s1225_s9 + $0x50] ss:$8 sps:$4 sm:$0xff]   ;;  %v998_v40 = vld [vmem:[%s1225_s9 + $0x44] ss:$8 sps:$4 sm:$0xff]   ;;  %v1000_v41 = vld [vmem:[%s1225_s9 + $0x40] ss:$8 sps:$4 sm:$0xff]  }
  0x2c   : > { %709 = vmatprep.mubr.bf16.mxu0 %v911_v33  ;;  %679 = vmatprep.subr.bf16.mxu0 %v992_v36  ;;  %v1001_v42 = vld [vmem:[%s1225_s9 + $0x34] ss:$8 sps:$4 sm:$0xff]   ;;  %v1003_v43 = vld [vmem:[%s1225_s9 + $0x30] ss:$8 sps:$4 sm:$0xff]   ;;  %v1004_v44 = vld [vmem:[%s1225_s9 + $0x24] ss:$8 sps:$4 sm:$0xff]  }
  0x2d   : > { %v1006_v45 = vld [vmem:[%s1225_s9 + $0x20] ss:$8 sps:$4 sm:$0xff]   ;;  %v1007_v46 = vld [vmem:[%s1225_s9 + $0x14] ss:$8 sps:$4 sm:$0xff]   ;;  %v1009_v47 = vld [vmem:[%s1225_s9 + $0x10] ss:$8 sps:$4 sm:$0xff]  }
  0x2e   : > { %v1010_v48 = vld [vmem:[%s1225_s9 + $0x4] ss:$8 sps:$4 sm:$0xff]   ;;  %v1012_v49 = vld [vmem:[%s1225_s9] ss:$8 sps:$4 sm:$0xff]   ;;  %v1013_v50 = vld [vmem:[%s1225_s9 + $0xf4] ss:$8 sps:$4 sm:$0xff]  }
  0x2f   : > { %680 = vmatpush1.bf16.msra.mxu0 %v994_v37  ;;  %v1015_v51 = vld [vmem:[%s1225_s9 + $0xf0] ss:$8 sps:$4 sm:$0xff]   ;;  %v1016_v52 = vld [vmem:[%s1225_s9 + $0xe4] ss:$8 sps:$4 sm:$0xff]   ;;  %v1018_v53 = vld [vmem:[%s1225_s9 + $0xe0] ss:$8 sps:$4 sm:$0xff]  }
  0x30   : > { %681 = vmatprep.subr.bf16.mxu0 %v995_v38  ;;  %v1019_v54 = vld [vmem:[%s1225_s9 + $0xd4] ss:$8 sps:$4 sm:$0xff]   ;;  %v1021_v55 = vld [vmem:[%s1225_s9 + $0xd0] ss:$8 sps:$4 sm:$0xff]   ;;  %v1022_v56 = vld [vmem:[%s1225_s9 + $0xc4] ss:$8 sps:$4 sm:$0xff]  }
  0x31   : > { %v1024_v57 = vld [vmem:[%s1225_s9 + $0xc0] ss:$8 sps:$4 sm:$0xff]   ;;  %v1025_v58 = vld [vmem:[%s1225_s9 + $0xb4] ss:$8 sps:$4 sm:$0xff]   ;;  %v1027_v59 = vld [vmem:[%s1225_s9 + $0xb0] ss:$8 sps:$4 sm:$0xff]  }
  0x32   : > { %v1028_v60 = vld [vmem:[%s1225_s9 + $0xa4] ss:$8 sps:$4 sm:$0xff]   ;;  %v1030_v61 = vld [vmem:[%s1225_s9 + $0xa0] ss:$8 sps:$4 sm:$0xff]   ;;  %v1031_v62 = vld [vmem:[%s1225_s9 + $0x94] ss:$8 sps:$4 sm:$0xff]  }
  0x33   : > { %682 = vmatpush1.bf16.msra.mxu0 %v997_v39  ;;  %v1033_v63 = vld [vmem:[%s1225_s9 + $0x90] ss:$8 sps:$4 sm:$0xff]   ;;  %v1034_v0 = vld [vmem:[%s1225_s9 + $0x84] ss:$8 sps:$4 sm:$0xff]   ;;  %v1036_v1 = vld [vmem:[%s1225_s9 + $0x80] ss:$8 sps:$4 sm:$0xff]  }
  0x34   : > { %683 = vmatprep.subr.bf16.mxu0 %v998_v40  ;;  %v730_v4 = vshrl.u32 %v729_v3, 7  ;;  %v727_v6 = vld [vmem:[%s452_s13] sm:$0x3]  ;;  %s909_s17 = sshll.u32 %s1298_s10, 2 }
  0x35   : > { %v741_v9 = vld [vmem:[%s457_s21] sm:$0x3]  ;;  %s467_s25 = scalar_lea.vmem %s1290_s4, %s909_s17 }
  0x36   : > { %v731_v5 = vsub.s32 0, %v730_v4  ;;  %v735_v7 = vsub.s32 1, %v730_v4 }
  0x37   : > { %684 = vmatpush1.bf16.msra.mxu0 %v1000_v41 }
  0x38   : > { %685 = vmatprep.subr.bf16.mxu0 %v1001_v42  ;;  %v732_v8 = vrot.slane %v727_v6, %v731_v5  ;;  %v736_v10 = vrot.slane %v727_v6, %v735_v7  ;;  %v746_v13 = vrot.slane %v741_v9, %v731_v5  ;;  %v750_v14 = vrot.slane %v741_v9, %v735_v7 }
  0x3b   : > { %686 = vmatpush1.bf16.msra.mxu0 %v1003_v43 }
  0x3c   : > { %687 = vmatprep.subr.bf16.mxu0 %v1004_v44 }
  0x3f   : > { %688 = vmatpush1.bf16.msra.mxu0 %v1006_v45 }
  0x40   : > { %689 = vmatprep.subr.bf16.mxu0 %v1007_v46 }
  0x43   : > { %690 = vmatpush1.bf16.msra.mxu0 %v1009_v47 }
  0x44   : > { %691 = vmatprep.subr.bf16.mxu0 %v1010_v48 }
  0x47   : > { %692 = vmatpush1.bf16.msra.mxu0 %v1012_v49 }
  0x48   : > { %693 = vmatprep.subr.bf16.mxu0 %v1013_v50 }
  0x4b   : > { %694 = vmatpush2.bf16.msra.mxu0 %v1015_v51 }
  0x4c   : > { %695 = vmatprep.subr.bf16.mxu0 %v1016_v52 }
  0x4f   : > { %696 = vmatpush2.bf16.msra.mxu0 %v1018_v53 }
  0x50   : > { %697 = vmatprep.subr.bf16.mxu0 %v1019_v54 }
  0x53   : > { %698 = vmatpush2.bf16.msra.mxu0 %v1021_v55 }
  0x54   : > { %699 = vmatprep.subr.bf16.mxu0 %v1022_v56 }
  0x57   : > { %700 = vmatpush2.bf16.msra.mxu0 %v1024_v57 }
  0x58   : > { %701 = vmatprep.subr.bf16.mxu0 %v1025_v58 }
  0x5b   : > { %702 = vmatpush2.bf16.msra.mxu0 %v1027_v59 }
  0x5c   : > { %703 = vmatprep.subr.bf16.mxu0 %v1028_v60 }
  0x5f   : > { %704 = vmatpush2.bf16.msra.mxu0 %v1030_v61 }
  0x60   : > { %705 = vmatprep.subr.bf16.mxu0 %v1031_v62 }
  0x63   : > { %706 = vmatpush2.bf16.msra.mxu0 %v1033_v63 }
  0x64   : > { %707 = vmatprep.subr.bf16.mxu0 %v1034_v0 }
  0x67   : > { %708 = vmatpush2.bf16.msra.mxu0 %v1036_v1 }
  0x6a   : > { %710 = vmatmul.mubr.bf16.vlgmr.msra.gmra.mxu0 %v910_v2 }
 0x12a   : > { %v711_v11 = vpop.f32.mrf.mxu0 }
 0x12b   : > { %v739_v12 = vmul.f32 %v732_v8, %v711_v11 }
 0x12c   : > { %v713_v15 = vpop.f32.mrf.mxu0 }
 0x12d   : > { %v740_v16 = vmul.f32 %v736_v10, %v713_v15  ;;  %v753_v18 = vadd.f32 %v746_v13, %v739_v12 }
 0x12e   : > { %v715_v17 = vpop.f32.mrf.mxu0 }
 0x12f   : > { %v754_v19 = vadd.f32 %v750_v14, %v740_v16 }
 0x130   : > { %v716_v20 = vpop.f32.mrf.mxu0 }
 0x131   : > { %v948_v21 = vpack.c.bf16 %v754_v19, %v753_v18 }
 0x133   : > { %763 = vst [vmem:[%s467_s25] sm:$0xff] %v948_v21 }
 0x134 PF: > { %s14_s19 = sadd.s32 1, %s1077_s19   ;;  %s1291_s15 = smov %s1065_s16 }
 0x135   : > { %p11_p10 = scmp.ge.s32.totalorder %s14_s19, 4   ;;  %s1292_s16 = smov %s1139_s23 }
 0x136   : > { %s1293_s17 = smov %s1073_s18  ;;  %s1294_s18 = smov %s1296_s20 }
 0x137   :  { %13 = sbr.rel (!%p11_p10) target bundleno = 3 (0x3), region = 126 }

// kernel: _lambda_.39
= control target key start
LH: loop header
LB: loop body
LE: loop exit
PB: predicated region body
PF: predicated region fallthrough
CT: control target
= control target key end

     0   :  { %s1599_s15 = smov 0   ;;  %s1601_s16 = smov 0   ;;  %s1919_s0 = inlined_call_operand.vmem [shape: bf16[8,4608], index: 0, kind: input, shape index: {}]   ;;  %s1920_s1 = inlined_call_operand.vmem [shape: bf16[4608,512], index: 1, kind: input, shape index: {}]   ;;  %s1921_s2 = inlined_call_operand.vmem [shape: f32[1,512], index: 2, kind: input, shape index: {}]   ;;  %s1922_s3 = inlined_call_operand.vmem [shape: f32[1,512], index: 3, kind: input, shape index: {}]   ;;  %s1923_s4 = inlined_call_operand.vmem [shape: bf16[8,512], index: 4, kind: output, shape index: {}]  }
   0x1   :  { %s1603_s17 = smov 0   ;;  %s1605_s18 = smov 0  }
   0x2   :  { %s1607_s19 = smov 0   ;;  %s1609_s20 = smov 0  }
   0x3   :  { %s1611_s21 = smov 0  }
   0x4 LB: > { %s26_s22 = sadd.s32 1, %s1563_s19  ;;  %s29_s23 = sadd.s32 1, %s1567_s20  ;;  %s1571_s21 = sphi %s1611_s21, %s14_s21   ;;  %s1567_s20 = sphi %s1609_s20, %s1929_s20   ;;  %s1563_s19 = sphi %s1607_s19, %s1928_s19   ;;  %s1559_s18 = sphi %s1605_s18, %s1927_s18   ;;  %s1555_s17 = sphi %s1603_s17, %s1926_s17   ;;  %s1551_s16 = sphi %s1601_s16, %s1925_s16   ;;  %s1547_s15 = sphi %s1599_s15, %s1924_s15  }
   0x5   : > { %p27_p0 = scmp.ge.s32.totalorder %s26_s22, 9  ;;  %p77_p1 = scmp.ne.s32.totalorder %s1551_s16, %s1547_s15 }
   0x6   : > { %p78_p2 = scmp.eq.s32.totalorder %s1571_s21, 0  ;;  %s70_s27 = sadd.s32 1, %s1551_s16 }
   0x7   : > { %s1931_s22 = smov (%p27_p0, %s26_s22), 0  ;;  %s1933_s23 = smov (!%p27_p0, %s29_s23), %s1567_s20 }
   0x8   : > { %p79_p3 = por %p78_p2, %p77_p1  ;;  %p31_p4 = scmp.ge.s32.totalorder %s1933_s23, 2 }
   0x9   : > { %s65_s24 = ssub.s32 %s1563_s19, %s1931_s22  ;;  %p1271_p6 = scmp.ge.s32.totalorder %s1571_s21, 18 }
   0xa   : > { %s1935_s23 = smov (%p31_p4, %s1933_s23), 0 }
   0xb   : > { %s66_s25 = ssub.s32 %s1567_s20, %s1935_s23  ;;  %183 = sbr.rel (%p1271_p6) target bundleno = 55 (0x37), region = 16 }
   0xc   : > { %s67_s26 = sor.u32 %s66_s25, %s65_s24 }
   0xd   : > { %p68_p5 = scmp.eq.s32.totalorder %s67_s26, 0 }
   0xf   : > { %s1650_s28 = scalar_select %p68_p5, %s1551_s16, %s70_s27  }
  0x10   : > { %199 = sbr.rel (!%p79_p3) target bundleno = 55 (0x37), region = 24  ;;  %s201_s29 = sand.u32 (%p79_p3), 1, %s1551_s16  }
  0x11   : > { %s1274_s30 = sshll.u32 (%p79_p3), %s1567_s20, 1  ;;  %s1272_s5 = sshll.u32 (%p79_p3), %s201_s29, 9 }
  0x12   : > { %s1358_s6 = sshll.u32 (%p79_p3), %s1563_s19, 8  ;;  %s1664_s12 = scalar_lea.vmem (%p79_p3), [#allocation3], %s1272_s5 }
  0x13   : > { %s207_s7 = sadd.s32 (%p79_p3), %s1358_s6, %s1274_s30 }
  0x14   : > { %s1276_s8 = sshll.u32 (%p79_p3), %s207_s7, 2 }
  0x15   : > { %s1659_s11 = scalar_lea.vmem %s1920_s1, %s1276_s8 }
  0x16   : > { %v364_v0 = vld [vmem:[%s1659_s11] sm:$0xff]  ;;  %v366_v1 = vld [vmem:[%s1659_s11 + $0x10] sm:$0xff] }
  0x17   : > { %v368_v2 = vld [vmem:[%s1659_s11 + $0x20] sm:$0xff]  ;;  %365 = vst [vmem:[%s1664_s12] sm:$0xff] %v364_v0  ;;  %367 = vst [vmem:[%s1664_s12 + $0x8] sm:$0xff] %v366_v1  ;;  %v370_v3 = vld [vmem:[%s1659_s11 + $0x30] sm:$0xff] }
  0x18   : > { %369 = vst [vmem:[%s1664_s12 + $0x10] sm:$0xff] %v368_v2  ;;  %v372_v4 = vld [vmem:[%s1659_s11 + $0x40] sm:$0xff]  ;;  %v374_v5 = vld [vmem:[%s1659_s11 + $0x50] sm:$0xff]  ;;  %371 = vst [vmem:[%s1664_s12 + $0x18] sm:$0xff] %v370_v3 }
  0x19   : > { %373 = vst [vmem:[%s1664_s12 + $0x20] sm:$0xff] %v372_v4  ;;  %375 = vst [vmem:[%s1664_s12 + $0x28] sm:$0xff] %v374_v5  ;;  %v376_v6 = vld [vmem:[%s1659_s11 + $0x60] sm:$0xff]  ;;  %v378_v7 = vld [vmem:[%s1659_s11 + $0x70] sm:$0xff] }
  0x1a   : > { %v380_v8 = vld [vmem:[%s1659_s11 + $0x80] sm:$0xff]  ;;  %377 = vst [vmem:[%s1664_s12 + $0x30] sm:$0xff] %v376_v6  ;;  %379 = vst [vmem:[%s1664_s12 + $0x38] sm:$0xff] %v378_v7  ;;  %v382_v9 = vld [vmem:[%s1659_s11 + $0x90] sm:$0xff] }
  0x1b   : > { %381 = vst [vmem:[%s1664_s12 + $0x40] sm:$0xff] %v380_v8  ;;  %v384_v10 = vld [vmem:[%s1659_s11 + $0xa0] sm:$0xff]  ;;  %v386_v11 = vld [vmem:[%s1659_s11 + $0xb0] sm:$0xff]  ;;  %383 = vst [vmem:[%s1664_s12 + $0x48] sm:$0xff] %v382_v9 }
  0x1c   : > { %385 = vst [vmem:[%s1664_s12 + $0x50] sm:$0xff] %v384_v10  ;;  %387 = vst [vmem:[%s1664_s12 + $0x58] sm:$0xff] %v386_v11  ;;  %v388_v12 = vld [vmem:[%s1659_s11 + $0xc0] sm:$0xff]  ;;  %v390_v13 = vld [vmem:[%s1659_s11 + $0xd0] sm:$0xff] }
  0x1d   : > { %v392_v14 = vld [vmem:[%s1659_s11 + $0xe0] sm:$0xff]  ;;  %389 = vst [vmem:[%s1664_s12 + $0x60] sm:$0xff] %v388_v12  ;;  %391 = vst [vmem:[%s1664_s12 + $0x68] sm:$0xff] %v390_v13  ;;  %v394_v15 = vld [vmem:[%s1659_s11 + $0xf0] sm:$0xff] }
  0x1e   : > { %393 = vst [vmem:[%s1664_s12 + $0x70] sm:$0xff] %v392_v14  ;;  %v396_v16 = vld [vmem:[%s1659_s11 + $0x100] sm:$0xff]  ;;  %v398_v17 = vld [vmem:[%s1659_s11 + $0x110] sm:$0xff]  ;;  %395 = vst [vmem:[%s1664_s12 + $0x78] sm:$0xff] %v394_v15 }
  0x1f   : > { %397 = vst [vmem:[%s1664_s12 + $0x80] sm:$0xff] %v396_v16  ;;  %399 = vst [vmem:[%s1664_s12 + $0x88] sm:$0xff] %v398_v17  ;;  %v400_v18 = vld [vmem:[%s1659_s11 + $0x120] sm:$0xff]  ;;  %v402_v19 = vld [vmem:[%s1659_s11 + $0x130] sm:$0xff] }
  0x20   : > { %v404_v20 = vld [vmem:[%s1659_s11 + $0x140] sm:$0xff]  ;;  %401 = vst [vmem:[%s1664_s12 + $0x90] sm:$0xff] %v400_v18  ;;  %403 = vst [vmem:[%s1664_s12 + $0x98] sm:$0xff] %v402_v19  ;;  %v406_v21 = vld [vmem:[%s1659_s11 + $0x150] sm:$0xff] }
  0x21   : > { %405 = vst [vmem:[%s1664_s12 + $0xa0] sm:$0xff] %v404_v20  ;;  %v408_v22 = vld [vmem:[%s1659_s11 + $0x160] sm:$0xff]  ;;  %v410_v23 = vld [vmem:[%s1659_s11 + $0x170] sm:$0xff]  ;;  %407 = vst [vmem:[%s1664_s12 + $0xa8] sm:$0xff] %v406_v21 }
  0x22   : > { %409 = vst [vmem:[%s1664_s12 + $0xb0] sm:$0xff] %v408_v22  ;;  %411 = vst [vmem:[%s1664_s12 + $0xb8] sm:$0xff] %v410_v23  ;;  %v412_v24 = vld [vmem:[%s1659_s11 + $0x180] sm:$0xff]  ;;  %v414_v25 = vld [vmem:[%s1659_s11 + $0x190] sm:$0xff] }
  0x23   : > { %v416_v26 = vld [vmem:[%s1659_s11 + $0x1a0] sm:$0xff]  ;;  %413 = vst [vmem:[%s1664_s12 + $0xc0] sm:$0xff] %v412_v24  ;;  %415 = vst [vmem:[%s1664_s12 + $0xc8] sm:$0xff] %v414_v25  ;;  %v418_v27 = vld [vmem:[%s1659_s11 + $0x1b0] sm:$0xff] }
  0x24   : > { %417 = vst [vmem:[%s1664_s12 + $0xd0] sm:$0xff] %v416_v26  ;;  %v420_v28 = vld [vmem:[%s1659_s11 + $0x1c0] sm:$0xff]  ;;  %v422_v29 = vld [vmem:[%s1659_s11 + $0x1d0] sm:$0xff]  ;;  %419 = vst [vmem:[%s1664_s12 + $0xd8] sm:$0xff] %v418_v27 }
  0x25   : > { %421 = vst [vmem:[%s1664_s12 + $0xe0] sm:$0xff] %v420_v28  ;;  %423 = vst [vmem:[%s1664_s12 + $0xe8] sm:$0xff] %v422_v29  ;;  %v424_v30 = vld [vmem:[%s1659_s11 + $0x1e0] sm:$0xff]  ;;  %v426_v31 = vld [vmem:[%s1659_s11 + $0x1f0] sm:$0xff] }
  0x26   : > { %v428_v32 = vld [vmem:[%s1659_s11 + $0x200] sm:$0xff]  ;;  %425 = vst [vmem:[%s1664_s12 + $0xf0] sm:$0xff] %v424_v30  ;;  %427 = vst [vmem:[%s1664_s12 + $0xf8] sm:$0xff] %v426_v31  ;;  %v430_v33 = vld [vmem:[%s1659_s11 + $0x210] sm:$0xff] }
  0x27   : > { %429 = vst [vmem:[%s1664_s12 + $0x100] sm:$0xff] %v428_v32  ;;  %v432_v34 = vld [vmem:[%s1659_s11 + $0x220] sm:$0xff]  ;;  %v434_v35 = vld [vmem:[%s1659_s11 + $0x230] sm:$0xff]  ;;  %431 = vst [vmem:[%s1664_s12 + $0x108] sm:$0xff] %v430_v33 }
  0x28   : > { %433 = vst [vmem:[%s1664_s12 + $0x110] sm:$0xff] %v432_v34  ;;  %435 = vst [vmem:[%s1664_s12 + $0x118] sm:$0xff] %v434_v35  ;;  %v436_v36 = vld [vmem:[%s1659_s11 + $0x240] sm:$0xff]  ;;  %v438_v37 = vld [vmem:[%s1659_s11 + $0x250] sm:$0xff] }
  0x29   : > { %v440_v38 = vld [vmem:[%s1659_s11 + $0x260] sm:$0xff]  ;;  %437 = vst [vmem:[%s1664_s12 + $0x120] sm:$0xff] %v436_v36  ;;  %439 = vst [vmem:[%s1664_s12 + $0x128] sm:$0xff] %v438_v37  ;;  %v442_v39 = vld [vmem:[%s1659_s11 + $0x270] sm:$0xff] }
  0x2a   : > { %441 = vst [vmem:[%s1664_s12 + $0x130] sm:$0xff] %v440_v38  ;;  %v444_v40 = vld [vmem:[%s1659_s11 + $0x280] sm:$0xff]  ;;  %v446_v41 = vld [vmem:[%s1659_s11 + $0x290] sm:$0xff]  ;;  %443 = vst [vmem:[%s1664_s12 + $0x138] sm:$0xff] %v442_v39 }
  0x2b   : > { %445 = vst [vmem:[%s1664_s12 + $0x140] sm:$0xff] %v444_v40  ;;  %447 = vst [vmem:[%s1664_s12 + $0x148] sm:$0xff] %v446_v41  ;;  %v448_v42 = vld [vmem:[%s1659_s11 + $0x2a0] sm:$0xff]  ;;  %v450_v43 = vld [vmem:[%s1659_s11 + $0x2b0] sm:$0xff] }
  0x2c   : > { %v452_v44 = vld [vmem:[%s1659_s11 + $0x2c0] sm:$0xff]  ;;  %449 = vst [vmem:[%s1664_s12 + $0x150] sm:$0xff] %v448_v42  ;;  %451 = vst [vmem:[%s1664_s12 + $0x158] sm:$0xff] %v450_v43  ;;  %v454_v45 = vld [vmem:[%s1659_s11 + $0x2d0] sm:$0xff] }
  0x2d   : > { %453 = vst [vmem:[%s1664_s12 + $0x160] sm:$0xff] %v452_v44  ;;  %v456_v46 = vld [vmem:[%s1659_s11 + $0x2e0] sm:$0xff]  ;;  %v458_v47 = vld [vmem:[%s1659_s11 + $0x2f0] sm:$0xff]  ;;  %455 = vst [vmem:[%s1664_s12 + $0x168] sm:$0xff] %v454_v45 }
  0x2e   : > { %457 = vst [vmem:[%s1664_s12 + $0x170] sm:$0xff] %v456_v46  ;;  %459 = vst [vmem:[%s1664_s12 + $0x178] sm:$0xff] %v458_v47  ;;  %v460_v48 = vld [vmem:[%s1659_s11 + $0x300] sm:$0xff]  ;;  %v462_v49 = vld [vmem:[%s1659_s11 + $0x310] sm:$0xff] }
  0x2f   : > { %v464_v50 = vld [vmem:[%s1659_s11 + $0x320] sm:$0xff]  ;;  %461 = vst [vmem:[%s1664_s12 + $0x180] sm:$0xff] %v460_v48  ;;  %463 = vst [vmem:[%s1664_s12 + $0x188] sm:$0xff] %v462_v49  ;;  %v466_v51 = vld [vmem:[%s1659_s11 + $0x330] sm:$0xff] }
  0x30   : > { %465 = vst [vmem:[%s1664_s12 + $0x190] sm:$0xff] %v464_v50  ;;  %v468_v52 = vld [vmem:[%s1659_s11 + $0x340] sm:$0xff]  ;;  %v470_v53 = vld [vmem:[%s1659_s11 + $0x350] sm:$0xff]  ;;  %467 = vst [vmem:[%s1664_s12 + $0x198] sm:$0xff] %v466_v51 }
  0x31   : > { %469 = vst [vmem:[%s1664_s12 + $0x1a0] sm:$0xff] %v468_v52  ;;  %471 = vst [vmem:[%s1664_s12 + $0x1a8] sm:$0xff] %v470_v53  ;;  %v472_v54 = vld [vmem:[%s1659_s11 + $0x360] sm:$0xff]  ;;  %v474_v55 = vld [vmem:[%s1659_s11 + $0x370] sm:$0xff] }
  0x32   : > { %v476_v56 = vld [vmem:[%s1659_s11 + $0x380] sm:$0xff]  ;;  %473 = vst [vmem:[%s1664_s12 + $0x1b0] sm:$0xff] %v472_v54  ;;  %475 = vst [vmem:[%s1664_s12 + $0x1b8] sm:$0xff] %v474_v55  ;;  %v478_v57 = vld [vmem:[%s1659_s11 + $0x390] sm:$0xff] }
  0x33   : > { %477 = vst [vmem:[%s1664_s12 + $0x1c0] sm:$0xff] %v476_v56  ;;  %v480_v58 = vld [vmem:[%s1659_s11 + $0x3a0] sm:$0xff]  ;;  %v482_v59 = vld [vmem:[%s1659_s11 + $0x3b0] sm:$0xff]  ;;  %479 = vst [vmem:[%s1664_s12 + $0x1c8] sm:$0xff] %v478_v57 }
  0x34   : > { %481 = vst [vmem:[%s1664_s12 + $0x1d0] sm:$0xff] %v480_v58  ;;  %483 = vst [vmem:[%s1664_s12 + $0x1d8] sm:$0xff] %v482_v59  ;;  %v484_v60 = vld [vmem:[%s1659_s11 + $0x3c0] sm:$0xff]  ;;  %v486_v61 = vld [vmem:[%s1659_s11 + $0x3d0] sm:$0xff] }
  0x35   : > { %v488_v62 = vld [vmem:[%s1659_s11 + $0x3e0] sm:$0xff]  ;;  %485 = vst [vmem:[%s1664_s12 + $0x1e0] sm:$0xff] %v484_v60  ;;  %487 = vst [vmem:[%s1664_s12 + $0x1e8] sm:$0xff] %v486_v61  ;;  %v490_v63 = vld [vmem:[%s1659_s11 + $0x3f0] sm:$0xff] }
  0x36   : > { %489 = vst [vmem:[%s1664_s12 + $0x1f0] sm:$0xff] %v488_v62  ;;  %491 = vst [vmem:[%s1664_s12 + $0x1f8] sm:$0xff] %v490_v63 }
  0x37 PF: > { %p1277_p7 = scmp.ge.s32.totalorder %s1571_s21, 1  ;;  %p512_p8 = scmp.lt.s32.totalorder %s1571_s21, 19 }
  0x39   : > { %p513_p9 = pnand %p1277_p7, %p512_p8 }
  0x3a   : > { %s519_s13 = sand.u32 (!%p513_p9), 1, %s1547_s15   ;;  %s1279_s14 = sshll.u32 (!%p513_p9), %s1555_s17, 2 }
  0x3b   : > { %516 = sbr.rel (%p513_p9) target bundleno = 357 (0x165), region = 70  ;;  %s1278_s24 = sshll.u32 (!%p513_p9), %s519_s13, 9 }
  0x3c   : > { %p568_p10 = scmp.lt.s32.totalorder (!%p513_p9), %s1279_s14, 35  ;;  %s1281_s25 = sshll.u32 (!%p513_p9), %s1559_s18, 1 }
  0x3d   : > { %p578_p11 = scmp.lt.s32.totalorder (!%p513_p9), %s1281_s25, 3  ;;  %s1817_s13 = scalar_lea.vmem (!%p513_p9), [#allocation3], %s1278_s24 }
  0x3e   : > { %p1285_p12 = scmp.ne.s32.totalorder (!%p513_p9), %s1555_s17, 0 }
  0x40   : > { %s1937_s14 = smov (!%p568_p10, %s1279_s14), 35  ;;  %s1939_s25 = smov (!%p578_p11, %s1281_s25), 3 }
  0x41   : > { %s1280_s26 = sshll.u32 %s1937_s14, 2  ;;  %s580_s15 = scalar_lea.vmem %s1921_s2, %s1939_s25 }
  0x42   : > { %s1799_s30 = scalar_lea.vmem %s1919_s0, %s1280_s26  ;;  %s585_s18 = scalar_lea.vmem %s1922_s3, %s1939_s25 }
  0x43   : > { %s1284_s9 = sshll.u32 %s1939_s25, 2  ;;  %600 = sbr.rel (%p1285_p12) target bundleno = 74 (0x4a), region = 78 }
  0x44   : > { %s1815_s12 = scalar_lea.vmem %s1923_s4, %s1284_s9 }
  0x48   : > { %v1573_v0 = vmov 0.0  }
  0x49   : > { %601 = vst [vmem:[#allocation2] sm:$0xff] %v1573_v0  ;;  %602 = vst [vmem:[#allocation2 + $0x8] sm:$0xff] %v1573_v0 }
  0x4a PF: > { %v1417_v1 = vld [vmem:[%s1817_s13 + $0x74] ss:$8 sps:$4 sm:$0xff]   ;;  %v1421_v3 = vld [vmem:[%s1817_s13 + $0x70] ss:$8 sps:$4 sm:$0xff]   ;;  %v1423_v5 = vld [vmem:[%s1817_s13 + $0x64] ss:$8 sps:$4 sm:$0xff]  }
  0x4b   : > { %v1419_v2 = vld [vmem:[%s1817_s13 + $0x174] ss:$8 sps:$4 sm:$0xff]   ;;  %1005 = vmatprep.subr.bf16.mxu0 %v1417_v1  ;;  %v1422_v4 = vld [vmem:[%s1817_s13 + $0x170] ss:$8 sps:$4 sm:$0xff]   ;;  %v1425_v6 = vld [vmem:[%s1817_s13 + $0x164] ss:$8 sps:$4 sm:$0xff]  }
  0x4c   : > { %1046 = vmatprep.subr.bf16.mxu1 %v1419_v2  ;;  %1006 = vmatpush1.bf16.msra.mxu0 %v1421_v3  ;;  %v1427_v7 = vld [vmem:[%s1817_s13 + $0x60] ss:$8 sps:$4 sm:$0xff]   ;;  %v1429_v9 = vld [vmem:[%s1817_s13 + $0x54] ss:$8 sps:$4 sm:$0xff]   ;;  %v1433_v11 = vld [vmem:[%s1817_s13 + $0x50] ss:$8 sps:$4 sm:$0xff]  }
  0x4d   : > { %1047 = vmatpush1.bf16.msra.mxu1 %v1422_v4  ;;  %1007 = vmatprep.subr.bf16.mxu0 %v1423_v5  ;;  %v1428_v8 = vld [vmem:[%s1817_s13 + $0x160] ss:$8 sps:$4 sm:$0xff]   ;;  %v1431_v10 = vld [vmem:[%s1817_s13 + $0x154] ss:$8 sps:$4 sm:$0xff]   ;;  %v1434_v12 = vld [vmem:[%s1817_s13 + $0x150] ss:$8 sps:$4 sm:$0xff]  }
  0x4e   : > { %1048 = vmatprep.subr.bf16.mxu1 %v1425_v6  ;;  %v1435_v13 = vld [vmem:[%s1817_s13 + $0x44] ss:$8 sps:$4 sm:$0xff]   ;;  %v1439_v15 = vld [vmem:[%s1817_s13 + $0x40] ss:$8 sps:$4 sm:$0xff]   ;;  %v1441_v17 = vld [vmem:[%s1817_s13 + $0x34] ss:$8 sps:$4 sm:$0xff]  }
  0x4f   : > { %v1437_v14 = vld [vmem:[%s1817_s13 + $0x144] ss:$8 sps:$4 sm:$0xff]   ;;  %v1440_v16 = vld [vmem:[%s1817_s13 + $0x140] ss:$8 sps:$4 sm:$0xff]   ;;  %v1443_v18 = vld [vmem:[%s1817_s13 + $0x134] ss:$8 sps:$4 sm:$0xff]  }
  0x50   : > { %1008 = vmatpush1.bf16.msra.mxu0 %v1427_v7  ;;  %v1445_v19 = vld [vmem:[%s1817_s13 + $0x30] ss:$8 sps:$4 sm:$0xff]   ;;  %v1447_v21 = vld [vmem:[%s1817_s13 + $0x24] ss:$8 sps:$4 sm:$0xff]   ;;  %v1451_v23 = vld [vmem:[%s1817_s13 + $0x20] ss:$8 sps:$4 sm:$0xff]  }
  0x51   : > { %1049 = vmatpush1.bf16.msra.mxu1 %v1428_v8  ;;  %1009 = vmatprep.subr.bf16.mxu0 %v1429_v9  ;;  %v1446_v20 = vld [vmem:[%s1817_s13 + $0x130] ss:$8 sps:$4 sm:$0xff]   ;;  %v1449_v22 = vld [vmem:[%s1817_s13 + $0x124] ss:$8 sps:$4 sm:$0xff]   ;;  %v1452_v24 = vld [vmem:[%s1817_s13 + $0x120] ss:$8 sps:$4 sm:$0xff]  }
  0x52   : > { %1050 = vmatprep.subr.bf16.mxu1 %v1431_v10  ;;  %v1453_v25 = vld [vmem:[%s1817_s13 + $0x14] ss:$8 sps:$4 sm:$0xff]   ;;  %v1457_v27 = vld [vmem:[%s1817_s13 + $0x10] ss:$8 sps:$4 sm:$0xff]   ;;  %v1459_v29 = vld [vmem:[%s1817_s13 + $0x4] ss:$8 sps:$4 sm:$0xff]  }
  0x53   : > { %v1455_v26 = vld [vmem:[%s1817_s13 + $0x114] ss:$8 sps:$4 sm:$0xff]   ;;  %v1458_v28 = vld [vmem:[%s1817_s13 + $0x110] ss:$8 sps:$4 sm:$0xff]   ;;  %v1461_v30 = vld [vmem:[%s1817_s13 + $0x104] ss:$8 sps:$4 sm:$0xff]  }
  0x54   : > { %1010 = vmatpush1.bf16.msra.mxu0 %v1433_v11  ;;  %v1463_v31 = vld [vmem:[%s1817_s13] ss:$8 sps:$4 sm:$0xff]   ;;  %v1465_v33 = vld [vmem:[%s1817_s13 + $0xf4] ss:$8 sps:$4 sm:$0xff]   ;;  %v1469_v35 = vld [vmem:[%s1817_s13 + $0xf0] ss:$8 sps:$4 sm:$0xff]  }
  0x55   : > { %1051 = vmatpush1.bf16.msra.mxu1 %v1434_v12  ;;  %1011 = vmatprep.subr.bf16.mxu0 %v1435_v13  ;;  %v1464_v32 = vld [vmem:[%s1817_s13 + $0x100] ss:$8 sps:$4 sm:$0xff]   ;;  %v1467_v34 = vld [vmem:[%s1817_s13 + $0x1f4] ss:$8 sps:$4 sm:$0xff]   ;;  %v1470_v36 = vld [vmem:[%s1817_s13 + $0x1f0] ss:$8 sps:$4 sm:$0xff]  }
  0x56   : > { %1052 = vmatprep.subr.bf16.mxu1 %v1437_v14  ;;  %v1471_v37 = vld [vmem:[%s1817_s13 + $0xe4] ss:$8 sps:$4 sm:$0xff]   ;;  %v1475_v39 = vld [vmem:[%s1817_s13 + $0xe0] ss:$8 sps:$4 sm:$0xff]   ;;  %v1477_v41 = vld [vmem:[%s1817_s13 + $0xd4] ss:$8 sps:$4 sm:$0xff]  }
  0x57   : > { %v1473_v38 = vld [vmem:[%s1817_s13 + $0x1e4] ss:$8 sps:$4 sm:$0xff]   ;;  %v1476_v40 = vld [vmem:[%s1817_s13 + $0x1e0] ss:$8 sps:$4 sm:$0xff]   ;;  %v1479_v42 = vld [vmem:[%s1817_s13 + $0x1d4] ss:$8 sps:$4 sm:$0xff]  }
  0x58   : > { %1012 = vmatpush1.bf16.msra.mxu0 %v1439_v15  ;;  %v1481_v43 = vld [vmem:[%s1817_s13 + $0xd0] ss:$8 sps:$4 sm:$0xff]   ;;  %v1483_v45 = vld [vmem:[%s1817_s13 + $0xc4] ss:$8 sps:$4 sm:$0xff]   ;;  %v1487_v50 = vld [vmem:[%s1817_s13 + $0xc0] ss:$8 sps:$4 sm:$0xff]  }
  0x59   : > { %1053 = vmatpush1.bf16.msra.mxu1 %v1440_v16  ;;  %1013 = vmatprep.subr.bf16.mxu0 %v1441_v17  ;;  %v1482_v44 = vld [vmem:[%s1817_s13 + $0x1d0] ss:$8 sps:$4 sm:$0xff]   ;;  %v1485_v46 = vld [vmem:[%s1817_s13 + $0x1c4] ss:$8 sps:$4 sm:$0xff]   ;;  %v1488_v51 = vld [vmem:[%s1817_s13 + $0x1c0] ss:$8 sps:$4 sm:$0xff]  }
  0x5a   : > { %1054 = vmatprep.subr.bf16.mxu1 %v1443_v18  ;;  %v605_v47 = vld [vmem:[%s1799_s30] sm:$0xff]  ;;  %v606_v49 = vld [vmem:[%s1799_s30 + $0x8] sm:$0xff]  ;;  %v1495_v57 = vld [vmem:[%s1817_s13 + $0xa4] ss:$8 sps:$4 sm:$0xff]   ;;  %p1354_p13 = scmp.ne.s32.totalorder %s1555_s17, 8 }
  0x5b   : > { %v1287_v48 = vcombine.high %v605_v47, %v605_v47  ;;  %v1289_v52 = vcombine.high %v606_v49, %v606_v49  ;;  %v1489_v53 = vld [vmem:[%s1817_s13 + $0xb4] ss:$8 sps:$4 sm:$0xff]   ;;  %v1493_v55 = vld [vmem:[%s1817_s13 + $0xb0] ss:$8 sps:$4 sm:$0xff]   ;;  %v1497_v58 = vld [vmem:[%s1817_s13 + $0x1a4] ss:$8 sps:$4 sm:$0xff]   ;;  %v1286_v5 = vcombine.low %v605_v47, %v605_v47  ;;  %v1288_v6 = vcombine.low %v606_v49, %v606_v49 }
  0x5c   : > { %1014 = vmatpush1.bf16.msra.mxu0 %v1445_v19  ;;  %v1491_v54 = vld [vmem:[%s1817_s13 + $0x1b4] ss:$8 sps:$4 sm:$0xff]   ;;  %v1494_v56 = vld [vmem:[%s1817_s13 + $0x1b0] ss:$8 sps:$4 sm:$0xff]   ;;  %v1499_v59 = vld [vmem:[%s1817_s13 + $0xa0] ss:$8 sps:$4 sm:$0xff]  }
  0x5d   : > { %1055 = vmatpush1.bf16.msra.mxu1 %v1446_v20  ;;  %1015 = vmatprep.subr.bf16.mxu0 %v1447_v21  ;;  %v1500_v60 = vld [vmem:[%s1817_s13 + $0x1a0] ss:$8 sps:$4 sm:$0xff]   ;;  %v1501_v61 = vld [vmem:[%s1817_s13 + $0x94] ss:$8 sps:$4 sm:$0xff]   ;;  %v1505_v63 = vld [vmem:[%s1817_s13 + $0x90] ss:$8 sps:$4 sm:$0xff]  }
  0x5e   : > { %1056 = vmatprep.subr.bf16.mxu1 %v1449_v22  ;;  %1037 = vmatprep.mubr.bf16.mxu0 %v1287_v48  ;;  %v1503_v62 = vld [vmem:[%s1817_s13 + $0x194] ss:$8 sps:$4 sm:$0xff]   ;;  %v1506_v0 = vld [vmem:[%s1817_s13 + $0x190] ss:$8 sps:$4 sm:$0xff]   ;;  %v1507_v1 = vld [vmem:[%s1817_s13 + $0x84] ss:$8 sps:$4 sm:$0xff]  }
  0x5f   : > { %1078 = vmatprep.mubr.bf16.mxu1 %v1289_v52  ;;  %v1509_v2 = vld [vmem:[%s1817_s13 + $0x184] ss:$8 sps:$4 sm:$0xff]   ;;  %v1511_v3 = vld [vmem:[%s1817_s13 + $0x80] ss:$8 sps:$4 sm:$0xff]   ;;  %v603_v8 = vld [vmem:[#allocation2] sm:$0xff] }
  0x60   : > { %1016 = vmatpush1.bf16.msra.mxu0 %v1451_v23  ;;  %v1512_v4 = vld [vmem:[%s1817_s13 + $0x180] ss:$8 sps:$4 sm:$0xff]   ;;  %v604_v12 = vld [vmem:[#allocation2 + $0x8] sm:$0xff] }
  0x61   : > { %1057 = vmatpush1.bf16.msra.mxu1 %v1452_v24  ;;  %1017 = vmatprep.subr.bf16.mxu0 %v1453_v25 }
  0x62   : > { %1058 = vmatprep.subr.bf16.mxu1 %v1455_v26 }
  0x64   : > { %1018 = vmatpush1.bf16.msra.mxu0 %v1457_v27 }
  0x65   : > { %1059 = vmatpush1.bf16.msra.mxu1 %v1458_v28  ;;  %1019 = vmatprep.subr.bf16.mxu0 %v1459_v29 }
  0x66   : > { %1060 = vmatprep.subr.bf16.mxu1 %v1461_v30 }
  0x68   : > { %1020 = vmatpush1.bf16.msra.mxu0 %v1463_v31 }
  0x69   : > { %1061 = vmatpush1.bf16.msra.mxu1 %v1464_v32  ;;  %1021 = vmatprep.subr.bf16.mxu0 %v1465_v33 }
  0x6a   : > { %1062 = vmatprep.subr.bf16.mxu1 %v1467_v34 }
  0x6c   : > { %1022 = vmatpush2.bf16.msra.mxu0 %v1469_v35 }
  0x6d   : > { %1063 = vmatpush2.bf16.msra.mxu1 %v1470_v36  ;;  %1023 = vmatprep.subr.bf16.mxu0 %v1471_v37 }
  0x6e   : > { %1064 = vmatprep.subr.bf16.mxu1 %v1473_v38 }
  0x70   : > { %1024 = vmatpush2.bf16.msra.mxu0 %v1475_v39 }
  0x71   : > { %1065 = vmatpush2.bf16.msra.mxu1 %v1476_v40  ;;  %1025 = vmatprep.subr.bf16.mxu0 %v1477_v41 }
  0x72   : > { %1066 = vmatprep.subr.bf16.mxu1 %v1479_v42 }
  0x74   : > { %1026 = vmatpush2.bf16.msra.mxu0 %v1481_v43 }
  0x75   : > { %1067 = vmatpush2.bf16.msra.mxu1 %v1482_v44  ;;  %1027 = vmatprep.subr.bf16.mxu0 %v1483_v45 }
  0x76   : > { %1068 = vmatprep.subr.bf16.mxu1 %v1485_v46 }
  0x78   : > { %1028 = vmatpush2.bf16.msra.mxu0 %v1487_v50 }
  0x79   : > { %1069 = vmatpush2.bf16.msra.mxu1 %v1488_v51  ;;  %1029 = vmatprep.subr.bf16.mxu0 %v1489_v53 }
  0x7a   : > { %1070 = vmatprep.subr.bf16.mxu1 %v1491_v54 }
  0x7c   : > { %1030 = vmatpush2.bf16.msra.mxu0 %v1493_v55 }
  0x7d   : > { %1071 = vmatpush2.bf16.msra.mxu1 %v1494_v56  ;;  %1031 = vmatprep.subr.bf16.mxu0 %v1495_v57 }
  0x7e   : > { %1072 = vmatprep.subr.bf16.mxu1 %v1497_v58 }
  0x80   : > { %1032 = vmatpush2.bf16.msra.mxu0 %v1499_v59 }
  0x81   : > { %1073 = vmatpush2.bf16.msra.mxu1 %v1500_v60  ;;  %1033 = vmatprep.subr.bf16.mxu0 %v1501_v61 }
  0x82   : > { %1074 = vmatprep.subr.bf16.mxu1 %v1503_v62 }
  0x84   : > { %1034 = vmatpush2.bf16.msra.mxu0 %v1505_v63 }
  0x85   : > { %1075 = vmatpush2.bf16.msra.mxu1 %v1506_v0  ;;  %1035 = vmatprep.subr.bf16.mxu0 %v1507_v1 }
  0x86   : > { %1076 = vmatprep.subr.bf16.mxu1 %v1509_v2 }
  0x88   : > { %1036 = vmatpush2.bf16.msra.mxu0 %v1511_v3 }
  0x89   : > { %1077 = vmatpush2.bf16.msra.mxu1 %v1512_v4 }
  0x8b   : > { %1038 = vmatmul.mubr.bf16.vlgmr.msra.gmra.mxu0 %v1286_v5 }
  0x8c   : > { %1079 = vmatmul.mubr.bf16.vlgmr.msra.gmra.mxu1 %v1288_v6 }
 0x14b   : > { %v1039_v7 = vpop.f32.mrf.mxu0 }
 0x14c   : > { %v1080_v9 = vpop.f32.mrf.mxu1 }
 0x14d   : > { %v1081_v10 = vadd.f32 %v1080_v9, %v1039_v7  ;;  %v1041_v11 = vpop.f32.mrf.mxu0 }
 0x14e   : > { %v1082_v13 = vpop.f32.mrf.mxu1 }
 0x14f   : > { %v1087_v14 = vadd.f32 %v1081_v10, %v603_v8  ;;  %v1083_v15 = vadd.f32 %v1082_v13, %v1041_v11  ;;  %v1043_v16 = vpop.f32.mrf.mxu0  ;;  %1094 = sbr.rel (%p1354_p13) target bundleno = 357 (0x165), region = 82 }
 0x150   : > { %v1084_v17 = vpop.f32.mrf.mxu1 }
 0x151   : > { %1089 = vst [vmem:[#allocation2] sm:$0xff] %v1087_v14  ;;  %v1088_v18 = vadd.f32 %v1083_v15, %v604_v12  ;;  %v1044_v19 = vpop.f32.mrf.mxu0 }
 0x152   : > { %v1085_v20 = vpop.f32.mrf.mxu1 }
 0x153   : > { %1090 = vst [vmem:[#allocation2 + $0x8] sm:$0xff] %v1088_v18 }
 0x154   : > { %v1099_v21 = vlaneseq  ;;  %v1097_v23 = vld [vmem:[%s580_s15] sm:$0x3] }
 0x155   : > { %v1111_v24 = vld [vmem:[%s585_s18] sm:$0x3] }
 0x156   : > { %v1100_v22 = vshrl.u32 %v1099_v21, 7 }
 0x158   : > { %v1101_v25 = vsub.s32 0, %v1100_v22  ;;  %v1105_v26 = vsub.s32 1, %v1100_v22  ;;  %v1095_v27 = vld [vmem:[#allocation2] sm:$0xff] }
 0x15a   : > { %v1096_v28 = vld [vmem:[#allocation2 + $0x8] sm:$0xff]  ;;  %v1102_v29 = vrot.slane %v1097_v23, %v1101_v25  ;;  %v1106_v30 = vrot.slane %v1097_v23, %v1105_v26  ;;  %v1116_v31 = vrot.slane %v1111_v24, %v1101_v25  ;;  %v1120_v32 = vrot.slane %v1111_v24, %v1105_v26 }
 0x15c   : > { %v1109_v33 = vmul.f32 %v1102_v29, %v1095_v27  ;;  %v1110_v34 = vmul.f32 %v1106_v30, %v1096_v28 }
 0x15e   : > { %v1123_v35 = vadd.f32 %v1116_v31, %v1109_v33  ;;  %v1124_v36 = vadd.f32 %v1120_v32, %v1110_v34 }
 0x160   : > { %v1125_v37 = vmax.f32 %v1123_v35, 0.0  ;;  %v1126_v38 = vmax.f32 %v1124_v36, 0.0 }
 0x162   : > { %v1359_v39 = vpack.c.bf16 %v1126_v38, %v1125_v37 }
 0x164   : > { %1135 = vst [vmem:[%s1815_s12] sm:$0xff] %v1359_v39 }
 0x165 PF: > { %s14_s21 = sadd.s32 1, %s1571_s21   ;;  %s1924_s15 = smov %s1551_s16 }
 0x166   : > { %p11_p0 = scmp.ge.s32.totalorder %s14_s21, 20   ;;  %s1925_s16 = smov %s1650_s28 }
 0x167   : > { %s1926_s17 = smov %s1563_s19  ;;  %s1927_s18 = smov %s1567_s20 }
 0x168   : > { %s1928_s19 = smov %s1931_s22  ;;  %s1929_s20 = smov %s1935_s23 }
 0x169   :  { %13 = sbr.rel (!%p11_p0) target bundleno = 4 (0x4), region = 126 }

// kernel: _lambda_.38
= control target key start
LH: loop header
LB: loop body
LE: loop exit
PB: predicated region body
PF: predicated region fallthrough
CT: control target
= control target key end

     0   :  { %s1692_s18 = smov 0   ;;  %s1694_s19 = smov 0   ;;  %s2018_s0 = inlined_call_operand.vmem [shape: bf16[8,4608], index: 0, kind: input, shape index: {}]   ;;  %s2019_s1 = inlined_call_operand.vmem [shape: bf16[4608,512], index: 1, kind: input, shape index: {}]   ;;  %s2020_s2 = inlined_call_operand.vmem [shape: f32[1,512], index: 2, kind: input, shape index: {}]   ;;  %s2021_s3 = inlined_call_operand.vmem [shape: f32[1,512], index: 3, kind: input, shape index: {}]   ;;  %s2022_s4 = inlined_call_operand.vmem [shape: bf16[8,512], index: 4, kind: input, shape index: {}]   ;;  %s2023_s5 = inlined_call_operand.vmem [shape: bf16[8,512], index: 5, kind: output, shape index: {}]  }
   0x1   :  { %s1696_s20 = smov 0   ;;  %s1698_s21 = smov 0  }
   0x2   :  { %s1700_s22 = smov 0   ;;  %s1702_s23 = smov 0  }
   0x3   :  { %s1704_s24 = smov 0  }
   0x4 LB: > { %s27_s25 = sadd.s32 1, %s1651_s22  ;;  %s30_s26 = sadd.s32 1, %s1655_s23  ;;  %s1659_s24 = sphi %s1704_s24, %s15_s24   ;;  %s1655_s23 = sphi %s1702_s23, %s2029_s23   ;;  %s1651_s22 = sphi %s1700_s22, %s2028_s22   ;;  %s1647_s21 = sphi %s1698_s21, %s2027_s21   ;;  %s1643_s20 = sphi %s1696_s20, %s2026_s20   ;;  %s1639_s19 = sphi %s1694_s19, %s2025_s19   ;;  %s1635_s18 = sphi %s1692_s18, %s2024_s18  }
   0x5   : > { %p28_p0 = scmp.ge.s32.totalorder %s27_s25, 9  ;;  %p78_p1 = scmp.ne.s32.totalorder %s1639_s19, %s1635_s18 }
   0x6   : > { %p79_p2 = scmp.eq.s32.totalorder %s1659_s24, 0  ;;  %s71_s30 = sadd.s32 1, %s1639_s19 }
   0x7   : > { %s2031_s25 = smov (%p28_p0, %s27_s25), 0  ;;  %s2033_s26 = smov (!%p28_p0, %s30_s26), %s1655_s23 }
   0x8   : > { %p80_p3 = por %p79_p2, %p78_p1  ;;  %p32_p4 = scmp.ge.s32.totalorder %s2033_s26, 2 }
   0x9   : > { %s66_s27 = ssub.s32 %s1651_s22, %s2031_s25  ;;  %p1357_p6 = scmp.ge.s32.totalorder %s1659_s24, 18 }
   0xa   : > { %s2035_s26 = smov (%p32_p4, %s2033_s26), 0 }
   0xb   : > { %s67_s28 = ssub.s32 %s1655_s23, %s2035_s26  ;;  %212 = sbr.rel (%p1357_p6) target bundleno = 55 (0x37), region = 16 }
   0xc   : > { %s68_s29 = sor.u32 %s67_s28, %s66_s27 }
   0xd   : > { %p69_p5 = scmp.eq.s32.totalorder %s68_s29, 0 }
   0xf   : > { %s1743_s6 = scalar_select %p69_p5, %s1639_s19, %s71_s30  }
  0x10   : > { %228 = sbr.rel (!%p80_p3) target bundleno = 55 (0x37), region = 24  ;;  %s230_s7 = sand.u32 (%p80_p3), 1, %s1639_s19  }
  0x11   : > { %s1360_s8 = sshll.u32 (%p80_p3), %s1655_s23, 1  ;;  %s1358_s9 = sshll.u32 (%p80_p3), %s230_s7, 9 }
  0x12   : > { %s1446_s10 = sshll.u32 (%p80_p3), %s1651_s22, 8  ;;  %s1757_s16 = scalar_lea.vmem (%p80_p3), [#allocation3], %s1358_s9 }
  0x13   : > { %s236_s11 = sadd.s32 (%p80_p3), %s1446_s10, %s1360_s8 }
  0x14   : > { %s1362_s12 = sshll.u32 (%p80_p3), %s236_s11, 2 }
  0x15   : > { %s1752_s15 = scalar_lea.vmem %s2019_s1, %s1362_s12 }
  0x16   : > { %v393_v0 = vld [vmem:[%s1752_s15] sm:$0xff]  ;;  %v395_v1 = vld [vmem:[%s1752_s15 + $0x10] sm:$0xff] }
  0x17   : > { %v397_v2 = vld [vmem:[%s1752_s15 + $0x20] sm:$0xff]  ;;  %394 = vst [vmem:[%s1757_s16] sm:$0xff] %v393_v0  ;;  %396 = vst [vmem:[%s1757_s16 + $0x8] sm:$0xff] %v395_v1  ;;  %v399_v3 = vld [vmem:[%s1752_s15 + $0x30] sm:$0xff] }
  0x18   : > { %398 = vst [vmem:[%s1757_s16 + $0x10] sm:$0xff] %v397_v2  ;;  %v401_v4 = vld [vmem:[%s1752_s15 + $0x40] sm:$0xff]  ;;  %v403_v5 = vld [vmem:[%s1752_s15 + $0x50] sm:$0xff]  ;;  %400 = vst [vmem:[%s1757_s16 + $0x18] sm:$0xff] %v399_v3 }
  0x19   : > { %402 = vst [vmem:[%s1757_s16 + $0x20] sm:$0xff] %v401_v4  ;;  %404 = vst [vmem:[%s1757_s16 + $0x28] sm:$0xff] %v403_v5  ;;  %v405_v6 = vld [vmem:[%s1752_s15 + $0x60] sm:$0xff]  ;;  %v407_v7 = vld [vmem:[%s1752_s15 + $0x70] sm:$0xff] }
  0x1a   : > { %v409_v8 = vld [vmem:[%s1752_s15 + $0x80] sm:$0xff]  ;;  %406 = vst [vmem:[%s1757_s16 + $0x30] sm:$0xff] %v405_v6  ;;  %408 = vst [vmem:[%s1757_s16 + $0x38] sm:$0xff] %v407_v7  ;;  %v411_v9 = vld [vmem:[%s1752_s15 + $0x90] sm:$0xff] }
  0x1b   : > { %410 = vst [vmem:[%s1757_s16 + $0x40] sm:$0xff] %v409_v8  ;;  %v413_v10 = vld [vmem:[%s1752_s15 + $0xa0] sm:$0xff]  ;;  %v415_v11 = vld [vmem:[%s1752_s15 + $0xb0] sm:$0xff]  ;;  %412 = vst [vmem:[%s1757_s16 + $0x48] sm:$0xff] %v411_v9 }
  0x1c   : > { %414 = vst [vmem:[%s1757_s16 + $0x50] sm:$0xff] %v413_v10  ;;  %416 = vst [vmem:[%s1757_s16 + $0x58] sm:$0xff] %v415_v11  ;;  %v417_v12 = vld [vmem:[%s1752_s15 + $0xc0] sm:$0xff]  ;;  %v419_v13 = vld [vmem:[%s1752_s15 + $0xd0] sm:$0xff] }
  0x1d   : > { %v421_v14 = vld [vmem:[%s1752_s15 + $0xe0] sm:$0xff]  ;;  %418 = vst [vmem:[%s1757_s16 + $0x60] sm:$0xff] %v417_v12  ;;  %420 = vst [vmem:[%s1757_s16 + $0x68] sm:$0xff] %v419_v13  ;;  %v423_v15 = vld [vmem:[%s1752_s15 + $0xf0] sm:$0xff] }
  0x1e   : > { %422 = vst [vmem:[%s1757_s16 + $0x70] sm:$0xff] %v421_v14  ;;  %v425_v16 = vld [vmem:[%s1752_s15 + $0x100] sm:$0xff]  ;;  %v427_v17 = vld [vmem:[%s1752_s15 + $0x110] sm:$0xff]  ;;  %424 = vst [vmem:[%s1757_s16 + $0x78] sm:$0xff] %v423_v15 }
  0x1f   : > { %426 = vst [vmem:[%s1757_s16 + $0x80] sm:$0xff] %v425_v16  ;;  %428 = vst [vmem:[%s1757_s16 + $0x88] sm:$0xff] %v427_v17  ;;  %v429_v18 = vld [vmem:[%s1752_s15 + $0x120] sm:$0xff]  ;;  %v431_v19 = vld [vmem:[%s1752_s15 + $0x130] sm:$0xff] }
  0x20   : > { %v433_v20 = vld [vmem:[%s1752_s15 + $0x140] sm:$0xff]  ;;  %430 = vst [vmem:[%s1757_s16 + $0x90] sm:$0xff] %v429_v18  ;;  %432 = vst [vmem:[%s1757_s16 + $0x98] sm:$0xff] %v431_v19  ;;  %v435_v21 = vld [vmem:[%s1752_s15 + $0x150] sm:$0xff] }
  0x21   : > { %434 = vst [vmem:[%s1757_s16 + $0xa0] sm:$0xff] %v433_v20  ;;  %v437_v22 = vld [vmem:[%s1752_s15 + $0x160] sm:$0xff]  ;;  %v439_v23 = vld [vmem:[%s1752_s15 + $0x170] sm:$0xff]  ;;  %436 = vst [vmem:[%s1757_s16 + $0xa8] sm:$0xff] %v435_v21 }
  0x22   : > { %438 = vst [vmem:[%s1757_s16 + $0xb0] sm:$0xff] %v437_v22  ;;  %440 = vst [vmem:[%s1757_s16 + $0xb8] sm:$0xff] %v439_v23  ;;  %v441_v24 = vld [vmem:[%s1752_s15 + $0x180] sm:$0xff]  ;;  %v443_v25 = vld [vmem:[%s1752_s15 + $0x190] sm:$0xff] }
  0x23   : > { %v445_v26 = vld [vmem:[%s1752_s15 + $0x1a0] sm:$0xff]  ;;  %442 = vst [vmem:[%s1757_s16 + $0xc0] sm:$0xff] %v441_v24  ;;  %444 = vst [vmem:[%s1757_s16 + $0xc8] sm:$0xff] %v443_v25  ;;  %v447_v27 = vld [vmem:[%s1752_s15 + $0x1b0] sm:$0xff] }
  0x24   : > { %446 = vst [vmem:[%s1757_s16 + $0xd0] sm:$0xff] %v445_v26  ;;  %v449_v28 = vld [vmem:[%s1752_s15 + $0x1c0] sm:$0xff]  ;;  %v451_v29 = vld [vmem:[%s1752_s15 + $0x1d0] sm:$0xff]  ;;  %448 = vst [vmem:[%s1757_s16 + $0xd8] sm:$0xff] %v447_v27 }
  0x25   : > { %450 = vst [vmem:[%s1757_s16 + $0xe0] sm:$0xff] %v449_v28  ;;  %452 = vst [vmem:[%s1757_s16 + $0xe8] sm:$0xff] %v451_v29  ;;  %v453_v30 = vld [vmem:[%s1752_s15 + $0x1e0] sm:$0xff]  ;;  %v455_v31 = vld [vmem:[%s1752_s15 + $0x1f0] sm:$0xff] }
  0x26   : > { %v457_v32 = vld [vmem:[%s1752_s15 + $0x200] sm:$0xff]  ;;  %454 = vst [vmem:[%s1757_s16 + $0xf0] sm:$0xff] %v453_v30  ;;  %456 = vst [vmem:[%s1757_s16 + $0xf8] sm:$0xff] %v455_v31  ;;  %v459_v33 = vld [vmem:[%s1752_s15 + $0x210] sm:$0xff] }
  0x27   : > { %458 = vst [vmem:[%s1757_s16 + $0x100] sm:$0xff] %v457_v32  ;;  %v461_v34 = vld [vmem:[%s1752_s15 + $0x220] sm:$0xff]  ;;  %v463_v35 = vld [vmem:[%s1752_s15 + $0x230] sm:$0xff]  ;;  %460 = vst [vmem:[%s1757_s16 + $0x108] sm:$0xff] %v459_v33 }
  0x28   : > { %462 = vst [vmem:[%s1757_s16 + $0x110] sm:$0xff] %v461_v34  ;;  %464 = vst [vmem:[%s1757_s16 + $0x118] sm:$0xff] %v463_v35  ;;  %v465_v36 = vld [vmem:[%s1752_s15 + $0x240] sm:$0xff]  ;;  %v467_v37 = vld [vmem:[%s1752_s15 + $0x250] sm:$0xff] }
  0x29   : > { %v469_v38 = vld [vmem:[%s1752_s15 + $0x260] sm:$0xff]  ;;  %466 = vst [vmem:[%s1757_s16 + $0x120] sm:$0xff] %v465_v36  ;;  %468 = vst [vmem:[%s1757_s16 + $0x128] sm:$0xff] %v467_v37  ;;  %v471_v39 = vld [vmem:[%s1752_s15 + $0x270] sm:$0xff] }
  0x2a   : > { %470 = vst [vmem:[%s1757_s16 + $0x130] sm:$0xff] %v469_v38  ;;  %v473_v40 = vld [vmem:[%s1752_s15 + $0x280] sm:$0xff]  ;;  %v475_v41 = vld [vmem:[%s1752_s15 + $0x290] sm:$0xff]  ;;  %472 = vst [vmem:[%s1757_s16 + $0x138] sm:$0xff] %v471_v39 }
  0x2b   : > { %474 = vst [vmem:[%s1757_s16 + $0x140] sm:$0xff] %v473_v40  ;;  %476 = vst [vmem:[%s1757_s16 + $0x148] sm:$0xff] %v475_v41  ;;  %v477_v42 = vld [vmem:[%s1752_s15 + $0x2a0] sm:$0xff]  ;;  %v479_v43 = vld [vmem:[%s1752_s15 + $0x2b0] sm:$0xff] }
  0x2c   : > { %v481_v44 = vld [vmem:[%s1752_s15 + $0x2c0] sm:$0xff]  ;;  %478 = vst [vmem:[%s1757_s16 + $0x150] sm:$0xff] %v477_v42  ;;  %480 = vst [vmem:[%s1757_s16 + $0x158] sm:$0xff] %v479_v43  ;;  %v483_v45 = vld [vmem:[%s1752_s15 + $0x2d0] sm:$0xff] }
  0x2d   : > { %482 = vst [vmem:[%s1757_s16 + $0x160] sm:$0xff] %v481_v44  ;;  %v485_v46 = vld [vmem:[%s1752_s15 + $0x2e0] sm:$0xff]  ;;  %v487_v47 = vld [vmem:[%s1752_s15 + $0x2f0] sm:$0xff]  ;;  %484 = vst [vmem:[%s1757_s16 + $0x168] sm:$0xff] %v483_v45 }
  0x2e   : > { %486 = vst [vmem:[%s1757_s16 + $0x170] sm:$0xff] %v485_v46  ;;  %488 = vst [vmem:[%s1757_s16 + $0x178] sm:$0xff] %v487_v47  ;;  %v489_v48 = vld [vmem:[%s1752_s15 + $0x300] sm:$0xff]  ;;  %v491_v49 = vld [vmem:[%s1752_s15 + $0x310] sm:$0xff] }
  0x2f   : > { %v493_v50 = vld [vmem:[%s1752_s15 + $0x320] sm:$0xff]  ;;  %490 = vst [vmem:[%s1757_s16 + $0x180] sm:$0xff] %v489_v48  ;;  %492 = vst [vmem:[%s1757_s16 + $0x188] sm:$0xff] %v491_v49  ;;  %v495_v51 = vld [vmem:[%s1752_s15 + $0x330] sm:$0xff] }
  0x30   : > { %494 = vst [vmem:[%s1757_s16 + $0x190] sm:$0xff] %v493_v50  ;;  %v497_v52 = vld [vmem:[%s1752_s15 + $0x340] sm:$0xff]  ;;  %v499_v53 = vld [vmem:[%s1752_s15 + $0x350] sm:$0xff]  ;;  %496 = vst [vmem:[%s1757_s16 + $0x198] sm:$0xff] %v495_v51 }
  0x31   : > { %498 = vst [vmem:[%s1757_s16 + $0x1a0] sm:$0xff] %v497_v52  ;;  %500 = vst [vmem:[%s1757_s16 + $0x1a8] sm:$0xff] %v499_v53  ;;  %v501_v54 = vld [vmem:[%s1752_s15 + $0x360] sm:$0xff]  ;;  %v503_v55 = vld [vmem:[%s1752_s15 + $0x370] sm:$0xff] }
  0x32   : > { %v505_v56 = vld [vmem:[%s1752_s15 + $0x380] sm:$0xff]  ;;  %502 = vst [vmem:[%s1757_s16 + $0x1b0] sm:$0xff] %v501_v54  ;;  %504 = vst [vmem:[%s1757_s16 + $0x1b8] sm:$0xff] %v503_v55  ;;  %v507_v57 = vld [vmem:[%s1752_s15 + $0x390] sm:$0xff] }
  0x33   : > { %506 = vst [vmem:[%s1757_s16 + $0x1c0] sm:$0xff] %v505_v56  ;;  %v509_v58 = vld [vmem:[%s1752_s15 + $0x3a0] sm:$0xff]  ;;  %v511_v59 = vld [vmem:[%s1752_s15 + $0x3b0] sm:$0xff]  ;;  %508 = vst [vmem:[%s1757_s16 + $0x1c8] sm:$0xff] %v507_v57 }
  0x34   : > { %510 = vst [vmem:[%s1757_s16 + $0x1d0] sm:$0xff] %v509_v58  ;;  %512 = vst [vmem:[%s1757_s16 + $0x1d8] sm:$0xff] %v511_v59  ;;  %v513_v60 = vld [vmem:[%s1752_s15 + $0x3c0] sm:$0xff]  ;;  %v515_v61 = vld [vmem:[%s1752_s15 + $0x3d0] sm:$0xff] }
  0x35   : > { %v517_v62 = vld [vmem:[%s1752_s15 + $0x3e0] sm:$0xff]  ;;  %514 = vst [vmem:[%s1757_s16 + $0x1e0] sm:$0xff] %v513_v60  ;;  %516 = vst [vmem:[%s1757_s16 + $0x1e8] sm:$0xff] %v515_v61  ;;  %v519_v63 = vld [vmem:[%s1752_s15 + $0x3f0] sm:$0xff] }
  0x36   : > { %518 = vst [vmem:[%s1757_s16 + $0x1f0] sm:$0xff] %v517_v62  ;;  %520 = vst [vmem:[%s1757_s16 + $0x1f8] sm:$0xff] %v519_v63 }
  0x37 PF: > { %p1363_p7 = scmp.ge.s32.totalorder %s1659_s24, 1  ;;  %p554_p8 = scmp.lt.s32.totalorder %s1659_s24, 19 }
  0x39   : > { %p555_p9 = pnand %p1363_p7, %p554_p8 }
  0x3a   : > { %s561_s17 = sand.u32 (!%p555_p9), 1, %s1635_s18   ;;  %s1365_s27 = sshll.u32 (!%p555_p9), %s1643_s20, 2 }
  0x3b   : > { %558 = sbr.rel (%p555_p9) target bundleno = 359 (0x167), region = 74  ;;  %s1364_s28 = sshll.u32 (!%p555_p9), %s561_s17, 9 }
  0x3c   : > { %p621_p10 = scmp.lt.s32.totalorder (!%p555_p9), %s1365_s27, 35  ;;  %s1367_s29 = sshll.u32 (!%p555_p9), %s1647_s21, 1 }
  0x3d   : > { %p631_p11 = scmp.lt.s32.totalorder (!%p555_p9), %s1367_s29, 3  ;;  %s1915_s8 = scalar_lea.vmem (!%p555_p9), [#allocation3], %s1364_s28 }
  0x3e   : > { %p1373_p12 = scmp.ne.s32.totalorder (!%p555_p9), %s1643_s20, 0 }
  0x40   : > { %s2037_s27 = smov (!%p621_p10, %s1365_s27), 35  ;;  %s2039_s29 = smov (!%p631_p11, %s1367_s29), 3 }
  0x41   : > { %s1366_s30 = sshll.u32 %s2037_s27, 2  ;;  %s633_s18 = scalar_lea.vmem %s2020_s2, %s2039_s29 }
  0x42   : > { %s1892_s9 = scalar_lea.vmem %s2018_s0, %s1366_s30  ;;  %s638_s21 = scalar_lea.vmem %s2021_s3, %s2039_s29 }
  0x43   : > { %s1370_s14 = sshll.u32 %s2039_s29, 2  ;;  %663 = sbr.rel (%p1373_p12) target bundleno = 74 (0x4a), region = 82 }
  0x44   : > { %s1908_s17 = scalar_lea.vmem %s2022_s4, %s1370_s14  ;;  %s1913_s7 = scalar_lea.vmem %s2023_s5, %s1370_s14 }
  0x48   : > { %v1661_v0 = vmov 0.0  }
  0x49   : > { %664 = vst [vmem:[#allocation2] sm:$0xff] %v1661_v0  ;;  %665 = vst [vmem:[#allocation2 + $0x8] sm:$0xff] %v1661_v0 }
  0x4a PF: > { %v1505_v1 = vld [vmem:[%s1915_s8 + $0x74] ss:$8 sps:$4 sm:$0xff]   ;;  %v1509_v3 = vld [vmem:[%s1915_s8 + $0x70] ss:$8 sps:$4 sm:$0xff]   ;;  %v1511_v5 = vld [vmem:[%s1915_s8 + $0x64] ss:$8 sps:$4 sm:$0xff]  }
  0x4b   : > { %v1507_v2 = vld [vmem:[%s1915_s8 + $0x174] ss:$8 sps:$4 sm:$0xff]   ;;  %1068 = vmatprep.subr.bf16.mxu0 %v1505_v1  ;;  %v1510_v4 = vld [vmem:[%s1915_s8 + $0x170] ss:$8 sps:$4 sm:$0xff]   ;;  %v1513_v6 = vld [vmem:[%s1915_s8 + $0x164] ss:$8 sps:$4 sm:$0xff]  }
  0x4c   : > { %1109 = vmatprep.subr.bf16.mxu1 %v1507_v2  ;;  %1069 = vmatpush1.bf16.msra.mxu0 %v1509_v3  ;;  %v1515_v7 = vld [vmem:[%s1915_s8 + $0x60] ss:$8 sps:$4 sm:$0xff]   ;;  %v1517_v9 = vld [vmem:[%s1915_s8 + $0x54] ss:$8 sps:$4 sm:$0xff]   ;;  %v1521_v11 = vld [vmem:[%s1915_s8 + $0x50] ss:$8 sps:$4 sm:$0xff]  }
  0x4d   : > { %1110 = vmatpush1.bf16.msra.mxu1 %v1510_v4  ;;  %1070 = vmatprep.subr.bf16.mxu0 %v1511_v5  ;;  %v1516_v8 = vld [vmem:[%s1915_s8 + $0x160] ss:$8 sps:$4 sm:$0xff]   ;;  %v1519_v10 = vld [vmem:[%s1915_s8 + $0x154] ss:$8 sps:$4 sm:$0xff]   ;;  %v1522_v12 = vld [vmem:[%s1915_s8 + $0x150] ss:$8 sps:$4 sm:$0xff]  }
  0x4e   : > { %1111 = vmatprep.subr.bf16.mxu1 %v1513_v6  ;;  %v1523_v13 = vld [vmem:[%s1915_s8 + $0x44] ss:$8 sps:$4 sm:$0xff]   ;;  %v1527_v15 = vld [vmem:[%s1915_s8 + $0x40] ss:$8 sps:$4 sm:$0xff]   ;;  %v1529_v17 = vld [vmem:[%s1915_s8 + $0x34] ss:$8 sps:$4 sm:$0xff]  }
  0x4f   : > { %v1525_v14 = vld [vmem:[%s1915_s8 + $0x144] ss:$8 sps:$4 sm:$0xff]   ;;  %v1528_v16 = vld [vmem:[%s1915_s8 + $0x140] ss:$8 sps:$4 sm:$0xff]   ;;  %v1531_v18 = vld [vmem:[%s1915_s8 + $0x134] ss:$8 sps:$4 sm:$0xff]  }
  0x50   : > { %1071 = vmatpush1.bf16.msra.mxu0 %v1515_v7  ;;  %v1533_v19 = vld [vmem:[%s1915_s8 + $0x30] ss:$8 sps:$4 sm:$0xff]   ;;  %v1535_v21 = vld [vmem:[%s1915_s8 + $0x24] ss:$8 sps:$4 sm:$0xff]   ;;  %v1539_v23 = vld [vmem:[%s1915_s8 + $0x20] ss:$8 sps:$4 sm:$0xff]  }
  0x51   : > { %1112 = vmatpush1.bf16.msra.mxu1 %v1516_v8  ;;  %1072 = vmatprep.subr.bf16.mxu0 %v1517_v9  ;;  %v1534_v20 = vld [vmem:[%s1915_s8 + $0x130] ss:$8 sps:$4 sm:$0xff]   ;;  %v1537_v22 = vld [vmem:[%s1915_s8 + $0x124] ss:$8 sps:$4 sm:$0xff]   ;;  %v1540_v24 = vld [vmem:[%s1915_s8 + $0x120] ss:$8 sps:$4 sm:$0xff]  }
  0x52   : > { %1113 = vmatprep.subr.bf16.mxu1 %v1519_v10  ;;  %v1541_v25 = vld [vmem:[%s1915_s8 + $0x14] ss:$8 sps:$4 sm:$0xff]   ;;  %v1545_v27 = vld [vmem:[%s1915_s8 + $0x10] ss:$8 sps:$4 sm:$0xff]   ;;  %v1547_v29 = vld [vmem:[%s1915_s8 + $0x4] ss:$8 sps:$4 sm:$0xff]  }
  0x53   : > { %v1543_v26 = vld [vmem:[%s1915_s8 + $0x114] ss:$8 sps:$4 sm:$0xff]   ;;  %v1546_v28 = vld [vmem:[%s1915_s8 + $0x110] ss:$8 sps:$4 sm:$0xff]   ;;  %v1549_v30 = vld [vmem:[%s1915_s8 + $0x104] ss:$8 sps:$4 sm:$0xff]  }
  0x54   : > { %1073 = vmatpush1.bf16.msra.mxu0 %v1521_v11  ;;  %v1551_v31 = vld [vmem:[%s1915_s8] ss:$8 sps:$4 sm:$0xff]   ;;  %v1553_v33 = vld [vmem:[%s1915_s8 + $0xf4] ss:$8 sps:$4 sm:$0xff]   ;;  %v1557_v35 = vld [vmem:[%s1915_s8 + $0xf0] ss:$8 sps:$4 sm:$0xff]  }
  0x55   : > { %1114 = vmatpush1.bf16.msra.mxu1 %v1522_v12  ;;  %1074 = vmatprep.subr.bf16.mxu0 %v1523_v13  ;;  %v1552_v32 = vld [vmem:[%s1915_s8 + $0x100] ss:$8 sps:$4 sm:$0xff]   ;;  %v1555_v34 = vld [vmem:[%s1915_s8 + $0x1f4] ss:$8 sps:$4 sm:$0xff]   ;;  %v1558_v36 = vld [vmem:[%s1915_s8 + $0x1f0] ss:$8 sps:$4 sm:$0xff]  }
  0x56   : > { %1115 = vmatprep.subr.bf16.mxu1 %v1525_v14  ;;  %v1559_v37 = vld [vmem:[%s1915_s8 + $0xe4] ss:$8 sps:$4 sm:$0xff]   ;;  %v1563_v39 = vld [vmem:[%s1915_s8 + $0xe0] ss:$8 sps:$4 sm:$0xff]   ;;  %v1565_v41 = vld [vmem:[%s1915_s8 + $0xd4] ss:$8 sps:$4 sm:$0xff]  }
  0x57   : > { %v1561_v38 = vld [vmem:[%s1915_s8 + $0x1e4] ss:$8 sps:$4 sm:$0xff]   ;;  %v1564_v40 = vld [vmem:[%s1915_s8 + $0x1e0] ss:$8 sps:$4 sm:$0xff]   ;;  %v1567_v42 = vld [vmem:[%s1915_s8 + $0x1d4] ss:$8 sps:$4 sm:$0xff]  }
  0x58   : > { %1075 = vmatpush1.bf16.msra.mxu0 %v1527_v15  ;;  %v1569_v43 = vld [vmem:[%s1915_s8 + $0xd0] ss:$8 sps:$4 sm:$0xff]   ;;  %v1571_v45 = vld [vmem:[%s1915_s8 + $0xc4] ss:$8 sps:$4 sm:$0xff]   ;;  %v1575_v50 = vld [vmem:[%s1915_s8 + $0xc0] ss:$8 sps:$4 sm:$0xff]  }
  0x59   : > { %1116 = vmatpush1.bf16.msra.mxu1 %v1528_v16  ;;  %1076 = vmatprep.subr.bf16.mxu0 %v1529_v17  ;;  %v1570_v44 = vld [vmem:[%s1915_s8 + $0x1d0] ss:$8 sps:$4 sm:$0xff]   ;;  %v1573_v46 = vld [vmem:[%s1915_s8 + $0x1c4] ss:$8 sps:$4 sm:$0xff]   ;;  %v1576_v51 = vld [vmem:[%s1915_s8 + $0x1c0] ss:$8 sps:$4 sm:$0xff]  }
  0x5a   : > { %1117 = vmatprep.subr.bf16.mxu1 %v1531_v18  ;;  %v668_v47 = vld [vmem:[%s1892_s9] sm:$0xff]  ;;  %v669_v49 = vld [vmem:[%s1892_s9 + $0x8] sm:$0xff]  ;;  %v1583_v57 = vld [vmem:[%s1915_s8 + $0xa4] ss:$8 sps:$4 sm:$0xff]   ;;  %p1442_p13 = scmp.ne.s32.totalorder %s1643_s20, 8 }
  0x5b   : > { %v1375_v48 = vcombine.high %v668_v47, %v668_v47  ;;  %v1377_v52 = vcombine.high %v669_v49, %v669_v49  ;;  %v1577_v53 = vld [vmem:[%s1915_s8 + $0xb4] ss:$8 sps:$4 sm:$0xff]   ;;  %v1581_v55 = vld [vmem:[%s1915_s8 + $0xb0] ss:$8 sps:$4 sm:$0xff]   ;;  %v1585_v58 = vld [vmem:[%s1915_s8 + $0x1a4] ss:$8 sps:$4 sm:$0xff]   ;;  %v1374_v5 = vcombine.low %v668_v47, %v668_v47  ;;  %v1376_v6 = vcombine.low %v669_v49, %v669_v49 }
  0x5c   : > { %1077 = vmatpush1.bf16.msra.mxu0 %v1533_v19  ;;  %v1579_v54 = vld [vmem:[%s1915_s8 + $0x1b4] ss:$8 sps:$4 sm:$0xff]   ;;  %v1582_v56 = vld [vmem:[%s1915_s8 + $0x1b0] ss:$8 sps:$4 sm:$0xff]   ;;  %v1587_v59 = vld [vmem:[%s1915_s8 + $0xa0] ss:$8 sps:$4 sm:$0xff]  }
  0x5d   : > { %1118 = vmatpush1.bf16.msra.mxu1 %v1534_v20  ;;  %1078 = vmatprep.subr.bf16.mxu0 %v1535_v21  ;;  %v1588_v60 = vld [vmem:[%s1915_s8 + $0x1a0] ss:$8 sps:$4 sm:$0xff]   ;;  %v1589_v61 = vld [vmem:[%s1915_s8 + $0x94] ss:$8 sps:$4 sm:$0xff]   ;;  %v1593_v63 = vld [vmem:[%s1915_s8 + $0x90] ss:$8 sps:$4 sm:$0xff]  }
  0x5e   : > { %1119 = vmatprep.subr.bf16.mxu1 %v1537_v22  ;;  %1100 = vmatprep.mubr.bf16.mxu0 %v1375_v48  ;;  %v1591_v62 = vld [vmem:[%s1915_s8 + $0x194] ss:$8 sps:$4 sm:$0xff]   ;;  %v1594_v0 = vld [vmem:[%s1915_s8 + $0x190] ss:$8 sps:$4 sm:$0xff]   ;;  %v1595_v1 = vld [vmem:[%s1915_s8 + $0x84] ss:$8 sps:$4 sm:$0xff]  }
  0x5f   : > { %1141 = vmatprep.mubr.bf16.mxu1 %v1377_v52  ;;  %v1597_v2 = vld [vmem:[%s1915_s8 + $0x184] ss:$8 sps:$4 sm:$0xff]   ;;  %v1599_v3 = vld [vmem:[%s1915_s8 + $0x80] ss:$8 sps:$4 sm:$0xff]   ;;  %v666_v8 = vld [vmem:[#allocation2] sm:$0xff] }
  0x60   : > { %1079 = vmatpush1.bf16.msra.mxu0 %v1539_v23  ;;  %v1600_v4 = vld [vmem:[%s1915_s8 + $0x180] ss:$8 sps:$4 sm:$0xff]   ;;  %v667_v12 = vld [vmem:[#allocation2 + $0x8] sm:$0xff] }
  0x61   : > { %1120 = vmatpush1.bf16.msra.mxu1 %v1540_v24  ;;  %1080 = vmatprep.subr.bf16.mxu0 %v1541_v25 }
  0x62   : > { %1121 = vmatprep.subr.bf16.mxu1 %v1543_v26 }
  0x64   : > { %1081 = vmatpush1.bf16.msra.mxu0 %v1545_v27 }
  0x65   : > { %1122 = vmatpush1.bf16.msra.mxu1 %v1546_v28  ;;  %1082 = vmatprep.subr.bf16.mxu0 %v1547_v29 }
  0x66   : > { %1123 = vmatprep.subr.bf16.mxu1 %v1549_v30 }
  0x68   : > { %1083 = vmatpush1.bf16.msra.mxu0 %v1551_v31 }
  0x69   : > { %1124 = vmatpush1.bf16.msra.mxu1 %v1552_v32  ;;  %1084 = vmatprep.subr.bf16.mxu0 %v1553_v33 }
  0x6a   : > { %1125 = vmatprep.subr.bf16.mxu1 %v1555_v34 }
  0x6c   : > { %1085 = vmatpush2.bf16.msra.mxu0 %v1557_v35 }
  0x6d   : > { %1126 = vmatpush2.bf16.msra.mxu1 %v1558_v36  ;;  %1086 = vmatprep.subr.bf16.mxu0 %v1559_v37 }
  0x6e   : > { %1127 = vmatprep.subr.bf16.mxu1 %v1561_v38 }
  0x70   : > { %1087 = vmatpush2.bf16.msra.mxu0 %v1563_v39 }
  0x71   : > { %1128 = vmatpush2.bf16.msra.mxu1 %v1564_v40  ;;  %1088 = vmatprep.subr.bf16.mxu0 %v1565_v41 }
  0x72   : > { %1129 = vmatprep.subr.bf16.mxu1 %v1567_v42 }
  0x74   : > { %1089 = vmatpush2.bf16.msra.mxu0 %v1569_v43 }
  0x75   : > { %1130 = vmatpush2.bf16.msra.mxu1 %v1570_v44  ;;  %1090 = vmatprep.subr.bf16.mxu0 %v1571_v45 }
  0x76   : > { %1131 = vmatprep.subr.bf16.mxu1 %v1573_v46 }
  0x78   : > { %1091 = vmatpush2.bf16.msra.mxu0 %v1575_v50 }
  0x79   : > { %1132 = vmatpush2.bf16.msra.mxu1 %v1576_v51  ;;  %1092 = vmatprep.subr.bf16.mxu0 %v1577_v53 }
  0x7a   : > { %1133 = vmatprep.subr.bf16.mxu1 %v1579_v54 }
  0x7c   : > { %1093 = vmatpush2.bf16.msra.mxu0 %v1581_v55 }
  0x7d   : > { %1134 = vmatpush2.bf16.msra.mxu1 %v1582_v56  ;;  %1094 = vmatprep.subr.bf16.mxu0 %v1583_v57 }
  0x7e   : > { %1135 = vmatprep.subr.bf16.mxu1 %v1585_v58 }
  0x80   : > { %1095 = vmatpush2.bf16.msra.mxu0 %v1587_v59 }
  0x81   : > { %1136 = vmatpush2.bf16.msra.mxu1 %v1588_v60  ;;  %1096 = vmatprep.subr.bf16.mxu0 %v1589_v61 }
  0x82   : > { %1137 = vmatprep.subr.bf16.mxu1 %v1591_v62 }
  0x84   : > { %1097 = vmatpush2.bf16.msra.mxu0 %v1593_v63 }
  0x85   : > { %1138 = vmatpush2.bf16.msra.mxu1 %v1594_v0  ;;  %1098 = vmatprep.subr.bf16.mxu0 %v1595_v1 }
  0x86   : > { %1139 = vmatprep.subr.bf16.mxu1 %v1597_v2 }
  0x88   : > { %1099 = vmatpush2.bf16.msra.mxu0 %v1599_v3 }
  0x89   : > { %1140 = vmatpush2.bf16.msra.mxu1 %v1600_v4 }
  0x8b   : > { %1101 = vmatmul.mubr.bf16.vlgmr.msra.gmra.mxu0 %v1374_v5 }
  0x8c   : > { %1142 = vmatmul.mubr.bf16.vlgmr.msra.gmra.mxu1 %v1376_v6 }
 0x14b   : > { %v1102_v7 = vpop.f32.mrf.mxu0 }
 0x14c   : > { %v1143_v9 = vpop.f32.mrf.mxu1 }
 0x14d   : > { %v1144_v10 = vadd.f32 %v1143_v9, %v1102_v7  ;;  %v1104_v11 = vpop.f32.mrf.mxu0 }
 0x14e   : > { %v1145_v13 = vpop.f32.mrf.mxu1 }
 0x14f   : > { %v1150_v14 = vadd.f32 %v1144_v10, %v666_v8  ;;  %v1146_v15 = vadd.f32 %v1145_v13, %v1104_v11  ;;  %v1106_v16 = vpop.f32.mrf.mxu0  ;;  %1157 = sbr.rel (%p1442_p13) target bundleno = 359 (0x167), region = 86 }
 0x150   : > { %v1147_v17 = vpop.f32.mrf.mxu1 }
 0x151   : > { %1152 = vst [vmem:[#allocation2] sm:$0xff] %v1150_v14  ;;  %v1151_v18 = vadd.f32 %v1146_v15, %v667_v12  ;;  %v1107_v19 = vpop.f32.mrf.mxu0 }
 0x152   : > { %v1148_v20 = vpop.f32.mrf.mxu1 }
 0x153   : > { %1153 = vst [vmem:[#allocation2 + $0x8] sm:$0xff] %v1151_v18 }
 0x154   : > { %v1162_v21 = vlaneseq  ;;  %v1160_v23 = vld [vmem:[%s633_s18] sm:$0x3] }
 0x155   : > { %v1174_v24 = vld [vmem:[%s638_s21] sm:$0x3] }
 0x156   : > { %v1163_v22 = vshrl.u32 %v1162_v21, 7  ;;  %v1188_v29 = vld [vmem:[%s1908_s17] sm:$0xff] }
 0x157   : > { %v1189_v36 = vunpack.c.l.bf16 %v1188_v29  ;;  %v1190_v37 = vunpack.c.h.bf16 %v1188_v29 }
 0x158   : > { %v1164_v25 = vsub.s32 0, %v1163_v22  ;;  %v1168_v26 = vsub.s32 1, %v1163_v22  ;;  %v1158_v27 = vld [vmem:[#allocation2] sm:$0xff] }
 0x15a   : > { %v1159_v28 = vld [vmem:[#allocation2 + $0x8] sm:$0xff]  ;;  %v1165_v30 = vrot.slane %v1160_v23, %v1164_v25  ;;  %v1169_v31 = vrot.slane %v1160_v23, %v1168_v26  ;;  %v1179_v32 = vrot.slane %v1174_v24, %v1164_v25  ;;  %v1183_v33 = vrot.slane %v1174_v24, %v1168_v26 }
 0x15c   : > { %v1172_v34 = vmul.f32 %v1165_v30, %v1158_v27  ;;  %v1173_v35 = vmul.f32 %v1169_v31, %v1159_v28 }
 0x15e   : > { %v1186_v38 = vadd.f32 %v1179_v32, %v1172_v34  ;;  %v1187_v39 = vadd.f32 %v1183_v33, %v1173_v35 }
 0x160   : > { %v1191_v40 = vadd.f32 %v1189_v36, %v1186_v38  ;;  %v1192_v41 = vadd.f32 %v1190_v37, %v1187_v39 }
 0x162   : > { %v1193_v42 = vmax.f32 %v1191_v40, 0.0  ;;  %v1194_v43 = vmax.f32 %v1192_v41, 0.0 }
 0x164   : > { %v1447_v44 = vpack.c.bf16 %v1194_v43, %v1193_v42 }
 0x166   : > { %1203 = vst [vmem:[%s1913_s7] sm:$0xff] %v1447_v44 }
 0x167 PF: > { %s15_s24 = sadd.s32 1, %s1659_s24   ;;  %s2024_s18 = smov %s1639_s19 }
 0x168   : > { %p12_p0 = scmp.ge.s32.totalorder %s15_s24, 20   ;;  %s2025_s19 = smov %s1743_s6 }
 0x169   : > { %s2026_s20 = smov %s1651_s22  ;;  %s2027_s21 = smov %s1655_s23 }
 0x16a   : > { %s2028_s22 = smov %s2031_s25  ;;  %s2029_s23 = smov %s2035_s26 }
 0x16b   :  { %14 = sbr.rel (!%p12_p0) target bundleno = 4 (0x4), region = 133 }

// kernel: _lambda_.41
= control target key start
LH: loop header
LB: loop body
LE: loop exit
PB: predicated region body
PF: predicated region fallthrough
CT: control target
= control target key end

     0   :  { %v1956_v2 = vmov 0.0   ;;  %vm34_vm0 = vcmask 64512   ;;  %s2506_s1 = inlined_call_operand.vmem [shape: bf16[8,512], index: 1, kind: input, shape index: {}]   ;;  %s2507_s0 = inlined_call_operand.vmem [shape: f32[8,8], index: 0, kind: input, shape index: {}]   ;;  %s2508_s2 = inlined_call_operand.vmem [shape: bf16[512,512], index: 2, kind: input, shape index: {}]   ;;  %s2509_s5 = inlined_call_operand.vmem [shape: bf16[512,128], index: 5, kind: input, shape index: {}]   ;;  %s2510_s3 = inlined_call_operand.vmem [shape: f32[1,512], index: 3, kind: input, shape index: {}]   ;;  %s2511_s4 = inlined_call_operand.vmem [shape: f32[1,512], index: 4, kind: input, shape index: {}]   ;;  %s2512_s6 = inlined_call_operand.vmem [shape: f32[1,128], index: 6, kind: input, shape index: {}]   ;;  %s2513_s7 = inlined_call_operand.vmem [shape: f32[8,128], index: 7, kind: output, shape index: {}]  }
   0x1   :  { %v28_v0 = vld [vmem:[%s2506_s1] sm:$0xff]  ;;  %v29_v1 = vld [vmem:[%s2506_s1 + $0x8] sm:$0xff]  ;;  %102 = vmatprep.mubr.f32.mxu0 %v1956_v2  ;;  %173 = vmatprep.mubr.f32.mxu1 %v1956_v2 }
   0x2   :  { %v27_v3 = vld [vmem:[%s2507_s0] sm:$0xff]  ;;  %v31_v4 = vunpack.c.h.bf16 %v28_v0  ;;  %v33_v5 = vunpack.c.h.bf16 %v29_v1  ;;  %v30_v6 = vunpack.c.l.bf16 %v28_v0  ;;  %v32_v7 = vunpack.c.l.bf16 %v29_v1 }
   0x3   :  { %v1732_v8 = vld [vmem:[%s2508_s2 + $0xe0] ss:$16 sps:$4 sm:$0xff]   ;;  %v1734_v9 = vld [vmem:[%s2508_s2 + $0xe4] ss:$16 sps:$4 sm:$0xff]  }
   0x4   :  { %68 = vmatprep.subr.mxu0 %v31_v4  ;;  %139 = vmatprep.subr.mxu1 %v33_v5  ;;  %v1735_v10 = vld [vmem:[%s2508_s2 + $0x2e0] ss:$16 sps:$4 sm:$0xff]   ;;  %v1737_v11 = vld [vmem:[%s2508_s2 + $0x2e4] ss:$16 sps:$4 sm:$0xff]  }
   0x5   :  { %69 = vmatpush1.msra.mxu0 %v30_v6  ;;  %140 = vmatpush1.msra.mxu1 %v32_v7  ;;  %v1740_v12 = vld [vmem:[%s2508_s2 + $0xc4] ss:$16 sps:$4 sm:$0xff]   ;;  %v1738_v14 = vld [vmem:[%s2508_s2 + $0xc0] ss:$16 sps:$4 sm:$0xff]  }
   0x6   :  { %1524 = vmatmul.mubr.msk.f32.vlgmr.msra.gmra.mxu0 %vm34_vm0, %v27_v3  ;;  %1525 = vmatmul.mubr.msk.f32.vlgmr.msra.gmra.mxu1 %vm34_vm0, %v27_v3  ;;  %v1743_v13 = vld [vmem:[%s2508_s2 + $0x2c4] ss:$16 sps:$4 sm:$0xff]   ;;  %v1741_v15 = vld [vmem:[%s2508_s2 + $0x2c0] ss:$16 sps:$4 sm:$0xff]  }
   0x7   :  { %952 = vmatprep.subr.bf16.mxu0 %v1734_v9  ;;  %993 = vmatprep.subr.bf16.mxu1 %v1737_v11  ;;  %v1746_v16 = vld [vmem:[%s2508_s2 + $0xa4] ss:$16 sps:$4 sm:$0xff]   ;;  %v1744_v18 = vld [vmem:[%s2508_s2 + $0xa0] ss:$16 sps:$4 sm:$0xff]   ;;  %v1833_v9 = vld [vmem:[%s2508_s2 + $0x2ec] ss:$16 sps:$4 sm:$0xff]  }
   0x8   :  { %953 = vmatpush1.bf16.msra.mxu0 %v1732_v8  ;;  %994 = vmatpush1.bf16.msra.mxu1 %v1735_v10  ;;  %v1749_v17 = vld [vmem:[%s2508_s2 + $0x2a4] ss:$16 sps:$4 sm:$0xff]   ;;  %v1747_v19 = vld [vmem:[%s2508_s2 + $0x2a0] ss:$16 sps:$4 sm:$0xff]   ;;  %v1830_v8 = vld [vmem:[%s2508_s2 + $0xec] ss:$16 sps:$4 sm:$0xff]  }
   0x9   :  { %954 = vmatprep.subr.bf16.mxu0 %v1740_v12  ;;  %995 = vmatprep.subr.bf16.mxu1 %v1743_v13  ;;  %v1752_v20 = vld [vmem:[%s2508_s2 + $0x84] ss:$16 sps:$4 sm:$0xff]   ;;  %v1750_v22 = vld [vmem:[%s2508_s2 + $0x80] ss:$16 sps:$4 sm:$0xff]  }
   0xa   :  { %v1755_v21 = vld [vmem:[%s2508_s2 + $0x284] ss:$16 sps:$4 sm:$0xff]   ;;  %v1753_v23 = vld [vmem:[%s2508_s2 + $0x280] ss:$16 sps:$4 sm:$0xff]  }
   0xb   :  { %v1758_v24 = vld [vmem:[%s2508_s2 + $0x64] ss:$16 sps:$4 sm:$0xff]   ;;  %v1756_v26 = vld [vmem:[%s2508_s2 + $0x60] ss:$16 sps:$4 sm:$0xff]  }
   0xc   :  { %955 = vmatpush1.bf16.msra.mxu0 %v1738_v14  ;;  %996 = vmatpush1.bf16.msra.mxu1 %v1741_v15  ;;  %v1761_v25 = vld [vmem:[%s2508_s2 + $0x264] ss:$16 sps:$4 sm:$0xff]   ;;  %v1759_v27 = vld [vmem:[%s2508_s2 + $0x260] ss:$16 sps:$4 sm:$0xff]  }
   0xd   :  { %956 = vmatprep.subr.bf16.mxu0 %v1746_v16  ;;  %997 = vmatprep.subr.bf16.mxu1 %v1749_v17  ;;  %v1764_v28 = vld [vmem:[%s2508_s2 + $0x44] ss:$16 sps:$4 sm:$0xff]   ;;  %v1762_v30 = vld [vmem:[%s2508_s2 + $0x40] ss:$16 sps:$4 sm:$0xff]   ;;  %v1828_v16 = vld [vmem:[%s2508_s2 + $0xe8] ss:$16 sps:$4 sm:$0xff]  }
   0xe   :  { %v1767_v29 = vld [vmem:[%s2508_s2 + $0x244] ss:$16 sps:$4 sm:$0xff]   ;;  %v1765_v31 = vld [vmem:[%s2508_s2 + $0x240] ss:$16 sps:$4 sm:$0xff]   ;;  %v1831_v17 = vld [vmem:[%s2508_s2 + $0x2e8] ss:$16 sps:$4 sm:$0xff]  }
   0xf   :  { %v1770_v32 = vld [vmem:[%s2508_s2 + $0x24] ss:$16 sps:$4 sm:$0xff]   ;;  %v1768_v34 = vld [vmem:[%s2508_s2 + $0x20] ss:$16 sps:$4 sm:$0xff]  }
  0x10   :  { %957 = vmatpush1.bf16.msra.mxu0 %v1744_v18  ;;  %998 = vmatpush1.bf16.msra.mxu1 %v1747_v19  ;;  %v1773_v33 = vld [vmem:[%s2508_s2 + $0x224] ss:$16 sps:$4 sm:$0xff]   ;;  %v1771_v35 = vld [vmem:[%s2508_s2 + $0x220] ss:$16 sps:$4 sm:$0xff]  }
  0x11   :  { %958 = vmatprep.subr.bf16.mxu0 %v1752_v20  ;;  %999 = vmatprep.subr.bf16.mxu1 %v1755_v21  ;;  %v1776_v36 = vld [vmem:[%s2508_s2 + $0x4] ss:$16 sps:$4 sm:$0xff]   ;;  %v1774_v38 = vld [vmem:[%s2508_s2] ss:$16 sps:$4 sm:$0xff]   ;;  %v1836_v20 = vld [vmem:[%s2508_s2 + $0xcc] ss:$16 sps:$4 sm:$0xff]  }
  0x12   :  { %v1779_v37 = vld [vmem:[%s2508_s2 + $0x204] ss:$16 sps:$4 sm:$0xff]   ;;  %v1777_v39 = vld [vmem:[%s2508_s2 + $0x200] ss:$16 sps:$4 sm:$0xff]   ;;  %v1839_v21 = vld [vmem:[%s2508_s2 + $0x2cc] ss:$16 sps:$4 sm:$0xff]  }
  0x13   :  { %v1782_v40 = vld [vmem:[%s2508_s2 + $0x1e4] ss:$16 sps:$4 sm:$0xff]   ;;  %v1780_v42 = vld [vmem:[%s2508_s2 + $0x1e0] ss:$16 sps:$4 sm:$0xff]  }
  0x14   :  { %959 = vmatpush1.bf16.msra.mxu0 %v1750_v22  ;;  %1000 = vmatpush1.bf16.msra.mxu1 %v1753_v23  ;;  %v1785_v41 = vld [vmem:[%s2508_s2 + $0x3e4] ss:$16 sps:$4 sm:$0xff]   ;;  %v1783_v43 = vld [vmem:[%s2508_s2 + $0x3e0] ss:$16 sps:$4 sm:$0xff]   ;;  %v1834_v22 = vld [vmem:[%s2508_s2 + $0xc8] ss:$16 sps:$4 sm:$0xff]  }
  0x15   :  { %960 = vmatprep.subr.bf16.mxu0 %v1758_v24  ;;  %1001 = vmatprep.subr.bf16.mxu1 %v1761_v25  ;;  %v1788_v44 = vld [vmem:[%s2508_s2 + $0x1c4] ss:$16 sps:$4 sm:$0xff]   ;;  %v1786_v46 = vld [vmem:[%s2508_s2 + $0x1c0] ss:$16 sps:$4 sm:$0xff]   ;;  %v1837_v23 = vld [vmem:[%s2508_s2 + $0x2c8] ss:$16 sps:$4 sm:$0xff]  }
  0x16   :  { %v1791_v45 = vld [vmem:[%s2508_s2 + $0x3c4] ss:$16 sps:$4 sm:$0xff]   ;;  %v1789_v47 = vld [vmem:[%s2508_s2 + $0x3c0] ss:$16 sps:$4 sm:$0xff]   ;;  %v1842_v24 = vld [vmem:[%s2508_s2 + $0xac] ss:$16 sps:$4 sm:$0xff]  }
  0x17   :  { %v1794_v48 = vld [vmem:[%s2508_s2 + $0x1a4] ss:$16 sps:$4 sm:$0xff]   ;;  %v1792_v50 = vld [vmem:[%s2508_s2 + $0x1a0] ss:$16 sps:$4 sm:$0xff]   ;;  %v1845_v25 = vld [vmem:[%s2508_s2 + $0x2ac] ss:$16 sps:$4 sm:$0xff]  }
  0x18   :  { %961 = vmatpush1.bf16.msra.mxu0 %v1756_v26  ;;  %1002 = vmatpush1.bf16.msra.mxu1 %v1759_v27  ;;  %v1797_v49 = vld [vmem:[%s2508_s2 + $0x3a4] ss:$16 sps:$4 sm:$0xff]   ;;  %v1795_v51 = vld [vmem:[%s2508_s2 + $0x3a0] ss:$16 sps:$4 sm:$0xff]   ;;  %v1840_v26 = vld [vmem:[%s2508_s2 + $0xa8] ss:$16 sps:$4 sm:$0xff]  }
  0x19   :  { %962 = vmatprep.subr.bf16.mxu0 %v1764_v28  ;;  %1003 = vmatprep.subr.bf16.mxu1 %v1767_v29  ;;  %v1800_v52 = vld [vmem:[%s2508_s2 + $0x184] ss:$16 sps:$4 sm:$0xff]   ;;  %v1798_v54 = vld [vmem:[%s2508_s2 + $0x180] ss:$16 sps:$4 sm:$0xff]   ;;  %v1843_v27 = vld [vmem:[%s2508_s2 + $0x2a8] ss:$16 sps:$4 sm:$0xff]  }
  0x1a   :  { %v1803_v53 = vld [vmem:[%s2508_s2 + $0x384] ss:$16 sps:$4 sm:$0xff]   ;;  %v1801_v55 = vld [vmem:[%s2508_s2 + $0x380] ss:$16 sps:$4 sm:$0xff]   ;;  %v1848_v28 = vld [vmem:[%s2508_s2 + $0x8c] ss:$16 sps:$4 sm:$0xff]  }
  0x1b   :  { %v1806_v56 = vld [vmem:[%s2508_s2 + $0x164] ss:$16 sps:$4 sm:$0xff]   ;;  %v1804_v58 = vld [vmem:[%s2508_s2 + $0x160] ss:$16 sps:$4 sm:$0xff]   ;;  %v1851_v29 = vld [vmem:[%s2508_s2 + $0x28c] ss:$16 sps:$4 sm:$0xff]  }
  0x1c   :  { %963 = vmatpush1.bf16.msra.mxu0 %v1762_v30  ;;  %1004 = vmatpush1.bf16.msra.mxu1 %v1765_v31  ;;  %v1809_v57 = vld [vmem:[%s2508_s2 + $0x364] ss:$16 sps:$4 sm:$0xff]   ;;  %v1807_v59 = vld [vmem:[%s2508_s2 + $0x360] ss:$16 sps:$4 sm:$0xff]   ;;  %v1846_v30 = vld [vmem:[%s2508_s2 + $0x88] ss:$16 sps:$4 sm:$0xff]  }
  0x1d   :  { %964 = vmatprep.subr.bf16.mxu0 %v1770_v32  ;;  %1005 = vmatprep.subr.bf16.mxu1 %v1773_v33  ;;  %v1812_v60 = vld [vmem:[%s2508_s2 + $0x144] ss:$16 sps:$4 sm:$0xff]   ;;  %v1810_v62 = vld [vmem:[%s2508_s2 + $0x140] ss:$16 sps:$4 sm:$0xff]   ;;  %v1849_v31 = vld [vmem:[%s2508_s2 + $0x288] ss:$16 sps:$4 sm:$0xff]  }
  0x1e   :  { %v1815_v61 = vld [vmem:[%s2508_s2 + $0x344] ss:$16 sps:$4 sm:$0xff]   ;;  %v1813_v63 = vld [vmem:[%s2508_s2 + $0x340] ss:$16 sps:$4 sm:$0xff]   ;;  %v1854_v32 = vld [vmem:[%s2508_s2 + $0x6c] ss:$16 sps:$4 sm:$0xff]  }
  0x1f   :  { %v1818_v0 = vld [vmem:[%s2508_s2 + $0x124] ss:$16 sps:$4 sm:$0xff]   ;;  %v1816_v2 = vld [vmem:[%s2508_s2 + $0x120] ss:$16 sps:$4 sm:$0xff]   ;;  %v1857_v33 = vld [vmem:[%s2508_s2 + $0x26c] ss:$16 sps:$4 sm:$0xff]  }
  0x20   :  { %965 = vmatpush1.bf16.msra.mxu0 %v1768_v34  ;;  %1006 = vmatpush1.bf16.msra.mxu1 %v1771_v35  ;;  %v1821_v1 = vld [vmem:[%s2508_s2 + $0x324] ss:$16 sps:$4 sm:$0xff]   ;;  %v1819_v3 = vld [vmem:[%s2508_s2 + $0x320] ss:$16 sps:$4 sm:$0xff]   ;;  %v1852_v34 = vld [vmem:[%s2508_s2 + $0x68] ss:$16 sps:$4 sm:$0xff]  }
  0x21   :  { %966 = vmatprep.subr.bf16.mxu0 %v1776_v36  ;;  %1007 = vmatprep.subr.bf16.mxu1 %v1779_v37  ;;  %v1824_v4 = vld [vmem:[%s2508_s2 + $0x104] ss:$16 sps:$4 sm:$0xff]   ;;  %v1822_v6 = vld [vmem:[%s2508_s2 + $0x100] ss:$16 sps:$4 sm:$0xff]   ;;  %v1855_v35 = vld [vmem:[%s2508_s2 + $0x268] ss:$16 sps:$4 sm:$0xff]  }
  0x22   :  { %v1827_v5 = vld [vmem:[%s2508_s2 + $0x304] ss:$16 sps:$4 sm:$0xff]   ;;  %v1825_v7 = vld [vmem:[%s2508_s2 + $0x300] ss:$16 sps:$4 sm:$0xff]   ;;  %v1860_v36 = vld [vmem:[%s2508_s2 + $0x4c] ss:$16 sps:$4 sm:$0xff]  }
  0x23   :  { %v1863_v37 = vld [vmem:[%s2508_s2 + $0x24c] ss:$16 sps:$4 sm:$0xff]  }
  0x24   :  { %967 = vmatpush1.bf16.msra.mxu0 %v1774_v38  ;;  %1008 = vmatpush1.bf16.msra.mxu1 %v1777_v39  ;;  %v1858_v38 = vld [vmem:[%s2508_s2 + $0x48] ss:$16 sps:$4 sm:$0xff]  }
  0x25   :  { %968 = vmatprep.subr.bf16.mxu0 %v1782_v40  ;;  %1009 = vmatprep.subr.bf16.mxu1 %v1785_v41  ;;  %v1861_v39 = vld [vmem:[%s2508_s2 + $0x248] ss:$16 sps:$4 sm:$0xff]   ;;  %v1866_v40 = vld [vmem:[%s2508_s2 + $0x2c] ss:$16 sps:$4 sm:$0xff]  }
  0x26   :  { %v1869_v41 = vld [vmem:[%s2508_s2 + $0x22c] ss:$16 sps:$4 sm:$0xff]  }
  0x28   :  { %969 = vmatpush2.bf16.msra.mxu0 %v1780_v42  ;;  %1010 = vmatpush2.bf16.msra.mxu1 %v1783_v43  ;;  %v1864_v42 = vld [vmem:[%s2508_s2 + $0x28] ss:$16 sps:$4 sm:$0xff]  }
  0x29   :  { %970 = vmatprep.subr.bf16.mxu0 %v1788_v44  ;;  %1011 = vmatprep.subr.bf16.mxu1 %v1791_v45  ;;  %v1867_v43 = vld [vmem:[%s2508_s2 + $0x228] ss:$16 sps:$4 sm:$0xff]   ;;  %v1872_v44 = vld [vmem:[%s2508_s2 + $0xc] ss:$16 sps:$4 sm:$0xff]  }
  0x2a   :  { %v1875_v45 = vld [vmem:[%s2508_s2 + $0x20c] ss:$16 sps:$4 sm:$0xff]  }
  0x2c   :  { %971 = vmatpush2.bf16.msra.mxu0 %v1786_v46  ;;  %1012 = vmatpush2.bf16.msra.mxu1 %v1789_v47  ;;  %v1870_v46 = vld [vmem:[%s2508_s2 + $0x8] ss:$16 sps:$4 sm:$0xff]  }
  0x2d   :  { %972 = vmatprep.subr.bf16.mxu0 %v1794_v48  ;;  %1013 = vmatprep.subr.bf16.mxu1 %v1797_v49  ;;  %v1873_v47 = vld [vmem:[%s2508_s2 + $0x208] ss:$16 sps:$4 sm:$0xff]   ;;  %v1878_v48 = vld [vmem:[%s2508_s2 + $0x1ec] ss:$16 sps:$4 sm:$0xff]  }
  0x2e   :  { %v1881_v49 = vld [vmem:[%s2508_s2 + $0x3ec] ss:$16 sps:$4 sm:$0xff]  }
  0x30   :  { %973 = vmatpush2.bf16.msra.mxu0 %v1792_v50  ;;  %1014 = vmatpush2.bf16.msra.mxu1 %v1795_v51  ;;  %v1876_v50 = vld [vmem:[%s2508_s2 + $0x1e8] ss:$16 sps:$4 sm:$0xff]  }
  0x31   :  { %974 = vmatprep.subr.bf16.mxu0 %v1800_v52  ;;  %1015 = vmatprep.subr.bf16.mxu1 %v1803_v53  ;;  %v1879_v51 = vld [vmem:[%s2508_s2 + $0x3e8] ss:$16 sps:$4 sm:$0xff]   ;;  %v1884_v52 = vld [vmem:[%s2508_s2 + $0x1cc] ss:$16 sps:$4 sm:$0xff]  }
  0x32   :  { %v1887_v53 = vld [vmem:[%s2508_s2 + $0x3cc] ss:$16 sps:$4 sm:$0xff]  }
  0x34   :  { %975 = vmatpush2.bf16.msra.mxu0 %v1798_v54  ;;  %1016 = vmatpush2.bf16.msra.mxu1 %v1801_v55  ;;  %v1882_v54 = vld [vmem:[%s2508_s2 + $0x1c8] ss:$16 sps:$4 sm:$0xff]  }
  0x35   :  { %976 = vmatprep.subr.bf16.mxu0 %v1806_v56  ;;  %1017 = vmatprep.subr.bf16.mxu1 %v1809_v57  ;;  %v1885_v55 = vld [vmem:[%s2508_s2 + $0x3c8] ss:$16 sps:$4 sm:$0xff]   ;;  %v1890_v56 = vld [vmem:[%s2508_s2 + $0x1ac] ss:$16 sps:$4 sm:$0xff]  }
  0x36   :  { %v1893_v57 = vld [vmem:[%s2508_s2 + $0x3ac] ss:$16 sps:$4 sm:$0xff]  }
  0x38   :  { %977 = vmatpush2.bf16.msra.mxu0 %v1804_v58  ;;  %1018 = vmatpush2.bf16.msra.mxu1 %v1807_v59  ;;  %v1888_v58 = vld [vmem:[%s2508_s2 + $0x1a8] ss:$16 sps:$4 sm:$0xff]  }
  0x39   :  { %978 = vmatprep.subr.bf16.mxu0 %v1812_v60  ;;  %1019 = vmatprep.subr.bf16.mxu1 %v1815_v61  ;;  %v1891_v59 = vld [vmem:[%s2508_s2 + $0x3a8] ss:$16 sps:$4 sm:$0xff]   ;;  %v1896_v60 = vld [vmem:[%s2508_s2 + $0x18c] ss:$16 sps:$4 sm:$0xff]  }
  0x3a   :  { %v1899_v61 = vld [vmem:[%s2508_s2 + $0x38c] ss:$16 sps:$4 sm:$0xff]  }
  0x3c   :  { %979 = vmatpush2.bf16.msra.mxu0 %v1810_v62  ;;  %1020 = vmatpush2.bf16.msra.mxu1 %v1813_v63  ;;  %v1894_v62 = vld [vmem:[%s2508_s2 + $0x188] ss:$16 sps:$4 sm:$0xff]  }
  0x3d   :  { %980 = vmatprep.subr.bf16.mxu0 %v1818_v0  ;;  %1021 = vmatprep.subr.bf16.mxu1 %v1821_v1  ;;  %v1897_v63 = vld [vmem:[%s2508_s2 + $0x388] ss:$16 sps:$4 sm:$0xff]   ;;  %v1902_v0 = vld [vmem:[%s2508_s2 + $0x16c] ss:$16 sps:$4 sm:$0xff]  }
  0x3e   :  { %v1905_v1 = vld [vmem:[%s2508_s2 + $0x36c] ss:$16 sps:$4 sm:$0xff]  }
  0x40   :  { %981 = vmatpush2.bf16.msra.mxu0 %v1816_v2  ;;  %1022 = vmatpush2.bf16.msra.mxu1 %v1819_v3  ;;  %v1900_v2 = vld [vmem:[%s2508_s2 + $0x168] ss:$16 sps:$4 sm:$0xff]  }
  0x41   :  { %982 = vmatprep.subr.bf16.mxu0 %v1824_v4  ;;  %1023 = vmatprep.subr.bf16.mxu1 %v1827_v5  ;;  %v1903_v3 = vld [vmem:[%s2508_s2 + $0x368] ss:$16 sps:$4 sm:$0xff]   ;;  %v1908_v4 = vld [vmem:[%s2508_s2 + $0x14c] ss:$16 sps:$4 sm:$0xff]  }
  0x42   :  { %v1911_v5 = vld [vmem:[%s2508_s2 + $0x34c] ss:$16 sps:$4 sm:$0xff]  }
  0x44   :  { %983 = vmatpush2.bf16.msra.mxu0 %v1822_v6  ;;  %1024 = vmatpush2.bf16.msra.mxu1 %v1825_v7  ;;  %v1906_v6 = vld [vmem:[%s2508_s2 + $0x148] ss:$16 sps:$4 sm:$0xff]  }
  0x45   :  { %1034 = vmatprep.subr.bf16.mxu0 %v1830_v8  ;;  %1075 = vmatprep.subr.bf16.mxu1 %v1833_v9  ;;  %v1909_v7 = vld [vmem:[%s2508_s2 + $0x348] ss:$16 sps:$4 sm:$0xff]   ;;  %v1914_v8 = vld [vmem:[%s2508_s2 + $0x12c] ss:$16 sps:$4 sm:$0xff]  }
  0x46   :  { %v1917_v9 = vld [vmem:[%s2508_s2 + $0x32c] ss:$16 sps:$4 sm:$0xff]  }
  0xc6   :  { %v104_v10 = vpop.f32.mrf.mxu0  ;;  %v175_v11 = vpop.f32.mrf.mxu1 }
  0xc7   :  { %v2210_v18 = vpack.c.bf16 %v104_v10, %v104_v10  ;;  %v2212_v19 = vpack.c.bf16 %v175_v11, %v175_v11  ;;  %v1912_v10 = vld [vmem:[%s2508_s2 + $0x128] ss:$16 sps:$4 sm:$0xff]  }
  0xc8   :  { %v106_v12 = vpop.f32.mrf.mxu0  ;;  %v177_v13 = vpop.f32.mrf.mxu1  ;;  %v1915_v11 = vld [vmem:[%s2508_s2 + $0x328] ss:$16 sps:$4 sm:$0xff]  }
  0xc9   :  { %v181_v14 = vpack.c.bf16 %v106_v12, %v106_v12  ;;  %v183_v15 = vpack.c.bf16 %v177_v13, %v177_v13  ;;  %v1920_v12 = vld [vmem:[%s2508_s2 + $0x10c] ss:$16 sps:$4 sm:$0xff]  }
  0xca   :  { %v1923_v13 = vld [vmem:[%s2508_s2 + $0x30c] ss:$16 sps:$4 sm:$0xff]  }
  0xcb   :  { %984 = vmatprep.mubr.bf16.mxu0 %v181_v14  ;;  %1025 = vmatprep.mubr.bf16.mxu1 %v183_v15 }
  0xcc   :  { %985 = vmatmul.mubr.bf16.vlgmr.msra.gmra.mxu0 %v2210_v18  ;;  %1026 = vmatmul.mubr.bf16.vlgmr.msra.gmra.mxu1 %v2212_v19 }
  0xcd   :  { %1035 = vmatpush1.bf16.msra.mxu0 %v1828_v16  ;;  %1076 = vmatpush1.bf16.msra.mxu1 %v1831_v17  ;;  %v1924_v16 = vld [vmem:[%s2509_s5 + $0x78] sm:$0xff]  }
  0xce   :  { %1066 = vmatprep.mubr.bf16.mxu0 %v181_v14  ;;  %1107 = vmatprep.mubr.bf16.mxu1 %v183_v15  ;;  %v1918_v14 = vld [vmem:[%s2508_s2 + $0x108] ss:$16 sps:$4 sm:$0xff]  }
  0xcf   :  { %1036 = vmatprep.subr.bf16.mxu0 %v1836_v20  ;;  %1077 = vmatprep.subr.bf16.mxu1 %v1839_v21  ;;  %v1921_v15 = vld [vmem:[%s2508_s2 + $0x308] ss:$16 sps:$4 sm:$0xff]   ;;  %v1926_v20 = vld [vmem:[%s2509_s5 + $0x70] sm:$0xff]  }
  0xd0   :  { %v1925_v17 = vld [vmem:[%s2509_s5 + $0x38] sm:$0xff]   ;;  %v1927_v21 = vld [vmem:[%s2509_s5 + $0x30] sm:$0xff]  }
  0xd1   :  { %1037 = vmatpush1.bf16.msra.mxu0 %v1834_v22  ;;  %1078 = vmatpush1.bf16.msra.mxu1 %v1837_v23  ;;  %v1928_v22 = vld [vmem:[%s2509_s5 + $0x68] sm:$0xff]  }
  0xd2   :  { %1038 = vmatprep.subr.bf16.mxu0 %v1842_v24  ;;  %1079 = vmatprep.subr.bf16.mxu1 %v1845_v25  ;;  %v1929_v23 = vld [vmem:[%s2509_s5 + $0x28] sm:$0xff]   ;;  %v1932_v24 = vld [vmem:[%s2509_s5 + $0x58] sm:$0xff]  }
  0xd3   :  { %v1933_v25 = vld [vmem:[%s2509_s5 + $0x18] sm:$0xff]  }
  0xd5   :  { %1039 = vmatpush1.bf16.msra.mxu0 %v1840_v26  ;;  %1080 = vmatpush1.bf16.msra.mxu1 %v1843_v27  ;;  %v1934_v26 = vld [vmem:[%s2509_s5 + $0x50] sm:$0xff]   ;;  %v1940_v27 = vld [vmem:[%s2509_s5 + $0xf8] sm:$0xff]  }
  0xd6   :  { %1040 = vmatprep.subr.bf16.mxu0 %v1848_v28  ;;  %1081 = vmatprep.subr.bf16.mxu1 %v1851_v29  ;;  %v1941_v28 = vld [vmem:[%s2509_s5 + $0xb8] sm:$0xff]   ;;  %v1942_v29 = vld [vmem:[%s2509_s5 + $0xf0] sm:$0xff]  }
  0xd9   :  { %1041 = vmatpush1.bf16.msra.mxu0 %v1846_v30  ;;  %1082 = vmatpush1.bf16.msra.mxu1 %v1849_v31  ;;  %v1935_v30 = vld [vmem:[%s2509_s5 + $0x10] sm:$0xff]  }
  0xda   :  { %1042 = vmatprep.subr.bf16.mxu0 %v1854_v32  ;;  %1083 = vmatprep.subr.bf16.mxu1 %v1857_v33  ;;  %v1943_v31 = vld [vmem:[%s2509_s5 + $0xb0] sm:$0xff]   ;;  %v1936_v32 = vld [vmem:[%s2509_s5 + $0x48] sm:$0xff]  }
  0xdb   :  { %v1944_v33 = vld [vmem:[%s2509_s5 + $0xe8] sm:$0xff]  }
  0xdd   :  { %1043 = vmatpush1.bf16.msra.mxu0 %v1852_v34  ;;  %1084 = vmatpush1.bf16.msra.mxu1 %v1855_v35  ;;  %v1937_v34 = vld [vmem:[%s2509_s5 + $0x8] sm:$0xff]  }
  0xde   :  { %1044 = vmatprep.subr.bf16.mxu0 %v1860_v36  ;;  %1085 = vmatprep.subr.bf16.mxu1 %v1863_v37  ;;  %v1945_v35 = vld [vmem:[%s2509_s5 + $0xa8] sm:$0xff]   ;;  %v1938_v36 = vld [vmem:[%s2509_s5 + $0x40] sm:$0xff]  }
  0xdf   :  { %v1946_v37 = vld [vmem:[%s2509_s5 + $0xe0] sm:$0xff]  }
  0xe1   :  { %1045 = vmatpush1.bf16.msra.mxu0 %v1858_v38  ;;  %1086 = vmatpush1.bf16.msra.mxu1 %v1861_v39  ;;  %v1939_v38 = vld [vmem:[%s2509_s5] sm:$0xff]  }
  0xe2   :  { %1046 = vmatprep.subr.bf16.mxu0 %v1866_v40  ;;  %1087 = vmatprep.subr.bf16.mxu1 %v1869_v41  ;;  %v1947_v39 = vld [vmem:[%s2509_s5 + $0xa0] sm:$0xff]   ;;  %v1948_v40 = vld [vmem:[%s2509_s5 + $0xd8] sm:$0xff]  }
  0xe3   :  { %v1949_v41 = vld [vmem:[%s2509_s5 + $0x98] sm:$0xff]  }
  0xe5   :  { %1047 = vmatpush1.bf16.msra.mxu0 %v1864_v42  ;;  %1088 = vmatpush1.bf16.msra.mxu1 %v1867_v43  ;;  %v1950_v42 = vld [vmem:[%s2509_s5 + $0xd0] sm:$0xff]  }
  0xe6   :  { %1048 = vmatprep.subr.bf16.mxu0 %v1872_v44  ;;  %1089 = vmatprep.subr.bf16.mxu1 %v1875_v45  ;;  %v1951_v43 = vld [vmem:[%s2509_s5 + $0x90] sm:$0xff]   ;;  %v1952_v44 = vld [vmem:[%s2509_s5 + $0xc8] sm:$0xff]  }
  0xe7   :  { %v1953_v45 = vld [vmem:[%s2509_s5 + $0x88] sm:$0xff]  }
  0xe9   :  { %1049 = vmatpush1.bf16.msra.mxu0 %v1870_v46  ;;  %1090 = vmatpush1.bf16.msra.mxu1 %v1873_v47  ;;  %v1954_v46 = vld [vmem:[%s2509_s5 + $0xc0] sm:$0xff]  }
  0xea   :  { %1050 = vmatprep.subr.bf16.mxu0 %v1878_v48  ;;  %1091 = vmatprep.subr.bf16.mxu1 %v1881_v49  ;;  %v1955_v47 = vld [vmem:[%s2509_s5 + $0x80] sm:$0xff]   ;;  %v1118_v48 = vlaneseq }
  0xec   :  { %v1119_v49 = vshrl.u32 %v1118_v48, 7 }
  0xed   :  { %1051 = vmatpush2.bf16.msra.mxu0 %v1876_v50  ;;  %1092 = vmatpush2.bf16.msra.mxu1 %v1879_v51  ;;  %v1116_v51 = vld [vmem:[%s2510_s3] sm:$0xf] }
  0xee   :  { %1052 = vmatprep.subr.bf16.mxu0 %v1884_v52  ;;  %1093 = vmatprep.subr.bf16.mxu1 %v1887_v53  ;;  %v1120_v50 = vsub.s32 0, %v1119_v49  ;;  %v1124_v52 = vsub.s32 1, %v1119_v49  ;;  %v1142_v53 = vld [vmem:[%s2511_s4] sm:$0xf] }
  0xf1   :  { %1053 = vmatpush2.bf16.msra.mxu0 %v1882_v54  ;;  %1094 = vmatpush2.bf16.msra.mxu1 %v1885_v55  ;;  %v1121_v54 = vrot.slane %v1116_v51, %v1120_v50 }
  0xf2   :  { %1054 = vmatprep.subr.bf16.mxu0 %v1890_v56  ;;  %1095 = vmatprep.subr.bf16.mxu1 %v1893_v57 }
  0xf5   :  { %1055 = vmatpush2.bf16.msra.mxu0 %v1888_v58  ;;  %1096 = vmatpush2.bf16.msra.mxu1 %v1891_v59  ;;  %v1147_v58 = vrot.slane %v1142_v53, %v1120_v50  ;;  %v1125_v59 = vrot.slane %v1116_v51, %v1124_v52 }
  0xf6   :  { %1056 = vmatprep.subr.bf16.mxu0 %v1896_v60  ;;  %1097 = vmatprep.subr.bf16.mxu1 %v1899_v61 }
  0xf9   :  { %1057 = vmatpush2.bf16.msra.mxu0 %v1894_v62  ;;  %1098 = vmatpush2.bf16.msra.mxu1 %v1897_v63 }
  0xfa   :  { %1058 = vmatprep.subr.bf16.mxu0 %v1902_v0  ;;  %1099 = vmatprep.subr.bf16.mxu1 %v1905_v1  ;;  %v1151_v0 = vrot.slane %v1142_v53, %v1124_v52 }
  0xfd   :  { %1059 = vmatpush2.bf16.msra.mxu0 %v1900_v2  ;;  %1100 = vmatpush2.bf16.msra.mxu1 %v1903_v3 }
  0xfe   :  { %1060 = vmatprep.subr.bf16.mxu0 %v1908_v4  ;;  %1101 = vmatprep.subr.bf16.mxu1 %v1911_v5 }
 0x101   :  { %1061 = vmatpush2.bf16.msra.mxu0 %v1906_v6  ;;  %1102 = vmatpush2.bf16.msra.mxu1 %v1909_v7 }
 0x102   :  { %1062 = vmatprep.subr.bf16.mxu0 %v1914_v8  ;;  %1103 = vmatprep.subr.bf16.mxu1 %v1917_v9 }
 0x105   :  { %1063 = vmatpush2.bf16.msra.mxu0 %v1912_v10  ;;  %1104 = vmatpush2.bf16.msra.mxu1 %v1915_v11 }
 0x106   :  { %1064 = vmatprep.subr.bf16.mxu0 %v1920_v12  ;;  %1105 = vmatprep.subr.bf16.mxu1 %v1923_v13  ;;  %v1128_v12 = vsub.s32 2, %v1119_v49  ;;  %v1132_v13 = vsub.s32 3, %v1119_v49 }
 0x109   :  { %1065 = vmatpush2.bf16.msra.mxu0 %v1918_v14  ;;  %1106 = vmatpush2.bf16.msra.mxu1 %v1921_v15  ;;  %v1129_v14 = vrot.slane %v1116_v51, %v1128_v12 }
 0x10a   :  { %1687 = vmatprep.subr.bf16.mxu0 %v1924_v16  ;;  %1709 = vmatprep.subr.bf16.mxu1 %v1940_v27 }
 0x10c   :  { %1067 = vmatmul.mubr.bf16.vlgmr.msra.gmra.mxu0 %v2210_v18  ;;  %1108 = vmatmul.mubr.bf16.vlgmr.msra.gmra.mxu1 %v2212_v19  ;;  %v1930_v18 = vld [vmem:[%s2509_s5 + $0x60] sm:$0xff]  }
 0x10d   :  { %1688 = vmatpush3.bf16.msra.mxu0 %v1925_v17  ;;  %v1931_v19 = vld [vmem:[%s2509_s5 + $0x20] sm:$0xff]   ;;  %1710 = vmatpush3.bf16.msra.mxu1 %v1941_v28 }
 0x10e   :  { %1689 = vmatprep.subr.bf16.mxu0 %v1926_v20  ;;  %1711 = vmatprep.subr.bf16.mxu1 %v1942_v29  ;;  %v1155_v20 = vrot.slane %v1142_v53, %v1128_v12 }
 0x111   :  { %1690 = vmatpush3.bf16.msra.mxu0 %v1927_v21  ;;  %1712 = vmatpush3.bf16.msra.mxu1 %v1943_v31  ;;  %v1133_v21 = vrot.slane %v1116_v51, %v1132_v13 }
 0x112   :  { %1691 = vmatprep.subr.bf16.mxu0 %v1928_v22  ;;  %1713 = vmatprep.subr.bf16.mxu1 %v1944_v33 }
 0x115   :  { %1692 = vmatpush3.bf16.msra.mxu0 %v1929_v23  ;;  %1714 = vmatpush3.bf16.msra.mxu1 %v1945_v35 }
 0x116   :  { %1693 = vmatprep.subr.bf16.mxu0 %v1930_v18  ;;  %1715 = vmatprep.subr.bf16.mxu1 %v1946_v37 }
 0x119   :  { %1694 = vmatpush3.bf16.msra.mxu0 %v1931_v19  ;;  %1716 = vmatpush3.bf16.msra.mxu1 %v1947_v39 }
 0x11a   :  { %1695 = vmatprep.subr.bf16.mxu0 %v1932_v24  ;;  %1717 = vmatprep.subr.bf16.mxu1 %v1948_v40  ;;  %v1159_v24 = vrot.slane %v1142_v53, %v1132_v13 }
 0x11d   :  { %1696 = vmatpush3.bf16.msra.mxu0 %v1933_v25  ;;  %1718 = vmatpush3.bf16.msra.mxu1 %v1949_v41  ;;  %v1654_v41 = vld [vmem:[%s2512_s6] ss:$0 sm:$0xff] }
 0x11e   :  { %1697 = vmatprep.subr.bf16.mxu0 %v1934_v26  ;;  %1719 = vmatprep.subr.bf16.mxu1 %v1950_v42 }
 0x121   :  { %1698 = vmatpush3.bf16.msra.mxu0 %v1935_v30  ;;  %1720 = vmatpush3.bf16.msra.mxu1 %v1951_v43 }
 0x122   :  { %1699 = vmatprep.subr.bf16.mxu0 %v1936_v32  ;;  %1721 = vmatprep.subr.bf16.mxu1 %v1952_v44 }
 0x125   :  { %1700 = vmatpush3.bf16.msra.mxu0 %v1937_v34  ;;  %1722 = vmatpush3.bf16.msra.mxu1 %v1953_v45 }
 0x126   :  { %1701 = vmatprep.subr.bf16.mxu0 %v1938_v36  ;;  %1723 = vmatprep.subr.bf16.mxu1 %v1954_v46 }
 0x129   :  { %1702 = vmatpush3.bf16.msra.mxu0 %v1939_v38  ;;  %1724 = vmatpush3.bf16.msra.mxu1 %v1955_v47 }
 0x18c   :  { %v986_v55 = vpop.f32.mrf.mxu0  ;;  %v1027_v56 = vpop.f32.mrf.mxu1 }
 0x18d   :  { %v1028_v57 = vadd.f32 %v1027_v56, %v986_v55 }
 0x18e   :  { %v988_v60 = vpop.f32.mrf.mxu0  ;;  %v1029_v61 = vpop.f32.mrf.mxu1 }
 0x18f   :  { %v1138_v62 = vmul.f32 %v1121_v54, %v1028_v57  ;;  %v1030_v63 = vadd.f32 %v1029_v61, %v988_v60 }
 0x190   :  { %v990_v1 = vpop.f32.mrf.mxu0  ;;  %v1031_v2 = vpop.f32.mrf.mxu1 }
 0x191   :  { %v1164_v3 = vadd.f32 %v1147_v58, %v1138_v62  ;;  %v1139_v4 = vmul.f32 %v1125_v59, %v1030_v63 }
 0x192   :  { %v991_v5 = vpop.f32.mrf.mxu0  ;;  %v1032_v6 = vpop.f32.mrf.mxu1 }
 0x193   :  { %v1165_v7 = vadd.f32 %v1151_v0, %v1139_v4  ;;  %v1168_v8 = vmax.f32 %v1164_v3, 0.0 }
 0x195   :  { %v1169_v9 = vmax.f32 %v1165_v7, 0.0  ;;  %v1172_v11 = vpack.c.bf16 %v1168_v8, %v1168_v8 }
 0x197   :  { %v1173_v10 = vpack.c.bf16 %v1169_v9, %v1169_v9 }
 0x199   :  { %1471 = vmatprep.mubr.bf16.mxu0 %v1173_v10 }
 0x19a   :  { %1472 = vmatmul.mubr.bf16.vlgmr.msra.gmra.mxu0 %v1172_v11 }
 0x1cc   :  { %v1068_v15 = vpop.f32.mrf.mxu0  ;;  %v1109_v16 = vpop.f32.mrf.mxu1 }
 0x1cd   :  { %v1110_v17 = vadd.f32 %v1109_v16, %v1068_v15 }
 0x1ce   :  { %v1070_v22 = vpop.f32.mrf.mxu0  ;;  %v1111_v23 = vpop.f32.mrf.mxu1 }
 0x1cf   :  { %v1140_v18 = vmul.f32 %v1129_v14, %v1110_v17  ;;  %v1112_v19 = vadd.f32 %v1111_v23, %v1070_v22 }
 0x1d0   :  { %v1072_v25 = vpop.f32.mrf.mxu0  ;;  %v1113_v26 = vpop.f32.mrf.mxu1 }
 0x1d1   :  { %v1166_v27 = vadd.f32 %v1155_v20, %v1140_v18  ;;  %v1141_v28 = vmul.f32 %v1133_v21, %v1112_v19 }
 0x1d2   :  { %v1073_v29 = vpop.f32.mrf.mxu0  ;;  %v1114_v30 = vpop.f32.mrf.mxu1 }
 0x1d3   :  { %v1167_v31 = vadd.f32 %v1159_v24, %v1141_v28  ;;  %v1170_v32 = vmax.f32 %v1166_v27, 0.0 }
 0x1d5   :  { %v1171_v33 = vmax.f32 %v1167_v31, 0.0  ;;  %v1174_v35 = vpack.c.bf16 %v1170_v32, %v1170_v32 }
 0x1d7   :  { %v1175_v34 = vpack.c.bf16 %v1171_v33, %v1171_v33 }
 0x1d9   :  { %1511 = vmatprep.mubr.bf16.mxu1 %v1175_v34 }
 0x1da   :  { %1512 = vmatmul.mubr.bf16.vlgmr.msra.gmra.mxu1 %v1174_v35 }
 0x25a   :  { %v1703_v36 = vpop.f32.mrf.mxu0 }
 0x25c   :  { %v1704_v37 = vpop.f32.mrf.mxu0 }
 0x25d   :  { %v1705_v40 = vadd.f32 %v1704_v37, %v1703_v36 }
 0x25e   :  { %v1706_v38 = vpop.f32.mrf.mxu0 }
 0x25f   :  { %v1474_v44 = vadd.f32 %v1705_v40, %v1654_v41 }
 0x260   :  { %v1707_v39 = vpop.f32.mrf.mxu0 }
 0x29a   :  { %v1725_v42 = vpop.f32.mrf.mxu1 }
 0x29c   :  { %v1726_v43 = vpop.f32.mrf.mxu1 }
 0x29d   :  { %v1727_v45 = vadd.f32 %v1726_v43, %v1725_v42 }
 0x29e   :  { %v1728_v46 = vpop.f32.mrf.mxu1 }
 0x29f   :  { %v1514_v47 = vadd.f32 %v1727_v45, %v1474_v44 }
 0x2a0   :  { %v1729_v48 = vpop.f32.mrf.mxu1 }
 0x2a1   :  { %1519 = vst [vmem:[%s2513_s7] sm:$0xff] %v1514_v47 }

</bundles_post_ra>
